<compile_context>
chip_gen: v7x
topology: tpu7x:2x2x1
jax: 0.10.0
libtpu: 0.0.40
codegen_flags: <defaults>
</compile_context>

<pallas_src>
import functools

import jax
import jax.numpy as jnp
from jax.experimental import pallas as pl
from jax.experimental.pallas import tpu as pltpu

LANES = 128  # TPU lane width; channel axes are padded to this.


# ----------------------------------------------------------------------------
# Activation (matches the reference ConvBlock: unknown names fall back to ReLU).
# NOTE (padded-lane hygiene): every supported activation maps 0 -> 0, and padded
# channels have scale=shift=0, so the zero-padded lanes stay exactly zero through
# the whole network (convs, pooling and the classifier then ignore them).
# ----------------------------------------------------------------------------
def _activation(y, name):
    if name == "leaky_relu":
        return jnp.where(y > 0, y, 0.1 * y)
    if name == "elu":
        return jnp.where(y > 0, y, jnp.exp(y) - 1.0)
    if name == "selu":
        alpha, scale = 1.6732632423543772, 1.0507009873554805
        return scale * jnp.where(y > 0, y, alpha * (jnp.exp(y) - 1.0))
    return jnp.maximum(y, 0.0)   # 'relu' and the reference's else-branch fallback


# ----------------------------------------------------------------------------
# Fused Pallas kernel: one grid step == BB batch samples, full network.
# ----------------------------------------------------------------------------
def _fused_cnn_kernel(*refs, cfg):
    H, W = cfg["H"], cfg["W"]
    RC = cfg["rows_per_chunk"]            # H-rows per chunk (divides H)
    MC = RC * W                           # matmul M per chunk (<= 64 target)
    BB = cfg["batch_block"]
    row_lo, col_lo = cfg["row_lo"], cfg["col_lo"]
    ks = cfg["kernel_sizes"]
    acts = cfg["activations"]
    k0_chunks = cfg["k0_chunks"]
    nl = len(ks)
    n_chunks = H // RC

    it = iter(refs)
    x0_ref = next(it)                                   # (BB, H*W, k0_chunks*128) bf16 im2col
    layer_refs = [(next(it), next(it), next(it)) for _ in range(nl)]
    fc_w_ref = next(it)                                 # (128, 128) bf16
    fc_b_ref = next(it)                                 # (1, 128) f32
    out_ref = next(it)                                  # (BB, 128) f32
    buf_ref = next(it) if nl > 1 else None              # (2*BB, Hp, Wp, 128) bf16 ping-pong

    # Zero only the pad FRAME around the interior (the interior is fully rewritten
    # by every layer).  Done every grid step so it is correct even when the grid is
    # split across TensorCores (scratch is per-core and uninitialized).
    if nl > 1 and row_lo > 0:
        nb, Hp, Wp, _ = buf_ref.shape
        z = jnp.bfloat16(0)
        buf_ref[:, 0:row_lo, :, :] = jnp.full((nb, row_lo, Wp, LANES), z)
        buf_ref[:, row_lo + H:Hp, :, :] = jnp.full((nb, Hp - row_lo - H, Wp, LANES), z)
        buf_ref[:, row_lo:row_lo + H, 0:col_lo, :] = jnp.full((nb, H, col_lo, LANES), z)
        buf_ref[:, row_lo:row_lo + H, col_lo + W:Wp, :] = (
            jnp.full((nb, H, Wp - col_lo - W, LANES), z))

    pool_sum = [None] * BB                # per-sample running (1,128) f32 pooling sums

    for i in range(nl):
        w_ref, sc_ref, sh_ref = layer_refs[i]
        sc = sc_ref[...]                  # (1,128) f32, hoisted out of the chunk loops
        sh = sh_ref[...]
        k = ks[i]
        pad = k // 2
        rd = ((i - 1) % 2) * BB           # ping-pong read slot (layers >= 1)
        wr = (i % 2) * BB                 # ping-pong write slot
        last = (i == nl - 1)

        for b in range(BB):
            for c in range(n_chunks):
                r0 = c * RC
                if i == 0:
                    # Layer 0: wrapper-side im2col -> dense K-deep contraction(s).
                    acc = jnp.zeros((MC, LANES), jnp.float32)
                    m0 = r0 * W
                    for kc in range(k0_chunks):
                        patch = x0_ref[b, m0:m0 + MC, kc * LANES:(kc + 1) * LANES]
                        acc = acc + jnp.dot(patch, w_ref[kc],
                                            preferred_element_type=jnp.float32)
                else:
                    # k column(dx)-shifted bf16 slabs, hoisted out of the dy loop;
                    # each covers the RC + k - 1 input rows this chunk touches.
                    rb = row_lo + r0 - pad
                    slabs = [
                        buf_ref[rd + b, rb:rb + RC + k - 1,
                                col_lo - pad + dx:col_lo - pad + dx + W, :]
                        for dx in range(k)
                    ]
                    acc = jnp.zeros((MC, LANES), jnp.float32)
                    for dy in range(k):
                        for dx in range(k):
                            patch = slabs[dx][dy:dy + RC].reshape(MC, LANES)
                            acc = acc + jnp.dot(patch, w_ref[dy * k + dx],
                                                preferred_element_type=jnp.float32)

                y = _activation(acc * sc + sh, acts[i])   # folded conv-bias + BN, f32
                # dropout_rate == 0.0 -> no-op.

                if last:
                    part = jnp.sum(y, axis=0, keepdims=True)            # (1,128) f32
                    pool_sum[b] = part if pool_sum[b] is None else pool_sum[b] + part
                else:
                    buf_ref[wr + b, row_lo + r0:row_lo + r0 + RC,
                            col_lo:col_lo + W, :] = (
                        y.reshape(RC, W, LANES).astype(jnp.bfloat16))

    # AdaptiveAvgPool2d((1,1)) + flatten + Linear, fused epilogue.
    pooled = jnp.concatenate(pool_sum, axis=0) * (1.0 / (H * W))        # (BB,128) f32
    logits = jnp.dot(pooled.astype(jnp.bfloat16), fc_w_ref[...],
                     preferred_element_type=jnp.float32) + fc_b_ref[...]
    out_ref[...] = logits.astype(out_ref.dtype)


# ----------------------------------------------------------------------------
# Wrapper: parameter packing (PyTorch layout -> lane-padded matmul form) + pallas_call
# ----------------------------------------------------------------------------
def _pad_axis(a, axis, target):
    pad = [(0, 0)] * a.ndim
    pad[axis] = (0, target - a.shape[axis])
    return jnp.pad(a, pad)


def _fold_bn(conv_b, bn, use_bn, eps=1e-5):
    if use_bn:
        scale = bn["gamma"] / jnp.sqrt(bn["var"] + eps)
        shift = (conv_b - bn["mean"]) * scale + bn["beta"]
    else:
        scale = jnp.ones_like(conv_b)
        shift = conv_b
    return scale, shift


def _pick_batch_block(n):
    """Batch samples per grid step; keeps the output block (8,128)-legal."""
    if n <= 32:
        return n                      # block equals full array -> always legal
    for d in range(32, 7, -1):
        if n % d == 0 and d % 8 == 0:
            return d
    return n


def conv_model_forward(x_nchw, params, arch):
    num_layers = arch["num_layers"]
    ks = [int(arch["kernel_sizes"][i]) for i in range(num_layers)]
    acts = [str(arch["activations"][i]) for i in range(num_layers)]
    filters = [int(arch["filters"][i]) for i in range(num_layers)]
    use_bn = arch.get("use_batch_norm", False)
    skips = arch.get("use_skip_connections", [False] * num_layers)
    if not isinstance(skips, list):
        skips = [skips] * num_layers
    num_classes = int(arch["num_classes"])

    N, Cin, H, W = x_nchw.shape
    assert all(f <= LANES for f in filters), "filters > 128 not supported"
    assert num_classes <= LANES

    BB = _pick_batch_block(N)
    assert N % BB == 0

    # Rows per chunk: keep the per-chunk (M,128) f32 accumulator at <= 64 rows
    # (8 vregs) so accumulator + dot result + shifted slabs never spill.
    RC = 1
    for d in range(1, H + 1):
        if H % d == 0 and d * W <= 64:
            RC = d

    # Buffer padding only has to cover layers >= 1 (layer 0 is im2col'd).
    pmax = max((k // 2 for k in ks[1:]), default=0)
    row_lo, col_lo = pmax, pmax
    Hp, Wp = H + 2 * pmax, W + 2 * pmax

    # ---- Layer 0: im2col in XLA (tap-major, cin-minor), pad K to a lane multiple,
    # ship bf16.  Single 128-deep MXU contraction per chunk for k0*k0*Cin <= 128.
    k0, p0 = ks[0], ks[0] // 2
    x_nhwc = jnp.transpose(x_nchw, (0, 2, 3, 1)).astype(jnp.float32)
    x_sp = jnp.pad(x_nhwc, ((0, 0), (p0, p0), (p0, p0), (0, 0)))
    taps = [x_sp[:, dy:dy + H, dx:dx + W, :] for dy in range(k0) for dx in range(k0)]
    x0 = jnp.concatenate(taps, axis=-1)                      # (N,H,W,k0*k0*Cin)
    K0 = k0 * k0 * Cin
    k0_chunks = -(-K0 // LANES)
    K0pad = k0_chunks * LANES
    x0 = _pad_axis(x0.reshape(N, H * W, K0), 2, K0pad).astype(jnp.bfloat16)

    inputs = [x0]
    in_specs = [pl.BlockSpec((BB, H * W, K0pad), lambda g: (g, 0, 0))]

    in_ch = Cin
    for i in range(num_layers):
        k = ks[i]
        w = params["layers"][i]["w"].astype(jnp.float32)     # (Cout, Cin_i, k, k)
        b = params["layers"][i]["b"].astype(jnp.float32)
        cout = filters[i]
        # Reference skip semantics: at layer i>0 with skips[i], reversed(skip_outputs)
        # first matches skip_outputs[-1] == x itself -> x := 2*x before the conv.
        # conv(2x, W) == conv(x, 2W): fold the factor 2 into this layer's weights.
        if i > 0 and skips[i]:
            w = w * 2.0
        w_t = jnp.transpose(w, (2, 3, 1, 0))                 # (k, k, Cin_i, Cout)
        if i == 0:
            w_mat = w_t.reshape(K0, cout)                    # rows match im2col ordering
            w_mat = _pad_axis(_pad_axis(w_mat, 0, K0pad), 1, LANES)
            w_pack = w_mat.reshape(k0_chunks, LANES, LANES).astype(jnp.bfloat16)
            w_block = (k0_chunks, LANES, LANES)
        else:
            w_taps = w_t.reshape(k * k, in_ch, cout)
            w_taps = _pad_axis(_pad_axis(w_taps, 1, LANES), 2, LANES)
            w_pack = w_taps.astype(jnp.bfloat16)
            w_block = (k * k, LANES, LANES)

        scale, shift = _fold_bn(b, params["layers"][i].get("bn"), use_bn)
        scale = _pad_axis(scale.reshape(1, cout), 1, LANES).astype(jnp.float32)
        shift = _pad_axis(shift.reshape(1, cout), 1, LANES).astype(jnp.float32)
        inputs += [w_pack, scale, shift]
        in_specs += [
            pl.BlockSpec(w_block, lambda g: (0, 0, 0)),
            pl.BlockSpec((1, LANES), lambda g: (0, 0)),
            pl.BlockSpec((1, LANES), lambda g: (0, 0)),
        ]
        in_ch = cout

    # Classifier: Linear(filters[-1], num_classes) -> padded (128,128) bf16 weight.
    fc_w = params["fc_w"].astype(jnp.float32)                # (num_classes, C_last)
    fc_b = params["fc_b"].astype(jnp.float32)
    fc_w_p = _pad_axis(_pad_axis(jnp.transpose(fc_w), 0, LANES), 1, LANES).astype(jnp.bfloat16)
    fc_b_p = _pad_axis(fc_b.reshape(1, -1), 1, LANES).astype(jnp.float32)
    inputs += [fc_w_p, fc_b_p]
    in_specs += [pl.BlockSpec((LANES, LANES), lambda g: (0, 0)),
                 pl.BlockSpec((1, LANES), lambda g: (0, 0))]

    cfg = dict(H=H, W=W, rows_per_chunk=RC, batch_block=BB,
               row_lo=row_lo, col_lo=col_lo,
               kernel_sizes=tuple(ks), activations=tuple(acts),
               k0_chunks=k0_chunks)
    kernel = functools.partial(_fused_cnn_kernel, cfg=cfg)

    scratch = []
    if num_layers > 1:
        scratch.append(pltpu.VMEM((2 * BB, Hp, Wp, LANES), jnp.bfloat16))

    out = pl.pallas_call(
        kernel,
        out_shape=jax.ShapeDtypeStruct((N, LANES), jnp.float32),
        grid=(N // BB,),
        in_specs=in_specs,
        out_specs=pl.BlockSpec((BB, LANES), lambda g: (g, 0)),
        scratch_shapes=scratch,
        compiler_params=pltpu.CompilerParams(dimension_semantics=("parallel",)),
    )(*inputs)
    return out[:, :num_classes]


# ----------------------------------------------------------------------------
# Pure-JAX reference (mirrors the PyTorch module exactly) for a correctness check.
# ----------------------------------------------------------------------------
def reference_forward(x, params, arch):
    num_layers = arch["num_layers"]
    use_bn = arch.get("use_batch_norm", False)
    skips = arch.get("use_skip_connections", [False] * num_layers)
    if not isinstance(skips, list):
        skips = [skips] * num_layers
    acts = arch["activations"]
    h = x.astype(jnp.float32)
    skip_outputs = []
    for i in range(num_layers):
        if i > 0 and skips[i] and skip_outputs:
            for so in reversed(skip_outputs):
                if so.shape == h.shape:
                    h = h + so
                    break
        w = params["layers"][i]["w"]
        b = params["layers"][i]["b"]
        k = w.shape[-1]
        pad = k // 2
        h = jax.lax.conv_general_dilated(
            h, w, (1, 1), [(pad, pad), (pad, pad)],
            dimension_numbers=("NCHW", "OIHW", "NCHW")) + b.reshape(1, -1, 1, 1)
        if use_bn:
            bn = params["layers"][i]["bn"]
            h = ((h - bn["mean"].reshape(1, -1, 1, 1))
                 / jnp.sqrt(bn["var"].reshape(1, -1, 1, 1) + 1e-5)
                 * bn["gamma"].reshape(1, -1, 1, 1) + bn["beta"].reshape(1, -1, 1, 1))
        name = acts[i]
        if name == "leaky_relu":
            h = jnp.where(h > 0, h, 0.1 * h)
        elif name == "elu":
            h = jnp.where(h > 0, h, jnp.exp(h) - 1.0)
        elif name == "selu":
            h = 1.0507009873554805 * jnp.where(h > 0, h, 1.6732632423543772 * (jnp.exp(h) - 1.0))
        else:
            h = jnp.maximum(h, 0.0)
        skip_outputs.append(h)
    pooled = jnp.mean(h, axis=(2, 3))
    return pooled @ params["fc_w"].T + params["fc_b"]


# ----------------------------------------------------------------------------
# Deterministic synthetic parameters (PyTorch-layout shapes)
# ----------------------------------------------------------------------------
def build_params(key, arch):
    num_layers = arch["num_layers"]
    use_bn = arch.get("use_batch_norm", False)
    in_ch = arch["input_shape"][0]
    kit = iter(jax.random.split(key, 64))

    def nrm(shape, s=0.1):
        return jax.random.normal(next(kit), shape, jnp.float32) * s

    def uni(shape, lo, hi):
        return jax.random.uniform(next(kit), shape, jnp.float32, minval=lo, maxval=hi)

    layers = []
    for i in range(num_layers):
        out_ch = int(arch["filters"][i])
        k = int(arch["kernel_sizes"][i])
        layer = dict(w=nrm((out_ch, in_ch, k, k)), b=nrm((out_ch,)))
        if use_bn:
            layer["bn"] = dict(gamma=uni((out_ch,), 0.8, 1.2), beta=nrm((out_ch,)),
                               mean=nrm((out_ch,)), var=uni((out_ch,), 0.5, 1.5))
        layers.append(layer)
        in_ch = out_ch
    return dict(layers=layers,
                fc_w=nrm((arch["num_classes"], in_ch)),
                fc_b=nrm((arch["num_classes"],)))


# ----------------------------------------------------------------------------
# main
# ----------------------------------------------------------------------------
if __name__ == "__main__":
    architecture = {
        "input_shape": (3, 16, 16),
        "num_classes": 10,
        "num_layers": 2,
        "filters": [32, 64],
        "kernel_sizes": [3, 3],
        "activations": ["relu", "relu"],
        "use_batch_norm": True,
        "dropout_rate": 0.0,
        "use_skip_connections": [False, True],   # exercises the (reference-exact) skip path
    }
    key = jax.random.PRNGKey(0)
    kx, kp = jax.random.split(key)
    x = jax.random.normal(kx, (2, 3, 16, 16), jnp.float32)   # NCHW like PyTorch
    params = build_params(kp, architecture)

    fwd = jax.jit(lambda xx, pp: conv_model_forward(xx, pp, architecture))
    logits = jax.block_until_ready(fwd(x, params))

    ref = reference_forward(x, params, architecture)
    assert logits.shape == (2, architecture["num_classes"])
    assert bool(jnp.all(jnp.isfinite(logits)))
    rel_err = float(jnp.max(jnp.abs(logits - ref)) / (jnp.max(jnp.abs(ref)) + 1e-6))
    assert rel_err < 5e-2, f"mismatch vs reference: rel_err={rel_err}"
    print("KERNEL_OK")
</pallas_src>

<mosaic_0001>
module attributes {stable_mosaic.version = 11 : i64} {
  func.func @_fused_cnn_kernel(%arg0: i32, %arg1: memref<2x256x128xbf16, #tpu.memory_space<vmem>>, %arg2: memref<1x128x128xbf16, #tpu.memory_space<vmem>>, %arg3: memref<1x128xf32, #tpu.memory_space<vmem>>, %arg4: memref<1x128xf32, #tpu.memory_space<vmem>>, %arg5: memref<9x128x128xbf16, #tpu.memory_space<vmem>>, %arg6: memref<1x128xf32, #tpu.memory_space<vmem>>, %arg7: memref<1x128xf32, #tpu.memory_space<vmem>>, %arg8: memref<128x128xbf16, #tpu.memory_space<vmem>>, %arg9: memref<1x128xf32, #tpu.memory_space<vmem>>, %arg10: memref<2x128xf32, #tpu.memory_space<vmem>>, %arg11: memref<4x18x18x128xbf16, #tpu.memory_space<vmem>>) attributes {dimension_semantics = [#tpu.dimension_semantics<parallel>], iteration_bounds = array<i64: 1>, scalar_prefetch = 0 : i64, scratch_operands = 1 : i64, tpu.core_type = #tpu.core_type<tc>, window_params = [{transform_indices = @transform_0, window_bounds = array<i64: 2, 256, 128>}, {pipeline_mode = #tpu.pipeline_mode<synchronous>, transform_indices = @transform_1, window_bounds = array<i64: 1, 128, 128>}, {pipeline_mode = #tpu.pipeline_mode<synchronous>, transform_indices = @transform_2, window_bounds = array<i64: 1, 128>}, {pipeline_mode = #tpu.pipeline_mode<synchronous>, transform_indices = @transform_3, window_bounds = array<i64: 1, 128>}, {pipeline_mode = #tpu.pipeline_mode<synchronous>, transform_indices = @transform_4, window_bounds = array<i64: 9, 128, 128>}, {pipeline_mode = #tpu.pipeline_mode<synchronous>, transform_indices = @transform_5, window_bounds = array<i64: 1, 128>}, {pipeline_mode = #tpu.pipeline_mode<synchronous>, transform_indices = @transform_6, window_bounds = array<i64: 1, 128>}, {pipeline_mode = #tpu.pipeline_mode<synchronous>, transform_indices = @transform_7, window_bounds = array<i64: 128, 128>}, {pipeline_mode = #tpu.pipeline_mode<synchronous>, transform_indices = @transform_8, window_bounds = array<i64: 1, 128>}, {transform_indices = @transform_9, window_bounds = array<i64: 2, 128>}]} {
    %cst = arith.constant 0.000000e+00 : bf16
    %0 = vector.broadcast %cst : bf16 to vector<4x1x18x128xbf16>
    %c0 = arith.constant 0 : index
    %c0_0 = arith.constant 0 : index
    %c0_1 = arith.constant 0 : index
    %c0_2 = arith.constant 0 : index
    %1 = vector.load %arg11[%c0, %c0_0, %c0_1, %c0_2] : memref<4x18x18x128xbf16, #tpu.memory_space<vmem>>, vector<4x1x18x128xbf16>
    tpu.vector_store %arg11[%c0, %c0_0, %c0_1, %c0_2], %0 {strides = array<i32>} : memref<4x18x18x128xbf16, #tpu.memory_space<vmem>>, vector<4x1x18x128xbf16>,
    %cst_3 = arith.constant 0.000000e+00 : bf16
    %2 = vector.broadcast %cst_3 : bf16 to vector<4x1x18x128xbf16>
    %c0_4 = arith.constant 0 : index
    %c17 = arith.constant 17 : index
    %c0_5 = arith.constant 0 : index
    %c0_6 = arith.constant 0 : index
    %3 = vector.load %arg11[%c0_4, %c17, %c0_5, %c0_6] : memref<4x18x18x128xbf16, #tpu.memory_space<vmem>>, vector<4x1x18x128xbf16>
    tpu.vector_store %arg11[%c0_4, %c17, %c0_5, %c0_6], %2 {strides = array<i32>} : memref<4x18x18x128xbf16, #tpu.memory_space<vmem>>, vector<4x1x18x128xbf16>,
    %cst_7 = arith.constant 0.000000e+00 : bf16
    %4 = vector.broadcast %cst_7 : bf16 to vector<4x16x1x128xbf16>
    %c0_8 = arith.constant 0 : index
    %c1 = arith.constant 1 : index
    %c0_9 = arith.constant 0 : index
    %c0_10 = arith.constant 0 : index
    %5 = vector.load %arg11[%c0_8, %c1, %c0_9, %c0_10] : memref<4x18x18x128xbf16, #tpu.memory_space<vmem>>, vector<4x16x1x128xbf16>
    tpu.vector_store %arg11[%c0_8, %c1, %c0_9, %c0_10], %4 {strides = array<i32>} : memref<4x18x18x128xbf16, #tpu.memory_space<vmem>>, vector<4x16x1x128xbf16>,
    %cst_11 = arith.constant 0.000000e+00 : bf16
    %6 = vector.broadcast %cst_11 : bf16 to vector<4x16x1x128xbf16>
    %c0_12 = arith.constant 0 : index
    %c1_13 = arith.constant 1 : index
    %c17_14 = arith.constant 17 : index
    %c0_15 = arith.constant 0 : index
    %7 = vector.load %arg11[%c0_12, %c1_13, %c17_14, %c0_15] : memref<4x18x18x128xbf16, #tpu.memory_space<vmem>>, vector<4x16x1x128xbf16>
    tpu.vector_store %arg11[%c0_12, %c1_13, %c17_14, %c0_15], %6 {strides = array<i32>} : memref<4x18x18x128xbf16, #tpu.memory_space<vmem>>, vector<4x16x1x128xbf16>,
    %c0_16 = arith.constant 0 : index
    %c0_17 = arith.constant 0 : index
    %8 = vector.load %arg3[%c0_16, %c0_17] : memref<1x128xf32, #tpu.memory_space<vmem>>, vector<1x128xf32>
    %c0_18 = arith.constant 0 : index
    %c0_19 = arith.constant 0 : index
    %9 = vector.load %arg4[%c0_18, %c0_19] : memref<1x128xf32, #tpu.memory_space<vmem>>, vector<1x128xf32>
    %cst_20 = arith.constant 0.000000e+00 : f32
    %10 = vector.broadcast %cst_20 : f32 to vector<64x128xf32>
    %c0_21 = arith.constant 0 : index
    %c0_22 = arith.constant 0 : index
    %c0_23 = arith.constant 0 : index
    %11 = vector.load %arg1[%c0_21, %c0_22, %c0_23] : memref<2x256x128xbf16, #tpu.memory_space<vmem>>, vector<1x64x128xbf16>
    %12 = vector.shape_cast %11 : vector<1x64x128xbf16> to vector<64x128xbf16>
    %c0_24 = arith.constant 0 : index
    %c0_25 = arith.constant 0 : index
    %c0_26 = arith.constant 0 : index
    %13 = vector.load %arg2[%c0_24, %c0_25, %c0_26] : memref<1x128x128xbf16, #tpu.memory_space<vmem>>, vector<1x128x128xbf16>
    %14 = vector.shape_cast %13 : vector<1x128x128xbf16> to vector<128x128xbf16>
    %cst_27 = arith.constant dense<0.000000e+00> : vector<64x128xf32>
    %15 = tpu.matmul %12, %14, %cst_27 {dimension_numbers = #tpu.dot_dimension_numbers<[1], [0], [0], [1], [0, 0, 1, 1], [], []>} : vector<64x128xbf16>, vector<128x128xbf16>, vector<64x128xf32> -> vector<64x128xf32>
    %16 = arith.addf %10, %15 : vector<64x128xf32>
    %17 = vector.broadcast %8 : vector<1x128xf32> to vector<64x128xf32>
    %18 = arith.mulf %16, %17 : vector<64x128xf32>
    %19 = vector.broadcast %9 : vector<1x128xf32> to vector<64x128xf32>
    %20 = arith.addf %18, %19 : vector<64x128xf32>
    %cst_28 = arith.constant 0.000000e+00 : f32
    %21 = vector.broadcast %cst_28 : f32 to vector<64x128xf32>
    %22 = arith.maximumf %20, %21 : vector<64x128xf32>
    %23 = vector.shape_cast %22 : vector<64x128xf32> to vector<4x16x128xf32>
    %24 = arith.truncf %23 : vector<4x16x128xf32> to vector<4x16x128xbf16>
    %c0_29 = arith.constant 0 : index
    %c1_30 = arith.constant 1 : index
    %c1_31 = arith.constant 1 : index
    %c0_32 = arith.constant 0 : index
    %25 = vector.load %arg11[%c0_29, %c1_30, %c1_31, %c0_32] : memref<4x18x18x128xbf16, #tpu.memory_space<vmem>>, vector<1x4x16x128xbf16>
    %26 = vector.shape_cast %25 : vector<1x4x16x128xbf16> to vector<4x16x128xbf16>
    %27 = vector.shape_cast %24 : vector<4x16x128xbf16> to vector<1x4x16x128xbf16>
    tpu.vector_store %arg11[%c0_29, %c1_30, %c1_31, %c0_32], %27 {strides = array<i32>} : memref<4x18x18x128xbf16, #tpu.memory_space<vmem>>, vector<1x4x16x128xbf16>,
    %cst_33 = arith.constant 0.000000e+00 : f32
    %28 = vector.broadcast %cst_33 : f32 to vector<64x128xf32>
    %c0_34 = arith.constant 0 : index
    %c64 = arith.constant 64 : index
    %c0_35 = arith.constant 0 : index
    %29 = vector.load %arg1[%c0_34, %c64, %c0_35] : memref<2x256x128xbf16, #tpu.memory_space<vmem>>, vector<1x64x128xbf16>
    %30 = vector.shape_cast %29 : vector<1x64x128xbf16> to vector<64x128xbf16>
    %c0_36 = arith.constant 0 : index
    %c0_37 = arith.constant 0 : index
    %c0_38 = arith.constant 0 : index
    %31 = vector.load %arg2[%c0_36, %c0_37, %c0_38] : memref<1x128x128xbf16, #tpu.memory_space<vmem>>, vector<1x128x128xbf16>
    %32 = vector.shape_cast %31 : vector<1x128x128xbf16> to vector<128x128xbf16>
    %cst_39 = arith.constant dense<0.000000e+00> : vector<64x128xf32>
    %33 = tpu.matmul %30, %32, %cst_39 {dimension_numbers = #tpu.dot_dimension_numbers<[1], [0], [0], [1], [0, 0, 1, 1], [], []>} : vector<64x128xbf16>, vector<128x128xbf16>, vector<64x128xf32> -> vector<64x128xf32>
    %34 = arith.addf %28, %33 : vector<64x128xf32>
    %35 = vector.broadcast %8 : vector<1x128xf32> to vector<64x128xf32>
    %36 = arith.mulf %34, %35 : vector<64x128xf32>
    %37 = vector.broadcast %9 : vector<1x128xf32> to vector<64x128xf32>
    %38 = arith.addf %36, %37 : vector<64x128xf32>
    %cst_40 = arith.constant 0.000000e+00 : f32
    %39 = vector.broadcast %cst_40 : f32 to vector<64x128xf32>
    %40 = arith.maximumf %38, %39 : vector<64x128xf32>
    %41 = vector.shape_cast %40 : vector<64x128xf32> to vector<4x16x128xf32>
    %42 = arith.truncf %41 : vector<4x16x128xf32> to vector<4x16x128xbf16>
    %c0_41 = arith.constant 0 : index
    %c5 = arith.constant 5 : index
    %c1_42 = arith.constant 1 : index
    %c0_43 = arith.constant 0 : index
    %43 = vector.load %arg11[%c0_41, %c5, %c1_42, %c0_43] : memref<4x18x18x128xbf16, #tpu.memory_space<vmem>>, vector<1x4x16x128xbf16>
    %44 = vector.shape_cast %43 : vector<1x4x16x128xbf16> to vector<4x16x128xbf16>
    %45 = vector.shape_cast %42 : vector<4x16x128xbf16> to vector<1x4x16x128xbf16>
    tpu.vector_store %arg11[%c0_41, %c5, %c1_42, %c0_43], %45 {strides = array<i32>} : memref<4x18x18x128xbf16, #tpu.memory_space<vmem>>, vector<1x4x16x128xbf16>,
    %cst_44 = arith.constant 0.000000e+00 : f32
    %46 = vector.broadcast %cst_44 : f32 to vector<64x128xf32>
    %c0_45 = arith.constant 0 : index
    %c128 = arith.constant 128 : index
    %c0_46 = arith.constant 0 : index
    %47 = vector.load %arg1[%c0_45, %c128, %c0_46] : memref<2x256x128xbf16, #tpu.memory_space<vmem>>, vector<1x64x128xbf16>
    %48 = vector.shape_cast %47 : vector<1x64x128xbf16> to vector<64x128xbf16>
    %c0_47 = arith.constant 0 : index
    %c0_48 = arith.constant 0 : index
    %c0_49 = arith.constant 0 : index
    %49 = vector.load %arg2[%c0_47, %c0_48, %c0_49] : memref<1x128x128xbf16, #tpu.memory_space<vmem>>, vector<1x128x128xbf16>
    %50 = vector.shape_cast %49 : vector<1x128x128xbf16> to vector<128x128xbf16>
    %cst_50 = arith.constant dense<0.000000e+00> : vector<64x128xf32>
    %51 = tpu.matmul %48, %50, %cst_50 {dimension_numbers = #tpu.dot_dimension_numbers<[1], [0], [0], [1], [0, 0, 1, 1], [], []>} : vector<64x128xbf16>, vector<128x128xbf16>, vector<64x128xf32> -> vector<64x128xf32>
    %52 = arith.addf %46, %51 : vector<64x128xf32>
    %53 = vector.broadcast %8 : vector<1x128xf32> to vector<64x128xf32>
    %54 = arith.mulf %52, %53 : vector<64x128xf32>
    %55 = vector.broadcast %9 : vector<1x128xf32> to vector<64x128xf32>
    %56 = arith.addf %54, %55 : vector<64x128xf32>
    %cst_51 = arith.constant 0.000000e+00 : f32
    %57 = vector.broadcast %cst_51 : f32 to vector<64x128xf32>
    %58 = arith.maximumf %56, %57 : vector<64x128xf32>
    %59 = vector.shape_cast %58 : vector<64x128xf32> to vector<4x16x128xf32>
    %60 = arith.truncf %59 : vector<4x16x128xf32> to vector<4x16x128xbf16>
    %c0_52 = arith.constant 0 : index
    %c9 = arith.constant 9 : index
    %c1_53 = arith.constant 1 : index
    %c0_54 = arith.constant 0 : index
    %61 = vector.load %arg11[%c0_52, %c9, %c1_53, %c0_54] : memref<4x18x18x128xbf16, #tpu.memory_space<vmem>>, vector<1x4x16x128xbf16>
    %62 = vector.shape_cast %61 : vector<1x4x16x128xbf16> to vector<4x16x128xbf16>
    %63 = vector.shape_cast %60 : vector<4x16x128xbf16> to vector<1x4x16x128xbf16>
    tpu.vector_store %arg11[%c0_52, %c9, %c1_53, %c0_54], %63 {strides = array<i32>} : memref<4x18x18x128xbf16, #tpu.memory_space<vmem>>, vector<1x4x16x128xbf16>,
    %cst_55 = arith.constant 0.000000e+00 : f32
    %64 = vector.broadcast %cst_55 : f32 to vector<64x128xf32>
    %c0_56 = arith.constant 0 : index
    %c192 = arith.constant 192 : index
    %c0_57 = arith.constant 0 : index
    %65 = vector.load %arg1[%c0_56, %c192, %c0_57] : memref<2x256x128xbf16, #tpu.memory_space<vmem>>, vector<1x64x128xbf16>
    %66 = vector.shape_cast %65 : vector<1x64x128xbf16> to vector<64x128xbf16>
    %c0_58 = arith.constant 0 : index
    %c0_59 = arith.constant 0 : index
    %c0_60 = arith.constant 0 : index
    %67 = vector.load %arg2[%c0_58, %c0_59, %c0_60] : memref<1x128x128xbf16, #tpu.memory_space<vmem>>, vector<1x128x128xbf16>
    %68 = vector.shape_cast %67 : vector<1x128x128xbf16> to vector<128x128xbf16>
    %cst_61 = arith.constant dense<0.000000e+00> : vector<64x128xf32>
    %69 = tpu.matmul %66, %68, %cst_61 {dimension_numbers = #tpu.dot_dimension_numbers<[1], [0], [0], [1], [0, 0, 1, 1], [], []>} : vector<64x128xbf16>, vector<128x128xbf16>, vector<64x128xf32> -> vector<64x128xf32>
    %70 = arith.addf %64, %69 : vector<64x128xf32>
    %71 = vector.broadcast %8 : vector<1x128xf32> to vector<64x128xf32>
    %72 = arith.mulf %70, %71 : vector<64x128xf32>
    %73 = vector.broadcast %9 : vector<1x128xf32> to vector<64x128xf32>
    %74 = arith.addf %72, %73 : vector<64x128xf32>
    %cst_62 = arith.constant 0.000000e+00 : f32
    %75 = vector.broadcast %cst_62 : f32 to vector<64x128xf32>
    %76 = arith.maximumf %74, %75 : vector<64x128xf32>
    %77 = vector.shape_cast %76 : vector<64x128xf32> to vector<4x16x128xf32>
    %78 = arith.truncf %77 : vector<4x16x128xf32> to vector<4x16x128xbf16>
    %c0_63 = arith.constant 0 : index
    %c13 = arith.constant 13 : index
    %c1_64 = arith.constant 1 : index
    %c0_65 = arith.constant 0 : index
    %79 = vector.load %arg11[%c0_63, %c13, %c1_64, %c0_65] : memref<4x18x18x128xbf16, #tpu.memory_space<vmem>>, vector<1x4x16x128xbf16>
    %80 = vector.shape_cast %79 : vector<1x4x16x128xbf16> to vector<4x16x128xbf16>
    %81 = vector.shape_cast %78 : vector<4x16x128xbf16> to vector<1x4x16x128xbf16>
    tpu.vector_store %arg11[%c0_63, %c13, %c1_64, %c0_65], %81 {strides = array<i32>} : memref<4x18x18x128xbf16, #tpu.memory_space<vmem>>, vector<1x4x16x128xbf16>,
    %cst_66 = arith.constant 0.000000e+00 : f32
    %82 = vector.broadcast %cst_66 : f32 to vector<64x128xf32>
    %c1_67 = arith.constant 1 : index
    %c0_68 = arith.constant 0 : index
    %c0_69 = arith.constant 0 : index
    %83 = vector.load %arg1[%c1_67, %c0_68, %c0_69] : memref<2x256x128xbf16, #tpu.memory_space<vmem>>, vector<1x64x128xbf16>
    %84 = vector.shape_cast %83 : vector<1x64x128xbf16> to vector<64x128xbf16>
    %c0_70 = arith.constant 0 : index
    %c0_71 = arith.constant 0 : index
    %c0_72 = arith.constant 0 : index
    %85 = vector.load %arg2[%c0_70, %c0_71, %c0_72] : memref<1x128x128xbf16, #tpu.memory_space<vmem>>, vector<1x128x128xbf16>
    %86 = vector.shape_cast %85 : vector<1x128x128xbf16> to vector<128x128xbf16>
    %cst_73 = arith.constant dense<0.000000e+00> : vector<64x128xf32>
    %87 = tpu.matmul %84, %86, %cst_73 {dimension_numbers = #tpu.dot_dimension_numbers<[1], [0], [0], [1], [0, 0, 1, 1], [], []>} : vector<64x128xbf16>, vector<128x128xbf16>, vector<64x128xf32> -> vector<64x128xf32>
    %88 = arith.addf %82, %87 : vector<64x128xf32>
    %89 = vector.broadcast %8 : vector<1x128xf32> to vector<64x128xf32>
    %90 = arith.mulf %88, %89 : vector<64x128xf32>
    %91 = vector.broadcast %9 : vector<1x128xf32> to vector<64x128xf32>
    %92 = arith.addf %90, %91 : vector<64x128xf32>
    %cst_74 = arith.constant 0.000000e+00 : f32
    %93 = vector.broadcast %cst_74 : f32 to vector<64x128xf32>
    %94 = arith.maximumf %92, %93 : vector<64x128xf32>
    %95 = vector.shape_cast %94 : vector<64x128xf32> to vector<4x16x128xf32>
    %96 = arith.truncf %95 : vector<4x16x128xf32> to vector<4x16x128xbf16>
    %c1_75 = arith.constant 1 : index
    %c1_76 = arith.constant 1 : index
    %c1_77 = arith.constant 1 : index
    %c0_78 = arith.constant 0 : index
    %97 = vector.load %arg11[%c1_75, %c1_76, %c1_77, %c0_78] : memref<4x18x18x128xbf16, #tpu.memory_space<vmem>>, vector<1x4x16x128xbf16>
    %98 = vector.shape_cast %97 : vector<1x4x16x128xbf16> to vector<4x16x128xbf16>
    %99 = vector.shape_cast %96 : vector<4x16x128xbf16> to vector<1x4x16x128xbf16>
    tpu.vector_store %arg11[%c1_75, %c1_76, %c1_77, %c0_78], %99 {strides = array<i32>} : memref<4x18x18x128xbf16, #tpu.memory_space<vmem>>, vector<1x4x16x128xbf16>,
    %cst_79 = arith.constant 0.000000e+00 : f32
    %100 = vector.broadcast %cst_79 : f32 to vector<64x128xf32>
    %c1_80 = arith.constant 1 : index
    %c64_81 = arith.constant 64 : index
    %c0_82 = arith.constant 0 : index
    %101 = vector.load %arg1[%c1_80, %c64_81, %c0_82] : memref<2x256x128xbf16, #tpu.memory_space<vmem>>, vector<1x64x128xbf16>
    %102 = vector.shape_cast %101 : vector<1x64x128xbf16> to vector<64x128xbf16>
    %c0_83 = arith.constant 0 : index
    %c0_84 = arith.constant 0 : index
    %c0_85 = arith.constant 0 : index
    %103 = vector.load %arg2[%c0_83, %c0_84, %c0_85] : memref<1x128x128xbf16, #tpu.memory_space<vmem>>, vector<1x128x128xbf16>
    %104 = vector.shape_cast %103 : vector<1x128x128xbf16> to vector<128x128xbf16>
    %cst_86 = arith.constant dense<0.000000e+00> : vector<64x128xf32>
    %105 = tpu.matmul %102, %104, %cst_86 {dimension_numbers = #tpu.dot_dimension_numbers<[1], [0], [0], [1], [0, 0, 1, 1], [], []>} : vector<64x128xbf16>, vector<128x128xbf16>, vector<64x128xf32> -> vector<64x128xf32>
    %106 = arith.addf %100, %105 : vector<64x128xf32>
    %107 = vector.broadcast %8 : vector<1x128xf32> to vector<64x128xf32>
    %108 = arith.mulf %106, %107 : vector<64x128xf32>
    %109 = vector.broadcast %9 : vector<1x128xf32> to vector<64x128xf32>
    %110 = arith.addf %108, %109 : vector<64x128xf32>
    %cst_87 = arith.constant 0.000000e+00 : f32
    %111 = vector.broadcast %cst_87 : f32 to vector<64x128xf32>
    %112 = arith.maximumf %110, %111 : vector<64x128xf32>
    %113 = vector.shape_cast %112 : vector<64x128xf32> to vector<4x16x128xf32>
    %114 = arith.truncf %113 : vector<4x16x128xf32> to vector<4x16x128xbf16>
    %c1_88 = arith.constant 1 : index
    %c5_89 = arith.constant 5 : index
    %c1_90 = arith.constant 1 : index
    %c0_91 = arith.constant 0 : index
    %115 = vector.load %arg11[%c1_88, %c5_89, %c1_90, %c0_91] : memref<4x18x18x128xbf16, #tpu.memory_space<vmem>>, vector<1x4x16x128xbf16>
    %116 = vector.shape_cast %115 : vector<1x4x16x128xbf16> to vector<4x16x128xbf16>
    %117 = vector.shape_cast %114 : vector<4x16x128xbf16> to vector<1x4x16x128xbf16>
    tpu.vector_store %arg11[%c1_88, %c5_89, %c1_90, %c0_91], %117 {strides = array<i32>} : memref<4x18x18x128xbf16, #tpu.memory_space<vmem>>, vector<1x4x16x128xbf16>,
    %cst_92 = arith.constant 0.000000e+00 : f32
    %118 = vector.broadcast %cst_92 : f32 to vector<64x128xf32>
    %c1_93 = arith.constant 1 : index
    %c128_94 = arith.constant 128 : index
    %c0_95 = arith.constant 0 : index
    %119 = vector.load %arg1[%c1_93, %c128_94, %c0_95] : memref<2x256x128xbf16, #tpu.memory_space<vmem>>, vector<1x64x128xbf16>
    %120 = vector.shape_cast %119 : vector<1x64x128xbf16> to vector<64x128xbf16>
    %c0_96 = arith.constant 0 : index
    %c0_97 = arith.constant 0 : index
    %c0_98 = arith.constant 0 : index
    %121 = vector.load %arg2[%c0_96, %c0_97, %c0_98] : memref<1x128x128xbf16, #tpu.memory_space<vmem>>, vector<1x128x128xbf16>
    %122 = vector.shape_cast %121 : vector<1x128x128xbf16> to vector<128x128xbf16>
    %cst_99 = arith.constant dense<0.000000e+00> : vector<64x128xf32>
    %123 = tpu.matmul %120, %122, %cst_99 {dimension_numbers = #tpu.dot_dimension_numbers<[1], [0], [0], [1], [0, 0, 1, 1], [], []>} : vector<64x128xbf16>, vector<128x128xbf16>, vector<64x128xf32> -> vector<64x128xf32>
    %124 = arith.addf %118, %123 : vector<64x128xf32>
    %125 = vector.broadcast %8 : vector<1x128xf32> to vector<64x128xf32>
    %126 = arith.mulf %124, %125 : vector<64x128xf32>
    %127 = vector.broadcast %9 : vector<1x128xf32> to vector<64x128xf32>
    %128 = arith.addf %126, %127 : vector<64x128xf32>
    %cst_100 = arith.constant 0.000000e+00 : f32
    %129 = vector.broadcast %cst_100 : f32 to vector<64x128xf32>
    %130 = arith.maximumf %128, %129 : vector<64x128xf32>
    %131 = vector.shape_cast %130 : vector<64x128xf32> to vector<4x16x128xf32>
    %132 = arith.truncf %131 : vector<4x16x128xf32> to vector<4x16x128xbf16>
    %c1_101 = arith.constant 1 : index
    %c9_102 = arith.constant 9 : index
    %c1_103 = arith.constant 1 : index
    %c0_104 = arith.constant 0 : index
    %133 = vector.load %arg11[%c1_101, %c9_102, %c1_103, %c0_104] : memref<4x18x18x128xbf16, #tpu.memory_space<vmem>>, vector<1x4x16x128xbf16>
    %134 = vector.shape_cast %133 : vector<1x4x16x128xbf16> to vector<4x16x128xbf16>
    %135 = vector.shape_cast %132 : vector<4x16x128xbf16> to vector<1x4x16x128xbf16>
    tpu.vector_store %arg11[%c1_101, %c9_102, %c1_103, %c0_104], %135 {strides = array<i32>} : memref<4x18x18x128xbf16, #tpu.memory_space<vmem>>, vector<1x4x16x128xbf16>,
    %cst_105 = arith.constant 0.000000e+00 : f32
    %136 = vector.broadcast %cst_105 : f32 to vector<64x128xf32>
    %c1_106 = arith.constant 1 : index
    %c192_107 = arith.constant 192 : index
    %c0_108 = arith.constant 0 : index
    %137 = vector.load %arg1[%c1_106, %c192_107, %c0_108] : memref<2x256x128xbf16, #tpu.memory_space<vmem>>, vector<1x64x128xbf16>
    %138 = vector.shape_cast %137 : vector<1x64x128xbf16> to vector<64x128xbf16>
    %c0_109 = arith.constant 0 : index
    %c0_110 = arith.constant 0 : index
    %c0_111 = arith.constant 0 : index
    %139 = vector.load %arg2[%c0_109, %c0_110, %c0_111] : memref<1x128x128xbf16, #tpu.memory_space<vmem>>, vector<1x128x128xbf16>
    %140 = vector.shape_cast %139 : vector<1x128x128xbf16> to vector<128x128xbf16>
    %cst_112 = arith.constant dense<0.000000e+00> : vector<64x128xf32>
    %141 = tpu.matmul %138, %140, %cst_112 {dimension_numbers = #tpu.dot_dimension_numbers<[1], [0], [0], [1], [0, 0, 1, 1], [], []>} : vector<64x128xbf16>, vector<128x128xbf16>, vector<64x128xf32> -> vector<64x128xf32>
    %142 = arith.addf %136, %141 : vector<64x128xf32>
    %143 = vector.broadcast %8 : vector<1x128xf32> to vector<64x128xf32>
    %144 = arith.mulf %142, %143 : vector<64x128xf32>
    %145 = vector.broadcast %9 : vector<1x128xf32> to vector<64x128xf32>
    %146 = arith.addf %144, %145 : vector<64x128xf32>
    %cst_113 = arith.constant 0.000000e+00 : f32
    %147 = vector.broadcast %cst_113 : f32 to vector<64x128xf32>
    %148 = arith.maximumf %146, %147 : vector<64x128xf32>
    %149 = vector.shape_cast %148 : vector<64x128xf32> to vector<4x16x128xf32>
    %150 = arith.truncf %149 : vector<4x16x128xf32> to vector<4x16x128xbf16>
    %c1_114 = arith.constant 1 : index
    %c13_115 = arith.constant 13 : index
    %c1_116 = arith.constant 1 : index
    %c0_117 = arith.constant 0 : index
    %151 = vector.load %arg11[%c1_114, %c13_115, %c1_116, %c0_117] : memref<4x18x18x128xbf16, #tpu.memory_space<vmem>>, vector<1x4x16x128xbf16>
    %152 = vector.shape_cast %151 : vector<1x4x16x128xbf16> to vector<4x16x128xbf16>
    %153 = vector.shape_cast %150 : vector<4x16x128xbf16> to vector<1x4x16x128xbf16>
    tpu.vector_store %arg11[%c1_114, %c13_115, %c1_116, %c0_117], %153 {strides = array<i32>} : memref<4x18x18x128xbf16, #tpu.memory_space<vmem>>, vector<1x4x16x128xbf16>,
    %c0_118 = arith.constant 0 : index
    %c0_119 = arith.constant 0 : index
    %154 = vector.load %arg6[%c0_118, %c0_119] : memref<1x128xf32, #tpu.memory_space<vmem>>, vector<1x128xf32>
    %c0_120 = arith.constant 0 : index
    %c0_121 = arith.constant 0 : index
    %155 = vector.load %arg7[%c0_120, %c0_121] : memref<1x128xf32, #tpu.memory_space<vmem>>, vector<1x128xf32>
    %c0_122 = arith.constant 0 : index
    %c0_123 = arith.constant 0 : index
    %c0_124 = arith.constant 0 : index
    %c0_125 = arith.constant 0 : index
    %156 = vector.load %arg11[%c0_122, %c0_123, %c0_124, %c0_125] : memref<4x18x18x128xbf16, #tpu.memory_space<vmem>>, vector<1x6x16x128xbf16>
    %157 = vector.shape_cast %156 : vector<1x6x16x128xbf16> to vector<6x16x128xbf16>
    %c0_126 = arith.constant 0 : index
    %c0_127 = arith.constant 0 : index
    %c1_128 = arith.constant 1 : index
    %c0_129 = arith.constant 0 : index
    %158 = vector.load %arg11[%c0_126, %c0_127, %c1_128, %c0_129] : memref<4x18x18x128xbf16, #tpu.memory_space<vmem>>, vector<1x6x16x128xbf16>
    %159 = vector.shape_cast %158 : vector<1x6x16x128xbf16> to vector<6x16x128xbf16>
    %c0_130 = arith.constant 0 : index
    %c0_131 = arith.constant 0 : index
    %c2 = arith.constant 2 : index
    %c0_132 = arith.constant 0 : index
    %160 = vector.load %arg11[%c0_130, %c0_131, %c2, %c0_132] : memref<4x18x18x128xbf16, #tpu.memory_space<vmem>>, vector<1x6x16x128xbf16>
    %161 = vector.shape_cast %160 : vector<1x6x16x128xbf16> to vector<6x16x128xbf16>
    %cst_133 = arith.constant 0.000000e+00 : f32
    %162 = vector.broadcast %cst_133 : f32 to vector<64x128xf32>
    %163 = vector.extract_strided_slice %157 {offsets = [0, 0, 0], sizes = [4, 16, 128], strides = [1, 1, 1]} : vector<6x16x128xbf16> to vector<4x16x128xbf16>
    %164 = vector.shape_cast %163 : vector<4x16x128xbf16> to vector<64x128xbf16>
    %c0_134 = arith.constant 0 : index
    %c0_135 = arith.constant 0 : index
    %c0_136 = arith.constant 0 : index
    %165 = vector.load %arg5[%c0_134, %c0_135, %c0_136] : memref<9x128x128xbf16, #tpu.memory_space<vmem>>, vector<1x128x128xbf16>
    %166 = vector.shape_cast %165 : vector<1x128x128xbf16> to vector<128x128xbf16>
    %cst_137 = arith.constant dense<0.000000e+00> : vector<64x128xf32>
    %167 = tpu.matmul %164, %166, %cst_137 {dimension_numbers = #tpu.dot_dimension_numbers<[1], [0], [0], [1], [0, 0, 1, 1], [], []>} : vector<64x128xbf16>, vector<128x128xbf16>, vector<64x128xf32> -> vector<64x128xf32>
    %168 = arith.addf %162, %167 : vector<64x128xf32>
    %169 = vector.extract_strided_slice %159 {offsets = [0, 0, 0], sizes = [4, 16, 128], strides = [1, 1, 1]} : vector<6x16x128xbf16> to vector<4x16x128xbf16>
    %170 = vector.shape_cast %169 : vector<4x16x128xbf16> to vector<64x128xbf16>
    %c1_138 = arith.constant 1 : index
    %c0_139 = arith.constant 0 : index
    %c0_140 = arith.constant 0 : index
    %171 = vector.load %arg5[%c1_138, %c0_139, %c0_140] : memref<9x128x128xbf16, #tpu.memory_space<vmem>>, vector<1x128x128xbf16>
    %172 = vector.shape_cast %171 : vector<1x128x128xbf16> to vector<128x128xbf16>
    %cst_141 = arith.constant dense<0.000000e+00> : vector<64x128xf32>
    %173 = tpu.matmul %170, %172, %cst_141 {dimension_numbers = #tpu.dot_dimension_numbers<[1], [0], [0], [1], [0, 0, 1, 1], [], []>} : vector<64x128xbf16>, vector<128x128xbf16>, vector<64x128xf32> -> vector<64x128xf32>
    %174 = arith.addf %168, %173 : vector<64x128xf32>
    %175 = vector.extract_strided_slice %161 {offsets = [0, 0, 0], sizes = [4, 16, 128], strides = [1, 1, 1]} : vector<6x16x128xbf16> to vector<4x16x128xbf16>
    %176 = vector.shape_cast %175 : vector<4x16x128xbf16> to vector<64x128xbf16>
    %c2_142 = arith.constant 2 : index
    %c0_143 = arith.constant 0 : index
    %c0_144 = arith.constant 0 : index
    %177 = vector.load %arg5[%c2_142, %c0_143, %c0_144] : memref<9x128x128xbf16, #tpu.memory_space<vmem>>, vector<1x128x128xbf16>
    %178 = vector.shape_cast %177 : vector<1x128x128xbf16> to vector<128x128xbf16>
    %cst_145 = arith.constant dense<0.000000e+00> : vector<64x128xf32>
    %179 = tpu.matmul %176, %178, %cst_145 {dimension_numbers = #tpu.dot_dimension_numbers<[1], [0], [0], [1], [0, 0, 1, 1], [], []>} : vector<64x128xbf16>, vector<128x128xbf16>, vector<64x128xf32> -> vector<64x128xf32>
    %180 = arith.addf %174, %179 : vector<64x128xf32>
    %181 = vector.extract_strided_slice %157 {offsets = [1, 0, 0], sizes = [4, 16, 128], strides = [1, 1, 1]} : vector<6x16x128xbf16> to vector<4x16x128xbf16>
    %182 = vector.shape_cast %181 : vector<4x16x128xbf16> to vector<64x128xbf16>
    %c3 = arith.constant 3 : index
    %c0_146 = arith.constant 0 : index
    %c0_147 = arith.constant 0 : index
    %183 = vector.load %arg5[%c3, %c0_146, %c0_147] : memref<9x128x128xbf16, #tpu.memory_space<vmem>>, vector<1x128x128xbf16>
    %184 = vector.shape_cast %183 : vector<1x128x128xbf16> to vector<128x128xbf16>
    %cst_148 = arith.constant dense<0.000000e+00> : vector<64x128xf32>
    %185 = tpu.matmul %182, %184, %cst_148 {dimension_numbers = #tpu.dot_dimension_numbers<[1], [0], [0], [1], [0, 0, 1, 1], [], []>} : vector<64x128xbf16>, vector<128x128xbf16>, vector<64x128xf32> -> vector<64x128xf32>
    %186 = arith.addf %180, %185 : vector<64x128xf32>
    %187 = vector.extract_strided_slice %159 {offsets = [1, 0, 0], sizes = [4, 16, 128], strides = [1, 1, 1]} : vector<6x16x128xbf16> to vector<4x16x128xbf16>
    %188 = vector.shape_cast %187 : vector<4x16x128xbf16> to vector<64x128xbf16>
    %c4 = arith.constant 4 : index
    %c0_149 = arith.constant 0 : index
    %c0_150 = arith.constant 0 : index
    %189 = vector.load %arg5[%c4, %c0_149, %c0_150] : memref<9x128x128xbf16, #tpu.memory_space<vmem>>, vector<1x128x128xbf16>
    %190 = vector.shape_cast %189 : vector<1x128x128xbf16> to vector<128x128xbf16>
    %cst_151 = arith.constant dense<0.000000e+00> : vector<64x128xf32>
    %191 = tpu.matmul %188, %190, %cst_151 {dimension_numbers = #tpu.dot_dimension_numbers<[1], [0], [0], [1], [0, 0, 1, 1], [], []>} : vector<64x128xbf16>, vector<128x128xbf16>, vector<64x128xf32> -> vector<64x128xf32>
    %192 = arith.addf %186, %191 : vector<64x128xf32>
    %193 = vector.extract_strided_slice %161 {offsets = [1, 0, 0], sizes = [4, 16, 128], strides = [1, 1, 1]} : vector<6x16x128xbf16> to vector<4x16x128xbf16>
    %194 = vector.shape_cast %193 : vector<4x16x128xbf16> to vector<64x128xbf16>
    %c5_152 = arith.constant 5 : index
    %c0_153 = arith.constant 0 : index
    %c0_154 = arith.constant 0 : index
    %195 = vector.load %arg5[%c5_152, %c0_153, %c0_154] : memref<9x128x128xbf16, #tpu.memory_space<vmem>>, vector<1x128x128xbf16>
    %196 = vector.shape_cast %195 : vector<1x128x128xbf16> to vector<128x128xbf16>
    %cst_155 = arith.constant dense<0.000000e+00> : vector<64x128xf32>
    %197 = tpu.matmul %194, %196, %cst_155 {dimension_numbers = #tpu.dot_dimension_numbers<[1], [0], [0], [1], [0, 0, 1, 1], [], []>} : vector<64x128xbf16>, vector<128x128xbf16>, vector<64x128xf32> -> vector<64x128xf32>
    %198 = arith.addf %192, %197 : vector<64x128xf32>
    %199 = vector.extract_strided_slice %157 {offsets = [2, 0, 0], sizes = [4, 16, 128], strides = [1, 1, 1]} : vector<6x16x128xbf16> to vector<4x16x128xbf16>
    %200 = vector.shape_cast %199 : vector<4x16x128xbf16> to vector<64x128xbf16>
    %c6 = arith.constant 6 : index
    %c0_156 = arith.constant 0 : index
    %c0_157 = arith.constant 0 : index
    %201 = vector.load %arg5[%c6, %c0_156, %c0_157] : memref<9x128x128xbf16, #tpu.memory_space<vmem>>, vector<1x128x128xbf16>
    %202 = vector.shape_cast %201 : vector<1x128x128xbf16> to vector<128x128xbf16>
    %cst_158 = arith.constant dense<0.000000e+00> : vector<64x128xf32>
    %203 = tpu.matmul %200, %202, %cst_158 {dimension_numbers = #tpu.dot_dimension_numbers<[1], [0], [0], [1], [0, 0, 1, 1], [], []>} : vector<64x128xbf16>, vector<128x128xbf16>, vector<64x128xf32> -> vector<64x128xf32>
    %204 = arith.addf %198, %203 : vector<64x128xf32>
    %205 = vector.extract_strided_slice %159 {offsets = [2, 0, 0], sizes = [4, 16, 128], strides = [1, 1, 1]} : vector<6x16x128xbf16> to vector<4x16x128xbf16>
    %206 = vector.shape_cast %205 : vector<4x16x128xbf16> to vector<64x128xbf16>
    %c7 = arith.constant 7 : index
    %c0_159 = arith.constant 0 : index
    %c0_160 = arith.constant 0 : index
    %207 = vector.load %arg5[%c7, %c0_159, %c0_160] : memref<9x128x128xbf16, #tpu.memory_space<vmem>>, vector<1x128x128xbf16>
    %208 = vector.shape_cast %207 : vector<1x128x128xbf16> to vector<128x128xbf16>
    %cst_161 = arith.constant dense<0.000000e+00> : vector<64x128xf32>
    %209 = tpu.matmul %206, %208, %cst_161 {dimension_numbers = #tpu.dot_dimension_numbers<[1], [0], [0], [1], [0, 0, 1, 1], [], []>} : vector<64x128xbf16>, vector<128x128xbf16>, vector<64x128xf32> -> vector<64x128xf32>
    %210 = arith.addf %204, %209 : vector<64x128xf32>
    %211 = vector.extract_strided_slice %161 {offsets = [2, 0, 0], sizes = [4, 16, 128], strides = [1, 1, 1]} : vector<6x16x128xbf16> to vector<4x16x128xbf16>
    %212 = vector.shape_cast %211 : vector<4x16x128xbf16> to vector<64x128xbf16>
    %c8 = arith.constant 8 : index
    %c0_162 = arith.constant 0 : index
    %c0_163 = arith.constant 0 : index
    %213 = vector.load %arg5[%c8, %c0_162, %c0_163] : memref<9x128x128xbf16, #tpu.memory_space<vmem>>, vector<1x128x128xbf16>
    %214 = vector.shape_cast %213 : vector<1x128x128xbf16> to vector<128x128xbf16>
    %cst_164 = arith.constant dense<0.000000e+00> : vector<64x128xf32>
    %215 = tpu.matmul %212, %214, %cst_164 {dimension_numbers = #tpu.dot_dimension_numbers<[1], [0], [0], [1], [0, 0, 1, 1], [], []>} : vector<64x128xbf16>, vector<128x128xbf16>, vector<64x128xf32> -> vector<64x128xf32>
    %216 = arith.addf %210, %215 : vector<64x128xf32>
    %217 = vector.broadcast %154 : vector<1x128xf32> to vector<64x128xf32>
    %218 = arith.mulf %216, %217 : vector<64x128xf32>
    %219 = vector.broadcast %155 : vector<1x128xf32> to vector<64x128xf32>
    %220 = arith.addf %218, %219 : vector<64x128xf32>
    %cst_165 = arith.constant 0.000000e+00 : f32
    %221 = vector.broadcast %cst_165 : f32 to vector<64x128xf32>
    %222 = arith.maximumf %220, %221 : vector<64x128xf32>
    %cst_166 = arith.constant dense<0.000000e+00> : vector<128xf32>
    %223 = vector.multi_reduction <add>, %222, %cst_166 [0] : vector<64x128xf32> to vector<128xf32>
    %224 = vector.shape_cast %223 : vector<128xf32> to vector<1x128xf32>
    %c0_167 = arith.constant 0 : index
    %c4_168 = arith.constant 4 : index
    %c0_169 = arith.constant 0 : index
    %c0_170 = arith.constant 0 : index
    %225 = vector.load %arg11[%c0_167, %c4_168, %c0_169, %c0_170] : memref<4x18x18x128xbf16, #tpu.memory_space<vmem>>, vector<1x6x16x128xbf16>
    %226 = vector.shape_cast %225 : vector<1x6x16x128xbf16> to vector<6x16x128xbf16>
    %c0_171 = arith.constant 0 : index
    %c4_172 = arith.constant 4 : index
    %c1_173 = arith.constant 1 : index
    %c0_174 = arith.constant 0 : index
    %227 = vector.load %arg11[%c0_171, %c4_172, %c1_173, %c0_174] : memref<4x18x18x128xbf16, #tpu.memory_space<vmem>>, vector<1x6x16x128xbf16>
    %228 = vector.shape_cast %227 : vector<1x6x16x128xbf16> to vector<6x16x128xbf16>
    %c0_175 = arith.constant 0 : index
    %c4_176 = arith.constant 4 : index
    %c2_177 = arith.constant 2 : index
    %c0_178 = arith.constant 0 : index
    %229 = vector.load %arg11[%c0_175, %c4_176, %c2_177, %c0_178] : memref<4x18x18x128xbf16, #tpu.memory_space<vmem>>, vector<1x6x16x128xbf16>
    %230 = vector.shape_cast %229 : vector<1x6x16x128xbf16> to vector<6x16x128xbf16>
    %cst_179 = arith.constant 0.000000e+00 : f32
    %231 = vector.broadcast %cst_179 : f32 to vector<64x128xf32>
    %232 = vector.extract_strided_slice %226 {offsets = [0, 0, 0], sizes = [4, 16, 128], strides = [1, 1, 1]} : vector<6x16x128xbf16> to vector<4x16x128xbf16>
    %233 = vector.shape_cast %232 : vector<4x16x128xbf16> to vector<64x128xbf16>
    %c0_180 = arith.constant 0 : index
    %c0_181 = arith.constant 0 : index
    %c0_182 = arith.constant 0 : index
    %234 = vector.load %arg5[%c0_180, %c0_181, %c0_182] : memref<9x128x128xbf16, #tpu.memory_space<vmem>>, vector<1x128x128xbf16>
    %235 = vector.shape_cast %234 : vector<1x128x128xbf16> to vector<128x128xbf16>
    %cst_183 = arith.constant dense<0.000000e+00> : vector<64x128xf32>
    %236 = tpu.matmul %233, %235, %cst_183 {dimension_numbers = #tpu.dot_dimension_numbers<[1], [0], [0], [1], [0, 0, 1, 1], [], []>} : vector<64x128xbf16>, vector<128x128xbf16>, vector<64x128xf32> -> vector<64x128xf32>
    %237 = arith.addf %231, %236 : vector<64x128xf32>
    %238 = vector.extract_strided_slice %228 {offsets = [0, 0, 0], sizes = [4, 16, 128], strides = [1, 1, 1]} : vector<6x16x128xbf16> to vector<4x16x128xbf16>
    %239 = vector.shape_cast %238 : vector<4x16x128xbf16> to vector<64x128xbf16>
    %c1_184 = arith.constant 1 : index
    %c0_185 = arith.constant 0 : index
    %c0_186 = arith.constant 0 : index
    %240 = vector.load %arg5[%c1_184, %c0_185, %c0_186] : memref<9x128x128xbf16, #tpu.memory_space<vmem>>, vector<1x128x128xbf16>
    %241 = vector.shape_cast %240 : vector<1x128x128xbf16> to vector<128x128xbf16>
    %cst_187 = arith.constant dense<0.000000e+00> : vector<64x128xf32>
    %242 = tpu.matmul %239, %241, %cst_187 {dimension_numbers = #tpu.dot_dimension_numbers<[1], [0], [0], [1], [0, 0, 1, 1], [], []>} : vector<64x128xbf16>, vector<128x128xbf16>, vector<64x128xf32> -> vector<64x128xf32>
    %243 = arith.addf %237, %242 : vector<64x128xf32>
    %244 = vector.extract_strided_slice %230 {offsets = [0, 0, 0], sizes = [4, 16, 128], strides = [1, 1, 1]} : vector<6x16x128xbf16> to vector<4x16x128xbf16>
    %245 = vector.shape_cast %244 : vector<4x16x128xbf16> to vector<64x128xbf16>
    %c2_188 = arith.constant 2 : index
    %c0_189 = arith.constant 0 : index
    %c0_190 = arith.constant 0 : index
    %246 = vector.load %arg5[%c2_188, %c0_189, %c0_190] : memref<9x128x128xbf16, #tpu.memory_space<vmem>>, vector<1x128x128xbf16>
    %247 = vector.shape_cast %246 : vector<1x128x128xbf16> to vector<128x128xbf16>
    %cst_191 = arith.constant dense<0.000000e+00> : vector<64x128xf32>
    %248 = tpu.matmul %245, %247, %cst_191 {dimension_numbers = #tpu.dot_dimension_numbers<[1], [0], [0], [1], [0, 0, 1, 1], [], []>} : vector<64x128xbf16>, vector<128x128xbf16>, vector<64x128xf32> -> vector<64x128xf32>
    %249 = arith.addf %243, %248 : vector<64x128xf32>
    %250 = vector.extract_strided_slice %226 {offsets = [1, 0, 0], sizes = [4, 16, 128], strides = [1, 1, 1]} : vector<6x16x128xbf16> to vector<4x16x128xbf16>
    %251 = vector.shape_cast %250 : vector<4x16x128xbf16> to vector<64x128xbf16>
    %c3_192 = arith.constant 3 : index
    %c0_193 = arith.constant 0 : index
    %c0_194 = arith.constant 0 : index
    %252 = vector.load %arg5[%c3_192, %c0_193, %c0_194] : memref<9x128x128xbf16, #tpu.memory_space<vmem>>, vector<1x128x128xbf16>
    %253 = vector.shape_cast %252 : vector<1x128x128xbf16> to vector<128x128xbf16>
    %cst_195 = arith.constant dense<0.000000e+00> : vector<64x128xf32>
    %254 = tpu.matmul %251, %253, %cst_195 {dimension_numbers = #tpu.dot_dimension_numbers<[1], [0], [0], [1], [0, 0, 1, 1], [], []>} : vector<64x128xbf16>, vector<128x128xbf16>, vector<64x128xf32> -> vector<64x128xf32>
    %255 = arith.addf %249, %254 : vector<64x128xf32>
    %256 = vector.extract_strided_slice %228 {offsets = [1, 0, 0], sizes = [4, 16, 128], strides = [1, 1, 1]} : vector<6x16x128xbf16> to vector<4x16x128xbf16>
    %257 = vector.shape_cast %256 : vector<4x16x128xbf16> to vector<64x128xbf16>
    %c4_196 = arith.constant 4 : index
    %c0_197 = arith.constant 0 : index
    %c0_198 = arith.constant 0 : index
    %258 = vector.load %arg5[%c4_196, %c0_197, %c0_198] : memref<9x128x128xbf16, #tpu.memory_space<vmem>>, vector<1x128x128xbf16>
    %259 = vector.shape_cast %258 : vector<1x128x128xbf16> to vector<128x128xbf16>
    %cst_199 = arith.constant dense<0.000000e+00> : vector<64x128xf32>
    %260 = tpu.matmul %257, %259, %cst_199 {dimension_numbers = #tpu.dot_dimension_numbers<[1], [0], [0], [1], [0, 0, 1, 1], [], []>} : vector<64x128xbf16>, vector<128x128xbf16>, vector<64x128xf32> -> vector<64x128xf32>
    %261 = arith.addf %255, %260 : vector<64x128xf32>
    %262 = vector.extract_strided_slice %230 {offsets = [1, 0, 0], sizes = [4, 16, 128], strides = [1, 1, 1]} : vector<6x16x128xbf16> to vector<4x16x128xbf16>
    %263 = vector.shape_cast %262 : vector<4x16x128xbf16> to vector<64x128xbf16>
    %c5_200 = arith.constant 5 : index
    %c0_201 = arith.constant 0 : index
    %c0_202 = arith.constant 0 : index
    %264 = vector.load %arg5[%c5_200, %c0_201, %c0_202] : memref<9x128x128xbf16, #tpu.memory_space<vmem>>, vector<1x128x128xbf16>
    %265 = vector.shape_cast %264 : vector<1x128x128xbf16> to vector<128x128xbf16>
    %cst_203 = arith.constant dense<0.000000e+00> : vector<64x128xf32>
    %266 = tpu.matmul %263, %265, %cst_203 {dimension_numbers = #tpu.dot_dimension_numbers<[1], [0], [0], [1], [0, 0, 1, 1], [], []>} : vector<64x128xbf16>, vector<128x128xbf16>, vector<64x128xf32> -> vector<64x128xf32>
    %267 = arith.addf %261, %266 : vector<64x128xf32>
    %268 = vector.extract_strided_slice %226 {offsets = [2, 0, 0], sizes = [4, 16, 128], strides = [1, 1, 1]} : vector<6x16x128xbf16> to vector<4x16x128xbf16>
    %269 = vector.shape_cast %268 : vector<4x16x128xbf16> to vector<64x128xbf16>
    %c6_204 = arith.constant 6 : index
    %c0_205 = arith.constant 0 : index
    %c0_206 = arith.constant 0 : index
    %270 = vector.load %arg5[%c6_204, %c0_205, %c0_206] : memref<9x128x128xbf16, #tpu.memory_space<vmem>>, vector<1x128x128xbf16>
    %271 = vector.shape_cast %270 : vector<1x128x128xbf16> to vector<128x128xbf16>
    %cst_207 = arith.constant dense<0.000000e+00> : vector<64x128xf32>
    %272 = tpu.matmul %269, %271, %cst_207 {dimension_numbers = #tpu.dot_dimension_numbers<[1], [0], [0], [1], [0, 0, 1, 1], [], []>} : vector<64x128xbf16>, vector<128x128xbf16>, vector<64x128xf32> -> vector<64x128xf32>
    %273 = arith.addf %267, %272 : vector<64x128xf32>
    %274 = vector.extract_strided_slice %228 {offsets = [2, 0, 0], sizes = [4, 16, 128], strides = [1, 1, 1]} : vector<6x16x128xbf16> to vector<4x16x128xbf16>
    %275 = vector.shape_cast %274 : vector<4x16x128xbf16> to vector<64x128xbf16>
    %c7_208 = arith.constant 7 : index
    %c0_209 = arith.constant 0 : index
    %c0_210 = arith.constant 0 : index
    %276 = vector.load %arg5[%c7_208, %c0_209, %c0_210] : memref<9x128x128xbf16, #tpu.memory_space<vmem>>, vector<1x128x128xbf16>
    %277 = vector.shape_cast %276 : vector<1x128x128xbf16> to vector<128x128xbf16>
    %cst_211 = arith.constant dense<0.000000e+00> : vector<64x128xf32>
    %278 = tpu.matmul %275, %277, %cst_211 {dimension_numbers = #tpu.dot_dimension_numbers<[1], [0], [0], [1], [0, 0, 1, 1], [], []>} : vector<64x128xbf16>, vector<128x128xbf16>, vector<64x128xf32> -> vector<64x128xf32>
    %279 = arith.addf %273, %278 : vector<64x128xf32>
    %280 = vector.extract_strided_slice %230 {offsets = [2, 0, 0], sizes = [4, 16, 128], strides = [1, 1, 1]} : vector<6x16x128xbf16> to vector<4x16x128xbf16>
    %281 = vector.shape_cast %280 : vector<4x16x128xbf16> to vector<64x128xbf16>
    %c8_212 = arith.constant 8 : index
    %c0_213 = arith.constant 0 : index
    %c0_214 = arith.constant 0 : index
    %282 = vector.load %arg5[%c8_212, %c0_213, %c0_214] : memref<9x128x128xbf16, #tpu.memory_space<vmem>>, vector<1x128x128xbf16>
    %283 = vector.shape_cast %282 : vector<1x128x128xbf16> to vector<128x128xbf16>
    %cst_215 = arith.constant dense<0.000000e+00> : vector<64x128xf32>
    %284 = tpu.matmul %281, %283, %cst_215 {dimension_numbers = #tpu.dot_dimension_numbers<[1], [0], [0], [1], [0, 0, 1, 1], [], []>} : vector<64x128xbf16>, vector<128x128xbf16>, vector<64x128xf32> -> vector<64x128xf32>
    %285 = arith.addf %279, %284 : vector<64x128xf32>
    %286 = vector.broadcast %154 : vector<1x128xf32> to vector<64x128xf32>
    %287 = arith.mulf %285, %286 : vector<64x128xf32>
    %288 = vector.broadcast %155 : vector<1x128xf32> to vector<64x128xf32>
    %289 = arith.addf %287, %288 : vector<64x128xf32>
    %cst_216 = arith.constant 0.000000e+00 : f32
    %290 = vector.broadcast %cst_216 : f32 to vector<64x128xf32>
    %291 = arith.maximumf %289, %290 : vector<64x128xf32>
    %cst_217 = arith.constant dense<0.000000e+00> : vector<128xf32>
    %292 = vector.multi_reduction <add>, %291, %cst_217 [0] : vector<64x128xf32> to vector<128xf32>
    %293 = vector.shape_cast %292 : vector<128xf32> to vector<1x128xf32>
    %294 = arith.addf %224, %293 : vector<1x128xf32>
    %c0_218 = arith.constant 0 : index
    %c8_219 = arith.constant 8 : index
    %c0_220 = arith.constant 0 : index
    %c0_221 = arith.constant 0 : index
    %295 = vector.load %arg11[%c0_218, %c8_219, %c0_220, %c0_221] : memref<4x18x18x128xbf16, #tpu.memory_space<vmem>>, vector<1x6x16x128xbf16>
    %296 = vector.shape_cast %295 : vector<1x6x16x128xbf16> to vector<6x16x128xbf16>
    %c0_222 = arith.constant 0 : index
    %c8_223 = arith.constant 8 : index
    %c1_224 = arith.constant 1 : index
    %c0_225 = arith.constant 0 : index
    %297 = vector.load %arg11[%c0_222, %c8_223, %c1_224, %c0_225] : memref<4x18x18x128xbf16, #tpu.memory_space<vmem>>, vector<1x6x16x128xbf16>
    %298 = vector.shape_cast %297 : vector<1x6x16x128xbf16> to vector<6x16x128xbf16>
    %c0_226 = arith.constant 0 : index
    %c8_227 = arith.constant 8 : index
    %c2_228 = arith.constant 2 : index
    %c0_229 = arith.constant 0 : index
    %299 = vector.load %arg11[%c0_226, %c8_227, %c2_228, %c0_229] : memref<4x18x18x128xbf16, #tpu.memory_space<vmem>>, vector<1x6x16x128xbf16>
    %300 = vector.shape_cast %299 : vector<1x6x16x128xbf16> to vector<6x16x128xbf16>
    %cst_230 = arith.constant 0.000000e+00 : f32
    %301 = vector.broadcast %cst_230 : f32 to vector<64x128xf32>
    %302 = vector.extract_strided_slice %296 {offsets = [0, 0, 0], sizes = [4, 16, 128], strides = [1, 1, 1]} : vector<6x16x128xbf16> to vector<4x16x128xbf16>
    %303 = vector.shape_cast %302 : vector<4x16x128xbf16> to vector<64x128xbf16>
    %c0_231 = arith.constant 0 : index
    %c0_232 = arith.constant 0 : index
    %c0_233 = arith.constant 0 : index
    %304 = vector.load %arg5[%c0_231, %c0_232, %c0_233] : memref<9x128x128xbf16, #tpu.memory_space<vmem>>, vector<1x128x128xbf16>
    %305 = vector.shape_cast %304 : vector<1x128x128xbf16> to vector<128x128xbf16>
    %cst_234 = arith.constant dense<0.000000e+00> : vector<64x128xf32>
    %306 = tpu.matmul %303, %305, %cst_234 {dimension_numbers = #tpu.dot_dimension_numbers<[1], [0], [0], [1], [0, 0, 1, 1], [], []>} : vector<64x128xbf16>, vector<128x128xbf16>, vector<64x128xf32> -> vector<64x128xf32>
    %307 = arith.addf %301, %306 : vector<64x128xf32>
    %308 = vector.extract_strided_slice %298 {offsets = [0, 0, 0], sizes = [4, 16, 128], strides = [1, 1, 1]} : vector<6x16x128xbf16> to vector<4x16x128xbf16>
    %309 = vector.shape_cast %308 : vector<4x16x128xbf16> to vector<64x128xbf16>
    %c1_235 = arith.constant 1 : index
    %c0_236 = arith.constant 0 : index
    %c0_237 = arith.constant 0 : index
    %310 = vector.load %arg5[%c1_235, %c0_236, %c0_237] : memref<9x128x128xbf16, #tpu.memory_space<vmem>>, vector<1x128x128xbf16>
    %311 = vector.shape_cast %310 : vector<1x128x128xbf16> to vector<128x128xbf16>
    %cst_238 = arith.constant dense<0.000000e+00> : vector<64x128xf32>
    %312 = tpu.matmul %309, %311, %cst_238 {dimension_numbers = #tpu.dot_dimension_numbers<[1], [0], [0], [1], [0, 0, 1, 1], [], []>} : vector<64x128xbf16>, vector<128x128xbf16>, vector<64x128xf32> -> vector<64x128xf32>
    %313 = arith.addf %307, %312 : vector<64x128xf32>
    %314 = vector.extract_strided_slice %300 {offsets = [0, 0, 0], sizes = [4, 16, 128], strides = [1, 1, 1]} : vector<6x16x128xbf16> to vector<4x16x128xbf16>
    %315 = vector.shape_cast %314 : vector<4x16x128xbf16> to vector<64x128xbf16>
    %c2_239 = arith.constant 2 : index
    %c0_240 = arith.constant 0 : index
    %c0_241 = arith.constant 0 : index
    %316 = vector.load %arg5[%c2_239, %c0_240, %c0_241] : memref<9x128x128xbf16, #tpu.memory_space<vmem>>, vector<1x128x128xbf16>
    %317 = vector.shape_cast %316 : vector<1x128x128xbf16> to vector<128x128xbf16>
    %cst_242 = arith.constant dense<0.000000e+00> : vector<64x128xf32>
    %318 = tpu.matmul %315, %317, %cst_242 {dimension_numbers = #tpu.dot_dimension_numbers<[1], [0], [0], [1], [0, 0, 1, 1], [], []>} : vector<64x128xbf16>, vector<128x128xbf16>, vector<64x128xf32> -> vector<64x128xf32>
    %319 = arith.addf %313, %318 : vector<64x128xf32>
    %320 = vector.extract_strided_slice %296 {offsets = [1, 0, 0], sizes = [4, 16, 128], strides = [1, 1, 1]} : vector<6x16x128xbf16> to vector<4x16x128xbf16>
    %321 = vector.shape_cast %320 : vector<4x16x128xbf16> to vector<64x128xbf16>
    %c3_243 = arith.constant 3 : index
    %c0_244 = arith.constant 0 : index
    %c0_245 = arith.constant 0 : index
    %322 = vector.load %arg5[%c3_243, %c0_244, %c0_245] : memref<9x128x128xbf16, #tpu.memory_space<vmem>>, vector<1x128x128xbf16>
    %323 = vector.shape_cast %322 : vector<1x128x128xbf16> to vector<128x128xbf16>
    %cst_246 = arith.constant dense<0.000000e+00> : vector<64x128xf32>
    %324 = tpu.matmul %321, %323, %cst_246 {dimension_numbers = #tpu.dot_dimension_numbers<[1], [0], [0], [1], [0, 0, 1, 1], [], []>} : vector<64x128xbf16>, vector<128x128xbf16>, vector<64x128xf32> -> vector<64x128xf32>
    %325 = arith.addf %319, %324 : vector<64x128xf32>
    %326 = vector.extract_strided_slice %298 {offsets = [1, 0, 0], sizes = [4, 16, 128], strides = [1, 1, 1]} : vector<6x16x128xbf16> to vector<4x16x128xbf16>
    %327 = vector.shape_cast %326 : vector<4x16x128xbf16> to vector<64x128xbf16>
    %c4_247 = arith.constant 4 : index
    %c0_248 = arith.constant 0 : index
    %c0_249 = arith.constant 0 : index
    %328 = vector.load %arg5[%c4_247, %c0_248, %c0_249] : memref<9x128x128xbf16, #tpu.memory_space<vmem>>, vector<1x128x128xbf16>
    %329 = vector.shape_cast %328 : vector<1x128x128xbf16> to vector<128x128xbf16>
    %cst_250 = arith.constant dense<0.000000e+00> : vector<64x128xf32>
    %330 = tpu.matmul %327, %329, %cst_250 {dimension_numbers = #tpu.dot_dimension_numbers<[1], [0], [0], [1], [0, 0, 1, 1], [], []>} : vector<64x128xbf16>, vector<128x128xbf16>, vector<64x128xf32> -> vector<64x128xf32>
    %331 = arith.addf %325, %330 : vector<64x128xf32>
    %332 = vector.extract_strided_slice %300 {offsets = [1, 0, 0], sizes = [4, 16, 128], strides = [1, 1, 1]} : vector<6x16x128xbf16> to vector<4x16x128xbf16>
    %333 = vector.shape_cast %332 : vector<4x16x128xbf16> to vector<64x128xbf16>
    %c5_251 = arith.constant 5 : index
    %c0_252 = arith.constant 0 : index
    %c0_253 = arith.constant 0 : index
    %334 = vector.load %arg5[%c5_251, %c0_252, %c0_253] : memref<9x128x128xbf16, #tpu.memory_space<vmem>>, vector<1x128x128xbf16>
    %335 = vector.shape_cast %334 : vector<1x128x128xbf16> to vector<128x128xbf16>
    %cst_254 = arith.constant dense<0.000000e+00> : vector<64x128xf32>
    %336 = tpu.matmul %333, %335, %cst_254 {dimension_numbers = #tpu.dot_dimension_numbers<[1], [0], [0], [1], [0, 0, 1, 1], [], []>} : vector<64x128xbf16>, vector<128x128xbf16>, vector<64x128xf32> -> vector<64x128xf32>
    %337 = arith.addf %331, %336 : vector<64x128xf32>
    %338 = vector.extract_strided_slice %296 {offsets = [2, 0, 0], sizes = [4, 16, 128], strides = [1, 1, 1]} : vector<6x16x128xbf16> to vector<4x16x128xbf16>
    %339 = vector.shape_cast %338 : vector<4x16x128xbf16> to vector<64x128xbf16>
    %c6_255 = arith.constant 6 : index
    %c0_256 = arith.constant 0 : index
    %c0_257 = arith.constant 0 : index
    %340 = vector.load %arg5[%c6_255, %c0_256, %c0_257] : memref<9x128x128xbf16, #tpu.memory_space<vmem>>, vector<1x128x128xbf16>
    %341 = vector.shape_cast %340 : vector<1x128x128xbf16> to vector<128x128xbf16>
    %cst_258 = arith.constant dense<0.000000e+00> : vector<64x128xf32>
    %342 = tpu.matmul %339, %341, %cst_258 {dimension_numbers = #tpu.dot_dimension_numbers<[1], [0], [0], [1], [0, 0, 1, 1], [], []>} : vector<64x128xbf16>, vector<128x128xbf16>, vector<64x128xf32> -> vector<64x128xf32>
    %343 = arith.addf %337, %342 : vector<64x128xf32>
    %344 = vector.extract_strided_slice %298 {offsets = [2, 0, 0], sizes = [4, 16, 128], strides = [1, 1, 1]} : vector<6x16x128xbf16> to vector<4x16x128xbf16>
    %345 = vector.shape_cast %344 : vector<4x16x128xbf16> to vector<64x128xbf16>
    %c7_259 = arith.constant 7 : index
    %c0_260 = arith.constant 0 : index
    %c0_261 = arith.constant 0 : index
    %346 = vector.load %arg5[%c7_259, %c0_260, %c0_261] : memref<9x128x128xbf16, #tpu.memory_space<vmem>>, vector<1x128x128xbf16>
    %347 = vector.shape_cast %346 : vector<1x128x128xbf16> to vector<128x128xbf16>
    %cst_262 = arith.constant dense<0.000000e+00> : vector<64x128xf32>
    %348 = tpu.matmul %345, %347, %cst_262 {dimension_numbers = #tpu.dot_dimension_numbers<[1], [0], [0], [1], [0, 0, 1, 1], [], []>} : vector<64x128xbf16>, vector<128x128xbf16>, vector<64x128xf32> -> vector<64x128xf32>
    %349 = arith.addf %343, %348 : vector<64x128xf32>
    %350 = vector.extract_strided_slice %300 {offsets = [2, 0, 0], sizes = [4, 16, 128], strides = [1, 1, 1]} : vector<6x16x128xbf16> to vector<4x16x128xbf16>
    %351 = vector.shape_cast %350 : vector<4x16x128xbf16> to vector<64x128xbf16>
    %c8_263 = arith.constant 8 : index
    %c0_264 = arith.constant 0 : index
    %c0_265 = arith.constant 0 : index
    %352 = vector.load %arg5[%c8_263, %c0_264, %c0_265] : memref<9x128x128xbf16, #tpu.memory_space<vmem>>, vector<1x128x128xbf16>
    %353 = vector.shape_cast %352 : vector<1x128x128xbf16> to vector<128x128xbf16>
    %cst_266 = arith.constant dense<0.000000e+00> : vector<64x128xf32>
    %354 = tpu.matmul %351, %353, %cst_266 {dimension_numbers = #tpu.dot_dimension_numbers<[1], [0], [0], [1], [0, 0, 1, 1], [], []>} : vector<64x128xbf16>, vector<128x128xbf16>, vector<64x128xf32> -> vector<64x128xf32>
    %355 = arith.addf %349, %354 : vector<64x128xf32>
    %356 = vector.broadcast %154 : vector<1x128xf32> to vector<64x128xf32>
    %357 = arith.mulf %355, %356 : vector<64x128xf32>
    %358 = vector.broadcast %155 : vector<1x128xf32> to vector<64x128xf32>
    %359 = arith.addf %357, %358 : vector<64x128xf32>
    %cst_267 = arith.constant 0.000000e+00 : f32
    %360 = vector.broadcast %cst_267 : f32 to vector<64x128xf32>
    %361 = arith.maximumf %359, %360 : vector<64x128xf32>
    %cst_268 = arith.constant dense<0.000000e+00> : vector<128xf32>
    %362 = vector.multi_reduction <add>, %361, %cst_268 [0] : vector<64x128xf32> to vector<128xf32>
    %363 = vector.shape_cast %362 : vector<128xf32> to vector<1x128xf32>
    %364 = arith.addf %294, %363 : vector<1x128xf32>
    %c0_269 = arith.constant 0 : index
    %c12 = arith.constant 12 : index
    %c0_270 = arith.constant 0 : index
    %c0_271 = arith.constant 0 : index
    %365 = vector.load %arg11[%c0_269, %c12, %c0_270, %c0_271] : memref<4x18x18x128xbf16, #tpu.memory_space<vmem>>, vector<1x6x16x128xbf16>
    %366 = vector.shape_cast %365 : vector<1x6x16x128xbf16> to vector<6x16x128xbf16>
    %c0_272 = arith.constant 0 : index
    %c12_273 = arith.constant 12 : index
    %c1_274 = arith.constant 1 : index
    %c0_275 = arith.constant 0 : index
    %367 = vector.load %arg11[%c0_272, %c12_273, %c1_274, %c0_275] : memref<4x18x18x128xbf16, #tpu.memory_space<vmem>>, vector<1x6x16x128xbf16>
    %368 = vector.shape_cast %367 : vector<1x6x16x128xbf16> to vector<6x16x128xbf16>
    %c0_276 = arith.constant 0 : index
    %c12_277 = arith.constant 12 : index
    %c2_278 = arith.constant 2 : index
    %c0_279 = arith.constant 0 : index
    %369 = vector.load %arg11[%c0_276, %c12_277, %c2_278, %c0_279] : memref<4x18x18x128xbf16, #tpu.memory_space<vmem>>, vector<1x6x16x128xbf16>
    %370 = vector.shape_cast %369 : vector<1x6x16x128xbf16> to vector<6x16x128xbf16>
    %cst_280 = arith.constant 0.000000e+00 : f32
    %371 = vector.broadcast %cst_280 : f32 to vector<64x128xf32>
    %372 = vector.extract_strided_slice %366 {offsets = [0, 0, 0], sizes = [4, 16, 128], strides = [1, 1, 1]} : vector<6x16x128xbf16> to vector<4x16x128xbf16>
    %373 = vector.shape_cast %372 : vector<4x16x128xbf16> to vector<64x128xbf16>
    %c0_281 = arith.constant 0 : index
    %c0_282 = arith.constant 0 : index
    %c0_283 = arith.constant 0 : index
    %374 = vector.load %arg5[%c0_281, %c0_282, %c0_283] : memref<9x128x128xbf16, #tpu.memory_space<vmem>>, vector<1x128x128xbf16>
    %375 = vector.shape_cast %374 : vector<1x128x128xbf16> to vector<128x128xbf16>
    %cst_284 = arith.constant dense<0.000000e+00> : vector<64x128xf32>
    %376 = tpu.matmul %373, %375, %cst_284 {dimension_numbers = #tpu.dot_dimension_numbers<[1], [0], [0], [1], [0, 0, 1, 1], [], []>} : vector<64x128xbf16>, vector<128x128xbf16>, vector<64x128xf32> -> vector<64x128xf32>
    %377 = arith.addf %371, %376 : vector<64x128xf32>
    %378 = vector.extract_strided_slice %368 {offsets = [0, 0, 0], sizes = [4, 16, 128], strides = [1, 1, 1]} : vector<6x16x128xbf16> to vector<4x16x128xbf16>
    %379 = vector.shape_cast %378 : vector<4x16x128xbf16> to vector<64x128xbf16>
    %c1_285 = arith.constant 1 : index
    %c0_286 = arith.constant 0 : index
    %c0_287 = arith.constant 0 : index
    %380 = vector.load %arg5[%c1_285, %c0_286, %c0_287] : memref<9x128x128xbf16, #tpu.memory_space<vmem>>, vector<1x128x128xbf16>
    %381 = vector.shape_cast %380 : vector<1x128x128xbf16> to vector<128x128xbf16>
    %cst_288 = arith.constant dense<0.000000e+00> : vector<64x128xf32>
    %382 = tpu.matmul %379, %381, %cst_288 {dimension_numbers = #tpu.dot_dimension_numbers<[1], [0], [0], [1], [0, 0, 1, 1], [], []>} : vector<64x128xbf16>, vector<128x128xbf16>, vector<64x128xf32> -> vector<64x128xf32>
    %383 = arith.addf %377, %382 : vector<64x128xf32>
    %384 = vector.extract_strided_slice %370 {offsets = [0, 0, 0], sizes = [4, 16, 128], strides = [1, 1, 1]} : vector<6x16x128xbf16> to vector<4x16x128xbf16>
    %385 = vector.shape_cast %384 : vector<4x16x128xbf16> to vector<64x128xbf16>
    %c2_289 = arith.constant 2 : index
    %c0_290 = arith.constant 0 : index
    %c0_291 = arith.constant 0 : index
    %386 = vector.load %arg5[%c2_289, %c0_290, %c0_291] : memref<9x128x128xbf16, #tpu.memory_space<vmem>>, vector<1x128x128xbf16>
    %387 = vector.shape_cast %386 : vector<1x128x128xbf16> to vector<128x128xbf16>
    %cst_292 = arith.constant dense<0.000000e+00> : vector<64x128xf32>
    %388 = tpu.matmul %385, %387, %cst_292 {dimension_numbers = #tpu.dot_dimension_numbers<[1], [0], [0], [1], [0, 0, 1, 1], [], []>} : vector<64x128xbf16>, vector<128x128xbf16>, vector<64x128xf32> -> vector<64x128xf32>
    %389 = arith.addf %383, %388 : vector<64x128xf32>
    %390 = vector.extract_strided_slice %366 {offsets = [1, 0, 0], sizes = [4, 16, 128], strides = [1, 1, 1]} : vector<6x16x128xbf16> to vector<4x16x128xbf16>
    %391 = vector.shape_cast %390 : vector<4x16x128xbf16> to vector<64x128xbf16>
    %c3_293 = arith.constant 3 : index
    %c0_294 = arith.constant 0 : index
    %c0_295 = arith.constant 0 : index
    %392 = vector.load %arg5[%c3_293, %c0_294, %c0_295] : memref<9x128x128xbf16, #tpu.memory_space<vmem>>, vector<1x128x128xbf16>
    %393 = vector.shape_cast %392 : vector<1x128x128xbf16> to vector<128x128xbf16>
    %cst_296 = arith.constant dense<0.000000e+00> : vector<64x128xf32>
    %394 = tpu.matmul %391, %393, %cst_296 {dimension_numbers = #tpu.dot_dimension_numbers<[1], [0], [0], [1], [0, 0, 1, 1], [], []>} : vector<64x128xbf16>, vector<128x128xbf16>, vector<64x128xf32> -> vector<64x128xf32>
    %395 = arith.addf %389, %394 : vector<64x128xf32>
    %396 = vector.extract_strided_slice %368 {offsets = [1, 0, 0], sizes = [4, 16, 128], strides = [1, 1, 1]} : vector<6x16x128xbf16> to vector<4x16x128xbf16>
    %397 = vector.shape_cast %396 : vector<4x16x128xbf16> to vector<64x128xbf16>
    %c4_297 = arith.constant 4 : index
    %c0_298 = arith.constant 0 : index
    %c0_299 = arith.constant 0 : index
    %398 = vector.load %arg5[%c4_297, %c0_298, %c0_299] : memref<9x128x128xbf16, #tpu.memory_space<vmem>>, vector<1x128x128xbf16>
    %399 = vector.shape_cast %398 : vector<1x128x128xbf16> to vector<128x128xbf16>
    %cst_300 = arith.constant dense<0.000000e+00> : vector<64x128xf32>
    %400 = tpu.matmul %397, %399, %cst_300 {dimension_numbers = #tpu.dot_dimension_numbers<[1], [0], [0], [1], [0, 0, 1, 1], [], []>} : vector<64x128xbf16>, vector<128x128xbf16>, vector<64x128xf32> -> vector<64x128xf32>
    %401 = arith.addf %395, %400 : vector<64x128xf32>
    %402 = vector.extract_strided_slice %370 {offsets = [1, 0, 0], sizes = [4, 16, 128], strides = [1, 1, 1]} : vector<6x16x128xbf16> to vector<4x16x128xbf16>
    %403 = vector.shape_cast %402 : vector<4x16x128xbf16> to vector<64x128xbf16>
    %c5_301 = arith.constant 5 : index
    %c0_302 = arith.constant 0 : index
    %c0_303 = arith.constant 0 : index
    %404 = vector.load %arg5[%c5_301, %c0_302, %c0_303] : memref<9x128x128xbf16, #tpu.memory_space<vmem>>, vector<1x128x128xbf16>
    %405 = vector.shape_cast %404 : vector<1x128x128xbf16> to vector<128x128xbf16>
    %cst_304 = arith.constant dense<0.000000e+00> : vector<64x128xf32>
    %406 = tpu.matmul %403, %405, %cst_304 {dimension_numbers = #tpu.dot_dimension_numbers<[1], [0], [0], [1], [0, 0, 1, 1], [], []>} : vector<64x128xbf16>, vector<128x128xbf16>, vector<64x128xf32> -> vector<64x128xf32>
    %407 = arith.addf %401, %406 : vector<64x128xf32>
    %408 = vector.extract_strided_slice %366 {offsets = [2, 0, 0], sizes = [4, 16, 128], strides = [1, 1, 1]} : vector<6x16x128xbf16> to vector<4x16x128xbf16>
    %409 = vector.shape_cast %408 : vector<4x16x128xbf16> to vector<64x128xbf16>
    %c6_305 = arith.constant 6 : index
    %c0_306 = arith.constant 0 : index
    %c0_307 = arith.constant 0 : index
    %410 = vector.load %arg5[%c6_305, %c0_306, %c0_307] : memref<9x128x128xbf16, #tpu.memory_space<vmem>>, vector<1x128x128xbf16>
    %411 = vector.shape_cast %410 : vector<1x128x128xbf16> to vector<128x128xbf16>
    %cst_308 = arith.constant dense<0.000000e+00> : vector<64x128xf32>
    %412 = tpu.matmul %409, %411, %cst_308 {dimension_numbers = #tpu.dot_dimension_numbers<[1], [0], [0], [1], [0, 0, 1, 1], [], []>} : vector<64x128xbf16>, vector<128x128xbf16>, vector<64x128xf32> -> vector<64x128xf32>
    %413 = arith.addf %407, %412 : vector<64x128xf32>
    %414 = vector.extract_strided_slice %368 {offsets = [2, 0, 0], sizes = [4, 16, 128], strides = [1, 1, 1]} : vector<6x16x128xbf16> to vector<4x16x128xbf16>
    %415 = vector.shape_cast %414 : vector<4x16x128xbf16> to vector<64x128xbf16>
    %c7_309 = arith.constant 7 : index
    %c0_310 = arith.constant 0 : index
    %c0_311 = arith.constant 0 : index
    %416 = vector.load %arg5[%c7_309, %c0_310, %c0_311] : memref<9x128x128xbf16, #tpu.memory_space<vmem>>, vector<1x128x128xbf16>
    %417 = vector.shape_cast %416 : vector<1x128x128xbf16> to vector<128x128xbf16>
    %cst_312 = arith.constant dense<0.000000e+00> : vector<64x128xf32>
    %418 = tpu.matmul %415, %417, %cst_312 {dimension_numbers = #tpu.dot_dimension_numbers<[1], [0], [0], [1], [0, 0, 1, 1], [], []>} : vector<64x128xbf16>, vector<128x128xbf16>, vector<64x128xf32> -> vector<64x128xf32>
    %419 = arith.addf %413, %418 : vector<64x128xf32>
    %420 = vector.extract_strided_slice %370 {offsets = [2, 0, 0], sizes = [4, 16, 128], strides = [1, 1, 1]} : vector<6x16x128xbf16> to vector<4x16x128xbf16>
    %421 = vector.shape_cast %420 : vector<4x16x128xbf16> to vector<64x128xbf16>
    %c8_313 = arith.constant 8 : index
    %c0_314 = arith.constant 0 : index
    %c0_315 = arith.constant 0 : index
    %422 = vector.load %arg5[%c8_313, %c0_314, %c0_315] : memref<9x128x128xbf16, #tpu.memory_space<vmem>>, vector<1x128x128xbf16>
    %423 = vector.shape_cast %422 : vector<1x128x128xbf16> to vector<128x128xbf16>
    %cst_316 = arith.constant dense<0.000000e+00> : vector<64x128xf32>
    %424 = tpu.matmul %421, %423, %cst_316 {dimension_numbers = #tpu.dot_dimension_numbers<[1], [0], [0], [1], [0, 0, 1, 1], [], []>} : vector<64x128xbf16>, vector<128x128xbf16>, vector<64x128xf32> -> vector<64x128xf32>
    %425 = arith.addf %419, %424 : vector<64x128xf32>
    %426 = vector.broadcast %154 : vector<1x128xf32> to vector<64x128xf32>
    %427 = arith.mulf %425, %426 : vector<64x128xf32>
    %428 = vector.broadcast %155 : vector<1x128xf32> to vector<64x128xf32>
    %429 = arith.addf %427, %428 : vector<64x128xf32>
    %cst_317 = arith.constant 0.000000e+00 : f32
    %430 = vector.broadcast %cst_317 : f32 to vector<64x128xf32>
    %431 = arith.maximumf %429, %430 : vector<64x128xf32>
    %cst_318 = arith.constant dense<0.000000e+00> : vector<128xf32>
    %432 = vector.multi_reduction <add>, %431, %cst_318 [0] : vector<64x128xf32> to vector<128xf32>
    %433 = vector.shape_cast %432 : vector<128xf32> to vector<1x128xf32>
    %434 = arith.addf %364, %433 : vector<1x128xf32>
    %c1_319 = arith.constant 1 : index
    %c0_320 = arith.constant 0 : index
    %c0_321 = arith.constant 0 : index
    %c0_322 = arith.constant 0 : index
    %435 = vector.load %arg11[%c1_319, %c0_320, %c0_321, %c0_322] : memref<4x18x18x128xbf16, #tpu.memory_space<vmem>>, vector<1x6x16x128xbf16>
    %436 = vector.shape_cast %435 : vector<1x6x16x128xbf16> to vector<6x16x128xbf16>
    %c1_323 = arith.constant 1 : index
    %c0_324 = arith.constant 0 : index
    %c1_325 = arith.constant 1 : index
    %c0_326 = arith.constant 0 : index
    %437 = vector.load %arg11[%c1_323, %c0_324, %c1_325, %c0_326] : memref<4x18x18x128xbf16, #tpu.memory_space<vmem>>, vector<1x6x16x128xbf16>
    %438 = vector.shape_cast %437 : vector<1x6x16x128xbf16> to vector<6x16x128xbf16>
    %c1_327 = arith.constant 1 : index
    %c0_328 = arith.constant 0 : index
    %c2_329 = arith.constant 2 : index
    %c0_330 = arith.constant 0 : index
    %439 = vector.load %arg11[%c1_327, %c0_328, %c2_329, %c0_330] : memref<4x18x18x128xbf16, #tpu.memory_space<vmem>>, vector<1x6x16x128xbf16>
    %440 = vector.shape_cast %439 : vector<1x6x16x128xbf16> to vector<6x16x128xbf16>
    %cst_331 = arith.constant 0.000000e+00 : f32
    %441 = vector.broadcast %cst_331 : f32 to vector<64x128xf32>
    %442 = vector.extract_strided_slice %436 {offsets = [0, 0, 0], sizes = [4, 16, 128], strides = [1, 1, 1]} : vector<6x16x128xbf16> to vector<4x16x128xbf16>
    %443 = vector.shape_cast %442 : vector<4x16x128xbf16> to vector<64x128xbf16>
    %c0_332 = arith.constant 0 : index
    %c0_333 = arith.constant 0 : index
    %c0_334 = arith.constant 0 : index
    %444 = vector.load %arg5[%c0_332, %c0_333, %c0_334] : memref<9x128x128xbf16, #tpu.memory_space<vmem>>, vector<1x128x128xbf16>
    %445 = vector.shape_cast %444 : vector<1x128x128xbf16> to vector<128x128xbf16>
    %cst_335 = arith.constant dense<0.000000e+00> : vector<64x128xf32>
    %446 = tpu.matmul %443, %445, %cst_335 {dimension_numbers = #tpu.dot_dimension_numbers<[1], [0], [0], [1], [0, 0, 1, 1], [], []>} : vector<64x128xbf16>, vector<128x128xbf16>, vector<64x128xf32> -> vector<64x128xf32>
    %447 = arith.addf %441, %446 : vector<64x128xf32>
    %448 = vector.extract_strided_slice %438 {offsets = [0, 0, 0], sizes = [4, 16, 128], strides = [1, 1, 1]} : vector<6x16x128xbf16> to vector<4x16x128xbf16>
    %449 = vector.shape_cast %448 : vector<4x16x128xbf16> to vector<64x128xbf16>
    %c1_336 = arith.constant 1 : index
    %c0_337 = arith.constant 0 : index
    %c0_338 = arith.constant 0 : index
    %450 = vector.load %arg5[%c1_336, %c0_337, %c0_338] : memref<9x128x128xbf16, #tpu.memory_space<vmem>>, vector<1x128x128xbf16>
    %451 = vector.shape_cast %450 : vector<1x128x128xbf16> to vector<128x128xbf16>
    %cst_339 = arith.constant dense<0.000000e+00> : vector<64x128xf32>
    %452 = tpu.matmul %449, %451, %cst_339 {dimension_numbers = #tpu.dot_dimension_numbers<[1], [0], [0], [1], [0, 0, 1, 1], [], []>} : vector<64x128xbf16>, vector<128x128xbf16>, vector<64x128xf32> -> vector<64x128xf32>
    %453 = arith.addf %447, %452 : vector<64x128xf32>
    %454 = vector.extract_strided_slice %440 {offsets = [0, 0, 0], sizes = [4, 16, 128], strides = [1, 1, 1]} : vector<6x16x128xbf16> to vector<4x16x128xbf16>
    %455 = vector.shape_cast %454 : vector<4x16x128xbf16> to vector<64x128xbf16>
    %c2_340 = arith.constant 2 : index
    %c0_341 = arith.constant 0 : index
    %c0_342 = arith.constant 0 : index
    %456 = vector.load %arg5[%c2_340, %c0_341, %c0_342] : memref<9x128x128xbf16, #tpu.memory_space<vmem>>, vector<1x128x128xbf16>
    %457 = vector.shape_cast %456 : vector<1x128x128xbf16> to vector<128x128xbf16>
    %cst_343 = arith.constant dense<0.000000e+00> : vector<64x128xf32>
    %458 = tpu.matmul %455, %457, %cst_343 {dimension_numbers = #tpu.dot_dimension_numbers<[1], [0], [0], [1], [0, 0, 1, 1], [], []>} : vector<64x128xbf16>, vector<128x128xbf16>, vector<64x128xf32> -> vector<64x128xf32>
    %459 = arith.addf %453, %458 : vector<64x128xf32>
    %460 = vector.extract_strided_slice %436 {offsets = [1, 0, 0], sizes = [4, 16, 128], strides = [1, 1, 1]} : vector<6x16x128xbf16> to vector<4x16x128xbf16>
    %461 = vector.shape_cast %460 : vector<4x16x128xbf16> to vector<64x128xbf16>
    %c3_344 = arith.constant 3 : index
    %c0_345 = arith.constant 0 : index
    %c0_346 = arith.constant 0 : index
    %462 = vector.load %arg5[%c3_344, %c0_345, %c0_346] : memref<9x128x128xbf16, #tpu.memory_space<vmem>>, vector<1x128x128xbf16>
    %463 = vector.shape_cast %462 : vector<1x128x128xbf16> to vector<128x128xbf16>
    %cst_347 = arith.constant dense<0.000000e+00> : vector<64x128xf32>
    %464 = tpu.matmul %461, %463, %cst_347 {dimension_numbers = #tpu.dot_dimension_numbers<[1], [0], [0], [1], [0, 0, 1, 1], [], []>} : vector<64x128xbf16>, vector<128x128xbf16>, vector<64x128xf32> -> vector<64x128xf32>
    %465 = arith.addf %459, %464 : vector<64x128xf32>
    %466 = vector.extract_strided_slice %438 {offsets = [1, 0, 0], sizes = [4, 16, 128], strides = [1, 1, 1]} : vector<6x16x128xbf16> to vector<4x16x128xbf16>
    %467 = vector.shape_cast %466 : vector<4x16x128xbf16> to vector<64x128xbf16>
    %c4_348 = arith.constant 4 : index
    %c0_349 = arith.constant 0 : index
    %c0_350 = arith.constant 0 : index
    %468 = vector.load %arg5[%c4_348, %c0_349, %c0_350] : memref<9x128x128xbf16, #tpu.memory_space<vmem>>, vector<1x128x128xbf16>
    %469 = vector.shape_cast %468 : vector<1x128x128xbf16> to vector<128x128xbf16>
    %cst_351 = arith.constant dense<0.000000e+00> : vector<64x128xf32>
    %470 = tpu.matmul %467, %469, %cst_351 {dimension_numbers = #tpu.dot_dimension_numbers<[1], [0], [0], [1], [0, 0, 1, 1], [], []>} : vector<64x128xbf16>, vector<128x128xbf16>, vector<64x128xf32> -> vector<64x128xf32>
    %471 = arith.addf %465, %470 : vector<64x128xf32>
    %472 = vector.extract_strided_slice %440 {offsets = [1, 0, 0], sizes = [4, 16, 128], strides = [1, 1, 1]} : vector<6x16x128xbf16> to vector<4x16x128xbf16>
    %473 = vector.shape_cast %472 : vector<4x16x128xbf16> to vector<64x128xbf16>
    %c5_352 = arith.constant 5 : index
    %c0_353 = arith.constant 0 : index
    %c0_354 = arith.constant 0 : index
    %474 = vector.load %arg5[%c5_352, %c0_353, %c0_354] : memref<9x128x128xbf16, #tpu.memory_space<vmem>>, vector<1x128x128xbf16>
    %475 = vector.shape_cast %474 : vector<1x128x128xbf16> to vector<128x128xbf16>
    %cst_355 = arith.constant dense<0.000000e+00> : vector<64x128xf32>
    %476 = tpu.matmul %473, %475, %cst_355 {dimension_numbers = #tpu.dot_dimension_numbers<[1], [0], [0], [1], [0, 0, 1, 1], [], []>} : vector<64x128xbf16>, vector<128x128xbf16>, vector<64x128xf32> -> vector<64x128xf32>
    %477 = arith.addf %471, %476 : vector<64x128xf32>
    %478 = vector.extract_strided_slice %436 {offsets = [2, 0, 0], sizes = [4, 16, 128], strides = [1, 1, 1]} : vector<6x16x128xbf16> to vector<4x16x128xbf16>
    %479 = vector.shape_cast %478 : vector<4x16x128xbf16> to vector<64x128xbf16>
    %c6_356 = arith.constant 6 : index
    %c0_357 = arith.constant 0 : index
    %c0_358 = arith.constant 0 : index
    %480 = vector.load %arg5[%c6_356, %c0_357, %c0_358] : memref<9x128x128xbf16, #tpu.memory_space<vmem>>, vector<1x128x128xbf16>
    %481 = vector.shape_cast %480 : vector<1x128x128xbf16> to vector<128x128xbf16>
    %cst_359 = arith.constant dense<0.000000e+00> : vector<64x128xf32>
    %482 = tpu.matmul %479, %481, %cst_359 {dimension_numbers = #tpu.dot_dimension_numbers<[1], [0], [0], [1], [0, 0, 1, 1], [], []>} : vector<64x128xbf16>, vector<128x128xbf16>, vector<64x128xf32> -> vector<64x128xf32>
    %483 = arith.addf %477, %482 : vector<64x128xf32>
    %484 = vector.extract_strided_slice %438 {offsets = [2, 0, 0], sizes = [4, 16, 128], strides = [1, 1, 1]} : vector<6x16x128xbf16> to vector<4x16x128xbf16>
    %485 = vector.shape_cast %484 : vector<4x16x128xbf16> to vector<64x128xbf16>
    %c7_360 = arith.constant 7 : index
    %c0_361 = arith.constant 0 : index
    %c0_362 = arith.constant 0 : index
    %486 = vector.load %arg5[%c7_360, %c0_361, %c0_362] : memref<9x128x128xbf16, #tpu.memory_space<vmem>>, vector<1x128x128xbf16>
    %487 = vector.shape_cast %486 : vector<1x128x128xbf16> to vector<128x128xbf16>
    %cst_363 = arith.constant dense<0.000000e+00> : vector<64x128xf32>
    %488 = tpu.matmul %485, %487, %cst_363 {dimension_numbers = #tpu.dot_dimension_numbers<[1], [0], [0], [1], [0, 0, 1, 1], [], []>} : vector<64x128xbf16>, vector<128x128xbf16>, vector<64x128xf32> -> vector<64x128xf32>
    %489 = arith.addf %483, %488 : vector<64x128xf32>
    %490 = vector.extract_strided_slice %440 {offsets = [2, 0, 0], sizes = [4, 16, 128], strides = [1, 1, 1]} : vector<6x16x128xbf16> to vector<4x16x128xbf16>
    %491 = vector.shape_cast %490 : vector<4x16x128xbf16> to vector<64x128xbf16>
    %c8_364 = arith.constant 8 : index
    %c0_365 = arith.constant 0 : index
    %c0_366 = arith.constant 0 : index
    %492 = vector.load %arg5[%c8_364, %c0_365, %c0_366] : memref<9x128x128xbf16, #tpu.memory_space<vmem>>, vector<1x128x128xbf16>
    %493 = vector.shape_cast %492 : vector<1x128x128xbf16> to vector<128x128xbf16>
    %cst_367 = arith.constant dense<0.000000e+00> : vector<64x128xf32>
    %494 = tpu.matmul %491, %493, %cst_367 {dimension_numbers = #tpu.dot_dimension_numbers<[1], [0], [0], [1], [0, 0, 1, 1], [], []>} : vector<64x128xbf16>, vector<128x128xbf16>, vector<64x128xf32> -> vector<64x128xf32>
    %495 = arith.addf %489, %494 : vector<64x128xf32>
    %496 = vector.broadcast %154 : vector<1x128xf32> to vector<64x128xf32>
    %497 = arith.mulf %495, %496 : vector<64x128xf32>
    %498 = vector.broadcast %155 : vector<1x128xf32> to vector<64x128xf32>
    %499 = arith.addf %497, %498 : vector<64x128xf32>
    %cst_368 = arith.constant 0.000000e+00 : f32
    %500 = vector.broadcast %cst_368 : f32 to vector<64x128xf32>
    %501 = arith.maximumf %499, %500 : vector<64x128xf32>
    %cst_369 = arith.constant dense<0.000000e+00> : vector<128xf32>
    %502 = vector.multi_reduction <add>, %501, %cst_369 [0] : vector<64x128xf32> to vector<128xf32>
    %503 = vector.shape_cast %502 : vector<128xf32> to vector<1x128xf32>
    %c1_370 = arith.constant 1 : index
    %c4_371 = arith.constant 4 : index
    %c0_372 = arith.constant 0 : index
    %c0_373 = arith.constant 0 : index
    %504 = vector.load %arg11[%c1_370, %c4_371, %c0_372, %c0_373] : memref<4x18x18x128xbf16, #tpu.memory_space<vmem>>, vector<1x6x16x128xbf16>
    %505 = vector.shape_cast %504 : vector<1x6x16x128xbf16> to vector<6x16x128xbf16>
    %c1_374 = arith.constant 1 : index
    %c4_375 = arith.constant 4 : index
    %c1_376 = arith.constant 1 : index
    %c0_377 = arith.constant 0 : index
    %506 = vector.load %arg11[%c1_374, %c4_375, %c1_376, %c0_377] : memref<4x18x18x128xbf16, #tpu.memory_space<vmem>>, vector<1x6x16x128xbf16>
    %507 = vector.shape_cast %506 : vector<1x6x16x128xbf16> to vector<6x16x128xbf16>
    %c1_378 = arith.constant 1 : index
    %c4_379 = arith.constant 4 : index
    %c2_380 = arith.constant 2 : index
    %c0_381 = arith.constant 0 : index
    %508 = vector.load %arg11[%c1_378, %c4_379, %c2_380, %c0_381] : memref<4x18x18x128xbf16, #tpu.memory_space<vmem>>, vector<1x6x16x128xbf16>
    %509 = vector.shape_cast %508 : vector<1x6x16x128xbf16> to vector<6x16x128xbf16>
    %cst_382 = arith.constant 0.000000e+00 : f32
    %510 = vector.broadcast %cst_382 : f32 to vector<64x128xf32>
    %511 = vector.extract_strided_slice %505 {offsets = [0, 0, 0], sizes = [4, 16, 128], strides = [1, 1, 1]} : vector<6x16x128xbf16> to vector<4x16x128xbf16>
    %512 = vector.shape_cast %511 : vector<4x16x128xbf16> to vector<64x128xbf16>
    %c0_383 = arith.constant 0 : index
    %c0_384 = arith.constant 0 : index
    %c0_385 = arith.constant 0 : index
    %513 = vector.load %arg5[%c0_383, %c0_384, %c0_385] : memref<9x128x128xbf16, #tpu.memory_space<vmem>>, vector<1x128x128xbf16>
    %514 = vector.shape_cast %513 : vector<1x128x128xbf16> to vector<128x128xbf16>
    %cst_386 = arith.constant dense<0.000000e+00> : vector<64x128xf32>
    %515 = tpu.matmul %512, %514, %cst_386 {dimension_numbers = #tpu.dot_dimension_numbers<[1], [0], [0], [1], [0, 0, 1, 1], [], []>} : vector<64x128xbf16>, vector<128x128xbf16>, vector<64x128xf32> -> vector<64x128xf32>
    %516 = arith.addf %510, %515 : vector<64x128xf32>
    %517 = vector.extract_strided_slice %507 {offsets = [0, 0, 0], sizes = [4, 16, 128], strides = [1, 1, 1]} : vector<6x16x128xbf16> to vector<4x16x128xbf16>
    %518 = vector.shape_cast %517 : vector<4x16x128xbf16> to vector<64x128xbf16>
    %c1_387 = arith.constant 1 : index
    %c0_388 = arith.constant 0 : index
    %c0_389 = arith.constant 0 : index
    %519 = vector.load %arg5[%c1_387, %c0_388, %c0_389] : memref<9x128x128xbf16, #tpu.memory_space<vmem>>, vector<1x128x128xbf16>
    %520 = vector.shape_cast %519 : vector<1x128x128xbf16> to vector<128x128xbf16>
    %cst_390 = arith.constant dense<0.000000e+00> : vector<64x128xf32>
    %521 = tpu.matmul %518, %520, %cst_390 {dimension_numbers = #tpu.dot_dimension_numbers<[1], [0], [0], [1], [0, 0, 1, 1], [], []>} : vector<64x128xbf16>, vector<128x128xbf16>, vector<64x128xf32> -> vector<64x128xf32>
    %522 = arith.addf %516, %521 : vector<64x128xf32>
    %523 = vector.extract_strided_slice %509 {offsets = [0, 0, 0], sizes = [4, 16, 128], strides = [1, 1, 1]} : vector<6x16x128xbf16> to vector<4x16x128xbf16>
    %524 = vector.shape_cast %523 : vector<4x16x128xbf16> to vector<64x128xbf16>
    %c2_391 = arith.constant 2 : index
    %c0_392 = arith.constant 0 : index
    %c0_393 = arith.constant 0 : index
    %525 = vector.load %arg5[%c2_391, %c0_392, %c0_393] : memref<9x128x128xbf16, #tpu.memory_space<vmem>>, vector<1x128x128xbf16>
    %526 = vector.shape_cast %525 : vector<1x128x128xbf16> to vector<128x128xbf16>
    %cst_394 = arith.constant dense<0.000000e+00> : vector<64x128xf32>
    %527 = tpu.matmul %524, %526, %cst_394 {dimension_numbers = #tpu.dot_dimension_numbers<[1], [0], [0], [1], [0, 0, 1, 1], [], []>} : vector<64x128xbf16>, vector<128x128xbf16>, vector<64x128xf32> -> vector<64x128xf32>
    %528 = arith.addf %522, %527 : vector<64x128xf32>
    %529 = vector.extract_strided_slice %505 {offsets = [1, 0, 0], sizes = [4, 16, 128], strides = [1, 1, 1]} : vector<6x16x128xbf16> to vector<4x16x128xbf16>
    %530 = vector.shape_cast %529 : vector<4x16x128xbf16> to vector<64x128xbf16>
    %c3_395 = arith.constant 3 : index
    %c0_396 = arith.constant 0 : index
    %c0_397 = arith.constant 0 : index
    %531 = vector.load %arg5[%c3_395, %c0_396, %c0_397] : memref<9x128x128xbf16, #tpu.memory_space<vmem>>, vector<1x128x128xbf16>
    %532 = vector.shape_cast %531 : vector<1x128x128xbf16> to vector<128x128xbf16>
    %cst_398 = arith.constant dense<0.000000e+00> : vector<64x128xf32>
    %533 = tpu.matmul %530, %532, %cst_398 {dimension_numbers = #tpu.dot_dimension_numbers<[1], [0], [0], [1], [0, 0, 1, 1], [], []>} : vector<64x128xbf16>, vector<128x128xbf16>, vector<64x128xf32> -> vector<64x128xf32>
    %534 = arith.addf %528, %533 : vector<64x128xf32>
    %535 = vector.extract_strided_slice %507 {offsets = [1, 0, 0], sizes = [4, 16, 128], strides = [1, 1, 1]} : vector<6x16x128xbf16> to vector<4x16x128xbf16>
    %536 = vector.shape_cast %535 : vector<4x16x128xbf16> to vector<64x128xbf16>
    %c4_399 = arith.constant 4 : index
    %c0_400 = arith.constant 0 : index
    %c0_401 = arith.constant 0 : index
    %537 = vector.load %arg5[%c4_399, %c0_400, %c0_401] : memref<9x128x128xbf16, #tpu.memory_space<vmem>>, vector<1x128x128xbf16>
    %538 = vector.shape_cast %537 : vector<1x128x128xbf16> to vector<128x128xbf16>
    %cst_402 = arith.constant dense<0.000000e+00> : vector<64x128xf32>
    %539 = tpu.matmul %536, %538, %cst_402 {dimension_numbers = #tpu.dot_dimension_numbers<[1], [0], [0], [1], [0, 0, 1, 1], [], []>} : vector<64x128xbf16>, vector<128x128xbf16>, vector<64x128xf32> -> vector<64x128xf32>
    %540 = arith.addf %534, %539 : vector<64x128xf32>
    %541 = vector.extract_strided_slice %509 {offsets = [1, 0, 0], sizes = [4, 16, 128], strides = [1, 1, 1]} : vector<6x16x128xbf16> to vector<4x16x128xbf16>
    %542 = vector.shape_cast %541 : vector<4x16x128xbf16> to vector<64x128xbf16>
    %c5_403 = arith.constant 5 : index
    %c0_404 = arith.constant 0 : index
    %c0_405 = arith.constant 0 : index
    %543 = vector.load %arg5[%c5_403, %c0_404, %c0_405] : memref<9x128x128xbf16, #tpu.memory_space<vmem>>, vector<1x128x128xbf16>
    %544 = vector.shape_cast %543 : vector<1x128x128xbf16> to vector<128x128xbf16>
    %cst_406 = arith.constant dense<0.000000e+00> : vector<64x128xf32>
    %545 = tpu.matmul %542, %544, %cst_406 {dimension_numbers = #tpu.dot_dimension_numbers<[1], [0], [0], [1], [0, 0, 1, 1], [], []>} : vector<64x128xbf16>, vector<128x128xbf16>, vector<64x128xf32> -> vector<64x128xf32>
    %546 = arith.addf %540, %545 : vector<64x128xf32>
    %547 = vector.extract_strided_slice %505 {offsets = [2, 0, 0], sizes = [4, 16, 128], strides = [1, 1, 1]} : vector<6x16x128xbf16> to vector<4x16x128xbf16>
    %548 = vector.shape_cast %547 : vector<4x16x128xbf16> to vector<64x128xbf16>
    %c6_407 = arith.constant 6 : index
    %c0_408 = arith.constant 0 : index
    %c0_409 = arith.constant 0 : index
    %549 = vector.load %arg5[%c6_407, %c0_408, %c0_409] : memref<9x128x128xbf16, #tpu.memory_space<vmem>>, vector<1x128x128xbf16>
    %550 = vector.shape_cast %549 : vector<1x128x128xbf16> to vector<128x128xbf16>
    %cst_410 = arith.constant dense<0.000000e+00> : vector<64x128xf32>
    %551 = tpu.matmul %548, %550, %cst_410 {dimension_numbers = #tpu.dot_dimension_numbers<[1], [0], [0], [1], [0, 0, 1, 1], [], []>} : vector<64x128xbf16>, vector<128x128xbf16>, vector<64x128xf32> -> vector<64x128xf32>
    %552 = arith.addf %546, %551 : vector<64x128xf32>
    %553 = vector.extract_strided_slice %507 {offsets = [2, 0, 0], sizes = [4, 16, 128], strides = [1, 1, 1]} : vector<6x16x128xbf16> to vector<4x16x128xbf16>
    %554 = vector.shape_cast %553 : vector<4x16x128xbf16> to vector<64x128xbf16>
    %c7_411 = arith.constant 7 : index
    %c0_412 = arith.constant 0 : index
    %c0_413 = arith.constant 0 : index
    %555 = vector.load %arg5[%c7_411, %c0_412, %c0_413] : memref<9x128x128xbf16, #tpu.memory_space<vmem>>, vector<1x128x128xbf16>
    %556 = vector.shape_cast %555 : vector<1x128x128xbf16> to vector<128x128xbf16>
    %cst_414 = arith.constant dense<0.000000e+00> : vector<64x128xf32>
    %557 = tpu.matmul %554, %556, %cst_414 {dimension_numbers = #tpu.dot_dimension_numbers<[1], [0], [0], [1], [0, 0, 1, 1], [], []>} : vector<64x128xbf16>, vector<128x128xbf16>, vector<64x128xf32> -> vector<64x128xf32>
    %558 = arith.addf %552, %557 : vector<64x128xf32>
    %559 = vector.extract_strided_slice %509 {offsets = [2, 0, 0], sizes = [4, 16, 128], strides = [1, 1, 1]} : vector<6x16x128xbf16> to vector<4x16x128xbf16>
    %560 = vector.shape_cast %559 : vector<4x16x128xbf16> to vector<64x128xbf16>
    %c8_415 = arith.constant 8 : index
    %c0_416 = arith.constant 0 : index
    %c0_417 = arith.constant 0 : index
    %561 = vector.load %arg5[%c8_415, %c0_416, %c0_417] : memref<9x128x128xbf16, #tpu.memory_space<vmem>>, vector<1x128x128xbf16>
    %562 = vector.shape_cast %561 : vector<1x128x128xbf16> to vector<128x128xbf16>
    %cst_418 = arith.constant dense<0.000000e+00> : vector<64x128xf32>
    %563 = tpu.matmul %560, %562, %cst_418 {dimension_numbers = #tpu.dot_dimension_numbers<[1], [0], [0], [1], [0, 0, 1, 1], [], []>} : vector<64x128xbf16>, vector<128x128xbf16>, vector<64x128xf32> -> vector<64x128xf32>
    %564 = arith.addf %558, %563 : vector<64x128xf32>
    %565 = vector.broadcast %154 : vector<1x128xf32> to vector<64x128xf32>
    %566 = arith.mulf %564, %565 : vector<64x128xf32>
    %567 = vector.broadcast %155 : vector<1x128xf32> to vector<64x128xf32>
    %568 = arith.addf %566, %567 : vector<64x128xf32>
    %cst_419 = arith.constant 0.000000e+00 : f32
    %569 = vector.broadcast %cst_419 : f32 to vector<64x128xf32>
    %570 = arith.maximumf %568, %569 : vector<64x128xf32>
    %cst_420 = arith.constant dense<0.000000e+00> : vector<128xf32>
    %571 = vector.multi_reduction <add>, %570, %cst_420 [0] : vector<64x128xf32> to vector<128xf32>
    %572 = vector.shape_cast %571 : vector<128xf32> to vector<1x128xf32>
    %573 = arith.addf %503, %572 : vector<1x128xf32>
    %c1_421 = arith.constant 1 : index
    %c8_422 = arith.constant 8 : index
    %c0_423 = arith.constant 0 : index
    %c0_424 = arith.constant 0 : index
    %574 = vector.load %arg11[%c1_421, %c8_422, %c0_423, %c0_424] : memref<4x18x18x128xbf16, #tpu.memory_space<vmem>>, vector<1x6x16x128xbf16>
    %575 = vector.shape_cast %574 : vector<1x6x16x128xbf16> to vector<6x16x128xbf16>
    %c1_425 = arith.constant 1 : index
    %c8_426 = arith.constant 8 : index
    %c1_427 = arith.constant 1 : index
    %c0_428 = arith.constant 0 : index
    %576 = vector.load %arg11[%c1_425, %c8_426, %c1_427, %c0_428] : memref<4x18x18x128xbf16, #tpu.memory_space<vmem>>, vector<1x6x16x128xbf16>
    %577 = vector.shape_cast %576 : vector<1x6x16x128xbf16> to vector<6x16x128xbf16>
    %c1_429 = arith.constant 1 : index
    %c8_430 = arith.constant 8 : index
    %c2_431 = arith.constant 2 : index
    %c0_432 = arith.constant 0 : index
    %578 = vector.load %arg11[%c1_429, %c8_430, %c2_431, %c0_432] : memref<4x18x18x128xbf16, #tpu.memory_space<vmem>>, vector<1x6x16x128xbf16>
    %579 = vector.shape_cast %578 : vector<1x6x16x128xbf16> to vector<6x16x128xbf16>
    %cst_433 = arith.constant 0.000000e+00 : f32
    %580 = vector.broadcast %cst_433 : f32 to vector<64x128xf32>
    %581 = vector.extract_strided_slice %575 {offsets = [0, 0, 0], sizes = [4, 16, 128], strides = [1, 1, 1]} : vector<6x16x128xbf16> to vector<4x16x128xbf16>
    %582 = vector.shape_cast %581 : vector<4x16x128xbf16> to vector<64x128xbf16>
    %c0_434 = arith.constant 0 : index
    %c0_435 = arith.constant 0 : index
    %c0_436 = arith.constant 0 : index
    %583 = vector.load %arg5[%c0_434, %c0_435, %c0_436] : memref<9x128x128xbf16, #tpu.memory_space<vmem>>, vector<1x128x128xbf16>
    %584 = vector.shape_cast %583 : vector<1x128x128xbf16> to vector<128x128xbf16>
    %cst_437 = arith.constant dense<0.000000e+00> : vector<64x128xf32>
    %585 = tpu.matmul %582, %584, %cst_437 {dimension_numbers = #tpu.dot_dimension_numbers<[1], [0], [0], [1], [0, 0, 1, 1], [], []>} : vector<64x128xbf16>, vector<128x128xbf16>, vector<64x128xf32> -> vector<64x128xf32>
    %586 = arith.addf %580, %585 : vector<64x128xf32>
    %587 = vector.extract_strided_slice %577 {offsets = [0, 0, 0], sizes = [4, 16, 128], strides = [1, 1, 1]} : vector<6x16x128xbf16> to vector<4x16x128xbf16>
    %588 = vector.shape_cast %587 : vector<4x16x128xbf16> to vector<64x128xbf16>
    %c1_438 = arith.constant 1 : index
    %c0_439 = arith.constant 0 : index
    %c0_440 = arith.constant 0 : index
    %589 = vector.load %arg5[%c1_438, %c0_439, %c0_440] : memref<9x128x128xbf16, #tpu.memory_space<vmem>>, vector<1x128x128xbf16>
    %590 = vector.shape_cast %589 : vector<1x128x128xbf16> to vector<128x128xbf16>
    %cst_441 = arith.constant dense<0.000000e+00> : vector<64x128xf32>
    %591 = tpu.matmul %588, %590, %cst_441 {dimension_numbers = #tpu.dot_dimension_numbers<[1], [0], [0], [1], [0, 0, 1, 1], [], []>} : vector<64x128xbf16>, vector<128x128xbf16>, vector<64x128xf32> -> vector<64x128xf32>
    %592 = arith.addf %586, %591 : vector<64x128xf32>
    %593 = vector.extract_strided_slice %579 {offsets = [0, 0, 0], sizes = [4, 16, 128], strides = [1, 1, 1]} : vector<6x16x128xbf16> to vector<4x16x128xbf16>
    %594 = vector.shape_cast %593 : vector<4x16x128xbf16> to vector<64x128xbf16>
    %c2_442 = arith.constant 2 : index
    %c0_443 = arith.constant 0 : index
    %c0_444 = arith.constant 0 : index
    %595 = vector.load %arg5[%c2_442, %c0_443, %c0_444] : memref<9x128x128xbf16, #tpu.memory_space<vmem>>, vector<1x128x128xbf16>
    %596 = vector.shape_cast %595 : vector<1x128x128xbf16> to vector<128x128xbf16>
    %cst_445 = arith.constant dense<0.000000e+00> : vector<64x128xf32>
    %597 = tpu.matmul %594, %596, %cst_445 {dimension_numbers = #tpu.dot_dimension_numbers<[1], [0], [0], [1], [0, 0, 1, 1], [], []>} : vector<64x128xbf16>, vector<128x128xbf16>, vector<64x128xf32> -> vector<64x128xf32>
    %598 = arith.addf %592, %597 : vector<64x128xf32>
    %599 = vector.extract_strided_slice %575 {offsets = [1, 0, 0], sizes = [4, 16, 128], strides = [1, 1, 1]} : vector<6x16x128xbf16> to vector<4x16x128xbf16>
    %600 = vector.shape_cast %599 : vector<4x16x128xbf16> to vector<64x128xbf16>
    %c3_446 = arith.constant 3 : index
    %c0_447 = arith.constant 0 : index
    %c0_448 = arith.constant 0 : index
    %601 = vector.load %arg5[%c3_446, %c0_447, %c0_448] : memref<9x128x128xbf16, #tpu.memory_space<vmem>>, vector<1x128x128xbf16>
    %602 = vector.shape_cast %601 : vector<1x128x128xbf16> to vector<128x128xbf16>
    %cst_449 = arith.constant dense<0.000000e+00> : vector<64x128xf32>
    %603 = tpu.matmul %600, %602, %cst_449 {dimension_numbers = #tpu.dot_dimension_numbers<[1], [0], [0], [1], [0, 0, 1, 1], [], []>} : vector<64x128xbf16>, vector<128x128xbf16>, vector<64x128xf32> -> vector<64x128xf32>
    %604 = arith.addf %598, %603 : vector<64x128xf32>
    %605 = vector.extract_strided_slice %577 {offsets = [1, 0, 0], sizes = [4, 16, 128], strides = [1, 1, 1]} : vector<6x16x128xbf16> to vector<4x16x128xbf16>
    %606 = vector.shape_cast %605 : vector<4x16x128xbf16> to vector<64x128xbf16>
    %c4_450 = arith.constant 4 : index
    %c0_451 = arith.constant 0 : index
    %c0_452 = arith.constant 0 : index
    %607 = vector.load %arg5[%c4_450, %c0_451, %c0_452] : memref<9x128x128xbf16, #tpu.memory_space<vmem>>, vector<1x128x128xbf16>
    %608 = vector.shape_cast %607 : vector<1x128x128xbf16> to vector<128x128xbf16>
    %cst_453 = arith.constant dense<0.000000e+00> : vector<64x128xf32>
    %609 = tpu.matmul %606, %608, %cst_453 {dimension_numbers = #tpu.dot_dimension_numbers<[1], [0], [0], [1], [0, 0, 1, 1], [], []>} : vector<64x128xbf16>, vector<128x128xbf16>, vector<64x128xf32> -> vector<64x128xf32>
    %610 = arith.addf %604, %609 : vector<64x128xf32>
    %611 = vector.extract_strided_slice %579 {offsets = [1, 0, 0], sizes = [4, 16, 128], strides = [1, 1, 1]} : vector<6x16x128xbf16> to vector<4x16x128xbf16>
    %612 = vector.shape_cast %611 : vector<4x16x128xbf16> to vector<64x128xbf16>
    %c5_454 = arith.constant 5 : index
    %c0_455 = arith.constant 0 : index
    %c0_456 = arith.constant 0 : index
    %613 = vector.load %arg5[%c5_454, %c0_455, %c0_456] : memref<9x128x128xbf16, #tpu.memory_space<vmem>>, vector<1x128x128xbf16>
    %614 = vector.shape_cast %613 : vector<1x128x128xbf16> to vector<128x128xbf16>
    %cst_457 = arith.constant dense<0.000000e+00> : vector<64x128xf32>
    %615 = tpu.matmul %612, %614, %cst_457 {dimension_numbers = #tpu.dot_dimension_numbers<[1], [0], [0], [1], [0, 0, 1, 1], [], []>} : vector<64x128xbf16>, vector<128x128xbf16>, vector<64x128xf32> -> vector<64x128xf32>
    %616 = arith.addf %610, %615 : vector<64x128xf32>
    %617 = vector.extract_strided_slice %575 {offsets = [2, 0, 0], sizes = [4, 16, 128], strides = [1, 1, 1]} : vector<6x16x128xbf16> to vector<4x16x128xbf16>
    %618 = vector.shape_cast %617 : vector<4x16x128xbf16> to vector<64x128xbf16>
    %c6_458 = arith.constant 6 : index
    %c0_459 = arith.constant 0 : index
    %c0_460 = arith.constant 0 : index
    %619 = vector.load %arg5[%c6_458, %c0_459, %c0_460] : memref<9x128x128xbf16, #tpu.memory_space<vmem>>, vector<1x128x128xbf16>
    %620 = vector.shape_cast %619 : vector<1x128x128xbf16> to vector<128x128xbf16>
    %cst_461 = arith.constant dense<0.000000e+00> : vector<64x128xf32>
    %621 = tpu.matmul %618, %620, %cst_461 {dimension_numbers = #tpu.dot_dimension_numbers<[1], [0], [0], [1], [0, 0, 1, 1], [], []>} : vector<64x128xbf16>, vector<128x128xbf16>, vector<64x128xf32> -> vector<64x128xf32>
    %622 = arith.addf %616, %621 : vector<64x128xf32>
    %623 = vector.extract_strided_slice %577 {offsets = [2, 0, 0], sizes = [4, 16, 128], strides = [1, 1, 1]} : vector<6x16x128xbf16> to vector<4x16x128xbf16>
    %624 = vector.shape_cast %623 : vector<4x16x128xbf16> to vector<64x128xbf16>
    %c7_462 = arith.constant 7 : index
    %c0_463 = arith.constant 0 : index
    %c0_464 = arith.constant 0 : index
    %625 = vector.load %arg5[%c7_462, %c0_463, %c0_464] : memref<9x128x128xbf16, #tpu.memory_space<vmem>>, vector<1x128x128xbf16>
    %626 = vector.shape_cast %625 : vector<1x128x128xbf16> to vector<128x128xbf16>
    %cst_465 = arith.constant dense<0.000000e+00> : vector<64x128xf32>
    %627 = tpu.matmul %624, %626, %cst_465 {dimension_numbers = #tpu.dot_dimension_numbers<[1], [0], [0], [1], [0, 0, 1, 1], [], []>} : vector<64x128xbf16>, vector<128x128xbf16>, vector<64x128xf32> -> vector<64x128xf32>
    %628 = arith.addf %622, %627 : vector<64x128xf32>
    %629 = vector.extract_strided_slice %579 {offsets = [2, 0, 0], sizes = [4, 16, 128], strides = [1, 1, 1]} : vector<6x16x128xbf16> to vector<4x16x128xbf16>
    %630 = vector.shape_cast %629 : vector<4x16x128xbf16> to vector<64x128xbf16>
    %c8_466 = arith.constant 8 : index
    %c0_467 = arith.constant 0 : index
    %c0_468 = arith.constant 0 : index
    %631 = vector.load %arg5[%c8_466, %c0_467, %c0_468] : memref<9x128x128xbf16, #tpu.memory_space<vmem>>, vector<1x128x128xbf16>
    %632 = vector.shape_cast %631 : vector<1x128x128xbf16> to vector<128x128xbf16>
    %cst_469 = arith.constant dense<0.000000e+00> : vector<64x128xf32>
    %633 = tpu.matmul %630, %632, %cst_469 {dimension_numbers = #tpu.dot_dimension_numbers<[1], [0], [0], [1], [0, 0, 1, 1], [], []>} : vector<64x128xbf16>, vector<128x128xbf16>, vector<64x128xf32> -> vector<64x128xf32>
    %634 = arith.addf %628, %633 : vector<64x128xf32>
    %635 = vector.broadcast %154 : vector<1x128xf32> to vector<64x128xf32>
    %636 = arith.mulf %634, %635 : vector<64x128xf32>
    %637 = vector.broadcast %155 : vector<1x128xf32> to vector<64x128xf32>
    %638 = arith.addf %636, %637 : vector<64x128xf32>
    %cst_470 = arith.constant 0.000000e+00 : f32
    %639 = vector.broadcast %cst_470 : f32 to vector<64x128xf32>
    %640 = arith.maximumf %638, %639 : vector<64x128xf32>
    %cst_471 = arith.constant dense<0.000000e+00> : vector<128xf32>
    %641 = vector.multi_reduction <add>, %640, %cst_471 [0] : vector<64x128xf32> to vector<128xf32>
    %642 = vector.shape_cast %641 : vector<128xf32> to vector<1x128xf32>
    %643 = arith.addf %573, %642 : vector<1x128xf32>
    %c1_472 = arith.constant 1 : index
    %c12_473 = arith.constant 12 : index
    %c0_474 = arith.constant 0 : index
    %c0_475 = arith.constant 0 : index
    %644 = vector.load %arg11[%c1_472, %c12_473, %c0_474, %c0_475] : memref<4x18x18x128xbf16, #tpu.memory_space<vmem>>, vector<1x6x16x128xbf16>
    %645 = vector.shape_cast %644 : vector<1x6x16x128xbf16> to vector<6x16x128xbf16>
    %c1_476 = arith.constant 1 : index
    %c12_477 = arith.constant 12 : index
    %c1_478 = arith.constant 1 : index
    %c0_479 = arith.constant 0 : index
    %646 = vector.load %arg11[%c1_476, %c12_477, %c1_478, %c0_479] : memref<4x18x18x128xbf16, #tpu.memory_space<vmem>>, vector<1x6x16x128xbf16>
    %647 = vector.shape_cast %646 : vector<1x6x16x128xbf16> to vector<6x16x128xbf16>
    %c1_480 = arith.constant 1 : index
    %c12_481 = arith.constant 12 : index
    %c2_482 = arith.constant 2 : index
    %c0_483 = arith.constant 0 : index
    %648 = vector.load %arg11[%c1_480, %c12_481, %c2_482, %c0_483] : memref<4x18x18x128xbf16, #tpu.memory_space<vmem>>, vector<1x6x16x128xbf16>
    %649 = vector.shape_cast %648 : vector<1x6x16x128xbf16> to vector<6x16x128xbf16>
    %cst_484 = arith.constant 0.000000e+00 : f32
    %650 = vector.broadcast %cst_484 : f32 to vector<64x128xf32>
    %651 = vector.extract_strided_slice %645 {offsets = [0, 0, 0], sizes = [4, 16, 128], strides = [1, 1, 1]} : vector<6x16x128xbf16> to vector<4x16x128xbf16>
    %652 = vector.shape_cast %651 : vector<4x16x128xbf16> to vector<64x128xbf16>
    %c0_485 = arith.constant 0 : index
    %c0_486 = arith.constant 0 : index
    %c0_487 = arith.constant 0 : index
    %653 = vector.load %arg5[%c0_485, %c0_486, %c0_487] : memref<9x128x128xbf16, #tpu.memory_space<vmem>>, vector<1x128x128xbf16>
    %654 = vector.shape_cast %653 : vector<1x128x128xbf16> to vector<128x128xbf16>
    %cst_488 = arith.constant dense<0.000000e+00> : vector<64x128xf32>
    %655 = tpu.matmul %652, %654, %cst_488 {dimension_numbers = #tpu.dot_dimension_numbers<[1], [0], [0], [1], [0, 0, 1, 1], [], []>} : vector<64x128xbf16>, vector<128x128xbf16>, vector<64x128xf32> -> vector<64x128xf32>
    %656 = arith.addf %650, %655 : vector<64x128xf32>
    %657 = vector.extract_strided_slice %647 {offsets = [0, 0, 0], sizes = [4, 16, 128], strides = [1, 1, 1]} : vector<6x16x128xbf16> to vector<4x16x128xbf16>
    %658 = vector.shape_cast %657 : vector<4x16x128xbf16> to vector<64x128xbf16>
    %c1_489 = arith.constant 1 : index
    %c0_490 = arith.constant 0 : index
    %c0_491 = arith.constant 0 : index
    %659 = vector.load %arg5[%c1_489, %c0_490, %c0_491] : memref<9x128x128xbf16, #tpu.memory_space<vmem>>, vector<1x128x128xbf16>
    %660 = vector.shape_cast %659 : vector<1x128x128xbf16> to vector<128x128xbf16>
    %cst_492 = arith.constant dense<0.000000e+00> : vector<64x128xf32>
    %661 = tpu.matmul %658, %660, %cst_492 {dimension_numbers = #tpu.dot_dimension_numbers<[1], [0], [0], [1], [0, 0, 1, 1], [], []>} : vector<64x128xbf16>, vector<128x128xbf16>, vector<64x128xf32> -> vector<64x128xf32>
    %662 = arith.addf %656, %661 : vector<64x128xf32>
    %663 = vector.extract_strided_slice %649 {offsets = [0, 0, 0], sizes = [4, 16, 128], strides = [1, 1, 1]} : vector<6x16x128xbf16> to vector<4x16x128xbf16>
    %664 = vector.shape_cast %663 : vector<4x16x128xbf16> to vector<64x128xbf16>
    %c2_493 = arith.constant 2 : index
    %c0_494 = arith.constant 0 : index
    %c0_495 = arith.constant 0 : index
    %665 = vector.load %arg5[%c2_493, %c0_494, %c0_495] : memref<9x128x128xbf16, #tpu.memory_space<vmem>>, vector<1x128x128xbf16>
    %666 = vector.shape_cast %665 : vector<1x128x128xbf16> to vector<128x128xbf16>
    %cst_496 = arith.constant dense<0.000000e+00> : vector<64x128xf32>
    %667 = tpu.matmul %664, %666, %cst_496 {dimension_numbers = #tpu.dot_dimension_numbers<[1], [0], [0], [1], [0, 0, 1, 1], [], []>} : vector<64x128xbf16>, vector<128x128xbf16>, vector<64x128xf32> -> vector<64x128xf32>
    %668 = arith.addf %662, %667 : vector<64x128xf32>
    %669 = vector.extract_strided_slice %645 {offsets = [1, 0, 0], sizes = [4, 16, 128], strides = [1, 1, 1]} : vector<6x16x128xbf16> to vector<4x16x128xbf16>
    %670 = vector.shape_cast %669 : vector<4x16x128xbf16> to vector<64x128xbf16>
    %c3_497 = arith.constant 3 : index
    %c0_498 = arith.constant 0 : index
    %c0_499 = arith.constant 0 : index
    %671 = vector.load %arg5[%c3_497, %c0_498, %c0_499] : memref<9x128x128xbf16, #tpu.memory_space<vmem>>, vector<1x128x128xbf16>
    %672 = vector.shape_cast %671 : vector<1x128x128xbf16> to vector<128x128xbf16>
    %cst_500 = arith.constant dense<0.000000e+00> : vector<64x128xf32>
    %673 = tpu.matmul %670, %672, %cst_500 {dimension_numbers = #tpu.dot_dimension_numbers<[1], [0], [0], [1], [0, 0, 1, 1], [], []>} : vector<64x128xbf16>, vector<128x128xbf16>, vector<64x128xf32> -> vector<64x128xf32>
    %674 = arith.addf %668, %673 : vector<64x128xf32>
    %675 = vector.extract_strided_slice %647 {offsets = [1, 0, 0], sizes = [4, 16, 128], strides = [1, 1, 1]} : vector<6x16x128xbf16> to vector<4x16x128xbf16>
    %676 = vector.shape_cast %675 : vector<4x16x128xbf16> to vector<64x128xbf16>
    %c4_501 = arith.constant 4 : index
    %c0_502 = arith.constant 0 : index
    %c0_503 = arith.constant 0 : index
    %677 = vector.load %arg5[%c4_501, %c0_502, %c0_503] : memref<9x128x128xbf16, #tpu.memory_space<vmem>>, vector<1x128x128xbf16>
    %678 = vector.shape_cast %677 : vector<1x128x128xbf16> to vector<128x128xbf16>
    %cst_504 = arith.constant dense<0.000000e+00> : vector<64x128xf32>
    %679 = tpu.matmul %676, %678, %cst_504 {dimension_numbers = #tpu.dot_dimension_numbers<[1], [0], [0], [1], [0, 0, 1, 1], [], []>} : vector<64x128xbf16>, vector<128x128xbf16>, vector<64x128xf32> -> vector<64x128xf32>
    %680 = arith.addf %674, %679 : vector<64x128xf32>
    %681 = vector.extract_strided_slice %649 {offsets = [1, 0, 0], sizes = [4, 16, 128], strides = [1, 1, 1]} : vector<6x16x128xbf16> to vector<4x16x128xbf16>
    %682 = vector.shape_cast %681 : vector<4x16x128xbf16> to vector<64x128xbf16>
    %c5_505 = arith.constant 5 : index
    %c0_506 = arith.constant 0 : index
    %c0_507 = arith.constant 0 : index
    %683 = vector.load %arg5[%c5_505, %c0_506, %c0_507] : memref<9x128x128xbf16, #tpu.memory_space<vmem>>, vector<1x128x128xbf16>
    %684 = vector.shape_cast %683 : vector<1x128x128xbf16> to vector<128x128xbf16>
    %cst_508 = arith.constant dense<0.000000e+00> : vector<64x128xf32>
    %685 = tpu.matmul %682, %684, %cst_508 {dimension_numbers = #tpu.dot_dimension_numbers<[1], [0], [0], [1], [0, 0, 1, 1], [], []>} : vector<64x128xbf16>, vector<128x128xbf16>, vector<64x128xf32> -> vector<64x128xf32>
    %686 = arith.addf %680, %685 : vector<64x128xf32>
    %687 = vector.extract_strided_slice %645 {offsets = [2, 0, 0], sizes = [4, 16, 128], strides = [1, 1, 1]} : vector<6x16x128xbf16> to vector<4x16x128xbf16>
    %688 = vector.shape_cast %687 : vector<4x16x128xbf16> to vector<64x128xbf16>
    %c6_509 = arith.constant 6 : index
    %c0_510 = arith.constant 0 : index
    %c0_511 = arith.constant 0 : index
    %689 = vector.load %arg5[%c6_509, %c0_510, %c0_511] : memref<9x128x128xbf16, #tpu.memory_space<vmem>>, vector<1x128x128xbf16>
    %690 = vector.shape_cast %689 : vector<1x128x128xbf16> to vector<128x128xbf16>
    %cst_512 = arith.constant dense<0.000000e+00> : vector<64x128xf32>
    %691 = tpu.matmul %688, %690, %cst_512 {dimension_numbers = #tpu.dot_dimension_numbers<[1], [0], [0], [1], [0, 0, 1, 1], [], []>} : vector<64x128xbf16>, vector<128x128xbf16>, vector<64x128xf32> -> vector<64x128xf32>
    %692 = arith.addf %686, %691 : vector<64x128xf32>
    %693 = vector.extract_strided_slice %647 {offsets = [2, 0, 0], sizes = [4, 16, 128], strides = [1, 1, 1]} : vector<6x16x128xbf16> to vector<4x16x128xbf16>
    %694 = vector.shape_cast %693 : vector<4x16x128xbf16> to vector<64x128xbf16>
    %c7_513 = arith.constant 7 : index
    %c0_514 = arith.constant 0 : index
    %c0_515 = arith.constant 0 : index
    %695 = vector.load %arg5[%c7_513, %c0_514, %c0_515] : memref<9x128x128xbf16, #tpu.memory_space<vmem>>, vector<1x128x128xbf16>
    %696 = vector.shape_cast %695 : vector<1x128x128xbf16> to vector<128x128xbf16>
    %cst_516 = arith.constant dense<0.000000e+00> : vector<64x128xf32>
    %697 = tpu.matmul %694, %696, %cst_516 {dimension_numbers = #tpu.dot_dimension_numbers<[1], [0], [0], [1], [0, 0, 1, 1], [], []>} : vector<64x128xbf16>, vector<128x128xbf16>, vector<64x128xf32> -> vector<64x128xf32>
    %698 = arith.addf %692, %697 : vector<64x128xf32>
    %699 = vector.extract_strided_slice %649 {offsets = [2, 0, 0], sizes = [4, 16, 128], strides = [1, 1, 1]} : vector<6x16x128xbf16> to vector<4x16x128xbf16>
    %700 = vector.shape_cast %699 : vector<4x16x128xbf16> to vector<64x128xbf16>
    %c8_517 = arith.constant 8 : index
    %c0_518 = arith.constant 0 : index
    %c0_519 = arith.constant 0 : index
    %701 = vector.load %arg5[%c8_517, %c0_518, %c0_519] : memref<9x128x128xbf16, #tpu.memory_space<vmem>>, vector<1x128x128xbf16>
    %702 = vector.shape_cast %701 : vector<1x128x128xbf16> to vector<128x128xbf16>
    %cst_520 = arith.constant dense<0.000000e+00> : vector<64x128xf32>
    %703 = tpu.matmul %700, %702, %cst_520 {dimension_numbers = #tpu.dot_dimension_numbers<[1], [0], [0], [1], [0, 0, 1, 1], [], []>} : vector<64x128xbf16>, vector<128x128xbf16>, vector<64x128xf32> -> vector<64x128xf32>
    %704 = arith.addf %698, %703 : vector<64x128xf32>
    %705 = vector.broadcast %154 : vector<1x128xf32> to vector<64x128xf32>
    %706 = arith.mulf %704, %705 : vector<64x128xf32>
    %707 = vector.broadcast %155 : vector<1x128xf32> to vector<64x128xf32>
    %708 = arith.addf %706, %707 : vector<64x128xf32>
    %cst_521 = arith.constant 0.000000e+00 : f32
    %709 = vector.broadcast %cst_521 : f32 to vector<64x128xf32>
    %710 = arith.maximumf %708, %709 : vector<64x128xf32>
    %cst_522 = arith.constant dense<0.000000e+00> : vector<128xf32>
    %711 = vector.multi_reduction <add>, %710, %cst_522 [0] : vector<64x128xf32> to vector<128xf32>
    %712 = vector.shape_cast %711 : vector<128xf32> to vector<1x128xf32>
    %713 = arith.addf %643, %712 : vector<1x128xf32>
    %714 = tpu.concatenate %434, %713 in 0 : vector<1x128xf32>, vector<1x128xf32> -> vector<2x128xf32>
    %cst_523 = arith.constant 3.906250e-03 : f32
    %715 = vector.broadcast %cst_523 : f32 to vector<2x128xf32>
    %716 = arith.mulf %714, %715 : vector<2x128xf32>
    %717 = arith.truncf %716 : vector<2x128xf32> to vector<2x128xbf16>
    %c0_524 = arith.constant 0 : index
    %c0_525 = arith.constant 0 : index
    %718 = vector.load %arg8[%c0_524, %c0_525] : memref<128x128xbf16, #tpu.memory_space<vmem>>, vector<128x128xbf16>
    %cst_526 = arith.constant dense<0.000000e+00> : vector<2x128xf32>
    %719 = tpu.matmul %717, %718, %cst_526 {dimension_numbers = #tpu.dot_dimension_numbers<[1], [0], [0], [1], [0, 0, 1, 1], [], []>} : vector<2x128xbf16>, vector<128x128xbf16>, vector<2x128xf32> -> vector<2x128xf32>
    %c0_527 = arith.constant 0 : index
    %c0_528 = arith.constant 0 : index
    %720 = vector.load %arg9[%c0_527, %c0_528] : memref<1x128xf32, #tpu.memory_space<vmem>>, vector<1x128xf32>
    %721 = vector.broadcast %720 : vector<1x128xf32> to vector<2x128xf32>
    %722 = arith.addf %719, %721 : vector<2x128xf32>
    %c0_529 = arith.constant 0 : index
    %c0_530 = arith.constant 0 : index
    %723 = vector.load %arg10[%c0_529, %c0_530] : memref<2x128xf32, #tpu.memory_space<vmem>>, vector<2x128xf32>
    tpu.vector_store %arg10[%c0_529, %c0_530], %722 {strides = array<i32>} : memref<2x128xf32, #tpu.memory_space<vmem>>, vector<2x128xf32>,
    return
  }
  func.func @transform_0(%arg0: i32) -> (i32, i32, i32) {
    %c0_i32 = arith.constant 0 : i32
    %c0_i32_0 = arith.constant 0 : i32
    %c0_i32_1 = arith.constant 0 : i32
    return %arg0, %c0_i32, %c0_i32_0 : i32, i32, i32
  }
  func.func @transform_1(%arg0: i32) -> (i32, i32, i32) {
    %c0_i32 = arith.constant 0 : i32
    %c0_i32_0 = arith.constant 0 : i32
    %c0_i32_1 = arith.constant 0 : i32
    %c0_i32_2 = arith.constant 0 : i32
    return %c0_i32, %c0_i32_0, %c0_i32_1 : i32, i32, i32
  }
  func.func @transform_2(%arg0: i32) -> (i32, i32) {
    %c0_i32 = arith.constant 0 : i32
    %c0_i32_0 = arith.constant 0 : i32
    %c0_i32_1 = arith.constant 0 : i32
    return %c0_i32, %c0_i32_0 : i32, i32
  }
  func.func @transform_3(%arg0: i32) -> (i32, i32) {
    %c0_i32 = arith.constant 0 : i32
    %c0_i32_0 = arith.constant 0 : i32
    %c0_i32_1 = arith.constant 0 : i32
    return %c0_i32, %c0_i32_0 : i32, i32
  }
  func.func @transform_4(%arg0: i32) -> (i32, i32, i32) {
    %c0_i32 = arith.constant 0 : i32
    %c0_i32_0 = arith.constant 0 : i32
    %c0_i32_1 = arith.constant 0 : i32
    %c0_i32_2 = arith.constant 0 : i32
    return %c0_i32, %c0_i32_0, %c0_i32_1 : i32, i32, i32
  }
  func.func @transform_5(%arg0: i32) -> (i32, i32) {
    %c0_i32 = arith.constant 0 : i32
    %c0_i32_0 = arith.constant 0 : i32
    %c0_i32_1 = arith.constant 0 : i32
    return %c0_i32, %c0_i32_0 : i32, i32
  }
  func.func @transform_6(%arg0: i32) -> (i32, i32) {
    %c0_i32 = arith.constant 0 : i32
    %c0_i32_0 = arith.constant 0 : i32
    %c0_i32_1 = arith.constant 0 : i32
    return %c0_i32, %c0_i32_0 : i32, i32
  }
  func.func @transform_7(%arg0: i32) -> (i32, i32) {
    %c0_i32 = arith.constant 0 : i32
    %c0_i32_0 = arith.constant 0 : i32
    %c0_i32_1 = arith.constant 0 : i32
    return %c0_i32, %c0_i32_0 : i32, i32
  }
  func.func @transform_8(%arg0: i32) -> (i32, i32) {
    %c0_i32 = arith.constant 0 : i32
    %c0_i32_0 = arith.constant 0 : i32
    %c0_i32_1 = arith.constant 0 : i32
    return %c0_i32, %c0_i32_0 : i32, i32
  }
  func.func @transform_9(%arg0: i32) -> (i32, i32) {
    %c0_i32 = arith.constant 0 : i32
    %c0_i32_0 = arith.constant 0 : i32
    return %arg0, %c0_i32 : i32, i32
  }
}

</mosaic_0001>

<bundles_post_ra>
// kernel: _lambda_.1
= control target key start
LH: loop header
LB: loop body
LE: loop exit
PB: predicated region body
PF: predicated region fallthrough
CT: control target
= control target key end

     0   :  { %v159_v62 = vld [vmem:[#allocation2 + $0x1bc] sm:$0x1]  ;;  %v162_v63 = vld [vmem:[#allocation2 + $0x1c8] sm:$0x1]  ;;  %vm60_vm0 = vcmask 1040384   ;;  %s21049_s0 = inlined_call_operand.vmem [shape: bf16[2,256,128], index: 0, kind: input, shape index: {}]   ;;  %s21050_s1 = inlined_call_operand.vmem [shape: bf16[1,128,128], index: 1, kind: input, shape index: {}]   ;;  %s21051_s2 = inlined_call_operand.vmem [shape: f32[1,128], index: 2, kind: input, shape index: {}]   ;;  %s21052_s3 = inlined_call_operand.vmem [shape: f32[1,128], index: 3, kind: input, shape index: {}]   ;;  %s21053_s4 = inlined_call_operand.vmem [shape: bf16[9,128,128], index: 4, kind: input, shape index: {}]   ;;  %s21054_s5 = inlined_call_operand.vmem [shape: f32[1,128], index: 5, kind: input, shape index: {}]   ;;  %s21055_s6 = inlined_call_operand.vmem [shape: f32[1,128], index: 6, kind: input, shape index: {}]   ;;  %s21056_s7 = inlined_call_operand.vmem [shape: bf16[128,128], index: 7, kind: input, shape index: {}]   ;;  %s21057_s8 = inlined_call_operand.vmem [shape: f32[1,128], index: 8, kind: input, shape index: {}]   ;;  %s21058_s9 = inlined_call_operand.hbm [shape: f32[2,128], index: 9, kind: output, shape index: {}]  }
   0x1   :  { %v15716_v0 = vld [vmem:[%s21050_s1] sm:$0xff]   ;;  %v15718_v2 = vld [vmem:[%s21050_s1 + $0x8] sm:$0xff]   ;;  %v15720_v4 = vld [vmem:[%s21050_s1 + $0x10] sm:$0xff]   ;;  %vm61_vm1 = vsmask.f32 256 }
   0x2   :  { %v15717_v1 = vld [vmem:[%s21050_s1] sm:$0xff]   ;;  %13260 = vmatprep.subr.bf16.mxu0 %v15716_v0  ;;  %v15719_v3 = vld [vmem:[%s21050_s1 + $0x8] sm:$0xff]   ;;  %v15721_v5 = vld [vmem:[%s21050_s1 + $0x10] sm:$0xff]   ;;  %vm255_vm3 = vsmask.f32 7938 }
   0x3   :  { %13284 = vmatprep.subr.bf16.mxu1 %v15717_v1  ;;  %13261 = vmatpush3.bf16.msra.mxu0 %v15716_v0  ;;  %v15722_v6 = vld [vmem:[%s21050_s1 + $0x18] sm:$0xff]   ;;  %v15724_v8 = vld [vmem:[%s21050_s1 + $0x20] sm:$0xff]   ;;  %v15726_v10 = vld [vmem:[%s21050_s1 + $0x28] sm:$0xff]   ;;  %vm3053_vm5 = vsmask.f32 3328 }
   0x4   :  { %13285 = vmatpush3.bf16.msra.mxu1 %v15717_v1  ;;  %13262 = vmatprep.subr.bf16.mxu0 %v15718_v2  ;;  %v15723_v7 = vld [vmem:[%s21050_s1 + $0x18] sm:$0xff]   ;;  %v15725_v9 = vld [vmem:[%s21050_s1 + $0x20] sm:$0xff]   ;;  %v15727_v11 = vld [vmem:[%s21050_s1 + $0x28] sm:$0xff]   ;;  %vm3054_vm6 = vsmask.f32 7440 }
   0x5   :  { %13286 = vmatprep.subr.bf16.mxu1 %v15719_v3  ;;  %v15732_v12 = vld [vmem:[%s21049_s0] sm:$0xff]   ;;  %v15728_v14 = vld [vmem:[%s21050_s1 + $0x30] sm:$0xff]   ;;  %v15730_v16 = vld [vmem:[%s21050_s1 + $0x38] sm:$0xff]  }
   0x6   :  { %v15733_v13 = vld [vmem:[%s21049_s0 + $0x20] sm:$0xff]   ;;  %13276 = vmatprep.mubr.bf16.mxu0 %v15732_v12  ;;  %v15729_v15 = vld [vmem:[%s21050_s1 + $0x30] sm:$0xff]   ;;  %v15731_v17 = vld [vmem:[%s21050_s1 + $0x38] sm:$0xff]  }
   0x7   :  { %13263 = vmatpush3.bf16.msra.mxu0 %v15718_v2  ;;  %13300 = vmatprep.mubr.bf16.mxu1 %v15733_v13  ;;  %v15734_v18 = vld [vmem:[%s21049_s0 + $0x8] sm:$0xff]   ;;  %v15740_v19 = vld [vmem:[%s21050_s1] sm:$0xff]   ;;  %v15736_v22 = vld [vmem:[%s21049_s0 + $0x10] sm:$0xff]  }
   0x8   :  { %13287 = vmatpush3.bf16.msra.mxu1 %v15719_v3  ;;  %13264 = vmatprep.subr.bf16.mxu0 %v15720_v4  ;;  %v15741_v20 = vld [vmem:[%s21050_s1] sm:$0xff]   ;;  %v15735_v21 = vld [vmem:[%s21049_s0 + $0x28] sm:$0xff]   ;;  %v15738_v23 = vld [vmem:[%s21049_s0 + $0x30] sm:$0xff]  }
   0x9   :  { %13288 = vmatprep.subr.bf16.mxu1 %v15721_v5  ;;  %v15742_v24 = vld [vmem:[%s21050_s1 + $0x8] sm:$0xff]   ;;  %v15737_v26 = vld [vmem:[%s21049_s0 + $0x18] sm:$0xff]   ;;  %v15744_v27 = vld [vmem:[%s21050_s1 + $0x10] sm:$0xff]  }
   0xa   :  { %v15743_v25 = vld [vmem:[%s21050_s1 + $0x8] sm:$0xff]   ;;  %v15745_v28 = vld [vmem:[%s21050_s1 + $0x10] sm:$0xff]   ;;  %v15739_v29 = vld [vmem:[%s21049_s0 + $0x38] sm:$0xff]  }
   0xb   :  { %13265 = vmatpush3.bf16.msra.mxu0 %v15720_v4  ;;  %v15756_v30 = vld [vmem:[%s21049_s0 + $0x40] sm:$0xff]   ;;  %v15746_v31 = vld [vmem:[%s21050_s1 + $0x18] sm:$0xff]   ;;  %v15750_v36 = vld [vmem:[%s21050_s1 + $0x28] sm:$0xff]  }
   0xc   :  { %13289 = vmatpush3.bf16.msra.mxu1 %v15721_v5  ;;  %13266 = vmatprep.subr.bf16.mxu0 %v15722_v6  ;;  %v15747_v32 = vld [vmem:[%s21050_s1 + $0x18] sm:$0xff]   ;;  %v15759_v33 = vld [vmem:[%s21049_s0 + $0x60] sm:$0xff]   ;;  %v15751_v37 = vld [vmem:[%s21050_s1 + $0x28] sm:$0xff]  }
   0xd   :  { %13290 = vmatprep.subr.bf16.mxu1 %v15723_v7  ;;  %v15748_v34 = vld [vmem:[%s21050_s1 + $0x20] sm:$0xff]   ;;  %v15752_v38 = vld [vmem:[%s21050_s1 + $0x30] sm:$0xff]   ;;  %v15754_v40 = vld [vmem:[%s21050_s1 + $0x38] sm:$0xff]  }
   0xe   :  { %v15749_v35 = vld [vmem:[%s21050_s1 + $0x20] sm:$0xff]   ;;  %v15753_v39 = vld [vmem:[%s21050_s1 + $0x30] sm:$0xff]   ;;  %v15755_v41 = vld [vmem:[%s21050_s1 + $0x38] sm:$0xff]  }
   0xf   :  { %13267 = vmatpush3.bf16.msra.mxu0 %v15722_v6  ;;  %v15757_v42 = vld [vmem:[%s21049_s0 + $0x48] sm:$0xff]   ;;  %v15758_v43 = vld [vmem:[%s21050_s1] sm:$0xff]   ;;  %v15772_v48 = vld [vmem:[%s21049_s0 + $0x50] sm:$0xff]  }
  0x10   :  { %13291 = vmatpush3.bf16.msra.mxu1 %v15723_v7  ;;  %13268 = vmatprep.subr.bf16.mxu0 %v15724_v8  ;;  %v15761_v44 = vld [vmem:[%s21050_s1] sm:$0xff]   ;;  %v15760_v45 = vld [vmem:[%s21049_s0 + $0x68] sm:$0xff]   ;;  %v15775_v49 = vld [vmem:[%s21049_s0 + $0x70] sm:$0xff]  }
  0x11   :  { %13292 = vmatprep.subr.bf16.mxu1 %v15725_v9  ;;  %v15762_v46 = vld [vmem:[%s21050_s1 + $0x8] sm:$0xff]   ;;  %v15764_v50 = vld [vmem:[%s21050_s1 + $0x10] sm:$0xff]   ;;  %v15766_v52 = vld [vmem:[%s21050_s1 + $0x18] sm:$0xff]  }
  0x12   :  { %v15763_v47 = vld [vmem:[%s21050_s1 + $0x8] sm:$0xff]   ;;  %v15765_v51 = vld [vmem:[%s21050_s1 + $0x10] sm:$0xff]   ;;  %v15773_v53 = vld [vmem:[%s21049_s0 + $0x58] sm:$0xff]  }
  0x13   :  { %13269 = vmatpush3.bf16.msra.mxu0 %v15724_v8  ;;  %v15776_v54 = vld [vmem:[%s21049_s0 + $0x78] sm:$0xff]   ;;  %v15780_v56 = vld [vmem:[%s21049_s0 + $0x80] sm:$0xff]   ;;  %v15770_v60 = vld [vmem:[%s21050_s1 + $0x28] sm:$0xff]  }
  0x14   :  { %13293 = vmatpush3.bf16.msra.mxu1 %v15725_v9  ;;  %13270 = vmatprep.subr.bf16.mxu0 %v15726_v10  ;;  %v15767_v55 = vld [vmem:[%s21050_s1 + $0x18] sm:$0xff]   ;;  %v15783_v57 = vld [vmem:[%s21049_s0 + $0xa0] sm:$0xff]   ;;  %v15771_v61 = vld [vmem:[%s21050_s1 + $0x28] sm:$0xff]  }
  0x15   :  { %13294 = vmatprep.subr.bf16.mxu1 %v15727_v11  ;;  %v15768_v58 = vld [vmem:[%s21050_s1 + $0x20] sm:$0xff]   ;;  %v165_v0 = vld [vmem:[#allocation2 + $0x1d4] sm:$0x1]  ;;  %v171_v2 = vld [vmem:[#allocation2 + $0x1ec] sm:$0x1] }
  0x16   :  { %v15769_v59 = vld [vmem:[%s21050_s1 + $0x20] sm:$0xff]   ;;  %v174_v3 = vld [vmem:[#allocation2 + $0x1f8] sm:$0x1]  ;;  %v180_v5 = vld [vmem:[#allocation2 + $0x210] sm:$0x1] }
  0x17   :  { %13271 = vmatpush3.bf16.msra.mxu0 %v15726_v10  ;;  %v168_v1 = vld [vmem:[#allocation2 + $0x1e0] sm:$0x1]  ;;  %v177_v4 = vld [vmem:[#allocation2 + $0x204] sm:$0x1]  ;;  %v183_v6 = vld [vmem:[#allocation2 + $0x21c] sm:$0x1] }
  0x18   :  { %13295 = vmatpush3.bf16.msra.mxu1 %v15727_v11  ;;  %13272 = vmatprep.subr.bf16.mxu0 %v15728_v14  ;;  %v186_v7 = vld [vmem:[#allocation2 + $0x228] sm:$0x1]  ;;  %v189_v8 = vld [vmem:[#allocation2 + $0x234] sm:$0x1]  ;;  %v16463_v10 = vld [vmem:[#allocation2 + $0x240] sm:$0x1] }
  0x19   :  { %13296 = vmatprep.subr.bf16.mxu1 %v15729_v15  ;;  %v15774_v9 = vld [vmem:[%s21050_s1 + $0x30] sm:$0xff]   ;;  %v16465_v11 = vld [vmem:[#allocation2 + $0x24c] sm:$0x1]  ;;  %v16467_v12 = vld [vmem:[#allocation2 + $0x258] sm:$0x1] }
  0x1a   :  { %v16469_v13 = vld [vmem:[#allocation2 + $0x264] sm:$0x1]  ;;  %vm16491_vm2 = vmand %vm60_vm0, %vm61_vm1 }
  0x1b   :  { %13273 = vmatpush3.bf16.msra.mxu0 %v15728_v14  ;;  %v16474_v14 = vld [vmem:[%s21050_s1 + $0x30] sm:$0xff]   ;;  %vm16693_vm4 = vmand %vm60_vm0, %vm255_vm3 }
  0x1c   :  { %13297 = vmatpush3.bf16.msra.mxu1 %v15729_v15  ;;  %13274 = vmatprep.subr.bf16.mxu0 %v15730_v16  ;;  %v66_v15 = vld [vmem:[#allocation2 + $0x18] sm:$0x1]  ;;  %vm16855_vm7 = vmor %vm3053_vm5, %vm3054_vm6 }
  0x1d   :  { %13298 = vmatprep.subr.bf16.mxu1 %v15731_v17 }
  0x1f   :  { %13275 = vmatpush3.bf16.msra.mxu0 %v15730_v16  ;;  %v16476_v16 = vld [vmem:[#allocation2 + $0x270] sm:$0x1] }
  0x20   :  { %13299 = vmatpush3.bf16.msra.mxu1 %v15731_v17  ;;  %13308 = vmatprep.subr.bf16.mxu0 %v15740_v19  ;;  %v16478_v17 = vld [vmem:[#allocation2 + $0x294] sm:$0x1] }
  0x21   :  { %13332 = vmatprep.subr.bf16.mxu1 %v15741_v20 }
  0x22   :  { %13277 = vmatmul.mubr.bf16.vlgmr.msra.gmra.mrb[0].mxu0 %v15734_v18  ;;  %v16480_v18 = vld [vmem:[#allocation2 + $0x2a0] sm:$0x1] }
  0x23   :  { %13301 = vmatmul.mubr.bf16.vlgmr.msra.gmra.mrb[0].mxu1 %v15735_v21  ;;  %13280 = vmatprep.mubr.bf16.mxu0 %v15736_v22  ;;  %v16495_v22 = vld [vmem:[#allocation2 + $0x2b8] sm:$0x1] }
  0x24   :  { %13304 = vmatprep.mubr.bf16.mxu1 %v15738_v23  ;;  %13309 = vmatpush3.bf16.msra.mxu0 %v15740_v19  ;;  %v16482_v19 = vld [vmem:[#allocation2 + $0x2ac] sm:$0x1]  ;;  %v16497_v23 = vld [vmem:[#allocation2 + $0x2c4] sm:$0x1] }
  0x25   :  { %13333 = vmatpush3.bf16.msra.mxu1 %v15741_v20  ;;  %13310 = vmatprep.subr.bf16.mxu0 %v15742_v24  ;;  %v16487_v20 = vld [vmem:[%s21050_s1 + $0x38] sm:$0xff]  }
  0x26   :  { %13334 = vmatprep.subr.bf16.mxu1 %v15743_v25 }
  0x28   :  { %13311 = vmatpush3.bf16.msra.mxu0 %v15742_v24  ;;  %v16499_v24 = vld [vmem:[#allocation2 + $0x2d0] sm:$0x1] }
  0x29   :  { %13335 = vmatpush3.bf16.msra.mxu1 %v15743_v25  ;;  %13312 = vmatprep.subr.bf16.mxu0 %v15744_v27  ;;  %v16501_v25 = vld [vmem:[#allocation2 + $0x2dc] sm:$0x1] }
  0x2a   :  { %13281 = vmatmul.mubr.bf16.gmra.mrb[4].mxu0 %v15737_v26  ;;  %13336 = vmatprep.subr.bf16.mxu1 %v15745_v28  ;;  %v16506_v26 = vld [vmem:[%s21050_s1 + $0x38] sm:$0xff]  }
  0x2b   :  { %13305 = vmatmul.mubr.bf16.gmra.mrb[4].mxu1 %v15739_v29  ;;  %13324 = vmatprep.mubr.bf16.mxu0 %v15756_v30  ;;  %v163_v29 = vsel %vm16491_vm2, 0, %v162_v63  ;;  %v166_v30 = vsel %vm16491_vm2, 0, %v165_v0  ;;  %v15784_v63 = vld [vmem:[%s21049_s0 + $0xa8] sm:$0xff]  }
  0x2c   :  { %13313 = vmatpush3.bf16.msra.mxu0 %v15744_v27  ;;  %13348 = vmatprep.mubr.bf16.mxu1 %v15759_v33  ;;  %v67_v27 = vsel %vm16491_vm2, 0, %v66_v15  ;;  %v16520_v33 = vld [vmem:[#allocation2 + $0x300] sm:$0x1]  ;;  %164 = vst [vmem:[#allocation2 + $0x1c8] sm:$0x1] %v163_v29  ;;  %v15797_v15 = vld [vmem:[%s21049_s0 + $0x98] sm:$0xff]  }
  0x2d   :  { %13337 = vmatpush3.bf16.msra.mxu1 %v15745_v28  ;;  %13314 = vmatprep.subr.bf16.mxu0 %v15746_v31  ;;  %v160_v28 = vsel %vm16491_vm2, 0, %v159_v62  ;;  %68 = vst [vmem:[#allocation2 + $0x18] sm:$0x1] %v67_v27  ;;  %167 = vst [vmem:[#allocation2 + $0x1d4] sm:$0x1] %v166_v30  ;;  %v226_v62 = vsel %vm16491_vm2, 0, %v16501_v25 }
  0x2e   :  { %13338 = vmatprep.subr.bf16.mxu1 %v15747_v32  ;;  %161 = vst [vmem:[#allocation2 + $0x1bc] sm:$0x1] %v160_v28  ;;  %227 = vst [vmem:[#allocation2 + $0x2dc] sm:$0x1] %v226_v62  ;;  %v15801_v25 = vld [vmem:[%s21050_s1 + $0x30] sm:$0xff]   ;;  %v15803_v27 = vld [vmem:[%s21050_s1 + $0x38] sm:$0xff]  }
  0x2f   :  { %v15804_v28 = vld [vmem:[%s21049_s0 + $0xc0] sm:$0xff]   ;;  %v63_v29 = vld [vmem:[#allocation2 + $0xc] sm:$0x1]  ;;  %v78_v30 = vld [vmem:[#allocation2 + $0x48] sm:$0x1] }
  0x30   :  { %13315 = vmatpush3.bf16.msra.mxu0 %v15746_v31  ;;  %v16516_v31 = vld [vmem:[#allocation2 + $0x2e8] sm:$0x1]  ;;  %v401_v62 = vld [vmem:[#allocation2 + $0x29c] sm:$0x1] }
  0x31   :  { %13339 = vmatpush3.bf16.msra.mxu1 %v15747_v32  ;;  %13316 = vmatprep.subr.bf16.mxu0 %v15748_v34  ;;  %v16518_v32 = vld [vmem:[#allocation2 + $0x2f4] sm:$0x1]  ;;  %v229_v0 = vsel %vm16491_vm2, 0, %v16516_v31  ;;  %v64_v31 = vsel %vm16491_vm2, 0, %v63_v29 }
  0x32   :  { %13340 = vmatprep.subr.bf16.mxu1 %v15749_v35  ;;  %230 = vst [vmem:[#allocation2 + $0x2e8] sm:$0x1] %v229_v0  ;;  %65 = vst [vmem:[#allocation2 + $0xc] sm:$0x1] %v64_v31  ;;  %v407_v0 = vld [vmem:[#allocation2 + $0x2b4] sm:$0x1] }
  0x34   :  { %13317 = vmatpush3.bf16.msra.mxu0 %v15748_v34  ;;  %v16522_v34 = vld [vmem:[#allocation2 + $0x30c] sm:$0x1] }
  0x35   :  { %13341 = vmatpush3.bf16.msra.mxu1 %v15749_v35  ;;  %13318 = vmatprep.subr.bf16.mxu0 %v15750_v36  ;;  %v169_v35 = vsel %vm16491_vm2, 0, %v168_v1  ;;  %v232_v1 = vsel %vm16491_vm2, 0, %v16518_v32  ;;  %v75_v32 = vld [vmem:[#allocation2 + $0x3c] sm:$0x1] }
  0x36   :  { %13342 = vmatprep.subr.bf16.mxu1 %v15751_v37  ;;  %170 = vst [vmem:[#allocation2 + $0x1e0] sm:$0x1] %v169_v35  ;;  %233 = vst [vmem:[#allocation2 + $0x2f4] sm:$0x1] %v232_v1  ;;  %v76_v35 = vsel %vm16491_vm2, 0, %v75_v32  ;;  %v402_v32 = vsel %vm16693_vm4, 0, %v401_v62 }
  0x37   :  { %77 = vst [vmem:[#allocation2 + $0x3c] sm:$0x1] %v76_v35  ;;  %v410_v1 = vld [vmem:[#allocation2 + $0x2c0] sm:$0x1]  ;;  %v408_v35 = vsel %vm16693_vm4, 0, %v407_v0  ;;  %v15813_v0 = vld [vmem:[%s21053_s4 + $0x68] sm:$0xff]  }
  0x38   :  { %13319 = vmatpush3.bf16.msra.mxu0 %v15750_v36  ;;  %v172_v36 = vsel %vm16491_vm2, 0, %v171_v2  ;;  %v235_v2 = vsel %vm16491_vm2, 0, %v16520_v33  ;;  %403 = vst [vmem:[#allocation2 + $0x29c] sm:$0x1] %v402_v32  ;;  %409 = vst [vmem:[#allocation2 + $0x2b4] sm:$0x1] %v408_v35 }
  0x39   :  { %13343 = vmatpush3.bf16.msra.mxu1 %v15751_v37  ;;  %13320 = vmatprep.subr.bf16.mxu0 %v15752_v38  ;;  %v175_v37 = vsel %vm16491_vm2, 0, %v174_v3  ;;  %173 = vst [vmem:[#allocation2 + $0x1ec] sm:$0x1] %v172_v36  ;;  %v238_v3 = vsel %vm16491_vm2, 0, %v16522_v34  ;;  %236 = vst [vmem:[#allocation2 + $0x300] sm:$0x1] %v235_v2 }
  0x3a   :  { %13344 = vmatprep.subr.bf16.mxu1 %v15753_v39  ;;  %176 = vst [vmem:[#allocation2 + $0x1f8] sm:$0x1] %v175_v37  ;;  %239 = vst [vmem:[#allocation2 + $0x30c] sm:$0x1] %v238_v3  ;;  %v79_v34 = vsel %vm16491_vm2, 0, %v78_v30  ;;  %v15812_v62 = vld [vmem:[%s21053_s4 + $0x60] sm:$0xff]  }
  0x3b   :  { %v260_v36 = vld [vmem:[#allocation2 + $0x20] sm:$0x1]  ;;  %80 = vst [vmem:[#allocation2 + $0x48] sm:$0x1] %v79_v34  ;;  %v16719_v2 = vld [vmem:[#allocation2 + $0x2cc] sm:$0x1] }
  0x3c   :  { %13321 = vmatpush3.bf16.msra.mxu0 %v15752_v38  ;;  %v178_v38 = vsel %vm16491_vm2, 0, %v177_v4  ;;  %v15786_v4 = vld [vmem:[%s21050_s1 + $0x8] sm:$0xff]   ;;  %v261_v37 = vsel %vm16693_vm4, 0, %v260_v36  ;;  %v16721_v3 = vld [vmem:[#allocation2 + $0x2d8] sm:$0x1]  ;;  %v411_v36 = vsel %vm16693_vm4, 0, %v410_v1 }
  0x3d   :  { %13345 = vmatpush3.bf16.msra.mxu1 %v15753_v39  ;;  %13322 = vmatprep.subr.bf16.mxu0 %v15754_v40  ;;  %v16532_v39 = vld [vmem:[#allocation2 + $0x318] sm:$0x1]  ;;  %179 = vst [vmem:[#allocation2 + $0x204] sm:$0x1] %v178_v38  ;;  %262 = vst [vmem:[#allocation2 + $0x20] sm:$0x1] %v261_v37 }
  0x3e   :  { %13346 = vmatprep.subr.bf16.mxu1 %v15755_v41  ;;  %v15805_v38 = vld [vmem:[%s21049_s0 + $0xc8] sm:$0xff]   ;;  %412 = vst [vmem:[#allocation2 + $0x2c0] sm:$0x1] %v411_v36  ;;  %v414_v37 = vsel %vm16693_vm4, 0, %v16719_v2  ;;  %v15814_v2 = vld [vmem:[%s21049_s0 + $0xd0] sm:$0xff]   ;;  %v16868_v36 = vld [vmem:[%s21053_s4] sm:$0xff]  }
  0x3f   :  { %415 = vst [vmem:[#allocation2 + $0x2cc] sm:$0x1] %v414_v37 }
  0x40   :  { %13323 = vmatpush3.bf16.msra.mxu0 %v15754_v40  ;;  %v16534_v40 = vld [vmem:[#allocation2 + $0x324] sm:$0x1] }
  0x41   :  { %13347 = vmatpush3.bf16.msra.mxu1 %v15755_v41  ;;  %13356 = vmatprep.subr.bf16.mxu0 %v15758_v43  ;;  %v16536_v41 = vld [vmem:[#allocation2 + $0x330] sm:$0x1] }
  0x42   :  { %13380 = vmatprep.subr.bf16.mxu1 %v15761_v44 }
  0x43   :  { %13325 = vmatmul.mubr.bf16.vlgmr.msra.gmra.mrb[8].mxu0 %v15757_v42  ;;  %v16538_v42 = vld [vmem:[#allocation2 + $0x33c] sm:$0x1] }
  0x44   :  { %13357 = vmatpush3.bf16.msra.mxu0 %v15758_v43  ;;  %13349 = vmatmul.mubr.bf16.vlgmr.msra.gmra.mrb[8].mxu1 %v15760_v45  ;;  %v181_v43 = vsel %vm16491_vm2, 0, %v180_v5  ;;  %v187_v45 = vsel %vm16491_vm2, 0, %v186_v7  ;;  %v241_v5 = vsel %vm16491_vm2, 0, %v16532_v39  ;;  %v247_v7 = vsel %vm16491_vm2, 0, %v16536_v41  ;;  %v272_v39 = vld [vmem:[#allocation2 + $0x50] sm:$0x1] }
  0x45   :  { %13381 = vmatpush3.bf16.msra.mxu1 %v15761_v44  ;;  %13358 = vmatprep.subr.bf16.mxu0 %v15762_v46  ;;  %v184_v44 = vsel %vm16491_vm2, 0, %v183_v6  ;;  %182 = vst [vmem:[#allocation2 + $0x210] sm:$0x1] %v181_v43  ;;  %188 = vst [vmem:[#allocation2 + $0x228] sm:$0x1] %v187_v45  ;;  %v244_v6 = vsel %vm16491_vm2, 0, %v16534_v40 }
  0x46   :  { %13382 = vmatprep.subr.bf16.mxu1 %v15763_v47  ;;  %13328 = vmatprep.mubr.bf16.mxu0 %v15772_v48  ;;  %v16552_v48 = vld [vmem:[%s21050_s1] sm:$0xff]   ;;  %185 = vst [vmem:[#allocation2 + $0x21c] sm:$0x1] %v184_v44  ;;  %242 = vst [vmem:[#allocation2 + $0x318] sm:$0x1] %v241_v5  ;;  %v273_v45 = vsel %vm16693_vm4, 0, %v272_v39 }
  0x47   :  { %13352 = vmatprep.mubr.bf16.mxu1 %v15775_v49  ;;  %v193_v49 = vsel %vm16491_vm2, 0, %v16463_v10  ;;  %v15796_v10 = vld [vmem:[%s21049_s0 + $0x90] sm:$0xff]   ;;  %245 = vst [vmem:[#allocation2 + $0x324] sm:$0x1] %v244_v6  ;;  %248 = vst [vmem:[#allocation2 + $0x330] sm:$0x1] %v247_v7 }
  0x48   :  { %13359 = vmatpush3.bf16.msra.mxu0 %v15762_v46  ;;  %v190_v46 = vsel %vm16491_vm2, 0, %v189_v8  ;;  %194 = vst [vmem:[#allocation2 + $0x240] sm:$0x1] %v193_v49  ;;  %v250_v8 = vsel %vm16491_vm2, 0, %v16538_v42  ;;  %v15806_v40 = vld [vmem:[%s21049_s0 + $0xe0] sm:$0xff]  }
  0x49   :  { %13383 = vmatpush3.bf16.msra.mxu1 %v15763_v47  ;;  %13360 = vmatprep.subr.bf16.mxu0 %v15764_v50  ;;  %v252_v47 = vld [vmem:[#allocation2 + $0x348] sm:$0x1]  ;;  %191 = vst [vmem:[#allocation2 + $0x234] sm:$0x1] %v190_v46  ;;  %251 = vst [vmem:[#allocation2 + $0x33c] sm:$0x1] %v250_v8 }
  0x4a   :  { %13384 = vmatprep.subr.bf16.mxu1 %v15765_v51  ;;  %v353_v41 = vld [vmem:[#allocation2 + $0x1c4] sm:$0x1]  ;;  %v356_v42 = vld [vmem:[#allocation2 + $0x1d0] sm:$0x1]  ;;  %v359_v43 = vld [vmem:[#allocation2 + $0x1dc] sm:$0x1] }
  0x4b   :  { %13329 = vmatmul.mubr.bf16.gmra.mrb[12].mxu0 %v15773_v53  ;;  %v15785_v53 = vld [vmem:[%s21050_s1] sm:$0xff]   ;;  %v362_v44 = vld [vmem:[#allocation2 + $0x1e8] sm:$0x1]  ;;  %v257_v46 = vld [vmem:[#allocation2 + $0x14] sm:$0x1]  ;;  %v354_v6 = vsel %vm16693_vm4, 0, %v353_v41 }
  0x4c   :  { %13361 = vmatpush3.bf16.msra.mxu0 %v15764_v50  ;;  %13353 = vmatmul.mubr.bf16.gmra.mrb[12].mxu1 %v15776_v54  ;;  %v196_v50 = vsel %vm16491_vm2, 0, %v16465_v11  ;;  %v205_v54 = vsel %vm16491_vm2, 0, %v16476_v16  ;;  %v253_v11 = vsel %vm16491_vm2, 0, %v252_v47  ;;  %v15800_v16 = vld [vmem:[%s21049_s0 + $0xb8] sm:$0xff]   ;;  %v365_v47 = vld [vmem:[#allocation2 + $0x1f4] sm:$0x1] }
  0x4d   :  { %13385 = vmatpush3.bf16.msra.mxu1 %v15765_v51  ;;  %13362 = vmatprep.subr.bf16.mxu0 %v15766_v52  ;;  %v199_v51 = vsel %vm16491_vm2, 0, %v16467_v12  ;;  %197 = vst [vmem:[#allocation2 + $0x24c] sm:$0x1] %v196_v50  ;;  %206 = vst [vmem:[#allocation2 + $0x270] sm:$0x1] %v205_v54  ;;  %v15799_v12 = vld [vmem:[%s21049_s0 + $0xb0] sm:$0xff]  }
  0x4e   :  { %13386 = vmatprep.subr.bf16.mxu1 %v15767_v55  ;;  %13372 = vmatprep.mubr.bf16.mxu0 %v15780_v56  ;;  %200 = vst [vmem:[#allocation2 + $0x258] sm:$0x1] %v199_v51  ;;  %v211_v56 = vsel %vm16491_vm2, 0, %v16480_v18  ;;  %254 = vst [vmem:[#allocation2 + $0x348] sm:$0x1] %v253_v11  ;;  %v15791_v18 = vld [vmem:[%s21050_s1 + $0x18] sm:$0xff]  }
  0x4f   :  { %13396 = vmatprep.mubr.bf16.mxu1 %v15783_v57  ;;  %v214_v57 = vsel %vm16491_vm2, 0, %v16482_v19  ;;  %212 = vst [vmem:[#allocation2 + $0x2a0] sm:$0x1] %v211_v56  ;;  %v15792_v19 = vld [vmem:[%s21050_s1 + $0x20] sm:$0xff]   ;;  %v371_v49 = vld [vmem:[#allocation2 + $0x20c] sm:$0x1] }
  0x50   :  { %13363 = vmatpush3.bf16.msra.mxu0 %v15766_v52  ;;  %v202_v52 = vsel %vm16491_vm2, 0, %v16469_v13  ;;  %215 = vst [vmem:[#allocation2 + $0x2ac] sm:$0x1] %v214_v57  ;;  %v15788_v13 = vld [vmem:[%s21050_s1 + $0x10] sm:$0xff]   ;;  %v374_v50 = vld [vmem:[#allocation2 + $0x218] sm:$0x1] }
  0x51   :  { %13387 = vmatpush3.bf16.msra.mxu1 %v15767_v55  ;;  %13364 = vmatprep.subr.bf16.mxu0 %v15768_v58  ;;  %203 = vst [vmem:[#allocation2 + $0x264] sm:$0x1] %v202_v52  ;;  %v208_v55 = vsel %vm16491_vm2, 0, %v16478_v17  ;;  %v15790_v17 = vld [vmem:[%s21050_s1 + $0x18] sm:$0xff]   ;;  %274 = vst [vmem:[#allocation2 + $0x50] sm:$0x1] %v273_v45 }
  0x52   :  { %13388 = vmatprep.subr.bf16.mxu1 %v15769_v59  ;;  %209 = vst [vmem:[#allocation2 + $0x294] sm:$0x1] %v208_v55  ;;  %v258_v51 = vsel %vm16693_vm4, 0, %v257_v46  ;;  %v15807_v52 = vld [vmem:[%s21049_s0 + $0xe8] sm:$0xff]   ;;  %v377_v54 = vld [vmem:[#allocation2 + $0x224] sm:$0x1] }
  0x53   :  { %v380_v55 = vld [vmem:[#allocation2 + $0x230] sm:$0x1]  ;;  %v383_v56 = vld [vmem:[#allocation2 + $0x23c] sm:$0x1]  ;;  %v386_v57 = vld [vmem:[#allocation2 + $0x248] sm:$0x1] }
  0x54   :  { %13365 = vmatpush3.bf16.msra.mxu0 %v15768_v58  ;;  %v15781_v58 = vld [vmem:[%s21049_s0 + $0x88] sm:$0xff]   ;;  %259 = vst [vmem:[#allocation2 + $0x14] sm:$0x1] %v258_v51  ;;  %v16725_v5 = vld [vmem:[#allocation2 + $0x2f0] sm:$0x1]  ;;  %v357_v7 = vsel %vm16693_vm4, 0, %v356_v42 }
  0x55   :  { %13389 = vmatpush3.bf16.msra.mxu1 %v15769_v59  ;;  %13366 = vmatprep.subr.bf16.mxu0 %v15770_v60  ;;  %v217_v59 = vsel %vm16491_vm2, 0, %v16495_v22  ;;  %v15794_v22 = vld [vmem:[%s21050_s1 + $0x28] sm:$0xff]   ;;  %v360_v8 = vsel %vm16693_vm4, 0, %v359_v43  ;;  %355 = vst [vmem:[#allocation2 + $0x1c4] sm:$0x1] %v354_v6 }
  0x56   :  { %13390 = vmatprep.subr.bf16.mxu1 %v15771_v61  ;;  %218 = vst [vmem:[#allocation2 + $0x2b8] sm:$0x1] %v217_v59  ;;  %v392_v59 = vld [vmem:[#allocation2 + $0x260] sm:$0x1]  ;;  %v428_v11 = vld [vmem:[#allocation2 + $0x308] sm:$0x1] }
  0x57   :  { %358 = vst [vmem:[#allocation2 + $0x1d0] sm:$0x1] %v357_v7  ;;  %361 = vst [vmem:[#allocation2 + $0x1dc] sm:$0x1] %v360_v8  ;;  %v393_v29 = vsel %vm16693_vm4, 0, %v392_v59  ;;  %v429_v43 = vsel %vm16693_vm4, 0, %v428_v11 }
  0x58   :  { %13367 = vmatpush3.bf16.msra.mxu0 %v15770_v60  ;;  %v220_v60 = vsel %vm16491_vm2, 0, %v16497_v23  ;;  %v15795_v23 = vld [vmem:[%s21050_s1 + $0x28] sm:$0xff]   ;;  %394 = vst [vmem:[#allocation2 + $0x260] sm:$0x1] %v393_v29  ;;  %v269_v41 = vld [vmem:[#allocation2 + $0x44] sm:$0x1] }
  0x59   :  { %13391 = vmatpush3.bf16.msra.mxu1 %v15771_v61  ;;  %13368 = vmatprep.subr.bf16.mxu0 %v15774_v9  ;;  %v223_v61 = vsel %vm16491_vm2, 0, %v16499_v24  ;;  %221 = vst [vmem:[#allocation2 + $0x2c4] sm:$0x1] %v220_v60  ;;  %v15798_v24 = vld [vmem:[%s21050_s1 + $0x30] sm:$0xff]   ;;  %v395_v60 = vld [vmem:[#allocation2 + $0x26c] sm:$0x1] }
  0x5a   :  { %13392 = vmatprep.subr.bf16.mxu1 %v16474_v14  ;;  %224 = vst [vmem:[#allocation2 + $0x2d0] sm:$0x1] %v223_v61  ;;  %v398_v61 = vld [vmem:[#allocation2 + $0x278] sm:$0x1]  ;;  %v396_v30 = vsel %vm16693_vm4, 0, %v395_v60  ;;  %v270_v51 = vsel %vm16693_vm4, 0, %v269_v41 }
  0x5b   :  { %v399_v31 = vsel %vm16693_vm4, 0, %v398_v61  ;;  %397 = vst [vmem:[#allocation2 + $0x26c] sm:$0x1] %v396_v30  ;;  %430 = vst [vmem:[#allocation2 + $0x308] sm:$0x1] %v429_v43  ;;  %v15811_v59 = vld [vmem:[%s21053_s4 + $0x58] sm:$0xff]  }
  0x5c   :  { %13369 = vmatpush3.bf16.msra.mxu0 %v15774_v9  ;;  %v15787_v9 = vld [vmem:[%s21050_s1 + $0x8] sm:$0xff]   ;;  %400 = vst [vmem:[#allocation2 + $0x278] sm:$0x1] %v399_v31  ;;  %271 = vst [vmem:[#allocation2 + $0x44] sm:$0x1] %v270_v51  ;;  %v16220_v61 = vmov 0  }
  0x5d   :  { %13393 = vmatpush3.bf16.msra.mxu1 %v16474_v14  ;;  %13370 = vmatprep.subr.bf16.mxu0 %v16487_v20  ;;  %v15789_v14 = vld [vmem:[%s21050_s1 + $0x10] sm:$0xff]   ;;  %34 = vst [vmem:[#allocation2] sm:$0xf] %v16220_v61  ;;  %35 = vst [vmem:[#allocation2 + $0x4] sm:$0xf] %v16220_v61  ;;  %v21100_v30 = vmov 0 }
  0x5e   :  { %13394 = vmatprep.subr.bf16.mxu1 %v16506_v26  ;;  %36 = vst [vmem:[#allocation2 + $0x8] sm:$0x1] %v16220_v61  ;;  %37 = vst [vmem:[#allocation2 + $0xd8] sm:$0xf] %v16220_v61  ;;  %v84_v6 = vld [vmem:[#allocation2 + $0x60] sm:$0x1] }
  0x5f   :  { %38 = vst [vmem:[#allocation2 + $0xdc] sm:$0xf] %v16220_v61  ;;  %39 = vst [vmem:[#allocation2 + $0xe0] sm:$0x1] %v16220_v61  ;;  %v15816_v7 = vld [vmem:[%s21049_s0 + $0xf0] sm:$0xff]   ;;  %v85_v11 = vsel %vm16491_vm2, 0, %v84_v6 }
  0x60   :  { %13371 = vmatpush3.bf16.msra.mxu0 %v16487_v20  ;;  %v15793_v20 = vld [vmem:[%s21050_s1 + $0x20] sm:$0xff]   ;;  %47 = vst [vmem:[#allocation2 + $0xcc] sm:$0xf] %v16220_v61  ;;  %48 = vst [vmem:[#allocation2 + $0xd0] sm:$0xf] %v16220_v61  ;;  %v21101_v30 = vsel %vm16855_vm7, 4294967295, %v21100_v30 }
  0x61   :  { %13395 = vmatpush3.bf16.msra.mxu1 %v16506_v26  ;;  %13404 = vmatprep.subr.bf16.mxu0 %v16552_v48  ;;  %v15802_v26 = vld [vmem:[%s21050_s1 + $0x38] sm:$0xff]   ;;  %49 = vst [vmem:[#allocation2 + $0xd4] sm:$0x1] %v16220_v61  ;;  %50 = vst [vmem:[#allocation2 + $0x1a4] sm:$0xf] %v16220_v61 }
  0x62   :  { %13428 = vmatprep.subr.bf16.mxu1 %v15785_v53  ;;  %51 = vst [vmem:[#allocation2 + $0x1a8] sm:$0xf] %v16220_v61  ;;  %52 = vst [vmem:[#allocation2 + $0x1ac] sm:$0x1] %v16220_v61  ;;  %v278_v29 = vld [vmem:[#allocation2 + $0x68] sm:$0x1] }
  0x63   :  { %13373 = vmatmul.mubr.bf16.vlgmr.msra.gmra.mrb[16].mxu0 %v15781_v58  ;;  %v389_v58 = vld [vmem:[#allocation2 + $0x254] sm:$0x1]  ;;  %86 = vst [vmem:[#allocation2 + $0x60] sm:$0x1] %v85_v11  ;;  %21102 = vst [vmem:[#allocation6_spill] sm:$0xff] %v21101_v30  ;;  %v279_v32 = vsel %vm16693_vm4, 0, %v278_v29 }
  0x64   :  { %13405 = vmatpush3.bf16.msra.mxu0 %v16552_v48  ;;  %13397 = vmatmul.mubr.bf16.vlgmr.msra.gmra.mrb[16].mxu1 %v15784_v63  ;;  %v368_v48 = vld [vmem:[#allocation2 + $0x200] sm:$0x1]  ;;  %v404_v63 = vld [vmem:[#allocation2 + $0x2a8] sm:$0x1]  ;;  %280 = vst [vmem:[#allocation2 + $0x68] sm:$0x1] %v279_v32 }
  0x65   :  { %13429 = vmatpush3.bf16.msra.mxu1 %v15785_v53  ;;  %13406 = vmatprep.subr.bf16.mxu0 %v15786_v4  ;;  %v15808_v53 = vld [vmem:[%s21053_s4 + $0x40] sm:$0xff]   ;;  %v405_v34 = vsel %vm16693_vm4, 0, %v404_v63  ;;  %v81_v63 = vld [vmem:[#allocation2 + $0x54] sm:$0x1] }
  0x66   :  { %13430 = vmatprep.subr.bf16.mxu1 %v15787_v9  ;;  %13376 = vmatprep.mubr.bf16.mxu0 %v15796_v10  ;;  %v425_v10 = vld [vmem:[#allocation2 + $0x2fc] sm:$0x1]  ;;  %406 = vst [vmem:[#allocation2 + $0x2a8] sm:$0x1] %v405_v34  ;;  %v82_v1 = vsel %vm16491_vm2, 0, %v81_v63 }
  0x67   :  { %13400 = vmatprep.mubr.bf16.mxu1 %v15799_v12  ;;  %v431_v12 = vld [vmem:[#allocation2 + $0x314] sm:$0x1]  ;;  %v426_v42 = vsel %vm16693_vm4, 0, %v425_v10  ;;  %83 = vst [vmem:[#allocation2 + $0x54] sm:$0x1] %v82_v1 }
  0x68   :  { %13407 = vmatpush3.bf16.msra.mxu0 %v15786_v4  ;;  %v16723_v4 = vld [vmem:[#allocation2 + $0x2e4] sm:$0x1]  ;;  %427 = vst [vmem:[#allocation2 + $0x2fc] sm:$0x1] %v426_v42 }
  0x69   :  { %13431 = vmatpush3.bf16.msra.mxu1 %v15787_v9  ;;  %13408 = vmatprep.subr.bf16.mxu0 %v15788_v13  ;;  %v363_v9 = vsel %vm16693_vm4, 0, %v362_v44  ;;  %v420_v39 = vsel %vm16693_vm4, 0, %v16723_v4  ;;  %v432_v44 = vsel %vm16693_vm4, 0, %v431_v12  ;;  %v16828_v4 = vld [vmem:[#allocation2] sm:$0xf] }
  0x6a   :  { %13432 = vmatprep.subr.bf16.mxu1 %v15789_v14  ;;  %364 = vst [vmem:[#allocation2 + $0x1e8] sm:$0x1] %v363_v9  ;;  %421 = vst [vmem:[#allocation2 + $0x2e4] sm:$0x1] %v420_v39  ;;  %v3057_v8 = vshrl.u32 %v16828_v4, 16  ;;  %v3060_v9 = vshll.u32 %v16828_v4, 16 }
  0x6b   :  { %13377 = vmatmul.mubr.bf16.gmra.mrb[20].mxu0 %v15797_v15  ;;  %v369_v15 = vsel %vm16693_vm4, 0, %v368_v48  ;;  %433 = vst [vmem:[#allocation2 + $0x314] sm:$0x1] %v432_v44  ;;  %v275_v12 = vld [vmem:[#allocation2 + $0x5c] sm:$0x1] }
  0x6c   :  { %13409 = vmatpush3.bf16.msra.mxu0 %v15788_v13  ;;  %13401 = vmatmul.mubr.bf16.gmra.mrb[20].mxu1 %v15800_v16  ;;  %v434_v13 = vld [vmem:[#allocation2 + $0x320] sm:$0x1]  ;;  %v372_v16 = vsel %vm16693_vm4, 0, %v371_v49  ;;  %370 = vst [vmem:[#allocation2 + $0x200] sm:$0x1] %v369_v15 }
  0x6d   :  { %13433 = vmatpush3.bf16.msra.mxu1 %v15789_v14  ;;  %13410 = vmatprep.subr.bf16.mxu0 %v15790_v17  ;;  %v366_v14 = vsel %vm16693_vm4, 0, %v365_v47  ;;  %373 = vst [vmem:[#allocation2 + $0x20c] sm:$0x1] %v372_v16  ;;  %v435_v45 = vsel %vm16693_vm4, 0, %v434_v13  ;;  %v15817_v13 = vld [vmem:[%s21049_s0 + $0xf8] sm:$0xff]   ;;  %v276_v16 = vsel %vm16693_vm4, 0, %v275_v12 }
  0x6e   :  { %13434 = vmatprep.subr.bf16.mxu1 %v15791_v18  ;;  %13420 = vmatprep.mubr.bf16.mxu0 %v15804_v28  ;;  %367 = vst [vmem:[#allocation2 + $0x1f4] sm:$0x1] %v366_v14  ;;  %v390_v28 = vsel %vm16693_vm4, 0, %v389_v58  ;;  %436 = vst [vmem:[#allocation2 + $0x320] sm:$0x1] %v435_v45  ;;  %v15810_v58 = vld [vmem:[%s21053_s4 + $0x50] sm:$0xff]  }
  0x6f   :  { %13444 = vmatprep.mubr.bf16.mxu1 %v15806_v40  ;;  %391 = vst [vmem:[#allocation2 + $0x254] sm:$0x1] %v390_v28  ;;  %v423_v40 = vsel %vm16693_vm4, 0, %v16725_v5  ;;  %v16830_v5 = vld [vmem:[#allocation2 + $0x4] sm:$0xf]  ;;  %v15818_v14 = vld [vmem:[%s21053_s4 + $0x70] sm:$0xff]  }
  0x70   :  { %13411 = vmatpush3.bf16.msra.mxu0 %v15790_v17  ;;  %v375_v17 = vsel %vm16693_vm4, 0, %v374_v50  ;;  %424 = vst [vmem:[#allocation2 + $0x2f0] sm:$0x1] %v423_v40  ;;  %v72_v50 = vld [vmem:[#allocation2 + $0x30] sm:$0x1]  ;;  %v3066_v10 = vshll.u32 %v16830_v5, 16 }
  0x71   :  { %13435 = vmatpush3.bf16.msra.mxu1 %v15791_v18  ;;  %13412 = vmatprep.subr.bf16.mxu0 %v15792_v19  ;;  %v437_v18 = vld [vmem:[#allocation2 + $0x32c] sm:$0x1]  ;;  %376 = vst [vmem:[#allocation2 + $0x218] sm:$0x1] %v375_v17  ;;  %v3070_v15 = vshrl.u32 %v16830_v5, 16  ;;  %v3059_v17 = vrot.slane %v3057_v8, 4 }
  0x72   :  { %13436 = vmatprep.subr.bf16.mxu1 %v15793_v20  ;;  %v438_v46 = vsel %vm16693_vm4, 0, %v437_v18  ;;  %v3062_v18 = vrot.slane %v3060_v9, 5  ;;  %277 = vst [vmem:[#allocation2 + $0x5c] sm:$0x1] %v276_v16 }
  0x73   :  { %439 = vst [vmem:[#allocation2 + $0x32c] sm:$0x1] %v438_v46 }
  0x74   :  { %13413 = vmatpush3.bf16.msra.mxu0 %v15792_v19  ;;  %v440_v19 = vld [vmem:[#allocation2 + $0x338] sm:$0x1] }
  0x75   :  { %13437 = vmatpush3.bf16.msra.mxu1 %v15793_v20  ;;  %13414 = vmatprep.subr.bf16.mxu0 %v15794_v22  ;;  %v443_v20 = vld [vmem:[#allocation2 + $0x344] sm:$0x1]  ;;  %v441_v47 = vsel %vm16693_vm4, 0, %v440_v19  ;;  %v3068_v19 = vrot.slane %v3066_v10, 5 }
  0x76   :  { %13438 = vmatprep.subr.bf16.mxu1 %v15795_v23  ;;  %v444_v48 = vsel %vm16693_vm4, 0, %v443_v20  ;;  %442 = vst [vmem:[#allocation2 + $0x338] sm:$0x1] %v441_v47  ;;  %v16849_v20 = vld [vmem:[#allocation2 + $0x8] sm:$0x1] }
  0x77   :  { %445 = vst [vmem:[#allocation2 + $0x344] sm:$0x1] %v444_v48 }
  0x78   :  { %13415 = vmatpush3.bf16.msra.mxu0 %v15794_v22  ;;  %v446_v22 = vld [vmem:[#allocation2 + $0x350] sm:$0x1] }
  0x79   :  { %13439 = vmatpush3.bf16.msra.mxu1 %v15795_v23  ;;  %13416 = vmatprep.subr.bf16.mxu0 %v15798_v24  ;;  %v378_v23 = vsel %vm16693_vm4, 0, %v377_v54  ;;  %v447_v49 = vsel %vm16693_vm4, 0, %v446_v22  ;;  %v266_v54 = vld [vmem:[#allocation2 + $0x38] sm:$0x1]  ;;  %v3072_v22 = vrot.slane %v3070_v15, 4 }
  0x7a   :  { %13440 = vmatprep.subr.bf16.mxu1 %v15801_v25  ;;  %379 = vst [vmem:[#allocation2 + $0x224] sm:$0x1] %v378_v23  ;;  %448 = vst [vmem:[#allocation2 + $0x350] sm:$0x1] %v447_v49  ;;  %v3063_v23 = vor.u32 %v3062_v18, %v3059_v17 }
  0x7c   :  { %13417 = vmatpush3.bf16.msra.mxu0 %v15798_v24  ;;  %v381_v24 = vsel %vm16693_vm4, 0, %v380_v55 }
  0x7d   :  { %13441 = vmatpush3.bf16.msra.mxu1 %v15801_v25  ;;  %13418 = vmatprep.subr.bf16.mxu0 %v15802_v26  ;;  %v384_v25 = vsel %vm16693_vm4, 0, %v383_v56  ;;  %382 = vst [vmem:[#allocation2 + $0x230] sm:$0x1] %v381_v24  ;;  %v267_v56 = vsel %vm16693_vm4, 0, %v266_v54  ;;  %v3076_v24 = vshll.u32 %v16849_v20, 16 }
  0x7e   :  { %13442 = vmatprep.subr.bf16.mxu1 %v15803_v27  ;;  %385 = vst [vmem:[#allocation2 + $0x23c] sm:$0x1] %v384_v25  ;;  %268 = vst [vmem:[#allocation2 + $0x38] sm:$0x1] %v267_v56  ;;  %v15819_v25 = vld [vmem:[%s21053_s4 + $0x78] sm:$0xff]  }
  0x7f   :  { %v3078_v28 = vrot.slane %v3076_v24, 5 }
  0x80   :  { %13419 = vmatpush3.bf16.msra.mxu0 %v15802_v26  ;;  %v387_v26 = vsel %vm16693_vm4, 0, %v386_v57  ;;  %v263_v57 = vld [vmem:[#allocation2 + $0x2c] sm:$0x1] }
  0x81   :  { %13443 = vmatpush3.bf16.msra.mxu1 %v15803_v27  ;;  %13452 = vmatprep.subr.bf16.mxu0 %v15808_v53  ;;  %v15809_v27 = vld [vmem:[%s21053_s4 + $0x48] sm:$0xff]   ;;  %388 = vst [vmem:[#allocation2 + $0x248] sm:$0x1] %v387_v26  ;;  %v264_v60 = vsel %vm16693_vm4, 0, %v263_v57  ;;  %v3073_v26 = vor.u32 %v3072_v22, %v3068_v19 }
  0x82   :  { %13668 = vmatprep.subr.bf16.mxu1 %v15808_v53  ;;  %265 = vst [vmem:[#allocation2 + $0x2c] sm:$0x1] %v264_v60 }
  0x83   :  { %13421 = vmatmul.mubr.bf16.vlgmr.msra.gmra.mrb[24].mxu0 %v15805_v38  ;;  %v417_v38 = vsel %vm16693_vm4, 0, %v16721_v3  ;;  %v15815_v3 = vld [vmem:[%s21049_s0 + $0xd8] sm:$0xff]   ;;  %v3074_v31 = vrot.slane %v3073_v26, 4 }
  0x84   :  { %13445 = vmatmul.mubr.bf16.vlgmr.msra.gmra.mrb[24].mxu1 %v15807_v52  ;;  %13453 = vmatpush3.bf16.msra.mxu0 %v15808_v53  ;;  %418 = vst [vmem:[#allocation2 + $0x2d8] sm:$0x1] %v417_v38  ;;  %v73_v52 = vsel %vm16491_vm2, 0, %v72_v50 }
  0x85   :  { %13669 = vmatpush3.bf16.msra.mxu1 %v15808_v53  ;;  %13454 = vmatprep.subr.bf16.mxu0 %v15809_v27  ;;  %v69_v53 = vld [vmem:[#allocation2 + $0x24] sm:$0x1]  ;;  %74 = vst [vmem:[#allocation2 + $0x30] sm:$0x1] %v73_v52  ;;  %v3079_v35 = vsel %vm16855_vm7, %v3074_v31, %v3078_v28 }
  0x86   :  { %13670 = vmatprep.subr.bf16.mxu1 %v15809_v27  ;;  %v70_v55 = vsel %vm16491_vm2, 0, %v69_v53  ;;  %13424 = vmatprep.mubr.bf16.mxu0 %v15814_v2 }
  0x87   :  { %71 = vst [vmem:[#allocation2 + $0x24] sm:$0x1] %v70_v55  ;;  %13448 = vmatprep.mubr.bf16.mxu1 %v15816_v7 }
  0x88   :  { %13455 = vmatpush3.bf16.msra.mxu0 %v15809_v27 }
  0x89   :  { %13671 = vmatpush3.bf16.msra.mxu1 %v15809_v27  ;;  %13456 = vmatprep.subr.bf16.mxu0 %v15810_v58  ;;  %v3064_v27 = vrot.slane %v3063_v23, 4 }
  0x8a   :  { %13672 = vmatprep.subr.bf16.mxu1 %v15810_v58 }
  0x8b   :  { %13425 = vmatmul.mubr.bf16.gmra.mrb[28].mxu0 %v15815_v3  ;;  %v3069_v34 = vsel %vm16855_vm7, %v3064_v27, %v3068_v19 }
  0x8c   :  { %13457 = vmatpush3.bf16.msra.mxu0 %v15810_v58  ;;  %13449 = vmatmul.mubr.bf16.gmra.mrb[28].mxu1 %v15817_v13  ;;  %v11840_v37 = vcombine.low %v3069_v34, %v3079_v35 }
  0x8d   :  { %13673 = vmatpush3.bf16.msra.mxu1 %v15810_v58  ;;  %13458 = vmatprep.subr.bf16.mxu0 %v15811_v59 }
  0x8e   :  { %13674 = vmatprep.subr.bf16.mxu1 %v15811_v59  ;;  %13468 = vmatprep.mubr.bf16.mxu0 %v11840_v37 }
  0x90   :  { %13459 = vmatpush3.bf16.msra.mxu0 %v15811_v59 }
  0x91   :  { %13675 = vmatpush3.bf16.msra.mxu1 %v15811_v59  ;;  %13460 = vmatprep.subr.bf16.mxu0 %v15812_v62 }
  0x92   :  { %13676 = vmatprep.subr.bf16.mxu1 %v15812_v62 }
  0x94   :  { %13461 = vmatpush3.bf16.msra.mxu0 %v15812_v62 }
  0x95   :  { %13677 = vmatpush3.bf16.msra.mxu1 %v15812_v62  ;;  %13462 = vmatprep.subr.bf16.mxu0 %v15813_v0 }
  0x96   :  { %13678 = vmatprep.subr.bf16.mxu1 %v15813_v0 }
  0x98   :  { %13463 = vmatpush3.bf16.msra.mxu0 %v15813_v0 }
  0x99   :  { %13464 = vmatprep.subr.bf16.mxu0 %v15818_v14  ;;  %13679 = vmatpush3.bf16.msra.mxu1 %v15813_v0 }
  0x9a   :  { %13680 = vmatprep.subr.bf16.mxu1 %v15818_v14 }
  0x9c   :  { %13465 = vmatpush3.bf16.msra.mxu0 %v15818_v14 }
  0x9d   :  { %13466 = vmatprep.subr.bf16.mxu0 %v15819_v25  ;;  %13681 = vmatpush3.bf16.msra.mxu1 %v15818_v14 }
  0x9e   :  { %13682 = vmatprep.subr.bf16.mxu1 %v15819_v25 }
  0xa0   :  { %13467 = vmatpush3.bf16.msra.mxu0 %v15819_v25 }
  0xa1   :  { %13476 = vmatprep.subr.bf16.mxu0 %v16868_v36  ;;  %13683 = vmatpush3.bf16.msra.mxu1 %v15819_v25 }
  0xa2   :  { %13692 = vmatprep.subr.bf16.mxu1 %v16868_v36 }
  0xa3   :  { %14 = vsyncpa [#allocation4], 0  ;;  %v16875_v38 = vld [vmem:[%s21051_s2] ss:$0 sm:$0xff]  ;;  %v16877_v39 = vld [vmem:[#allocation2] sm:$0xe] }
  0xa4   :  { %v21059_v40 = vrot.slane %v16830_v5, 5  ;;  %v16883_v41 = vld [vmem:[%s21052_s3] ss:$0 sm:$0xff]  ;;  %vm754_vm8 = vcmask 1043456   ;;  %vm672_vm9 = vsmask.f32 4368 }
  0xa5   :  { %v763_v27 = vld [vmem:[#allocation2 + $0x18] sm:$0xf]  ;;  %vm16922_vm10 = vmand %vm754_vm8, %vm255_vm3  ;;  %vm3443_vm12 = vcmask 1042432   ;;  %vm3444_vm13 = vcmask 1046532   ;;  %v15881_v21 = vld [vmem:[%s21053_s4 + $0x1d0] sm:$0xff]   ;;  %vm16222_vm15 = vmmov 0  }
  0xa6   :  { %v16897_v58 = vrot.slane %v21059_v40, 4  ;;  %vm16936_vm11 = vmor %vm61_vm1, %vm672_vm9  ;;  %s16223_s26 = smov [#allocation3]  }
  0xa7   :  { %vm17178_vm14 = vmor %vm3443_vm12, %vm3444_vm13 }
  0xf5   :  { %v13278_v42 = vpop.f32.mrb[0].mxu0 }
  0xf6   :  { %v620_v43 = vmul.f32 %v13278_v42, %v16875_v38  ;;  %v13302_v44 = vpop.f32.mrb[0].mxu1  ;;  %v581_v45 = vpop.f32.mrb[1].mxu0 }
  0xf7   :  { %v947_v47 = vmul.f32 %v13302_v44, %v16875_v38  ;;  %v618_v48 = vmul.f32 %v16875_v38, %v581_v45  ;;  %v914_v49 = vpop.f32.mrb[1].mxu1  ;;  %v13279_v50 = vpop.f32.mrb[2].mxu0 }
  0xf8   :  { %v634_v53 = vadd.f32 %v16883_v41, %v620_v43  ;;  %v945_v54 = vmul.f32 %v16875_v38, %v914_v49  ;;  %v621_v55 = vmul.f32 %v13279_v50, %v16875_v38  ;;  %v13303_v56 = vpop.f32.mrb[2].mxu1  ;;  %v584_v57 = vpop.f32.mrb[3].mxu0 }
  0xf9   :  { %v955_v59 = vadd.f32 %v16883_v41, %v947_v47  ;;  %v632_v60 = vadd.f32 %v16883_v41, %v618_v48  ;;  %v948_v61 = vmul.f32 %v13303_v56, %v16875_v38  ;;  %v619_v62 = vmul.f32 %v16875_v38, %v584_v57  ;;  %v917_v63 = vpop.f32.mrb[3].mxu1 }
  0xfa   :  { %v642_v0 = vmax.f32 %v634_v53, 0.0  ;;  %v953_v1 = vadd.f32 %v16883_v41, %v945_v54  ;;  %v635_v2 = vadd.f32 %v16883_v41, %v621_v55  ;;  %v946_v3 = vmul.f32 %v16875_v38, %v917_v63  ;;  %v756_v53 = vld [vmem:[#allocation2 + $0xc] sm:$0xf] }
  0xfb   :  { %v963_v6 = vmax.f32 %v955_v59, 0.0  ;;  %v640_v7 = vmax.f32 %v632_v60, 0.0  ;;  %v956_v8 = vadd.f32 %v16883_v41, %v948_v61  ;;  %v16908_v9 = vadd.f32 %v16883_v41, %v619_v62  ;;  %v1081_v60 = vld [vmem:[#allocation2 + $0x48] sm:$0xf] }
  0xfc   :  { %v12229_v10 = vpack.c.bf16 %v642_v0, %v642_v0  ;;  %v961_v11 = vmax.f32 %v953_v1, 0.0  ;;  %v643_v12 = vmax.f32 %v635_v2, 0.0  ;;  %v16911_v13 = vadd.f32 %v16883_v41, %v946_v3  ;;  %v1074_v3 = vld [vmem:[#allocation2 + $0x3c] sm:$0xf] }
  0xfd   :  { %v12237_v14 = vpack.c.bf16 %v963_v6, %v963_v6  ;;  %v12227_v15 = vpack.c.bf16 %v640_v7, %v640_v7  ;;  %v964_v16 = vmax.f32 %v956_v8, 0.0  ;;  %v641_v17 = vmax.f32 %v16908_v9, 0.0  ;;  %v13282_v18 = vpop.f32.mrb[4].mxu0 }
  0xfe   :  { %v692_v19 = vshrl.u32 %v12229_v10, 16  ;;  %v695_v22 = vshll.u32 %v12229_v10, 16  ;;  %v12235_v23 = vpack.c.bf16 %v961_v11, %v961_v11  ;;  %v12230_v24 = vpack.c.bf16 %v643_v12, %v643_v12  ;;  %v597_v25 = vpop.f32.mrb[5].mxu0  ;;  %v16914_v26 = vpop.f32.mrb[4].mxu1  ;;  %v767_v11 = vld [vmem:[#allocation2 + $0x20] sm:$0x1] }
  0xff   :  { %v1011_v28 = vshrl.u32 %v12237_v14, 16  ;;  %v1014_v29 = vshll.u32 %v12237_v14, 16  ;;  %v675_v31 = vshrl.u32 %v12227_v15, 16  ;;  %v678_v32 = vshll.u32 %v12227_v15, 16  ;;  %v13283_v34 = vpop.f32.mrb[6].mxu0  ;;  %v16916_v35 = vpop.f32.mrb[5].mxu1 }
 0x100   :  { %v694_v37 = vrot.slane %v692_v19, 7  ;;  %v994_v42 = vshrl.u32 %v12235_v23, 16  ;;  %v997_v43 = vshll.u32 %v12235_v23, 16  ;;  %v700_v44 = vshrl.u32 %v12230_v24, 16  ;;  %v600_v45 = vpop.f32.mrb[7].mxu0  ;;  %v16918_v47 = vpop.f32.mrb[6].mxu1 }
 0x101   :  { %v1013_v49 = vrot.slane %v1011_v28, 7  ;;  %v16926_v50 = vrot.slane %v675_v31, 7  ;;  %v703_v54 = vshll.u32 %v12230_v24, 16  ;;  %v12238_v55 = vpack.c.bf16 %v964_v16, %v964_v16  ;;  %v16928_v56 = vpop.f32.mrb[7].mxu1 }
 0x102   :  { %v697_v57 = vor.u32 %v695_v22, %v694_v37  ;;  %v698_v59 = vrot.slane %v694_v37, 4  ;;  %v16930_v61 = vrot.slane %v994_v42, 7  ;;  %v702_v62 = vrot.slane %v700_v44, 7 }
 0x103   :  { %v1016_v63 = vor.u32 %v1014_v29, %v1013_v49  ;;  %v1017_v0 = vrot.slane %v1013_v49, 4  ;;  %v680_v1 = vor.u32 %v678_v32, %v16926_v50  ;;  %v681_v2 = vrot.slane %v16926_v50, 4  ;;  %v1085_v32 = vld [vmem:[#allocation2 + $0x50] sm:$0x1] }
 0x104   :  { %v764_v7 = vsel %vm16922_vm10, %v697_v57, %v763_v27  ;;  %v999_v8 = vor.u32 %v997_v43, %v16930_v61  ;;  %v1000_v9 = vrot.slane %v16930_v61, 4  ;;  %v705_v10 = vor.u32 %v703_v54, %v702_v62 }
 0x105   :  { %765 = vst [vmem:[#allocation2 + $0x18] sm:$0xf] %v764_v7  ;;  %v1082_v12 = vsel %vm16922_vm10, %v1016_v63, %v1081_v60  ;;  %v757_v14 = vsel %vm16922_vm10, %v680_v1, %v756_v53  ;;  %v707_v15 = vrot.slane %v702_v62, 4  ;;  %v1019_v16 = vshrl.u32 %v12238_v55, 16 }
 0x106   :  { %1083 = vst [vmem:[#allocation2 + $0x48] sm:$0xf] %v1082_v12  ;;  %758 = vst [vmem:[#allocation2 + $0xc] sm:$0xf] %v757_v14  ;;  %v1075_v19 = vsel %vm16922_vm10, %v999_v8, %v1074_v3  ;;  %v706_v22 = vsel %vm16936_vm11, %v698_v59, %v705_v10  ;;  %v1022_v23 = vshll.u32 %v12238_v55, 16  ;;  %v12228_v24 = vpack.c.bf16 %v641_v17, %v641_v17 }
 0x107   :  { %1076 = vst [vmem:[#allocation2 + $0x3c] sm:$0xf] %v1075_v19  ;;  %766 = vst [vmem:[#allocation2 + $0x1c] sm:$0xf] %v706_v22  ;;  %v768_v27 = vsel %vm16491_vm2, %v707_v15, %v767_v11  ;;  %v1021_v28 = vrot.slane %v1019_v16, 7  ;;  %v962_v29 = vmax.f32 %v16911_v13, 0.0  ;;  %v624_v31 = vmul.f32 %v13282_v18, %v16875_v38 }
 0x108   :  { %769 = vst [vmem:[#allocation2 + $0x20] sm:$0x1] %v768_v27  ;;  %v683_v37 = vshrl.u32 %v12228_v24, 16  ;;  %v686_v42 = vshll.u32 %v12228_v24, 16  ;;  %v622_v43 = vmul.f32 %v16875_v38, %v597_v25  ;;  %v625_v44 = vmul.f32 %v13283_v34, %v16875_v38  ;;  %v760_v59 = vld [vmem:[#allocation2 + $0x14] sm:$0x1] }
 0x109   :  { %v1024_v49 = vor.u32 %v1022_v23, %v1021_v28  ;;  %v1026_v17 = vrot.slane %v1021_v28, 4  ;;  %v12236_v50 = vpack.c.bf16 %v962_v29, %v962_v29  ;;  %v638_v53 = vadd.f32 %v16883_v41, %v624_v31  ;;  %v1078_v12 = vld [vmem:[#allocation2 + $0x44] sm:$0x1] }
 0x10a   :  { %v685_v54 = vrot.slane %v683_v37, 7  ;;  %v636_v55 = vadd.f32 %v16883_v41, %v622_v43  ;;  %v639_v13 = vadd.f32 %v16883_v41, %v625_v44  ;;  %v623_v18 = vmul.f32 %v16875_v38, %v600_v45 }
 0x10b   :  { %v1025_v57 = vsel %vm16936_vm11, %v1017_v0, %v1024_v49  ;;  %v1086_v25 = vsel %vm16491_vm2, %v1026_v17, %v1085_v32  ;;  %v1002_v34 = vshrl.u32 %v12236_v50, 16  ;;  %v1005_v60 = vshll.u32 %v12236_v50, 16  ;;  %v777_v49 = vld [vmem:[#allocation2 + $0x30] sm:$0xf]  ;;  %v770_v17 = vld [vmem:[#allocation2 + $0x24] sm:$0xf] }
 0x10c   :  { %1084 = vst [vmem:[#allocation2 + $0x4c] sm:$0xf] %v1025_v57  ;;  %1087 = vst [vmem:[#allocation2 + $0x50] sm:$0x1] %v1086_v25  ;;  %v688_v62 = vor.u32 %v686_v42, %v685_v54  ;;  %v690_v63 = vrot.slane %v685_v54, 4  ;;  %v646_v1 = vmax.f32 %v638_v53, 0.0  ;;  %v637_v10 = vadd.f32 %v16883_v41, %v623_v18 }
 0x10d   :  { %v644_v3 = vmax.f32 %v636_v55, 0.0  ;;  %v1004_v7 = vrot.slane %v1002_v34, 7  ;;  %v647_v8 = vmax.f32 %v639_v13, 0.0  ;;  %v951_v45 = vmul.f32 %v16914_v26, %v16875_v38  ;;  %v781_v57 = vld [vmem:[#allocation2 + $0x38] sm:$0x1] }
 0x10e   :  { %v689_v0 = vsel %vm16936_vm11, %v681_v2, %v688_v62  ;;  %v761_v11 = vsel %vm16491_vm2, %v690_v63, %v760_v59  ;;  %v12233_v14 = vpack.c.bf16 %v646_v1, %v646_v1  ;;  %v645_v23 = vmax.f32 %v637_v10, 0.0  ;;  %v16986_v62 = vld [vmem:[#allocation2 + $0xc] sm:$0xf] }
 0x10f   :  { %v12231_v15 = vpack.c.bf16 %v644_v3, %v644_v3  ;;  %759 = vst [vmem:[#allocation2 + $0x10] sm:$0xf] %v689_v0  ;;  %762 = vst [vmem:[#allocation2 + $0x14] sm:$0x1] %v761_v11  ;;  %v1007_v16 = vor.u32 %v1005_v60, %v1004_v7  ;;  %v1009_v19 = vrot.slane %v1004_v7, 4  ;;  %v12234_v22 = vpack.c.bf16 %v647_v8, %v647_v8 }
 0x110   :  { %v726_v24 = vshrl.u32 %v12233_v14, 16  ;;  %v729_v27 = vshll.u32 %v12233_v14, 16  ;;  %v12232_v43 = vpack.c.bf16 %v645_v23, %v645_v23  ;;  %v959_v44 = vadd.f32 %v16883_v41, %v951_v45  ;;  %v774_v8 = vld [vmem:[#allocation2 + $0x2c] sm:$0x1] }
 0x111   :  { %v709_v28 = vshrl.u32 %v12231_v15, 16  ;;  %v712_v29 = vshll.u32 %v12231_v15, 16  ;;  %v1008_v26 = vsel %vm16936_vm11, %v1000_v9, %v1007_v16  ;;  %v1079_v2 = vsel %vm16491_vm2, %v1009_v19, %v1078_v12 }
 0x112   :  { %v734_v31 = vshrl.u32 %v12234_v22, 16  ;;  %v737_v32 = vshll.u32 %v12234_v22, 16  ;;  %1077 = vst [vmem:[#allocation2 + $0x40] sm:$0xf] %v1008_v26  ;;  %1080 = vst [vmem:[#allocation2 + $0x44] sm:$0x1] %v1079_v2  ;;  %v949_v61 = vmul.f32 %v16875_v38, %v16916_v35  ;;  %v952_v9 = vmul.f32 %v16918_v47, %v16875_v38 }
 0x113   :  { %v728_v37 = vrot.slane %v726_v24, 7  ;;  %v711_v42 = vrot.slane %v709_v28, 7  ;;  %v950_v53 = vmul.f32 %v16875_v38, %v16928_v56  ;;  %v717_v34 = vshrl.u32 %v12232_v43, 16 }
 0x114   :  { %v736_v50 = vrot.slane %v734_v31, 7  ;;  %v720_v60 = vshll.u32 %v12232_v43, 16  ;;  %v967_v63 = vmax.f32 %v959_v44, 0.0  ;;  %v957_v38 = vadd.f32 %v16883_v41, %v949_v61 }
 0x115   :  { %v731_v54 = vor.u32 %v729_v27, %v728_v37  ;;  %v732_v55 = vrot.slane %v728_v37, 4  ;;  %v714_v13 = vor.u32 %v712_v29, %v711_v42  ;;  %v715_v18 = vrot.slane %v711_v42, 4  ;;  %v1095_v42 = vld [vmem:[#allocation2 + $0x60] sm:$0xf] }
 0x116   :  { %v739_v25 = vor.u32 %v737_v32, %v736_v50  ;;  %v741_v59 = vrot.slane %v736_v50, 4  ;;  %v719_v3 = vrot.slane %v717_v34, 7  ;;  %v960_v7 = vadd.f32 %v16883_v41, %v952_v9  ;;  %v17001_v27 = vld [vmem:[#allocation2 + $0x10] sm:$0xf] }
 0x117   :  { %v778_v35 = vsel %vm16922_vm10, %v731_v54, %v777_v49  ;;  %v771_v47 = vsel %vm16922_vm10, %v714_v13, %v770_v17  ;;  %v12241_v10 = vpack.c.bf16 %v967_v63, %v967_v63  ;;  %v965_v45 = vmax.f32 %v957_v38, 0.0  ;;  %v1092_v63 = vld [vmem:[#allocation2 + $0x5c] sm:$0x1] }
 0x118   :  { %779 = vst [vmem:[#allocation2 + $0x30] sm:$0xf] %v778_v35  ;;  %772 = vst [vmem:[#allocation2 + $0x24] sm:$0xf] %v771_v47  ;;  %v740_v56 = vsel %vm16936_vm11, %v732_v55, %v739_v25  ;;  %v782_v1 = vsel %vm16491_vm2, %v741_v59, %v781_v57  ;;  %v958_v0 = vadd.f32 %v16883_v41, %v950_v53  ;;  %v3081_v11 = vshrl.u32 %v16986_v62, 16 }
 0x119   :  { %780 = vst [vmem:[#allocation2 + $0x34] sm:$0xf] %v740_v56  ;;  %783 = vst [vmem:[#allocation2 + $0x38] sm:$0x1] %v782_v1  ;;  %v722_v12 = vor.u32 %v720_v60, %v719_v3  ;;  %v724_v14 = vrot.slane %v719_v3, 4  ;;  %v968_v15 = vmax.f32 %v960_v7, 0.0  ;;  %v12239_v23 = vpack.c.bf16 %v965_v45, %v965_v45 }
 0x11a   :  { %v3084_v16 = vshll.u32 %v16986_v62, 16  ;;  %v1045_v19 = vshrl.u32 %v12241_v10, 16  ;;  %v1048_v22 = vshll.u32 %v12241_v10, 16  ;;  %v966_v24 = vmax.f32 %v958_v0, 0.0  ;;  %v1088_v53 = vld [vmem:[#allocation2 + $0x54] sm:$0xf] }
 0x11b   :  { %v723_v28 = vsel %vm16936_vm11, %v715_v18, %v722_v12  ;;  %v775_v29 = vsel %vm16491_vm2, %v724_v14, %v774_v8  ;;  %v12242_v41 = vpack.c.bf16 %v968_v15, %v968_v15  ;;  %v3083_v26 = vrot.slane %v3081_v11, 4  ;;  %v17008_v18 = vld [vmem:[#allocation2 + $0x14] sm:$0x1]  ;;  %v1099_v35 = vld [vmem:[#allocation2 + $0x68] sm:$0x1] }
 0x11c   :  { %773 = vst [vmem:[#allocation2 + $0x28] sm:$0xf] %v723_v28  ;;  %776 = vst [vmem:[#allocation2 + $0x2c] sm:$0x1] %v775_v29  ;;  %v1047_v2 = vrot.slane %v1045_v19, 7  ;;  %v1028_v31 = vshrl.u32 %v12239_v23, 16  ;;  %v12240_v37 = vpack.c.bf16 %v966_v24, %v966_v24 }
 0x11d   :  { %v1031_v32 = vshll.u32 %v12239_v23, 16  ;;  %v1053_v43 = vshrl.u32 %v12242_v41, 16  ;;  %v1056_v44 = vshll.u32 %v12242_v41, 16  ;;  %v3086_v49 = vrot.slane %v3084_v16, 5  ;;  %v17013_v7 = vld [vmem:[#allocation2 + $0x18] sm:$0xf] }
 0x11e   :  { %v3090_v17 = vshll.u32 %v17001_v27, 16  ;;  %v1050_v50 = vor.u32 %v1048_v22, %v1047_v2  ;;  %v1051_v61 = vrot.slane %v1047_v2, 4  ;;  %v1030_v9 = vrot.slane %v1028_v31, 7  ;;  %v17018_v11 = vld [vmem:[#allocation2 + $0x1c] sm:$0xf] }
 0x11f   :  { %v1036_v54 = vshrl.u32 %v12240_v37, 16  ;;  %v1055_v55 = vrot.slane %v1053_v43, 7  ;;  %v1039_v13 = vshll.u32 %v12240_v37, 16  ;;  %v3087_v57 = vor.u32 %v3086_v49, %v3083_v26  ;;  %v17026_v19 = vld [vmem:[#allocation2 + $0x20] sm:$0x1]  ;;  %v17040_v37 = vpop.f32.mrb[8].mxu0 }
 0x120   :  { %v3092_v25 = vrot.slane %v3090_v17, 5  ;;  %v1096_v59 = vsel %vm16922_vm10, %v1050_v50, %v1095_v42  ;;  %v1033_v34 = vor.u32 %v1031_v32, %v1030_v9  ;;  %v1034_v60 = vrot.slane %v1030_v9, 4  ;;  %v17028_v22 = vld [vmem:[#allocation2 + $0x30] sm:$0xf]  ;;  %v17038_v32 = vld [vmem:[#allocation2 + $0x34] sm:$0xf] }
 0x121   :  { %v1038_v47 = vrot.slane %v1036_v54, 7  ;;  %1097 = vst [vmem:[#allocation2 + $0x60] sm:$0xf] %v1096_v59  ;;  %v1058_v38 = vor.u32 %v1056_v44, %v1055_v55  ;;  %v1060_v56 = vrot.slane %v1055_v55, 4  ;;  %v3088_v1 = vrot.slane %v3087_v57, 4  ;;  %v17045_v17 = vpop.f32.mrb[9].mxu0 }
 0x122   :  { %v3094_v3 = vshrl.u32 %v17001_v27, 16  ;;  %v1089_v8 = vsel %vm16922_vm10, %v1033_v34, %v1088_v53  ;;  %v3100_v0 = vshll.u32 %v17008_v18, 16  ;;  %v3105_v29 = vshrl.u32 %v17013_v7, 16  ;;  %v17047_v50 = vpop.f32.mrb[8].mxu1  ;;  %v17049_v55 = vld [vmem:[#allocation2 + $0x38] sm:$0x1] }
 0x123   :  { %v1041_v10 = vor.u32 %v1039_v13, %v1038_v47  ;;  %v1043_v45 = vrot.slane %v1038_v47, 4  ;;  %1090 = vst [vmem:[#allocation2 + $0x54] sm:$0xf] %v1089_v8  ;;  %v1059_v12 = vsel %vm16936_vm11, %v1051_v61, %v1058_v38  ;;  %v1100_v14 = vsel %vm16491_vm2, %v1060_v56, %v1099_v35  ;;  %v17052_v34 = vld [vmem:[#allocation2 + $0x24] sm:$0xf]  ;;  %v17059_v56 = vpop.f32.mrb[10].mxu0 }
 0x124   :  { %v3093_v15 = vsel %vm16855_vm7, %v3088_v1, %v3092_v25  ;;  %v3096_v16 = vrot.slane %v3094_v3, 4  ;;  %1098 = vst [vmem:[#allocation2 + $0x64] sm:$0xf] %v1059_v12  ;;  %1101 = vst [vmem:[#allocation2 + $0x68] sm:$0x1] %v1100_v14  ;;  %v3102_v28 = vrot.slane %v3100_v0, 5 }
 0x125   :  { %v1042_v23 = vsel %vm16936_vm11, %v1034_v60, %v1041_v10  ;;  %v1093_v24 = vsel %vm16491_vm2, %v1043_v45, %v1092_v63  ;;  %v3108_v26 = vshll.u32 %v17013_v7, 16  ;;  %v3114_v2 = vshll.u32 %v17018_v11, 16  ;;  %v17057_v38 = vld [vmem:[#allocation2 + $0x28] sm:$0xf] }
 0x126   :  { %1091 = vst [vmem:[#allocation2 + $0x58] sm:$0xf] %v1042_v23  ;;  %1094 = vst [vmem:[#allocation2 + $0x5c] sm:$0x1] %v1093_v24  ;;  %v3097_v41 = vor.u32 %v3096_v16, %v3092_v25  ;;  %v3118_v31 = vshrl.u32 %v17018_v11, 16  ;;  %v3107_v42 = vrot.slane %v3105_v29, 4 }
 0x127   :  { %v3124_v43 = vshll.u32 %v17026_v19, 16  ;;  %v4625_v44 = vshrl.u32 %v17028_v22, 16  ;;  %v4628_v49 = vshll.u32 %v17028_v22, 16  ;;  %v3110_v9 = vrot.slane %v3108_v26, 5  ;;  %v17066_v3 = vld [vmem:[%s21053_s4 + $0x8] sm:$0xff]  }
 0x128   :  { %v3098_v61 = vrot.slane %v3097_v41, 4  ;;  %v3116_v53 = vrot.slane %v3114_v2, 5  ;;  %v3120_v54 = vrot.slane %v3118_v31, 4  ;;  %v4634_v59 = vshll.u32 %v17038_v32, 16  ;;  %v17070_v23 = vld [vmem:[#allocation2 + $0x3c] sm:$0xf] }
 0x129   :  { %v3126_v13 = vrot.slane %v3124_v43, 5  ;;  %v4627_v57 = vrot.slane %v4625_v44, 4  ;;  %v4630_v25 = vrot.slane %v4628_v49, 5  ;;  %v3111_v35 = vor.u32 %v3110_v9, %v3107_v42  ;;  %v17082_v43 = vld [vmem:[#allocation2 + $0x40] sm:$0xf]  ;;  %v17084_v44 = vpop.f32.mrb[11].mxu0 }
 0x12a   :  { %v3103_v60 = vsel %vm16855_vm7, %v3098_v61, %v3102_v28  ;;  %v3121_v47 = vor.u32 %v3120_v54, %v3116_v53  ;;  %v4638_v63 = vshrl.u32 %v17038_v32, 16  ;;  %v4636_v10 = vrot.slane %v4634_v59, 5  ;;  %v17073_v28 = vld [vmem:[#allocation2 + $0x2c] sm:$0x1]  ;;  %v17092_v61 = vld [vmem:[%s21053_s4 + $0x10] sm:$0xff]  }
 0x12b   :  { %v17061_v1 = vcombine.low %v3093_v15, %v3103_v60  ;;  %v4631_v8 = vor.u32 %v4630_v25, %v4627_v57  ;;  %v4644_v45 = vshll.u32 %v17049_v55, 16  ;;  %v3112_v0 = vrot.slane %v3111_v35, 4  ;;  %v17098_v57 = vpop.f32.mrb[9].mxu1 }
 0x12c   :  { %v3122_v12 = vrot.slane %v3121_v47, 4  ;;  %v4640_v14 = vrot.slane %v4638_v63, 4  ;;  %v3129_v16 = vshrl.u32 %v17052_v34, 16  ;;  %v3132_v29 = vshll.u32 %v17052_v34, 16  ;;  %v17103_v47 = vpop.f32.mrb[10].mxu1 }
 0x12d   :  { %21107 = vst [vmem:[#allocation7_spill] sm:$0xff] %v17061_v1  ;;  %13469 = vmatmul.mubr.bf16.vlgmr.msra.gmra.mrb[32].mxu0 %v17061_v1  ;;  %v4632_v15 = vrot.slane %v4631_v8, 4  ;;  %v4646_v24 = vrot.slane %v4644_v45, 5  ;;  %v3138_v41 = vshll.u32 %v17057_v38, 16  ;;  %v3117_v26 = vsel %vm16855_vm7, %v3112_v0, %v3116_v53  ;;  %v17106_v8 = vld [vmem:[#allocation2 + $0x44] sm:$0x1] }
 0x12e   :  { %13477 = vmatpush3.bf16.msra.mxu0 %v16868_v36  ;;  %v3127_v2 = vsel %vm16855_vm7, %v3122_v12, %v3126_v13  ;;  %v4641_v31 = vor.u32 %v4640_v14, %v4636_v10  ;;  %v3131_v42 = vrot.slane %v3129_v16, 4  ;;  %v3134_v53 = vrot.slane %v3132_v29, 5  ;;  %v17096_v13 = vld [vmem:[#allocation2 + $0x48] sm:$0xf]  ;;  %v17111_v12 = vpop.f32.mrb[11].mxu1 }
 0x12f   :  { %v17086_v49 = vcombine.low %v3117_v26, %v3127_v2  ;;  %13478 = vmatprep.subr.bf16.mxu0 %v17066_v3  ;;  %v4637_v9 = vsel %vm16855_vm7, %v4632_v15, %v4636_v10  ;;  %v3140_v54 = vrot.slane %v3138_v41, 5  ;;  %v3142_v59 = vshrl.u32 %v17057_v38, 16  ;;  %21109 = vst [vmem:[#allocation9_spill] sm:$0xff] %v17111_v12  ;;  %v17116_v41 = vld [vmem:[#allocation2 + $0x4c] sm:$0xf] }
 0x130   :  { %v4642_v25 = vrot.slane %v4641_v31, 4  ;;  %v3148_v60 = vshll.u32 %v17073_v28, 16  ;;  %v4649_v35 = vshrl.u32 %v17070_v23, 16  ;;  %v3135_v63 = vor.u32 %v3134_v53, %v3131_v42  ;;  %v17122_v53 = vld [vmem:[%s21053_s4 + $0x18] sm:$0xff]  }
 0x131   :  { %21108 = vst [vmem:[#allocation8_spill] sm:$0xff] %v17086_v49  ;;  %13472 = vmatprep.mubr.bf16.mxu0 %v17086_v49  ;;  %v4652_v10 = vshll.u32 %v17070_v23, 16  ;;  %v4658_v45 = vshll.u32 %v17082_v43, 16  ;;  %v4662_v0 = vshrl.u32 %v17082_v43, 16  ;;  %v3144_v16 = vrot.slane %v3142_v59, 4 }
 0x132   :  { %13479 = vmatpush3.bf16.msra.mxu0 %v17066_v3  ;;  %v4647_v14 = vsel %vm16855_vm7, %v4642_v25, %v4646_v24  ;;  %v3150_v15 = vrot.slane %v3148_v60, 5  ;;  %v4651_v29 = vrot.slane %v4649_v35, 4  ;;  %v3136_v2 = vrot.slane %v3135_v63, 4  ;;  %v17152_v49 = vld [vmem:[#allocation2 + $0x5c] sm:$0x1] }
 0x133   :  { %13480 = vmatprep.subr.bf16.mxu0 %v17092_v61  ;;  %v12050_v26 = vcombine.low %v4637_v9, %v4647_v14  ;;  %v4654_v31 = vrot.slane %v4652_v10, 5  ;;  %v4660_v42 = vrot.slane %v4658_v45, 5  ;;  %v3145_v52 = vor.u32 %v3144_v16, %v3140_v54  ;;  %v17128_v9 = vld [vmem:[#allocation2 + $0x50] sm:$0x1]  ;;  %v17132_v45 = vld [vmem:[#allocation2 + $0x54] sm:$0xf] }
 0x134   :  { %v4664_v24 = vrot.slane %v4662_v0, 4  ;;  %v4668_v25 = vshll.u32 %v17106_v8, 16  ;;  %v4673_v59 = vshrl.u32 %v17096_v13, 16  ;;  %v3141_v60 = vsel %vm16855_vm7, %v3136_v2, %v3140_v54 }
 0x135   :  { %13684 = vmatprep.mubr.bf16.mxu1 %v12050_v26  ;;  %v4655_v35 = vor.u32 %v4654_v31, %v4651_v29  ;;  %v4676_v63 = vshll.u32 %v17096_v13, 16  ;;  %v4682_v10 = vshll.u32 %v17116_v41, 16  ;;  %v3146_v14 = vrot.slane %v3145_v52, 4  ;;  %v17140_v29 = vld [vmem:[%s21053_s4 + $0x20] sm:$0xff]  }
 0x136   :  { %13481 = vmatpush3.bf16.msra.mxu0 %v17092_v61  ;;  %v4665_v0 = vor.u32 %v4664_v24, %v4660_v42  ;;  %v4670_v16 = vrot.slane %v4668_v25, 5  ;;  %v4675_v51 = vrot.slane %v4673_v59, 4  ;;  %v4686_v54 = vshrl.u32 %v17116_v41, 16  ;;  %v17145_v24 = vld [vmem:[#allocation2 + $0x58] sm:$0xf] }
 0x137   :  { %v4656_v40 = vrot.slane %v4655_v35, 4  ;;  %v4678_v26 = vrot.slane %v4676_v63, 5  ;;  %v4684_v46 = vrot.slane %v4682_v10, 5  ;;  %13482 = vmatprep.subr.bf16.mxu0 %v17122_v53  ;;  %v3151_v52 = vsel %vm16855_vm7, %v3146_v14, %v3150_v15 }
 0x138   :  { %v4666_v2 = vrot.slane %v4665_v0, 4  ;;  %v4692_v31 = vshll.u32 %v17128_v9, 16  ;;  %v4697_v25 = vshrl.u32 %v17132_v45, 16  ;;  %v17148_v59 = vcombine.low %v3141_v60, %v3151_v52 }
 0x139   :  { %v4661_v35 = vsel %vm16855_vm7, %v4656_v40, %v4660_v42  ;;  %v4679_v63 = vor.u32 %v4678_v26, %v4675_v51  ;;  %v4688_v10 = vrot.slane %v4686_v54, 4  ;;  %v4700_v0 = vshll.u32 %v17132_v45, 16  ;;  %v17166_v51 = vld [vmem:[%s21053_s4 + $0x28] sm:$0xff]  }
 0x13a   :  { %21110 = vst [vmem:[#allocation10_spill] sm:$0xff] %v17148_v59  ;;  %v4671_v1 = vsel %vm16855_vm7, %v4666_v2, %v4670_v16  ;;  %v4694_v15 = vrot.slane %v4692_v31, 5  ;;  %13483 = vmatpush3.bf16.msra.mxu0 %v17122_v53  ;;  %v4699_v14 = vrot.slane %v4697_v25, 4  ;;  %v4706_v40 = vshll.u32 %v17145_v24, 16 }
 0x13b   :  { %13473 = vmatmul.mubr.bf16.gmra.mrb[36].mxu0 %v17148_v59  ;;  %v17159_v60 = vcombine.low %v4661_v35, %v4671_v1  ;;  %v4680_v52 = vrot.slane %v4679_v63, 4  ;;  %v4689_v12 = vor.u32 %v4688_v10, %v4684_v46  ;;  %13484 = vmatprep.subr.bf16.mxu0 %v17140_v29  ;;  %v4702_v42 = vrot.slane %v4700_v0, 5  ;;  %v17182_v35 = vpop.f32.mrb[12].mxu0  ;;  %v4619_v59 = vld [vmem:[#allocation2 + $0x3c] sm:$0xe] }
 0x13c   :  { %v4710_v16 = vshrl.u32 %v17145_v24, 16  ;;  %v4716_v26 = vshll.u32 %v17152_v49, 16  ;;  %v21112_v1 = vcombine.low %v16828_v4, %v16830_v5  ;;  %v4708_v31 = vrot.slane %v4706_v40, 5  ;;  %v17203_v40 = vpop.f32.mrb[12].mxu1 }
 0x13d   :  { %21111 = vst [vmem:[#allocation11_spill] sm:$0xff] %v17159_v60  ;;  %13685 = vmatmul.mubr.bf16.vlgmr.msra.gmra.mrb[32].mxu1 %v17159_v60  ;;  %v4685_v54 = vsel %vm16855_vm7, %v4680_v52, %v4684_v46  ;;  %v4690_v2 = vrot.slane %v4689_v12, 4  ;;  %v21113_v25 = vmov 0  ;;  %v4703_v4 = vor.u32 %v4702_v42, %v4699_v14 }
 0x13e   :  { %13492 = vmatprep.mubr.bf16.mxu0 %v21112_v1  ;;  %v21114_v25 = vsel %vm17178_vm14, 4294967295, %v21113_v25  ;;  %13693 = vmatpush3.bf16.msra.mxu1 %v16868_v36  ;;  %v4712_v63 = vrot.slane %v4710_v16, 4  ;;  %v21116_v10 = vrot.slane %v16830_v5, 5  ;;  %v21117_v46 = vrot.slane %v16877_v39, 9  ;;  %v17201_v36 = vpop.f32.mrb[13].mxu0 }
 0x13f   :  { %21115 = vst [vmem:[#allocation12_spill] sm:$0xff] %v21114_v25  ;;  %13485 = vmatpush3.bf16.msra.mxu0 %v17140_v29  ;;  %v21118_v0 = vrot.slane %v16849_v20, 5  ;;  %v4695_v5 = vsel %vm16855_vm7, %v4690_v2, %v4694_v15  ;;  %13694 = vmatprep.subr.bf16.mxu1 %v17066_v3  ;;  %v17209_v39 = vpop.f32.mrb[14].mxu0  ;;  %v4704_v20 = vrot.slane %v4703_v4, 4  ;;  %v4718_v16 = vrot.slane %v4716_v26, 5 }
 0x140   :  { %v17192_v12 = vsel %vm17178_vm14, %v21117_v46, %v21116_v10  ;;  %13486 = vmatprep.subr.bf16.mxu0 %v17166_v51  ;;  %v17211_v14 = vcombine.low %v4685_v54, %v4695_v5  ;;  %v4713_v42 = vor.u32 %v4712_v63, %v4708_v31  ;;  %v3032_v1 = vld [vmem:[#allocation2 + $0xc] sm:$0xe]  ;;  %v17218_v10 = vpop.f32.mrb[15].mxu0  ;;  %v12054_v15 = vcombine.low %v17028_v22, %v17038_v32  ;;  %v17225_v46 = vpop.f32.mrb[13].mxu1 }
 0x141   :  { %v17199_v52 = vsel %vm17178_vm14, %v16897_v58, %v21118_v0  ;;  %v17216_v58 = vld [vmem:[%s21053_s4 + $0x30] sm:$0xff]   ;;  %v21068_v2 = vrot.slane %v17038_v32, 5  ;;  %v4709_v26 = vsel %vm16855_vm7, %v4704_v20, %v4708_v31  ;;  %v17233_v63 = vcombine.low %v16986_v62, %v17001_v27  ;;  %v3033_v0 = vld [vmem:[#allocation2 + $0x18] sm:$0xe]  ;;  %v17236_v5 = vpop.f32.mrb[14].mxu1 }
 0x142   :  { %21119 = vst [vmem:[#allocation13_spill] sm:$0xff] %v17211_v14  ;;  %13688 = vmatprep.mubr.bf16.mxu1 %v17211_v14  ;;  %13695 = vmatpush3.bf16.msra.mxu1 %v17066_v3  ;;  %v4714_v4 = vrot.slane %v4713_v42, 4  ;;  %v3455_v22 = vrot.slane %v17001_v27, 5  ;;  %v17242_v3 = vcombine.low %v17013_v7, %v17018_v11  ;;  %v17246_v31 = vcombine.low %v17052_v34, %v17057_v38  ;;  %v17249_v42 = vpop.f32.mrb[15].mxu1 }
 0x143   :  { %13696 = vmatprep.subr.bf16.mxu1 %v17092_v61  ;;  %13487 = vmatpush3.bf16.msra.mxu0 %v17166_v51  ;;  %v11865_v20 = vrot.slane %v3032_v1, 9  ;;  %v3462_v62 = vrot.slane %v17018_v11, 5  ;;  %21121 = vst [vmem:[#allocation15_spill] sm:$0xff] %v17249_v42  ;;  %v4902_v54 = vrot.slane %v21068_v2, 4  ;;  %v3458_v7 = vrot.slane %v17008_v18, 5  ;;  %v17262_v11 = vld [vmem:[%s21053_s4 + $0x38] sm:$0xff]  }
 0x144   :  { %21120 = vst [vmem:[#allocation14_spill] sm:$0xff] %v17246_v31  ;;  %v4719_v27 = vsel %vm16855_vm7, %v4714_v4, %v4718_v16  ;;  %13488 = vmatprep.subr.bf16.mxu0 %v17216_v58  ;;  %v3457_v14 = vrot.slane %v3455_v22, 4  ;;  %v11866_v34 = vrot.slane %v3033_v0, 9  ;;  %v3465_v16 = vrot.slane %v17026_v19, 5  ;;  %v17265_v4 = vpop.f32.mrb[16].mxu0  ;;  %v17276_v0 = vpop.f32.mrb[16].mxu1 }
 0x145   :  { %v17257_v60 = vcombine.low %v4709_v26, %v4719_v27  ;;  %v3464_v1 = vrot.slane %v3462_v62, 4  ;;  %v4618_v2 = vld [vmem:[#allocation2 + $0x30] sm:$0xe]  ;;  %v4903_v30 = vrot.slane %v17049_v55, 5  ;;  %v3456_v18 = vsel %vm17178_vm14, %v11865_v20, %v3455_v22  ;;  %v17274_v42 = vpop.f32.mrb[17].mxu0  ;;  %21123 = vst [vmem:[#allocation17_spill] sm:$0xff] %v17276_v0 }
 0x146   :  { %13697 = vmatpush3.bf16.msra.mxu1 %v17092_v61  ;;  %v3459_v26 = vsel %vm17178_vm14, %v3457_v14, %v3458_v7  ;;  %v3469_v27 = vrot.slane %v17057_v38, 5  ;;  %v3463_v55 = vsel %vm17178_vm14, %v11866_v34, %v3462_v62  ;;  %v12059_v22 = vrot.slane %v4619_v59, 9  ;;  %v4621_v14 = vld [vmem:[#allocation2 + $0x54] sm:$0xe]  ;;  %v17286_v20 = vpop.f32.mrb[18].mxu0  ;;  %v17288_v38 = vpop.f32.mrb[17].mxu1 }
 0x147   :  { %21122 = vst [vmem:[#allocation16_spill] sm:$0xff] %v17257_v60  ;;  %13689 = vmatmul.mubr.bf16.gmra.mrb[36].mxu1 %v17257_v60  ;;  %13698 = vmatprep.subr.bf16.mxu1 %v17122_v53  ;;  %v17280_v19 = vcombine.low %v3456_v18, %v3459_v26  ;;  %v3466_v61 = vsel %vm17178_vm14, %v3464_v1, %v3465_v16  ;;  %21124 = vst [vmem:[#allocation18_spill] sm:$0xff] %v17286_v20  ;;  %v3034_v26 = vld [vmem:[#allocation2 + $0x24] sm:$0xe]  ;;  %v4907_v34 = vrot.slane %v17082_v43, 5  ;;  %v17319_v20 = vpop.f32.mrb[18].mxu1 }
 0x148   :  { %21125 = vst [vmem:[#allocation19_spill] sm:$0xff] %v17288_v38  ;;  %13708 = vmatprep.mubr.bf16.mxu1 %v12054_v15  ;;  %13489 = vmatpush3.bf16.msra.mxu0 %v17216_v58  ;;  %v17293_v7 = vcombine.low %v17070_v23, %v17082_v43  ;;  %v17295_v18 = vcombine.low %v3463_v55, %v3466_v61  ;;  %v3471_v62 = vrot.slane %v3469_v27, 4  ;;  %v4620_v1 = vld [vmem:[#allocation2 + $0x48] sm:$0xe]  ;;  %v17302_v59 = vld [vmem:[%s21053_s4 + $0x80] sm:$0xff]   ;;  %v12058_v15 = vrot.slane %v4618_v2, 9 }
 0x149   :  { %13490 = vmatprep.subr.bf16.mxu0 %v17262_v11  ;;  %v17306_v16 = vsel %vm17178_vm14, %v4902_v54, %v4903_v30  ;;  %v4910_v23 = vrot.slane %v17106_v8, 5  ;;  %v4914_v55 = vrot.slane %v17116_v41, 5  ;;  %v17310_v61 = vpop.f32.mrb[19].mxu0  ;;  %v3472_v43 = vrot.slane %v17073_v28, 5  ;;  %21126 = vst [vmem:[#allocation20_spill] sm:$0xff] %v17319_v20 }
 0x14a   :  { %13699 = vmatpush3.bf16.msra.mxu1 %v17122_v53  ;;  %v4908_v60 = vsel %vm17178_vm14, %v12059_v22, %v4907_v34  ;;  %v4909_v38 = vrot.slane %v4907_v34, 4  ;;  %v12061_v0 = vrot.slane %v4621_v14, 9  ;;  %v11867_v2 = vrot.slane %v3034_v26, 9  ;;  %v17327_v34 = vpop.f32.mrb[19].mxu1  ;;  %v17474_v25 = vpop.f32.mrb[20].mxu0 }
 0x14b   :  { %13700 = vmatprep.subr.bf16.mxu1 %v17140_v29  ;;  %v12060_v30 = vrot.slane %v4620_v1, 9  ;;  %v4917_v54 = vrot.slane %v17128_v9, 5  ;;  %v4921_v8 = vrot.slane %v17145_v24, 5  ;;  %v3473_v28 = vsel %vm17178_vm14, %v3471_v62, %v3472_v43  ;;  %21127 = vst [vmem:[#allocation21_spill] sm:$0xff] %v17327_v34  ;;  %v17333_v9 = vld [vmem:[%s21053_s4 + $0x88] sm:$0xff]   ;;  %21132 = vst [vmem:[#allocation24_spill] sm:$0xff] %v17474_v25 }
 0x14c   :  { %13491 = vmatpush3.bf16.msra.mxu0 %v17262_v11  ;;  %v4911_v53 = vsel %vm17178_vm14, %v4909_v38, %v4910_v23  ;;  %v4916_v22 = vrot.slane %v4914_v55, 4  ;;  %v4924_v14 = vrot.slane %v17152_v49, 5  ;;  %v21128_v26 = vrot.slane %v17038_v32, 5  ;;  %v17345_v23 = vld [vmem:[#allocation2 + $0x30] sm:$0xf]  ;;  %v17485_v25 = vpop.f32.mrb[21].mxu0 }
 0x14d   :  { %13500 = vmatprep.subr.bf16.mxu0 %v17302_v59  ;;  %v17341_v1 = vcombine.low %v4908_v60, %v4911_v53  ;;  %v4922_v49 = vsel %vm17178_vm14, %v12061_v0, %v4921_v8  ;;  %v4923_v38 = vrot.slane %v4921_v8, 4  ;;  %v90_v43 = vld [vmem:[#allocation2 + $0x78] sm:$0x1]  ;;  %v17350_v34 = vcombine.low %v17096_v13, %v17116_v41  ;;  %v87_v8 = vld [vmem:[#allocation2 + $0x6c] sm:$0x1]  ;;  %v17387_v53 = vld [vmem:[%s21053_s4 + $0x90] sm:$0xff]  }
 0x14e   :  { %v17339_v62 = vsel %vm17178_vm14, %v12058_v15, %v21128_v26  ;;  %13701 = vmatpush3.bf16.msra.mxu1 %v17140_v29  ;;  %v17354_v32 = vcombine.low %v17132_v45, %v17145_v24  ;;  %v3470_v0 = vsel %vm17178_vm14, %v11867_v2, %v3469_v27  ;;  %v17360_v15 = vld [vmem:[#allocation2 + $0x60] sm:$0xf]  ;;  %v17368_v13 = vsel %vm17178_vm14, %v12060_v30, %v4914_v55  ;;  %v102_v24 = vld [vmem:[#allocation2 + $0xa8] sm:$0x1]  ;;  %v281_v30 = vld [vmem:[#allocation2 + $0x74] sm:$0x1] }
 0x14f   :  { %21129 = vst [vmem:[#allocation22_spill] sm:$0xff] %v17350_v34  ;;  %13702 = vmatprep.subr.bf16.mxu1 %v17166_v51  ;;  %13493 = vmatmul.mubr.bf16.vlgmr.msra.gmra.mrb[32].mxu0 %v17233_v63  ;;  %v17364_v29 = vcombine.low %v3470_v0, %v3473_v28  ;;  %v4925_v41 = vsel %vm17178_vm14, %v4923_v38, %v4924_v14  ;;  %v284_v45 = vld [vmem:[#allocation2 + $0x80] sm:$0x1]  ;;  %v91_v55 = vsel %vm16491_vm2, 0, %v90_v43  ;;  %v99_v38 = vld [vmem:[#allocation2 + $0x9c] sm:$0x1] }
 0x150   :  { %13496 = vmatprep.mubr.bf16.mxu0 %v17242_v3  ;;  %13501 = vmatpush3.bf16.msra.mxu0 %v17302_v59  ;;  %v17376_v27 = vsel %vm17178_vm14, %v4916_v22, %v4917_v54  ;;  %v17378_v2 = vcombine.low %v4922_v49, %v4925_v41  ;;  %92 = vst [vmem:[#allocation2 + $0x78] sm:$0x1] %v91_v55  ;;  %v17394_v22 = vld [vmem:[%s21051_s2] ss:$0 sm:$0xff]  ;;  %v88_v49 = vsel %vm16491_vm2, 0, %v87_v8  ;;  %v285_v0 = vsel %vm16693_vm4, 0, %v284_v45 }
 0x151   :  { %13502 = vmatprep.subr.bf16.mxu0 %v17333_v9  ;;  %v1265_v26 = vmul.f32 %v17394_v22, %v17040_v37  ;;  %89 = vst [vmem:[#allocation2 + $0x6c] sm:$0x1] %v88_v49  ;;  %v1263_v43 = vmul.f32 %v17394_v22, %v17045_v17  ;;  %v1266_v41 = vmul.f32 %v17394_v22, %v17059_v56  ;;  %v103_v55 = vsel %vm16491_vm2, 0, %v102_v24  ;;  %v296_v37 = vld [vmem:[#allocation2 + $0xb0] sm:$0x1] }
 0x152   :  { %21130 = vst [vmem:[#allocation23_spill] sm:$0xff] %v17378_v2  ;;  %13703 = vmatpush3.bf16.msra.mxu1 %v17166_v51  ;;  %v17413_v51 = vld [vmem:[%s21052_s3] ss:$0 sm:$0xff]  ;;  %286 = vst [vmem:[#allocation2 + $0x80] sm:$0x1] %v285_v0  ;;  %v1583_v17 = vmul.f32 %v17394_v22, %v17047_v50  ;;  %v282_v56 = vsel %vm16693_vm4, 0, %v281_v30  ;;  %v1264_v45 = vmul.f32 %v17394_v22, %v17084_v44 }
 0x153   :  { %13704 = vmatprep.subr.bf16.mxu1 %v17216_v58  ;;  %v1273_v8 = vadd.f32 %v17413_v51, %v1265_v26  ;;  %104 = vst [vmem:[#allocation2 + $0xa8] sm:$0x1] %v103_v55  ;;  %v1271_v24 = vadd.f32 %v17413_v51, %v1263_v43  ;;  %v1274_v49 = vadd.f32 %v17413_v51, %v1266_v41  ;;  %283 = vst [vmem:[#allocation2 + $0x74] sm:$0x1] %v282_v56  ;;  %v293_v50 = vld [vmem:[#allocation2 + $0xa4] sm:$0x1] }
 0x154   :  { %13503 = vmatpush3.bf16.msra.mxu0 %v17333_v9  ;;  %v100_v26 = vsel %vm16491_vm2, 0, %v99_v38  ;;  %v1581_v0 = vmul.f32 %v17394_v22, %v17098_v57  ;;  %v17433_v44 = vld [vmem:[%s21053_s4 + $0x98] sm:$0xff]   ;;  %v1591_v43 = vadd.f32 %v17413_v51, %v1583_v17  ;;  %v1272_v41 = vadd.f32 %v17413_v51, %v1264_v45 }
 0x155   :  { %13504 = vmatprep.subr.bf16.mxu0 %v17387_v53  ;;  %v1281_v30 = vmax.f32 %v1273_v8, 0.0  ;;  %101 = vst [vmem:[#allocation2 + $0x9c] sm:$0x1] %v100_v26  ;;  %v297_v38 = vsel %vm16693_vm4, 0, %v296_v37  ;;  %v1279_v57 = vmax.f32 %v1271_v24, 0.0  ;;  %v1282_v55 = vmax.f32 %v1274_v49, 0.0 }
 0x156   :  { %13705 = vmatpush3.bf16.msra.mxu1 %v17216_v58  ;;  %v1589_v56 = vadd.f32 %v17413_v51, %v1581_v0  ;;  %298 = vst [vmem:[#allocation2 + $0xb0] sm:$0x1] %v297_v38  ;;  %v1584_v60 = vmul.f32 %v17394_v22, %v17103_v47  ;;  %v1599_v17 = vmax.f32 %v1591_v43, 0.0  ;;  %v1280_v45 = vmax.f32 %v1272_v41, 0.0  ;;  %v17458_v0 = vld [vmem:[%s21053_s4 + $0xa0] sm:$0xff]  }
 0x157   :  { %13706 = vmatprep.subr.bf16.mxu1 %v17262_v11  ;;  %13497 = vmatmul.mubr.bf16.gmra.mrb[36].mxu0 %v17246_v31  ;;  %v12245_v8 = vpack.c.bf16 %v1281_v30, %v1281_v30  ;;  %v294_v37 = vsel %vm16693_vm4, 0, %v293_v50  ;;  %v21131_v58 = vcombine.low %v17192_v12, %v17199_v52  ;;  %v12243_v24 = vpack.c.bf16 %v1279_v57, %v1279_v57  ;;  %v17479_v31 = vld [vmem:[#allocation2 + $0x34] sm:$0xf] }
 0x158   :  { %13505 = vmatpush3.bf16.msra.mxu0 %v17387_v53  ;;  %v12246_v49 = vpack.c.bf16 %v1282_v55, %v1282_v55  ;;  %v1597_v26 = vmax.f32 %v1589_v56, 0.0  ;;  %v17452_v47 = vadd.f32 %v17413_v51, %v1584_v60  ;;  %295 = vst [vmem:[#allocation2 + $0xa4] sm:$0x1] %v294_v37  ;;  %v12253_v43 = vpack.c.bf16 %v1599_v17, %v1599_v17  ;;  %v1399_v55 = vld [vmem:[#allocation2 + $0x78] sm:$0xf] }
 0x159   :  { %13516 = vmatprep.mubr.bf16.mxu0 %v21131_v58  ;;  %13506 = vmatprep.subr.bf16.mxu0 %v17433_v44  ;;  %v1329_v50 = vshrl.u32 %v12245_v8, 16  ;;  %v1332_v30 = vshll.u32 %v12245_v8, 16  ;;  %v12244_v41 = vpack.c.bf16 %v1280_v45, %v1280_v45  ;;  %v1312_v12 = vshrl.u32 %v12243_v24, 16  ;;  %v17466_v8 = vld [vmem:[%s21053_s4 + $0xa8] sm:$0xff]  }
 0x15a   :  { %13707 = vmatpush3.bf16.msra.mxu1 %v17262_v11  ;;  %v1315_v52 = vshll.u32 %v12243_v24, 16  ;;  %v1337_v38 = vshrl.u32 %v12246_v49, 16  ;;  %v1340_v57 = vshll.u32 %v12246_v49, 16  ;;  %v1647_v56 = vshrl.u32 %v12253_v43, 16  ;;  %v1392_v11 = vld [vmem:[#allocation2 + $0x6c] sm:$0xf] }
 0x15b   :  { %13716 = vmatprep.subr.bf16.mxu1 %v17302_v59  ;;  %v1331_v60 = vrot.slane %v1329_v50, 7  ;;  %v1650_v37 = vshll.u32 %v12253_v43, 16  ;;  %v1320_v58 = vshrl.u32 %v12244_v41, 16  ;;  %v1314_v17 = vrot.slane %v1312_v12, 7  ;;  %v1403_v43 = vld [vmem:[#allocation2 + $0x80] sm:$0x1] }
 0x15c   :  { %13507 = vmatpush3.bf16.msra.mxu0 %v17433_v44  ;;  %v1339_v45 = vrot.slane %v1337_v38, 7  ;;  %v1323_v24 = vshll.u32 %v12244_v41, 16  ;;  %v17468_v54 = vpack.c.bf16 %v1597_v26, %v1597_v26  ;;  %v17472_v14 = vrot.slane %v1647_v56, 7  ;;  %v1717_v20 = vld [vmem:[#allocation2 + $0xa8] sm:$0xf] }
 0x15d   :  { %13709 = vmatmul.mubr.bf16.vlgmr.msra.gmra.mrb[32].mxu1 %v17293_v7  ;;  %13508 = vmatprep.subr.bf16.mxu0 %v17458_v0  ;;  %v1334_v49 = vor.u32 %v1332_v30, %v1331_v60  ;;  %v1335_v50 = vrot.slane %v1331_v60, 4  ;;  %v1322_v28 = vrot.slane %v1320_v58, 7  ;;  %v1317_v12 = vor.u32 %v1315_v52, %v1314_v17  ;;  %v21188_v33 = vld [vmem:[#allocation23_spill] sm:$0xff] }
 0x15e   :  { %13712 = vmatprep.mubr.bf16.mxu1 %v17350_v34  ;;  %13717 = vmatpush3.bf16.msra.mxu1 %v17302_v59  ;;  %v1318_v41 = vrot.slane %v1314_v17, 4  ;;  %v1342_v26 = vor.u32 %v1340_v57, %v1339_v45  ;;  %v1344_v38 = vrot.slane %v1339_v45, 4  ;;  %v5098_v30 = vshll.u32 %v17360_v15, 16  ;;  %v1396_v34 = vld [vmem:[#allocation2 + $0x74] sm:$0x1]  ;;  %v17499_v17 = vpop.f32.mrb[22].mxu0 }
 0x15f   :  { %13718 = vmatprep.subr.bf16.mxu1 %v17333_v9  ;;  %v1400_v60 = vsel %vm16922_vm10, %v1334_v49, %v1399_v55  ;;  %v1652_v56 = vor.u32 %v1650_v37, %v17472_v14  ;;  %v1325_v58 = vor.u32 %v1323_v24, %v1322_v28  ;;  %v17491_v59 = vld [vmem:[%s21053_s4 + $0xb0] sm:$0xff]   ;;  %v1393_v52 = vsel %vm16922_vm10, %v1317_v12, %v1392_v11 }
 0x160   :  { %13509 = vmatpush3.bf16.msra.mxu0 %v17458_v0  ;;  %1401 = vst [vmem:[#allocation2 + $0x78] sm:$0xf] %v1400_v60  ;;  %v1343_v57 = vsel %vm16936_vm11, %v1335_v50, %v1342_v26  ;;  %v1404_v55 = vsel %vm16491_vm2, %v1344_v38, %v1403_v43  ;;  %v1327_v37 = vrot.slane %v1322_v28, 4  ;;  %1394 = vst [vmem:[#allocation2 + $0x6c] sm:$0xf] %v1393_v52  ;;  %v1630_v24 = vshrl.u32 %v17468_v54, 16 }
 0x161   :  { %13510 = vmatprep.subr.bf16.mxu0 %v17466_v8  ;;  %1402 = vst [vmem:[#allocation2 + $0x7c] sm:$0xf] %v1343_v57  ;;  %1405 = vst [vmem:[#allocation2 + $0x80] sm:$0x1] %v1404_v55  ;;  %v1718_v45 = vsel %vm16922_vm10, %v1652_v56, %v1717_v20  ;;  %v1326_v11 = vsel %vm16936_vm11, %v1318_v41, %v1325_v58  ;;  %v1633_v49 = vshll.u32 %v17468_v54, 16  ;;  %v17508_v43 = vpop.f32.mrb[20].mxu1 }
 0x162   :  { %v96_v50 = vld [vmem:[#allocation2 + $0x90] sm:$0x1]  ;;  %v17510_v28 = vpop.f32.mrb[23].mxu0  ;;  %13719 = vmatpush3.bf16.msra.mxu1 %v17333_v9  ;;  %v17515_v12 = vcombine.low %v17345_v23, %v17479_v31  ;;  %v17517_v26 = vld [vmem:[#allocation2 + $0x64] sm:$0xf]  ;;  %v1397_v20 = vsel %vm16491_vm2, %v1327_v37, %v1396_v34  ;;  %v1600_v54 = vmax.f32 %v17452_v47, 0.0  ;;  %v17529_v9 = vcombine.low %v17368_v13, %v17376_v27 }
 0x163   :  { %1719 = vst [vmem:[#allocation2 + $0xa8] sm:$0xf] %v1718_v45  ;;  %1395 = vst [vmem:[#allocation2 + $0x70] sm:$0xf] %v1326_v11  ;;  %v21134_v41 = vld [vmem:[#allocation9_spill] sm:$0xff]  ;;  %v17524_v60 = vpop.f32.mrb[21].mxu1  ;;  %13720 = vmatprep.subr.bf16.mxu1 %v17387_v53 }
 0x164   :  { %21133 = vst [vmem:[#allocation25_spill] sm:$0xff] %v17515_v12  ;;  %v1582_v38 = vmul.f32 %v17394_v22, %v21134_v41  ;;  %21135 = vst [vmem:[#allocation9_spill] sm:$0xff] %v17524_v60  ;;  %v21137_v56 = vshrl.u32 %v17345_v23, 16  ;;  %v21138_v52 = vshll.u32 %v17345_v23, 16  ;;  %v17539_v47 = vrot.slane %v1630_v24, 7  ;;  %13511 = vmatpush3.bf16.msra.mxu0 %v17466_v8  ;;  %v17546_v11 = vpop.f32.mrb[22].mxu1 }
 0x165   :  { %21136 = vst [vmem:[#allocation26_spill] sm:$0xff] %v17529_v9  ;;  %1398 = vst [vmem:[#allocation2 + $0x74] sm:$0x1] %v1397_v20  ;;  %v93_v57 = vld [vmem:[#allocation2 + $0x84] sm:$0x1]  ;;  %v3786_v55 = vshrl.u32 %v17479_v31, 16  ;;  %v12254_v45 = vpack.c.bf16 %v1600_v54, %v1600_v54  ;;  %13713 = vmatmul.mubr.bf16.gmra.mrb[36].mxu1 %v17354_v32  ;;  %13512 = vmatprep.subr.bf16.mxu0 %v17491_v59  ;;  %v17557_v24 = vcombine.low %v17360_v15, %v17517_v26 }
 0x166   :  { %v17533_v58 = vrot.slane %v21137_v56, 4  ;;  %v17537_v34 = vrot.slane %v21138_v52, 5  ;;  %v1710_v37 = vld [vmem:[#allocation2 + $0x9c] sm:$0xf]  ;;  %v1590_v13 = vadd.f32 %v17413_v51, %v1582_v38  ;;  %v97_v27 = vsel %vm16491_vm2, 0, %v96_v50  ;;  %21139 = vst [vmem:[#allocation27_spill] sm:$0xff] %v17546_v11  ;;  %13721 = vmatpush3.bf16.msra.mxu1 %v17387_v53 }
 0x167   :  { %v17553_v23 = vld [vmem:[%s21053_s4 + $0xb8] sm:$0xff]   ;;  %21140 = vst [vmem:[#allocation28_spill] sm:$0xff] %v17557_v24  ;;  %v21141_v20 = vshrl.u32 %v17360_v15, 16  ;;  %v17563_v50 = vrot.slane %v5098_v30, 5  ;;  %v1635_v41 = vor.u32 %v1633_v49, %v17539_v47  ;;  %98 = vst [vmem:[#allocation2 + $0x90] sm:$0x1] %v97_v27  ;;  %v21142_v52 = vcombine.low %v17339_v62, %v17306_v16  ;;  %13722 = vmatprep.subr.bf16.mxu1 %v17433_v44 }
 0x168   :  { %v290_v38 = vld [vmem:[#allocation2 + $0x98] sm:$0x1]  ;;  %v17566_v56 = vpop.f32.mrb[23].mxu1  ;;  %v1655_v11 = vshrl.u32 %v12254_v45, 16  ;;  %v1658_v24 = vshll.u32 %v12254_v45, 16  ;;  %v1598_v60 = vmax.f32 %v1590_v13, 0.0  ;;  %v1269_v15 = vmul.f32 %v17394_v22, %v17182_v35  ;;  %13513 = vmatpush3.bf16.msra.mxu0 %v17491_v59 }
 0x169   :  { %v17561_v54 = vrot.slane %v21141_v20, 4  ;;  %13732 = vmatprep.mubr.bf16.mxu1 %v21142_v52  ;;  %v108_v30 = vld [vmem:[#allocation2 + $0xc0] sm:$0x1]  ;;  %v17574_v20 = vpop.f32.mrb[24].mxu0  ;;  %v1653_v49 = vrot.slane %v17472_v14, 4  ;;  %v1711_v53 = vsel %vm16922_vm10, %v1635_v41, %v1710_v37  ;;  %v94_v62 = vsel %vm16491_vm2, 0, %v93_v57  ;;  %13514 = vmatprep.subr.bf16.mxu0 %v17553_v23 }
 0x16a   :  { %21143 = vst [vmem:[#allocation29_spill] sm:$0xff] %v17574_v20  ;;  %v17584_v45 = vpop.f32.mrb[25].mxu0  ;;  %v17590_v35 = vld [vmem:[%s21053_s4 + $0xc0] sm:$0xff]   ;;  %1712 = vst [vmem:[#allocation2 + $0x9c] sm:$0xf] %v1711_v53  ;;  %v1657_v14 = vrot.slane %v1655_v11, 7  ;;  %v12252_v13 = vpack.c.bf16 %v1598_v60, %v1598_v60  ;;  %v1277_v37 = vadd.f32 %v17413_v51, %v1269_v15  ;;  %v1267_v27 = vmul.f32 %v17394_v22, %v17201_v36 }
 0x16b   :  { %21144 = vst [vmem:[#allocation30_spill] sm:$0xff] %v17584_v45  ;;  %95 = vst [vmem:[#allocation2 + $0x84] sm:$0x1] %v94_v62  ;;  %v17595_v41 = vpop.f32.mrb[26].mxu0  ;;  %v17597_v57 = vpop.f32.mrb[24].mxu1  ;;  %v291_v53 = vsel %vm16693_vm4, 0, %v290_v38  ;;  %v1270_v60 = vmul.f32 %v17394_v22, %v17209_v39  ;;  %13723 = vmatpush3.bf16.msra.mxu1 %v17433_v44 }
 0x16c   :  { %21145 = vst [vmem:[#allocation31_spill] sm:$0xff] %v17595_v41  ;;  %21146 = vst [vmem:[#allocation32_spill] sm:$0xff] %v17597_v57  ;;  %v1721_v52 = vld [vmem:[#allocation2 + $0xb0] sm:$0x1]  ;;  %v109_v11 = vsel %vm16491_vm2, 0, %v108_v30  ;;  %v17607_v15 = vpop.f32.mrb[27].mxu0  ;;  %v1660_v36 = vor.u32 %v1658_v24, %v1657_v14  ;;  %13724 = vmatprep.subr.bf16.mxu1 %v17458_v0  ;;  %v1275_v45 = vadd.f32 %v17413_v51, %v1267_v27  ;;  %13515 = vmatpush3.bf16.msra.mxu0 %v17553_v23 }
 0x16d   :  { %21147 = vst [vmem:[#allocation33_spill] sm:$0xff] %v17607_v15  ;;  %v1662_v62 = vrot.slane %v1657_v14, 4  ;;  %v1638_v57 = vshrl.u32 %v12252_v13, 16  ;;  %v1641_v41 = vshll.u32 %v12252_v13, 16  ;;  %292 = vst [vmem:[#allocation2 + $0x98] sm:$0x1] %v291_v53  ;;  %v1278_v30 = vadd.f32 %v17413_v51, %v1270_v60  ;;  %13524 = vmatprep.subr.bf16.mxu0 %v17590_v35 }
 0x16e   :  { %110 = vst [vmem:[#allocation2 + $0xc0] sm:$0x1] %v109_v11  ;;  %v17610_v16 = vpop.f32.mrb[25].mxu1  ;;  %v17613_v38 = vrot.slane %v3786_v55, 4  ;;  %v1285_v39 = vmax.f32 %v1277_v37, 0.0  ;;  %v17623_v44 = vld [vmem:[%s21053_s4 + $0xc8] sm:$0xff]   ;;  %v1661_v55 = vsel %vm16936_vm11, %v1653_v49, %v1660_v36 }
 0x16f   :  { %v287_v15 = vld [vmem:[#allocation2 + $0x8c] sm:$0x1]  ;;  %v17617_v20 = vpop.f32.mrb[26].mxu1  ;;  %v1636_v24 = vrot.slane %v17539_v47, 4  ;;  %v1722_v14 = vsel %vm16491_vm2, %v1662_v62, %v1721_v52  ;;  %v1640_v13 = vrot.slane %v1638_v57, 7  ;;  %v1283_v60 = vmax.f32 %v1275_v45, 0.0  ;;  %13725 = vmatpush3.bf16.msra.mxu1 %v17458_v0  ;;  %13517 = vmatmul.mubr.bf16.vlgmr.msra.gmra.mrb[32].mxu0 %v17280_v19 }
 0x170   :  { %21148 = vst [vmem:[#allocation34_spill] sm:$0xff] %v17617_v20  ;;  %v17630_v37 = vpop.f32.mrb[27].mxu1  ;;  %1720 = vst [vmem:[#allocation2 + $0xac] sm:$0xf] %v1661_v55  ;;  %v1714_v27 = vld [vmem:[#allocation2 + $0xa4] sm:$0x1]  ;;  %v12249_v53 = vpack.c.bf16 %v1285_v39, %v1285_v39  ;;  %v1587_v47 = vmul.f32 %v17394_v22, %v17203_v40  ;;  %v1268_v52 = vmul.f32 %v17394_v22, %v17218_v10  ;;  %13726 = vmatprep.subr.bf16.mxu1 %v17466_v8 }
 0x171   :  { %1723 = vst [vmem:[#allocation2 + $0xb0] sm:$0x1] %v1722_v14  ;;  %v1286_v11 = vmax.f32 %v1278_v30, 0.0  ;;  %v105_v20 = vld [vmem:[#allocation2 + $0xb4] sm:$0x1]  ;;  %v1643_v49 = vor.u32 %v1641_v41, %v1640_v13  ;;  %v1645_v36 = vrot.slane %v1640_v13, 4  ;;  %v12247_v39 = vpack.c.bf16 %v1283_v60, %v1283_v60  ;;  %13520 = vmatprep.mubr.bf16.mxu0 %v17295_v18  ;;  %13525 = vmatpush3.bf16.msra.mxu0 %v17590_v35 }
 0x172   :  { %v288_v57 = vsel %vm16693_vm4, 0, %v287_v15  ;;  %v1363_v45 = vshrl.u32 %v12249_v53, 16  ;;  %v1366_v62 = vshll.u32 %v12249_v53, 16  ;;  %v17647_v40 = vld [vmem:[%s21053_s4 + $0xd0] sm:$0xff]   ;;  %v1595_v41 = vadd.f32 %v17413_v51, %v1587_v47  ;;  %13526 = vmatprep.subr.bf16.mxu0 %v17623_v44  ;;  %v302_v60 = vld [vmem:[#allocation2 + $0xc8] sm:$0x1] }
 0x173   :  { %v12250_v30 = vpack.c.bf16 %v1286_v11, %v1286_v11  ;;  %289 = vst [vmem:[#allocation2 + $0x8c] sm:$0x1] %v288_v57  ;;  %v1644_v10 = vsel %vm16936_vm11, %v1636_v24, %v1643_v49  ;;  %v1715_v0 = vsel %vm16491_vm2, %v1645_v36, %v1714_v27  ;;  %v106_v15 = vsel %vm16491_vm2, 0, %v105_v20  ;;  %13727 = vmatpush3.bf16.msra.mxu1 %v17466_v8  ;;  %v1413_v24 = vld [vmem:[#allocation2 + $0x90] sm:$0xf]  ;;  %v21190_v6 = vld [vmem:[#allocation25_spill] sm:$0xff] }
 0x174   :  { %1713 = vst [vmem:[#allocation2 + $0xa0] sm:$0xf] %v1644_v10  ;;  %1716 = vst [vmem:[#allocation2 + $0xa4] sm:$0x1] %v1715_v0  ;;  %v1365_v55 = vrot.slane %v1363_v45, 7  ;;  %v1346_v14 = vshrl.u32 %v12247_v39, 16  ;;  %v1276_v47 = vadd.f32 %v17413_v51, %v1268_v52  ;;  %v1585_v20 = vmul.f32 %v17394_v22, %v17225_v46  ;;  %13728 = vmatprep.subr.bf16.mxu1 %v17491_v59 }
 0x175   :  { %v1349_v13 = vshll.u32 %v12247_v39, 16  ;;  %v1371_v53 = vshrl.u32 %v12250_v30, 16  ;;  %107 = vst [vmem:[#allocation2 + $0xb4] sm:$0x1] %v106_v15  ;;  %v1374_v11 = vshll.u32 %v12250_v30, 16  ;;  %v1603_v27 = vmax.f32 %v1595_v41, 0.0  ;;  %13527 = vmatpush3.bf16.msra.mxu0 %v17623_v44 }
 0x176   :  { %v1368_v49 = vor.u32 %v1366_v62, %v1365_v55  ;;  %v1369_v36 = vrot.slane %v1365_v55, 4  ;;  %v17662_v57 = vrot.slane %v1346_v14, 7  ;;  %v1406_v39 = vld [vmem:[#allocation2 + $0x84] sm:$0xf]  ;;  %v1284_v8 = vmax.f32 %v1276_v47, 0.0  ;;  %13528 = vmatprep.subr.bf16.mxu0 %v17647_v40  ;;  %v17672_v46 = vld [vmem:[%s21053_s4 + $0xd8] sm:$0xff]  }
 0x177   :  { %v1373_v45 = vrot.slane %v1371_v53, 7  ;;  %v12257_v10 = vpack.c.bf16 %v1603_v27, %v1603_v27  ;;  %v1593_v30 = vadd.f32 %v17413_v51, %v1585_v20  ;;  %v303_v52 = vsel %vm16693_vm4, 0, %v302_v60  ;;  %v1417_v14 = vld [vmem:[#allocation2 + $0x98] sm:$0x1]  ;;  %13729 = vmatpush3.bf16.msra.mxu1 %v17491_v59  ;;  %v299_v20 = vld [vmem:[#allocation2 + $0xbc] sm:$0x1]  ;;  %13521 = vmatmul.mubr.bf16.gmra.mrb[36].mxu0 %v17364_v29 }
 0x178   :  { %v21149_v62 = vshll.u32 %v17479_v31, 16  ;;  %v1414_v41 = vsel %vm16922_vm10, %v1368_v49, %v1413_v24  ;;  %v1351_v15 = vor.u32 %v1349_v13, %v17662_v57  ;;  %304 = vst [vmem:[#allocation2 + $0xc8] sm:$0x1] %v303_v52  ;;  %v12248_v47 = vpack.c.bf16 %v1284_v8, %v1284_v8  ;;  %13730 = vmatprep.subr.bf16.mxu1 %v17553_v23  ;;  %v17684_v31 = vld [vmem:[#allocation2 + $0x38] sm:$0x1]  ;;  %v21150_v52 = vld [vmem:[#allocation15_spill] sm:$0xff] }
 0x179   :  { %v1376_v55 = vor.u32 %v1374_v11, %v1373_v45  ;;  %1415 = vst [vmem:[#allocation2 + $0x90] sm:$0xf] %v1414_v41  ;;  %v1378_v53 = vrot.slane %v1373_v45, 4  ;;  %v1681_v60 = vshrl.u32 %v12257_v10, 16  ;;  %v1684_v27 = vshll.u32 %v12257_v10, 16  ;;  %13529 = vmatpush3.bf16.msra.mxu0 %v17647_v40  ;;  %13540 = vmatprep.mubr.bf16.mxu0 %v17233_v63 }
 0x17a   :  { %v17676_v0 = vrot.slane %v21149_v62, 5  ;;  %v1407_v13 = vsel %vm16922_vm10, %v1351_v15, %v1406_v39  ;;  %v1601_v11 = vmax.f32 %v1593_v30, 0.0  ;;  %v1588_v59 = vmul.f32 %v17394_v22, %v17236_v5  ;;  %13530 = vmatprep.subr.bf16.mxu0 %v17672_v46  ;;  %v1731_v5 = vld [vmem:[#allocation2 + $0xc0] sm:$0xf] }
 0x17b   :  { %v1377_v24 = vsel %vm16936_vm11, %v1369_v36, %v1376_v55  ;;  %1408 = vst [vmem:[#allocation2 + $0x84] sm:$0xf] %v1407_v13  ;;  %v1418_v49 = vsel %vm16491_vm2, %v1378_v53, %v1417_v14  ;;  %v17696_v45 = vrot.slane %v1681_v60, 7  ;;  %v1354_v10 = vshrl.u32 %v12248_v47, 16  ;;  %v17702_v36 = vld [vmem:[%s21053_s4 + $0xe0] sm:$0xff]   ;;  %13731 = vmatpush3.bf16.msra.mxu1 %v17553_v23  ;;  %v17719_v23 = vld [vmem:[%s21053_s4 + $0xe8] sm:$0xff]  }
 0x17c   :  { %1416 = vst [vmem:[#allocation2 + $0x94] sm:$0xf] %v1377_v24  ;;  %v1357_v39 = vshll.u32 %v12248_v47, 16  ;;  %1419 = vst [vmem:[#allocation2 + $0x98] sm:$0x1] %v1418_v49  ;;  %v12255_v8 = vpack.c.bf16 %v1601_v11, %v1601_v11  ;;  %v1596_v63 = vadd.f32 %v17413_v51, %v1588_v59  ;;  %v300_v30 = vsel %vm16693_vm4, 0, %v299_v20  ;;  %13740 = vmatprep.subr.bf16.mxu1 %v17590_v35 }
 0x17d   :  { %v1586_v62 = vmul.f32 %v17394_v22, %v21150_v52  ;;  %v3792_v41 = vshll.u32 %v17684_v31, 16  ;;  %v1352_v15 = vrot.slane %v17662_v57, 4  ;;  %v1686_v55 = vor.u32 %v1684_v27, %v17696_v45  ;;  %301 = vst [vmem:[#allocation2 + $0xbc] sm:$0x1] %v300_v30  ;;  %v1410_v53 = vld [vmem:[#allocation2 + $0x8c] sm:$0x1]  ;;  %13531 = vmatpush3.bf16.msra.mxu0 %v17672_v46 }
 0x17e   :  { %v1356_v14 = vrot.slane %v1354_v10, 7  ;;  %v1664_v60 = vshrl.u32 %v12255_v8, 16  ;;  %v1667_v47 = vshll.u32 %v12255_v8, 16  ;;  %v1604_v13 = vmax.f32 %v1596_v63, 0.0  ;;  %v114_v59 = vld [vmem:[#allocation2 + $0xf0] sm:$0x1]  ;;  %13733 = vmatmul.mubr.bf16.vlgmr.msra.gmra.mrb[32].mxu1 %v17341_v1  ;;  %13532 = vmatprep.subr.bf16.mxu0 %v17702_v36 }
 0x17f   :  { %v1594_v20 = vadd.f32 %v17413_v51, %v1586_v62  ;;  %v3789_v57 = vor.u32 %v17613_v38, %v17676_v0  ;;  %v1732_v27 = vsel %vm16922_vm10, %v1686_v55, %v1731_v5  ;;  %v111_v30 = vld [vmem:[#allocation2 + $0xe4] sm:$0x1]  ;;  %v17730_v52 = vpop.f32.mrb[28].mxu0  ;;  %13736 = vmatprep.mubr.bf16.mxu1 %v17529_v9  ;;  %13741 = vmatpush3.bf16.msra.mxu1 %v17590_v35  ;;  %v1724_v55 = vld [vmem:[#allocation2 + $0xb4] sm:$0xf]  ;;  %v17750_v35 = vrot.slane %v3792_v41, 5 }
 0x180   :  { %v1359_v24 = vor.u32 %v1357_v39, %v1356_v14  ;;  %v1361_v11 = vrot.slane %v1356_v14, 4  ;;  %1733 = vst [vmem:[#allocation2 + $0xc0] sm:$0xf] %v1732_v27  ;;  %v17728_v10 = vrot.slane %v1664_v60, 7  ;;  %v12258_v8 = vpack.c.bf16 %v1604_v13, %v1604_v13  ;;  %v17745_v60 = vpop.f32.mrb[29].mxu0  ;;  %v17747_v13 = vpop.f32.mrb[28].mxu1  ;;  %13742 = vmatprep.subr.bf16.mxu1 %v17623_v44 }
 0x181   :  { %v1602_v63 = vmax.f32 %v1594_v20, 0.0  ;;  %v21151_v38 = vor.u32 %v17537_v34, %v17533_v58  ;;  %v5101_v14 = vor.u32 %v17563_v50, %v17561_v54  ;;  %v17753_v20 = vpop.f32.mrb[30].mxu0  ;;  %13533 = vmatpush3.bf16.msra.mxu0 %v17702_v36  ;;  %v17759_v54 = vld [vmem:[%s21053_s4 + $0xf0] sm:$0xff]   ;;  %v17761_v50 = vrot.slane %v3789_v57, 4 }
 0x182   :  { %v1360_v5 = vsel %vm16936_vm11, %v1352_v15, %v1359_v24  ;;  %v1411_v62 = vsel %vm16491_vm2, %v1361_v11, %v1410_v53  ;;  %v1669_v58 = vor.u32 %v1667_v47, %v17728_v10  ;;  %v1689_v34 = vshrl.u32 %v12258_v8, 16  ;;  %v17766_v47 = vpop.f32.mrb[31].mxu0  ;;  %13534 = vmatprep.subr.bf16.mxu0 %v17719_v23 }
 0x183   :  { %v17737_v39 = vrot.slane %v21151_v38, 4  ;;  %1409 = vst [vmem:[#allocation2 + $0x88] sm:$0xf] %v1360_v5  ;;  %1412 = vst [vmem:[#allocation2 + $0x8c] sm:$0x1] %v1411_v62  ;;  %v1692_v15 = vshll.u32 %v12258_v8, 16  ;;  %v12256_v53 = vpack.c.bf16 %v1602_v63, %v1602_v63  ;;  %v1902_v57 = vmul.f32 %v17394_v22, %v17265_v4  ;;  %13743 = vmatpush3.bf16.msra.mxu1 %v17623_v44 }
 0x184   :  { %v1687_v41 = vrot.slane %v17696_v45, 4  ;;  %v115_v27 = vsel %vm16491_vm2, 0, %v114_v59  ;;  %v1725_v24 = vsel %vm16922_vm10, %v1669_v58, %v1724_v55  ;;  %v1691_v11 = vrot.slane %v1689_v34, 7  ;;  %v1735_v8 = vld [vmem:[#allocation2 + $0xc8] sm:$0x1]  ;;  %v17779_v55 = vpop.f32.mrb[29].mxu1  ;;  %13744 = vmatprep.subr.bf16.mxu1 %v17647_v40 }
 0x185   :  { %116 = vst [vmem:[#allocation2 + $0xf0] sm:$0x1] %v115_v27  ;;  %v112_v45 = vsel %vm16491_vm2, 0, %v111_v30  ;;  %v308_v63 = vld [vmem:[#allocation2 + $0xf8] sm:$0x1]  ;;  %v1672_v59 = vshrl.u32 %v12256_v53, 16  ;;  %v1910_v30 = vadd.f32 %v17413_v51, %v1902_v57  ;;  %v1900_v44 = vmul.f32 %v17394_v22, %v17274_v42  ;;  %13535 = vmatpush3.bf16.msra.mxu0 %v17719_v23 }
 0x186   :  { %1726 = vst [vmem:[#allocation2 + $0xb4] sm:$0xf] %v1725_v24  ;;  %v1675_v38 = vshll.u32 %v12256_v53, 16  ;;  %v17776_v5 = vrot.slane %v5101_v14, 4  ;;  %113 = vst [vmem:[#allocation2 + $0xe4] sm:$0x1] %v112_v45  ;;  %v1694_v58 = vor.u32 %v1692_v15, %v1691_v11  ;;  %13737 = vmatmul.mubr.bf16.gmra.mrb[36].mxu1 %v17378_v2  ;;  %13536 = vmatprep.subr.bf16.mxu0 %v17759_v54 }
 0x187   :  { %v1696_v4 = vrot.slane %v1691_v11, 4  ;;  %v17782_v34 = vld [vmem:[#allocation2 + $0x68] sm:$0x1]  ;;  %v17787_v27 = vpop.f32.mrb[30].mxu1  ;;  %v1670_v14 = vrot.slane %v17728_v10, 4  ;;  %v1674_v53 = vrot.slane %v1672_v59, 7  ;;  %13745 = vmatpush3.bf16.msra.mxu1 %v17647_v40  ;;  %13756 = vmatprep.mubr.bf16.mxu1 %v17293_v7 }
 0x188   :  { %v309_v24 = vsel %vm16693_vm4, 0, %v308_v63  ;;  %v21152_v45 = vld [vmem:[#allocation18_spill] sm:$0xff]  ;;  %v126_v11 = vld [vmem:[#allocation2 + $0x120] sm:$0x1]  ;;  %v17795_v62 = vpop.f32.mrb[31].mxu1  ;;  %v17802_v42 = vld [vmem:[%s21053_s4 + $0xf8] sm:$0xff]   ;;  %v1695_v10 = vsel %vm16936_vm11, %v1687_v41, %v1694_v58  ;;  %13746 = vmatprep.subr.bf16.mxu1 %v17672_v46 }
 0x189   :  { %v1903_v15 = vmul.f32 %v17394_v22, %v21152_v45  ;;  %21153 = vst [vmem:[#allocation15_spill] sm:$0xff] %v17795_v62  ;;  %v1736_v57 = vsel %vm16491_vm2, %v1696_v4, %v1735_v8  ;;  %v1728_v63 = vld [vmem:[#allocation2 + $0xbc] sm:$0x1]  ;;  %v1918_v59 = vmax.f32 %v1910_v30, 0.0  ;;  %v1908_v45 = vadd.f32 %v17413_v51, %v1900_v44  ;;  %310 = vst [vmem:[#allocation2 + $0xf8] sm:$0x1] %v309_v24 }
 0x18a   :  { %1734 = vst [vmem:[#allocation2 + $0xc4] sm:$0xf] %v1695_v10  ;;  %1737 = vst [vmem:[#allocation2 + $0xc8] sm:$0x1] %v1736_v57  ;;  %v1677_v49 = vor.u32 %v1675_v38, %v1674_v53  ;;  %v1679_v2 = vrot.slane %v1674_v53, 4  ;;  %v21154_v9 = vshrl.u32 %v17517_v26, 16  ;;  %13537 = vmatpush3.bf16.msra.mxu0 %v17759_v54 }
 0x18b   :  { %v1911_v41 = vadd.f32 %v17413_v51, %v1903_v15  ;;  %v305_v8 = vld [vmem:[#allocation2 + $0xec] sm:$0x1]  ;;  %v12261_v4 = vpack.c.bf16 %v1918_v59, %v1918_v59  ;;  %v1916_v30 = vmax.f32 %v1908_v45, 0.0  ;;  %v127_v7 = vsel %vm16491_vm2, 0, %v126_v11  ;;  %v123_v40 = vld [vmem:[#allocation2 + $0x114] sm:$0x1]  ;;  %13538 = vmatprep.subr.bf16.mxu0 %v17802_v42  ;;  %13747 = vmatpush3.bf16.msra.mxu1 %v17672_v46 }
 0x18c   :  { %v17813_v62 = vrot.slane %v21154_v9, 4  ;;  %v1678_v38 = vsel %vm16936_vm11, %v1670_v14, %v1677_v49  ;;  %v1729_v9 = vsel %vm16491_vm2, %v1679_v2, %v1728_v63  ;;  %128 = vst [vmem:[#allocation2 + $0x120] sm:$0x1] %v127_v7  ;;  %v21155_v53 = vld [vmem:[#allocation17_spill] sm:$0xff]  ;;  %v306_v2 = vsel %vm16693_vm4, 0, %v305_v8  ;;  %13748 = vmatprep.subr.bf16.mxu1 %v17702_v36 }
 0x18d   :  { %v1919_v44 = vmax.f32 %v1911_v41, 0.0  ;;  %v2220_v24 = vmul.f32 %v17394_v22, %v21155_v53  ;;  %v17831_v15 = vld [vmem:[%s21053_s4 + $0x100] sm:$0xff]   ;;  %1727 = vst [vmem:[#allocation2 + $0xb8] sm:$0xf] %v1678_v38  ;;  %1730 = vst [vmem:[#allocation2 + $0xbc] sm:$0x1] %v1729_v9  ;;  %v12259_v49 = vpack.c.bf16 %v1916_v30, %v1916_v30  ;;  %v1901_v63 = vmul.f32 %v17394_v22, %v17310_v61 }
 0x18e   :  { %v1966_v11 = vshrl.u32 %v12261_v4, 16  ;;  %v1969_v10 = vshll.u32 %v12261_v4, 16  ;;  %307 = vst [vmem:[#allocation2 + $0xec] sm:$0x1] %v306_v2  ;;  %v124_v59 = vsel %vm16491_vm2, 0, %v123_v40  ;;  %v21156_v30 = vld [vmem:[#allocation19_spill] sm:$0xff]  ;;  %13539 = vmatpush3.bf16.msra.mxu0 %v17802_v42 }
 0x18f   :  { %v12262_v14 = vpack.c.bf16 %v1919_v44, %v1919_v44  ;;  %v2228_v57 = vadd.f32 %v17413_v51, %v2220_v24  ;;  %v1949_v41 = vshrl.u32 %v12259_v49, 16  ;;  %v1952_v4 = vshll.u32 %v12259_v49, 16  ;;  %125 = vst [vmem:[#allocation2 + $0x114] sm:$0x1] %v124_v59  ;;  %v320_v46 = vld [vmem:[#allocation2 + $0x128] sm:$0x1]  ;;  %13548 = vmatprep.subr.bf16.mxu0 %v17831_v15  ;;  %13749 = vmatpush3.bf16.msra.mxu1 %v17702_v36 }
 0x190   :  { %v1968_v45 = vrot.slane %v1966_v11, 7  ;;  %v2218_v8 = vmul.f32 %v17394_v22, %v21156_v30  ;;  %v2036_v7 = vld [vmem:[#allocation2 + $0xf0] sm:$0xf]  ;;  %v1909_v61 = vadd.f32 %v17413_v51, %v1901_v63  ;;  %v17850_v40 = vld [vmem:[%s21053_s4 + $0x108] sm:$0xff]   ;;  %v2029_v2 = vld [vmem:[#allocation2 + $0xe4] sm:$0xf]  ;;  %13750 = vmatprep.subr.bf16.mxu1 %v17719_v23 }
 0x191   :  { %v1974_v38 = vshrl.u32 %v12262_v14, 16  ;;  %v1977_v9 = vshll.u32 %v12262_v14, 16  ;;  %v2236_v44 = vmax.f32 %v2228_v57, 0.0  ;;  %v17852_v11 = vrot.slane %v1949_v41, 7  ;;  %13541 = vmatmul.mubr.bf16.vlgmr.msra.gmra.mrb[32].mxu0 %v17242_v3  ;;  %v2040_v30 = vld [vmem:[#allocation2 + $0xf8] sm:$0x1] }
 0x192   :  { %v1971_v53 = vor.u32 %v1969_v10, %v1968_v45  ;;  %v1972_v24 = vrot.slane %v1968_v45, 4  ;;  %v2226_v49 = vadd.f32 %v17413_v51, %v2218_v8  ;;  %v1917_v59 = vmax.f32 %v1909_v61, 0.0  ;;  %13549 = vmatpush3.bf16.msra.mxu0 %v17831_v15 }
 0x193   :  { %v1976_v14 = vrot.slane %v1974_v38, 7  ;;  %v12269_v57 = vpack.c.bf16 %v2236_v44, %v2236_v44  ;;  %v321_v63 = vsel %vm16693_vm4, 0, %v320_v46  ;;  %v21157_v10 = vshll.u32 %v17517_v26, 16  ;;  %v317_v38 = vld [vmem:[#allocation2 + $0x11c] sm:$0x1]  ;;  %v21158_v44 = vld [vmem:[#allocation14_spill] sm:$0xff]  ;;  %13550 = vmatprep.subr.bf16.mxu0 %v17850_v40  ;;  %13751 = vmatpush3.bf16.msra.mxu1 %v17719_v23 }
 0x194   :  { %v2037_v41 = vsel %vm16922_vm10, %v1971_v53, %v2036_v7  ;;  %v1954_v36 = vor.u32 %v1952_v4, %v17852_v11  ;;  %v2234_v8 = vmax.f32 %v2226_v49, 0.0  ;;  %322 = vst [vmem:[#allocation2 + $0x128] sm:$0x1] %v321_v63  ;;  %13544 = vmatprep.mubr.bf16.mxu0 %v21158_v44  ;;  %v17873_v7 = vld [vmem:[%s21053_s4 + $0x110] sm:$0xff]   ;;  %v12260_v53 = vpack.c.bf16 %v1917_v59, %v1917_v59 }
 0x195   :  { %v17862_v45 = vrot.slane %v21157_v10, 5  ;;  %2038 = vst [vmem:[#allocation2 + $0xf0] sm:$0xf] %v2037_v41  ;;  %v1979_v46 = vor.u32 %v1977_v9, %v1976_v14  ;;  %v1981_v61 = vrot.slane %v1976_v14, 4  ;;  %v2284_v58 = vshrl.u32 %v12269_v57, 16  ;;  %v21159_v63 = vld [vmem:[#allocation20_spill] sm:$0xff]  ;;  %13752 = vmatprep.subr.bf16.mxu1 %v17759_v54 }
 0x196   :  { %v2287_v26 = vshll.u32 %v12269_v57, 16  ;;  %v2030_v4 = vsel %vm16922_vm10, %v1954_v36, %v2029_v2  ;;  %v12267_v49 = vpack.c.bf16 %v2234_v8, %v2234_v8  ;;  %v2221_v10 = vmul.f32 %v17394_v22, %v21159_v63  ;;  %v2354_v2 = vld [vmem:[#allocation2 + $0x120] sm:$0xf]  ;;  %13551 = vmatpush3.bf16.msra.mxu0 %v17850_v40  ;;  %v120_v63 = vld [vmem:[#allocation2 + $0x108] sm:$0x1] }
 0x197   :  { %2031 = vst [vmem:[#allocation2 + $0xe4] sm:$0xf] %v2030_v4  ;;  %v1980_v9 = vsel %vm16936_vm11, %v1972_v24, %v1979_v46  ;;  %v2041_v14 = vsel %vm16491_vm2, %v1981_v61, %v2040_v30  ;;  %v17884_v57 = vrot.slane %v2284_v58, 7  ;;  %v318_v41 = vsel %vm16693_vm4, 0, %v317_v38  ;;  %v21160_v38 = vld [vmem:[#allocation21_spill] sm:$0xff]  ;;  %13552 = vmatprep.subr.bf16.mxu0 %v17873_v7  ;;  %13753 = vmatpush3.bf16.msra.mxu1 %v17759_v54 }
 0x198   :  { %2039 = vst [vmem:[#allocation2 + $0xf4] sm:$0xf] %v1980_v9  ;;  %2042 = vst [vmem:[#allocation2 + $0xf8] sm:$0x1] %v2041_v14  ;;  %v1957_v59 = vshrl.u32 %v12260_v53, 16  ;;  %v1960_v36 = vshll.u32 %v12260_v53, 16  ;;  %v5111_v24 = vor.u32 %v17813_v62, %v17862_v45  ;;  %v2229_v30 = vadd.f32 %v17413_v51, %v2221_v10  ;;  %13754 = vmatprep.subr.bf16.mxu1 %v17802_v42 }
 0x199   :  { %v2267_v23 = vshrl.u32 %v12267_v49, 16  ;;  %v2270_v8 = vshll.u32 %v12267_v49, 16  ;;  %319 = vst [vmem:[#allocation2 + $0x11c] sm:$0x1] %v318_v41  ;;  %v2289_v58 = vor.u32 %v2287_v26, %v17884_v57  ;;  %v2219_v46 = vmul.f32 %v17394_v22, %v21160_v38  ;;  %v17900_v61 = vld [vmem:[%s21053_s4 + $0x118] sm:$0xff]   ;;  %13545 = vmatmul.mubr.bf16.gmra.mrb[36].mxu0 %v17515_v12 }
 0x19a   :  { %v1955_v62 = vrot.slane %v17852_v11, 4  ;;  %v1959_v26 = vrot.slane %v1957_v59, 7  ;;  %v2033_v9 = vld [vmem:[#allocation2 + $0xec] sm:$0x1]  ;;  %v2347_v14 = vld [vmem:[#allocation2 + $0x114] sm:$0xf]  ;;  %13553 = vmatpush3.bf16.msra.mxu0 %v17873_v7 }
 0x19b   :  { %v17907_v49 = vrot.slane %v2267_v23, 7  ;;  %v2355_v10 = vsel %vm16922_vm10, %v2289_v58, %v2354_v2  ;;  %v2237_v41 = vmax.f32 %v2229_v30, 0.0  ;;  %v2227_v38 = vadd.f32 %v17413_v51, %v2219_v46  ;;  %v21163_v2 = vld [vmem:[#allocation7_spill] sm:$0xff]  ;;  %13554 = vmatprep.subr.bf16.mxu0 %v17900_v61  ;;  %13755 = vmatpush3.bf16.msra.mxu1 %v17802_v42  ;;  %v21164_v42 = vld [vmem:[#allocation24_spill] sm:$0xff] }
 0x19c   :  { %v21162_v11 = vshll.u32 %v17782_v34, 16  ;;  %2356 = vst [vmem:[#allocation2 + $0x120] sm:$0xf] %v2355_v10  ;;  %v1962_v59 = vor.u32 %v1960_v36, %v1959_v26  ;;  %v1964_v23 = vrot.slane %v1959_v26, 4  ;;  %13564 = vmatprep.mubr.bf16.mxu0 %v21163_v2  ;;  %v17930_v58 = vrot.slane %v5111_v24, 4  ;;  %v17936_v36 = vld [vmem:[%s21053_s4 + $0x120] sm:$0xff]   ;;  %13764 = vmatprep.subr.bf16.mxu1 %v17831_v15 }
 0x19d   :  { %v2272_v53 = vor.u32 %v2270_v8, %v17907_v49  ;;  %v12270_v30 = vpack.c.bf16 %v2237_v41, %v2237_v41  ;;  %v2235_v46 = vmax.f32 %v2227_v38, 0.0  ;;  %v121_v10 = vsel %vm16491_vm2, 0, %v120_v63  ;;  %v314_v41 = vld [vmem:[#allocation2 + $0x110] sm:$0x1]  ;;  %v17953_v63 = vld [vmem:[%s21051_s2] ss:$0 sm:$0xff] }
 0x19e   :  { %v17921_v54 = vrot.slane %v21162_v11, 5  ;;  %v117_v11 = vld [vmem:[#allocation2 + $0xfc] sm:$0x1]  ;;  %v1963_v8 = vsel %vm16936_vm11, %v1955_v62, %v1962_v59  ;;  %v2034_v26 = vsel %vm16491_vm2, %v1964_v23, %v2033_v9  ;;  %v2290_v38 = vrot.slane %v17884_v57, 4  ;;  %122 = vst [vmem:[#allocation2 + $0x108] sm:$0x1] %v121_v10  ;;  %13555 = vmatpush3.bf16.msra.mxu0 %v17900_v61 }
 0x19f   :  { %v2348_v24 = vsel %vm16922_vm10, %v2272_v53, %v2347_v14  ;;  %2032 = vst [vmem:[#allocation2 + $0xe8] sm:$0xf] %v1963_v8  ;;  %2035 = vst [vmem:[#allocation2 + $0xec] sm:$0x1] %v2034_v26  ;;  %v2292_v2 = vshrl.u32 %v12270_v30, 16  ;;  %v2295_v51 = vshll.u32 %v12270_v30, 16  ;;  %v12268_v62 = vpack.c.bf16 %v2235_v46, %v2235_v46  ;;  %13556 = vmatprep.subr.bf16.mxu0 %v17936_v36 }
 0x1a0   :  { %2349 = vst [vmem:[#allocation2 + $0x114] sm:$0xf] %v2348_v24  ;;  %v132_v59 = vld [vmem:[#allocation2 + $0x138] sm:$0x1]  ;;  %v2273_v53 = vrot.slane %v17907_v49, 4  ;;  %v1906_v57 = vmul.f32 %v17953_v63, %v21164_v42  ;;  %v118_v9 = vsel %vm16491_vm2, 0, %v117_v11  ;;  %v1904_v14 = vmul.f32 %v17953_v63, %v17485_v25 }
 0x1a1   :  { %v2294_v23 = vrot.slane %v2292_v2, 7  ;;  %v2275_v30 = vshrl.u32 %v12268_v62, 16  ;;  %v2278_v46 = vshll.u32 %v12268_v62, 16  ;;  %119 = vst [vmem:[#allocation2 + $0xfc] sm:$0x1] %v118_v9  ;;  %v315_v49 = vsel %vm16693_vm4, 0, %v314_v41 }
 0x1a2   :  { %v311_v8 = vld [vmem:[#allocation2 + $0x104] sm:$0x1]  ;;  %v17969_v11 = vld [vmem:[%s21053_s4 + $0x128] sm:$0xff]   ;;  %v17974_v24 = vld [vmem:[%s21052_s3] ss:$0 sm:$0xff]  ;;  %v1907_v2 = vmul.f32 %v17953_v63, %v17499_v17  ;;  %v133_v62 = vsel %vm16491_vm2, 0, %v132_v59  ;;  %13557 = vmatpush3.bf16.msra.mxu0 %v17936_v36 }
 0x1a3   :  { %v21165_v26 = vld [vmem:[#allocation22_spill] sm:$0xff]  ;;  %v1914_v10 = vadd.f32 %v17974_v24, %v1906_v57  ;;  %v1912_v41 = vadd.f32 %v17974_v24, %v1904_v14  ;;  %316 = vst [vmem:[#allocation2 + $0x110] sm:$0x1] %v315_v49  ;;  %v2297_v42 = vor.u32 %v2295_v51, %v2294_v23  ;;  %v2299_v9 = vrot.slane %v2294_v23, 4  ;;  %134 = vst [vmem:[#allocation2 + $0x138] sm:$0x1] %v133_v62 }
 0x1a4   :  { %13757 = vmatmul.mubr.bf16.vlgmr.msra.gmra.mrb[32].mxu1 %v21165_v26  ;;  %v2358_v25 = vld [vmem:[#allocation2 + $0x128] sm:$0x1]  ;;  %v2277_v22 = vrot.slane %v2275_v30, 7  ;;  %v2224_v57 = vmul.f32 %v17953_v63, %v17508_v43  ;;  %v129_v12 = vld [vmem:[#allocation2 + $0x12c] sm:$0x1]  ;;  %v1915_v44 = vadd.f32 %v17974_v24, %v1907_v2  ;;  %v312_v59 = vsel %vm16693_vm4, 0, %v311_v8  ;;  %13558 = vmatprep.subr.bf16.mxu0 %v17969_v11 }
 0x1a5   :  { %13760 = vmatprep.mubr.bf16.mxu1 %v17354_v32  ;;  %13765 = vmatpush3.bf16.msra.mxu1 %v17831_v15  ;;  %v2351_v14 = vld [vmem:[#allocation2 + $0x11c] sm:$0x1]  ;;  %v1922_v49 = vmax.f32 %v1914_v10, 0.0  ;;  %v1920_v17 = vmax.f32 %v1912_v41, 0.0  ;;  %v2298_v15 = vsel %vm16936_vm11, %v2290_v38, %v2297_v42  ;;  %v2359_v51 = vsel %vm16491_vm2, %v2299_v9, %v2358_v25  ;;  %313 = vst [vmem:[#allocation2 + $0x104] sm:$0x1] %v312_v59 }
 0x1a6   :  { %13766 = vmatprep.subr.bf16.mxu1 %v17850_v40  ;;  %v2280_v43 = vor.u32 %v2278_v46, %v2277_v22  ;;  %v2282_v23 = vrot.slane %v2277_v22, 4  ;;  %v17999_v30 = vld [vmem:[%s21053_s4 + $0x130] sm:$0xff]   ;;  %2357 = vst [vmem:[#allocation2 + $0x124] sm:$0xf] %v2298_v15  ;;  %2360 = vst [vmem:[#allocation2 + $0x128] sm:$0x1] %v2359_v51  ;;  %v2232_v38 = vadd.f32 %v17974_v24, %v2224_v57  ;;  %13559 = vmatpush3.bf16.msra.mxu0 %v17969_v11 }
 0x1a7   :  { %v12265_v8 = vpack.c.bf16 %v1922_v49, %v1922_v49  ;;  %v12263_v10 = vpack.c.bf16 %v1920_v17, %v1920_v17  ;;  %v1923_v41 = vmax.f32 %v1915_v44, 0.0  ;;  %v1905_v25 = vmul.f32 %v17953_v63, %v17510_v28  ;;  %v326_v62 = vld [vmem:[#allocation2 + $0x140] sm:$0x1]  ;;  %13560 = vmatprep.subr.bf16.mxu0 %v17999_v30  ;;  %v18021_v17 = vld [vmem:[%s21053_s4 + $0x138] sm:$0xff]   ;;  %v2050_v15 = vld [vmem:[#allocation2 + $0x108] sm:$0xf] }
 0x1a8   :  { %v2281_v22 = vsel %vm16936_vm11, %v2273_v53, %v2280_v43  ;;  %v2352_v46 = vsel %vm16491_vm2, %v2282_v23, %v2351_v14  ;;  %v130_v2 = vsel %vm16491_vm2, 0, %v129_v12  ;;  %v2240_v57 = vmax.f32 %v2232_v38, 0.0  ;;  %v21166_v28 = vld [vmem:[#allocation9_spill] sm:$0xff]  ;;  %v21167_v12 = vld [vmem:[#allocation28_spill] sm:$0xff]  ;;  %v21168_v23 = vld [vmem:[#allocation27_spill] sm:$0xff]  ;;  %s11622_s3 = sshll.u32 %s16223_s26, 4  ;;  %s11623_s3 = int_to_ptr.vmem [resolvable:$true] %s11622_s3 }
 0x1a9   :  { %13767 = vmatpush3.bf16.msra.mxu1 %v17850_v40  ;;  %2350 = vst [vmem:[#allocation2 + $0x118] sm:$0xf] %v2281_v22  ;;  %2353 = vst [vmem:[#allocation2 + $0x11c] sm:$0x1] %v2352_v46  ;;  %v2000_v44 = vshrl.u32 %v12265_v8, 16  ;;  %v2003_v42 = vshll.u32 %v12265_v8, 16  ;;  %v12266_v53 = vpack.c.bf16 %v1923_v41, %v1923_v41  ;;  %v1913_v14 = vadd.f32 %v17974_v24, %v1905_v25  ;;  %p16201_p1 = scmp.lt.s32.totalorder %s11623_s3, %s11623_s3 }
 0x1aa   :  { %13768 = vmatprep.subr.bf16.mxu1 %v17873_v7  ;;  %v1983_v40 = vshrl.u32 %v12263_v10, 16  ;;  %v1986_v9 = vshll.u32 %v12263_v10, 16  ;;  %131 = vst [vmem:[#allocation2 + $0x12c] sm:$0x1] %v130_v2  ;;  %v2222_v49 = vmul.f32 %v17953_v63, %v21166_v28  ;;  %v327_v43 = vsel %vm16693_vm4, 0, %v326_v62  ;;  %v21169_v10 = vld [vmem:[#allocation11_spill] sm:$0xff]  ;;  %13561 = vmatpush3.bf16.msra.mxu0 %v17999_v30 }
 0x1ab   :  { %v2002_v59 = vrot.slane %v2000_v44, 7  ;;  %v2225_v8 = vmul.f32 %v17953_v63, %v21168_v23  ;;  %v2043_v41 = vld [vmem:[#allocation2 + $0xfc] sm:$0xf]  ;;  %v2008_v38 = vshrl.u32 %v12266_v53, 16  ;;  %v2011_v22 = vshll.u32 %v12266_v53, 16  ;;  %13562 = vmatprep.subr.bf16.mxu0 %v18021_v17 }
 0x1ac   :  { %13761 = vmatmul.mubr.bf16.gmra.mrb[36].mxu1 %v21167_v12  ;;  %v18023_v51 = vrot.slane %v1983_v40, 7  ;;  %v12273_v46 = vpack.c.bf16 %v2240_v57, %v2240_v57  ;;  %v1921_v25 = vmax.f32 %v1913_v14, 0.0  ;;  %328 = vst [vmem:[#allocation2 + $0x140] sm:$0x1] %v327_v43  ;;  %v5117_v2 = vsel %vm16855_vm7, %v17930_v58, %v17921_v54  ;;  %v323_v57 = vld [vmem:[#allocation2 + $0x134] sm:$0x1] }
 0x1ad   :  { %13769 = vmatpush3.bf16.msra.mxu1 %v17873_v7  ;;  %13780 = vmatprep.mubr.bf16.mxu1 %v21169_v10  ;;  %v2005_v62 = vor.u32 %v2003_v42, %v2002_v59  ;;  %v2006_v44 = vrot.slane %v2002_v59, 4  ;;  %v2010_v7 = vrot.slane %v2008_v38, 7  ;;  %v18042_v14 = vld [vmem:[%s21053_s4 + $0x140] sm:$0xff]   ;;  %v2054_v42 = vld [vmem:[#allocation2 + $0x110] sm:$0x1]  ;;  %v2233_v59 = vadd.f32 %v17974_v24, %v2225_v8  ;;  %v16195_v4 = vld [vmem:[%s21053_s4 + $0x238] sm:$0xff]  }
 0x1ae   :  { %13770 = vmatprep.subr.bf16.mxu1 %v17900_v61  ;;  %v1988_v40 = vor.u32 %v1986_v9, %v18023_v51  ;;  %v2318_v28 = vshrl.u32 %v12273_v46, 16  ;;  %v2321_v23 = vshll.u32 %v12273_v46, 16  ;;  %v12264_v53 = vpack.c.bf16 %v1921_v25, %v1921_v25  ;;  %13563 = vmatpush3.bf16.msra.mxu0 %v18021_v17 }
 0x1af   :  { %v2051_v54 = vsel %vm16922_vm10, %v2005_v62, %v2050_v15  ;;  %v2230_v9 = vadd.f32 %v17974_v24, %v2222_v49  ;;  %v2013_v43 = vor.u32 %v2011_v22, %v2010_v7  ;;  %v2015_v10 = vrot.slane %v2010_v7, 4  ;;  %v2368_v15 = vld [vmem:[#allocation2 + $0x138] sm:$0xf]  ;;  %13572 = vmatprep.subr.bf16.mxu0 %v18042_v14  ;;  %v18067_v7 = vld [vmem:[%s21053_s4 + $0x148] sm:$0xff]  }
 0x1b0   :  { %v2044_v58 = vsel %vm16922_vm10, %v1988_v40, %v2043_v41  ;;  %2052 = vst [vmem:[#allocation2 + $0x108] sm:$0xf] %v2051_v54  ;;  %v18051_v38 = vrot.slane %v2318_v28, 7  ;;  %v1991_v46 = vshrl.u32 %v12264_v53, 16  ;;  %v1994_v25 = vshll.u32 %v12264_v53, 16 }
 0x1b1   :  { %13771 = vmatpush3.bf16.msra.mxu1 %v17900_v61  ;;  %2045 = vst [vmem:[#allocation2 + $0xfc] sm:$0xf] %v2044_v58  ;;  %v2238_v62 = vmax.f32 %v2230_v9, 0.0  ;;  %v2241_v41 = vmax.f32 %v2233_v59, 0.0  ;;  %v324_v49 = vsel %vm16693_vm4, 0, %v323_v57  ;;  %v1989_v61 = vrot.slane %v18023_v51, 4 }
 0x1b2   :  { %13772 = vmatprep.subr.bf16.mxu1 %v17936_v36  ;;  %v2014_v8 = vsel %vm16936_vm11, %v2006_v44, %v2013_v43  ;;  %v2055_v22 = vsel %vm16491_vm2, %v2015_v10, %v2054_v42  ;;  %v2323_v40 = vor.u32 %v2321_v23, %v18051_v38  ;;  %325 = vst [vmem:[#allocation2 + $0x134] sm:$0x1] %v324_v49  ;;  %v18069_v28 = vld [vmem:[#allocation2 + $0x30] sm:$0xe]  ;;  %v1993_v51 = vrot.slane %v1991_v46, 7 }
 0x1b3   :  { %2053 = vst [vmem:[#allocation2 + $0x10c] sm:$0xf] %v2014_v8  ;;  %2056 = vst [vmem:[#allocation2 + $0x110] sm:$0x1] %v2055_v22  ;;  %v12271_v53 = vpack.c.bf16 %v2238_v62, %v2238_v62  ;;  %v12274_v44 = vpack.c.bf16 %v2241_v41, %v2241_v41  ;;  %v2223_v57 = vmul.f32 %v17953_v63, %v17566_v56  ;;  %v135_v41 = vld [vmem:[#allocation2 + $0x144] sm:$0x1] }
 0x1b4   :  { %v21170_v23 = vsel %vm16855_vm7, %v17761_v50, %v17750_v35  ;;  %v21171_v54 = vsel %vm16855_vm7, %v17737_v39, %v17676_v0  ;;  %v21172_v42 = vsel %vm16855_vm7, %v17776_v5, %v17862_v45  ;;  %v2369_v35 = vsel %vm16922_vm10, %v2323_v40, %v2368_v15  ;;  %v2047_v50 = vld [vmem:[#allocation2 + $0x104] sm:$0x1]  ;;  %v21173_v0 = vld [vmem:[#allocation8_spill] sm:$0xff]  ;;  %v138_v5 = vld [vmem:[#allocation2 + $0x150] sm:$0x1] }
 0x1b5   :  { %13773 = vmatpush3.bf16.msra.mxu1 %v17936_v36  ;;  %v18084_v58 = vcombine.low %v21171_v54, %v21170_v23  ;;  %v18091_v56 = vcombine.low %v21172_v42, %v5117_v2  ;;  %v18093_v36 = vld [vmem:[#allocation2 + $0x34] sm:$0xf]  ;;  %13565 = vmatmul.mubr.bf16.vlgmr.msra.gmra.mrb[32].mxu0 %v21173_v0  ;;  %2370 = vst [vmem:[#allocation2 + $0x138] sm:$0xf] %v2369_v35  ;;  %v1998_v59 = vrot.slane %v1993_v51, 4  ;;  %v2301_v43 = vshrl.u32 %v12271_v53, 16 }
 0x1b6   :  { %v21085_v9 = vrot.slane %v18093_v36, 5  ;;  %13774 = vmatprep.subr.bf16.mxu1 %v17969_v11  ;;  %v1996_v39 = vor.u32 %v1994_v25, %v1993_v51  ;;  %v2304_v10 = vshll.u32 %v12271_v53, 16  ;;  %v21174_v45 = vld [vmem:[#allocation10_spill] sm:$0xff]  ;;  %13573 = vmatpush3.bf16.msra.mxu0 %v18042_v14  ;;  %v2326_v46 = vshrl.u32 %v12274_v44, 16  ;;  %v18108_v25 = vld [vmem:[%s21053_s4 + $0x150] sm:$0xff]  }
 0x1b7   :  { %13568 = vmatprep.mubr.bf16.mxu0 %v21174_v45  ;;  %v2329_v62 = vshll.u32 %v12274_v44, 16  ;;  %v2231_v15 = vadd.f32 %v17974_v24, %v2223_v57  ;;  %13574 = vmatprep.subr.bf16.mxu0 %v18067_v7  ;;  %v2324_v49 = vrot.slane %v18051_v38, 4  ;;  %v2048_v22 = vsel %vm16491_vm2, %v1998_v59, %v2047_v50  ;;  %v332_v51 = vld [vmem:[#allocation2 + $0x158] sm:$0x1]  ;;  %v2361_v53 = vld [vmem:[#allocation2 + $0x12c] sm:$0xf] }
 0x1b8   :  { %v1997_v8 = vsel %vm16936_vm11, %v1989_v61, %v1996_v39  ;;  %v18115_v40 = vrot.slane %v2301_v43, 7  ;;  %2049 = vst [vmem:[#allocation2 + $0x104] sm:$0x1] %v2048_v22  ;;  %v2328_v44 = vrot.slane %v2326_v46, 7  ;;  %v139_v23 = vsel %vm16491_vm2, 0, %v138_v5  ;;  %v21175_v38 = vld [vmem:[#allocation29_spill] sm:$0xff] }
 0x1b9   :  { %13775 = vmatpush3.bf16.msra.mxu1 %v17969_v11  ;;  %2046 = vst [vmem:[#allocation2 + $0x100] sm:$0xf] %v1997_v8  ;;  %v2239_v57 = vmax.f32 %v2231_v15, 0.0  ;;  %v2538_v54 = vmul.f32 %v17953_v63, %v21175_v38  ;;  %v18125_v61 = vrot.slane %v21085_v9, 4  ;;  %v3945_v42 = vrot.slane %v17684_v31, 5  ;;  %v21176_v8 = vld [vmem:[#allocation30_spill] sm:$0xff] }
 0x1ba   :  { %13776 = vmatprep.subr.bf16.mxu1 %v17999_v30  ;;  %v2306_v11 = vor.u32 %v2304_v10, %v18115_v40  ;;  %v2372_v35 = vld [vmem:[#allocation2 + $0x140] sm:$0x1]  ;;  %140 = vst [vmem:[#allocation2 + $0x150] sm:$0x1] %v139_v23  ;;  %v136_v50 = vsel %vm16491_vm2, 0, %v135_v41  ;;  %13575 = vmatpush3.bf16.msra.mxu0 %v18067_v7  ;;  %v2307_v39 = vrot.slane %v18115_v40, 4  ;;  %v2331_v59 = vor.u32 %v2329_v62, %v2328_v44 }
 0x1bb   :  { %v2333_v43 = vrot.slane %v2328_v44, 4  ;;  %v12272_v5 = vpack.c.bf16 %v2239_v57, %v2239_v57  ;;  %137 = vst [vmem:[#allocation2 + $0x144] sm:$0x1] %v136_v50  ;;  %v150_v46 = vld [vmem:[#allocation2 + $0x180] sm:$0x1]  ;;  %13576 = vmatprep.subr.bf16.mxu0 %v18108_v25  ;;  %v18137_v10 = vld [vmem:[%s21053_s4 + $0x158] sm:$0xff]   ;;  %v2546_v41 = vadd.f32 %v17974_v24, %v2538_v54  ;;  %v2536_v22 = vmul.f32 %v17953_v63, %v21176_v8 }
 0x1bc   :  { %v2362_v15 = vsel %vm16922_vm10, %v2306_v11, %v2361_v53  ;;  %v333_v62 = vsel %vm16693_vm4, 0, %v332_v51  ;;  %v329_v40 = vld [vmem:[#allocation2 + $0x14c] sm:$0x1]  ;;  %v2332_v44 = vsel %vm16936_vm11, %v2324_v49, %v2331_v59  ;;  %v147_v38 = vld [vmem:[#allocation2 + $0x174] sm:$0x1]  ;;  %v151_v49 = vsel %vm16491_vm2, 0, %v150_v46 }
 0x1bd   :  { %13777 = vmatpush3.bf16.msra.mxu1 %v17999_v30  ;;  %2363 = vst [vmem:[#allocation2 + $0x12c] sm:$0xf] %v2362_v15  ;;  %v2373_v57 = vsel %vm16491_vm2, %v2333_v43, %v2372_v35  ;;  %v2309_v23 = vshrl.u32 %v12272_v5, 16  ;;  %v2312_v53 = vshll.u32 %v12272_v5, 16  ;;  %334 = vst [vmem:[#allocation2 + $0x158] sm:$0x1] %v333_v62  ;;  %13569 = vmatmul.mubr.bf16.gmra.mrb[36].mxu0 %v18084_v58 }
 0x1be   :  { %13778 = vmatprep.subr.bf16.mxu1 %v18021_v17  ;;  %2371 = vst [vmem:[#allocation2 + $0x13c] sm:$0xf] %v2332_v44  ;;  %2374 = vst [vmem:[#allocation2 + $0x140] sm:$0x1] %v2373_v57  ;;  %v2554_v51 = vmax.f32 %v2546_v41, 0.0  ;;  %v2544_v30 = vadd.f32 %v17974_v24, %v2536_v22  ;;  %v21177_v54 = vld [vmem:[#allocation31_spill] sm:$0xff]  ;;  %13577 = vmatpush3.bf16.msra.mxu0 %v18108_v25 }
 0x1bf   :  { %v2539_v11 = vmul.f32 %v17953_v63, %v21177_v54  ;;  %13588 = vmatprep.mubr.bf16.mxu0 %v17280_v19  ;;  %v2311_v35 = vrot.slane %v2309_v23, 7  ;;  %152 = vst [vmem:[#allocation2 + $0x180] sm:$0x1] %v151_v49  ;;  %v21178_v50 = vld [vmem:[#allocation32_spill] sm:$0xff]  ;;  %v330_v43 = vsel %vm16693_vm4, 0, %v329_v40  ;;  %v21179_v5 = vld [vmem:[#allocation33_spill] sm:$0xff]  ;;  %13578 = vmatprep.subr.bf16.mxu0 %v18137_v10 }
 0x1c0   :  { %v2856_v59 = vmul.f32 %v17953_v63, %v21178_v50  ;;  %v2537_v15 = vmul.f32 %v17953_v63, %v21179_v5  ;;  %v18170_v46 = vld [vmem:[%s21053_s4 + $0x160] sm:$0xff]   ;;  %v2365_v41 = vld [vmem:[#allocation2 + $0x134] sm:$0x1]  ;;  %v12277_v19 = vpack.c.bf16 %v2554_v51, %v2554_v51  ;;  %v2552_v8 = vmax.f32 %v2544_v30, 0.0  ;;  %331 = vst [vmem:[#allocation2 + $0x14c] sm:$0x1] %v330_v43 }
 0x1c1   :  { %v2547_v22 = vadd.f32 %v17974_v24, %v2539_v11  ;;  %v148_v62 = vsel %vm16491_vm2, 0, %v147_v38  ;;  %13779 = vmatpush3.bf16.msra.mxu1 %v18021_v17  ;;  %v2314_v40 = vor.u32 %v2312_v53, %v2311_v35  ;;  %v2316_v44 = vrot.slane %v2311_v35, 4  ;;  %v344_v11 = vld [vmem:[#allocation2 + $0x188] sm:$0x1]  ;;  %v21180_v50 = vld [vmem:[#allocation13_spill] sm:$0xff] }
 0x1c2   :  { %v2864_v57 = vadd.f32 %v17974_v24, %v2856_v59  ;;  %v2545_v23 = vadd.f32 %v17974_v24, %v2537_v15  ;;  %149 = vst [vmem:[#allocation2 + $0x174] sm:$0x1] %v148_v62  ;;  %13788 = vmatprep.subr.bf16.mxu1 %v18042_v14  ;;  %v2602_v54 = vshrl.u32 %v12277_v19, 16  ;;  %v2605_v51 = vshll.u32 %v12277_v19, 16  ;;  %13579 = vmatpush3.bf16.msra.mxu0 %v18137_v10  ;;  %v18189_v59 = vld [vmem:[%s21053_s4 + $0x168] sm:$0xff]   ;;  %v21181_v19 = vld [vmem:[#allocation16_spill] sm:$0xff] }
 0x1c3   :  { %v12275_v30 = vpack.c.bf16 %v2552_v8, %v2552_v8  ;;  %v2555_v49 = vmax.f32 %v2547_v22, 0.0  ;;  %v2315_v38 = vsel %vm16936_vm11, %v2307_v39, %v2314_v40  ;;  %v2366_v17 = vsel %vm16491_vm2, %v2316_v44, %v2365_v41  ;;  %13580 = vmatprep.subr.bf16.mxu0 %v18170_v46  ;;  %v2672_v41 = vld [vmem:[#allocation2 + $0x150] sm:$0xf] }
 0x1c4   :  { %v2872_v53 = vmax.f32 %v2864_v57, 0.0  ;;  %v2553_v35 = vmax.f32 %v2545_v23, 0.0  ;;  %13781 = vmatmul.mubr.bf16.vlgmr.msra.gmra.mrb[32].mxu1 %v21180_v50  ;;  %2364 = vst [vmem:[#allocation2 + $0x130] sm:$0xf] %v2315_v38  ;;  %2367 = vst [vmem:[#allocation2 + $0x134] sm:$0x1] %v2366_v17  ;;  %v2854_v62 = vmul.f32 %v17953_v63, %v17610_v16 }
 0x1c5   :  { %v2604_v43 = vrot.slane %v2602_v54, 7  ;;  %v2585_v5 = vshrl.u32 %v12275_v30, 16  ;;  %v2588_v15 = vshll.u32 %v12275_v30, 16  ;;  %v12278_v39 = vpack.c.bf16 %v2555_v49, %v2555_v49  ;;  %13784 = vmatprep.mubr.bf16.mxu1 %v21181_v19  ;;  %13789 = vmatpush3.bf16.msra.mxu1 %v18042_v14  ;;  %v2665_v30 = vld [vmem:[#allocation2 + $0x144] sm:$0xf]  ;;  %v18203_v16 = vld [vmem:[%s21053_s4 + $0x170] sm:$0xff]  }
 0x1c6   :  { %v12285_v8 = vpack.c.bf16 %v2872_v53, %v2872_v53  ;;  %v12276_v22 = vpack.c.bf16 %v2553_v35, %v2553_v35  ;;  %v345_v40 = vsel %vm16693_vm4, 0, %v344_v11  ;;  %13790 = vmatprep.subr.bf16.mxu1 %v18067_v7  ;;  %13581 = vmatpush3.bf16.msra.mxu0 %v18170_v46  ;;  %v2862_v2 = vadd.f32 %v17974_v24, %v2854_v62 }
 0x1c7   :  { %v2607_v44 = vor.u32 %v2605_v51, %v2604_v43  ;;  %v2608_v57 = vrot.slane %v2604_v43, 4  ;;  %v2587_v23 = vrot.slane %v2585_v5, 7  ;;  %v2610_v54 = vshrl.u32 %v12278_v39, 16  ;;  %346 = vst [vmem:[#allocation2 + $0x188] sm:$0x1] %v345_v40  ;;  %13582 = vmatprep.subr.bf16.mxu0 %v18189_v59 }
 0x1c8   :  { %v2613_v14 = vshll.u32 %v12278_v39, 16  ;;  %v2920_v49 = vshrl.u32 %v12285_v8, 16  ;;  %v2923_v38 = vshll.u32 %v12285_v8, 16  ;;  %v2593_v17 = vshrl.u32 %v12276_v22, 16  ;;  %v341_v43 = vld [vmem:[#allocation2 + $0x17c] sm:$0x1] }
 0x1c9   :  { %v2673_v51 = vsel %vm16922_vm10, %v2607_v44, %v2672_v41  ;;  %v2590_v11 = vor.u32 %v2588_v15, %v2587_v23  ;;  %v2591_v53 = vrot.slane %v2587_v23, 4  ;;  %v2612_v35 = vrot.slane %v2610_v54, 7  ;;  %13791 = vmatpush3.bf16.msra.mxu1 %v18067_v7  ;;  %v2676_v5 = vld [vmem:[#allocation2 + $0x158] sm:$0x1]  ;;  %v2990_v44 = vld [vmem:[#allocation2 + $0x180] sm:$0xf] }
 0x1ca   :  { %2674 = vst [vmem:[#allocation2 + $0x150] sm:$0xf] %v2673_v51  ;;  %v18208_v39 = vrot.slane %v2920_v49, 7  ;;  %v2595_v8 = vrot.slane %v2593_v17, 7  ;;  %v2596_v40 = vshll.u32 %v12276_v22, 16  ;;  %13792 = vmatprep.subr.bf16.mxu1 %v18108_v25  ;;  %v21182_v54 = vld [vmem:[#allocation34_spill] sm:$0xff]  ;;  %13583 = vmatpush3.bf16.msra.mxu0 %v18189_v59  ;;  %v3946_v62 = vsel %vm17178_vm14, %v18125_v61, %v3945_v42 }
 0x1cb   :  { %v2666_v9 = vsel %vm16922_vm10, %v2590_v11, %v2665_v30  ;;  %v2615_v41 = vor.u32 %v2613_v14, %v2612_v35  ;;  %v2617_v15 = vrot.slane %v2612_v35, 4  ;;  %v2669_v23 = vld [vmem:[#allocation2 + $0x14c] sm:$0x1]  ;;  %v2857_v7 = vmul.f32 %v17953_v63, %v21182_v54  ;;  %13584 = vmatprep.subr.bf16.mxu0 %v18203_v16  ;;  %v18228_v14 = vld [vmem:[%s21053_s4 + $0x178] sm:$0xff]   ;;  %v18230_v51 = vld [vmem:[#allocation2 + $0x60] sm:$0xe] }
 0x1cc   :  { %2667 = vst [vmem:[#allocation2 + $0x144] sm:$0xf] %v2666_v9  ;;  %v2925_v49 = vor.u32 %v2923_v38, %v18208_v39  ;;  %v2598_v17 = vor.u32 %v2596_v40, %v2595_v8  ;;  %v2600_v30 = vrot.slane %v2595_v8, 4  ;;  %13785 = vmatmul.mubr.bf16.gmra.mrb[36].mxu1 %v18091_v56  ;;  %v2870_v61 = vmax.f32 %v2862_v2, 0.0  ;;  %v144_v38 = vld [vmem:[#allocation2 + $0x168] sm:$0x1] }
 0x1cd   :  { %v2616_v31 = vsel %vm16936_vm11, %v2608_v57, %v2615_v41  ;;  %v2677_v9 = vsel %vm16491_vm2, %v2617_v15, %v2676_v5  ;;  %v2865_v42 = vadd.f32 %v17974_v24, %v2857_v7  ;;  %13793 = vmatpush3.bf16.msra.mxu1 %v18108_v25  ;;  %13804 = vmatprep.mubr.bf16.mxu1 %v17341_v1  ;;  %v342_v2 = vsel %vm16693_vm4, 0, %v341_v43  ;;  %v141_v41 = vld [vmem:[#allocation2 + $0x15c] sm:$0x1]  ;;  %v15934_v22 = vld [vmem:[%s21056_s7 + $0x10] sm:$0xff]  }
 0x1ce   :  { %2675 = vst [vmem:[#allocation2 + $0x154] sm:$0xf] %v2616_v31  ;;  %2678 = vst [vmem:[#allocation2 + $0x158] sm:$0x1] %v2677_v9  ;;  %v2991_v11 = vsel %vm16922_vm10, %v2925_v49, %v2990_v44  ;;  %v2599_v35 = vsel %vm16936_vm11, %v2591_v53, %v2598_v17  ;;  %v2670_v57 = vsel %vm16491_vm2, %v2600_v30, %v2669_v23  ;;  %13794 = vmatprep.subr.bf16.mxu1 %v18137_v10  ;;  %v338_v49 = vld [vmem:[#allocation2 + $0x170] sm:$0x1] }
 0x1cf   :  { %v21184_v25 = vrot.slane %v18093_v36, 5  ;;  %v21185_v1 = vrot.slane %v18069_v28, 9  ;;  %2992 = vst [vmem:[#allocation2 + $0x180] sm:$0xf] %v2991_v11  ;;  %2668 = vst [vmem:[#allocation2 + $0x148] sm:$0xf] %v2599_v35  ;;  %v12283_v8 = vpack.c.bf16 %v2870_v61, %v2870_v61  ;;  %v2855_v40 = vmul.f32 %v17953_v63, %v17630_v37  ;;  %13585 = vmatpush3.bf16.msra.mxu0 %v18203_v16 }
 0x1d0   :  { %2671 = vst [vmem:[#allocation2 + $0x14c] sm:$0x1] %v2670_v57  ;;  %v2873_v53 = vmax.f32 %v2865_v42, 0.0  ;;  %343 = vst [vmem:[#allocation2 + $0x17c] sm:$0x1] %v342_v2  ;;  %v12068_v36 = vrot.slane %v18230_v51, 9  ;;  %13586 = vmatprep.subr.bf16.mxu0 %v18228_v14  ;;  %v2542_v31 = vmul.f32 %v17953_v63, %v17730_v52  ;;  %v2540_v52 = vmul.f32 %v17953_v63, %v17745_v60 }
 0x1d1   :  { %v3943_v5 = vsel %vm17178_vm14, %v21185_v1, %v21184_v25  ;;  %v18260_v28 = vld [vmem:[#allocation2 + $0x64] sm:$0xf]  ;;  %v145_v44 = vsel %vm16491_vm2, 0, %v144_v38  ;;  %v2903_v23 = vshrl.u32 %v12283_v8, 16  ;;  %v2906_v54 = vshll.u32 %v12283_v8, 16  ;;  %13795 = vmatpush3.bf16.msra.mxu1 %v18137_v10  ;;  %v18294_v25 = vld [vmem:[%s21053_s4 + $0x188] sm:$0xff]  }
 0x1d2   :  { %v18257_v43 = vcombine.low %v3943_v5, %v3946_v62  ;;  %v5199_v15 = vrot.slane %v18260_v28, 5  ;;  %v18269_v37 = vld [vmem:[%s21053_s4 + $0x180] sm:$0xff]   ;;  %v12286_v7 = vpack.c.bf16 %v2873_v53, %v2873_v53  ;;  %v2863_v62 = vadd.f32 %v17974_v24, %v2855_v40  ;;  %146 = vst [vmem:[#allocation2 + $0x168] sm:$0x1] %v145_v44  ;;  %13796 = vmatprep.subr.bf16.mxu1 %v18170_v46  ;;  %v156_v35 = vld [vmem:[#allocation2 + $0x198] sm:$0x1] }
 0x1d3   :  { %v5202_v17 = vrot.slane %v17782_v34, 5  ;;  %v2926_v30 = vrot.slane %v18208_v39, 4  ;;  %v142_v9 = vsel %vm16491_vm2, 0, %v141_v41  ;;  %v18280_v61 = vrot.slane %v2903_v23, 7  ;;  %13587 = vmatpush3.bf16.msra.mxu0 %v18228_v14  ;;  %v2983_v10 = vld [vmem:[#allocation2 + $0x174] sm:$0xf] }
 0x1d4   :  { %v2928_v42 = vshrl.u32 %v12286_v7, 16  ;;  %v2931_v38 = vshll.u32 %v12286_v7, 16  ;;  %v2871_v11 = vmax.f32 %v2863_v62, 0.0  ;;  %143 = vst [vmem:[#allocation2 + $0x15c] sm:$0x1] %v142_v9  ;;  %v2550_v39 = vadd.f32 %v17974_v24, %v2542_v31  ;;  %13596 = vmatprep.subr.bf16.mxu0 %v18269_v37 }
 0x1d5   :  { %v339_v57 = vsel %vm16693_vm4, 0, %v338_v49  ;;  %v2543_v2 = vmul.f32 %v17953_v63, %v17753_v20  ;;  %v2908_v1 = vor.u32 %v2906_v54, %v18280_v61  ;;  %v2909_v5 = vrot.slane %v18280_v61, 4  ;;  %13797 = vmatpush3.bf16.msra.mxu1 %v18170_v46  ;;  %v2994_v60 = vld [vmem:[#allocation2 + $0x188] sm:$0x1]  ;;  %v335_v61 = vld [vmem:[#allocation2 + $0x164] sm:$0x1] }
 0x1d6   :  { %v2930_v8 = vrot.slane %v2928_v42, 7  ;;  %v12284_v53 = vpack.c.bf16 %v2871_v11, %v2871_v11  ;;  %340 = vst [vmem:[#allocation2 + $0x170] sm:$0x1] %v339_v57  ;;  %v2558_v40 = vmax.f32 %v2550_v39, 0.0  ;;  %v2548_v20 = vadd.f32 %v17974_v24, %v2540_v52  ;;  %13798 = vmatprep.subr.bf16.mxu1 %v18189_v59  ;;  %13589 = vmatmul.mubr.bf16.vlgmr.msra.gmra.mrb[32].mxu0 %v17295_v18  ;;  %v18313_v42 = vld [vmem:[%s21053_s4 + $0x190] sm:$0xff]  }
 0x1d7   :  { %v2551_v41 = vadd.f32 %v17974_v24, %v2543_v2  ;;  %v157_v44 = vsel %vm16491_vm2, 0, %v156_v35  ;;  %v2984_v23 = vsel %vm16922_vm10, %v2908_v1, %v2983_v10  ;;  %13592 = vmatprep.mubr.bf16.mxu0 %v17364_v29  ;;  %13597 = vmatpush3.bf16.msra.mxu0 %v18269_v37  ;;  %v2860_v10 = vmul.f32 %v17953_v63, %v17747_v13  ;;  %v2987_v39 = vld [vmem:[#allocation2 + $0x17c] sm:$0x1] }
 0x1d8   :  { %v2933_v54 = vor.u32 %v2931_v38, %v2930_v8  ;;  %v2935_v7 = vrot.slane %v2930_v8, 4  ;;  %v2911_v62 = vshrl.u32 %v12284_v53, 16  ;;  %158 = vst [vmem:[#allocation2 + $0x198] sm:$0x1] %v157_v44  ;;  %2985 = vst [vmem:[#allocation2 + $0x174] sm:$0xf] %v2984_v23  ;;  %v12281_v49 = vpack.c.bf16 %v2558_v40, %v2558_v40  ;;  %13598 = vmatprep.subr.bf16.mxu0 %v18294_v25 }
 0x1d9   :  { %v2914_v46 = vshll.u32 %v12284_v53, 16  ;;  %v2556_v31 = vmax.f32 %v2548_v20, 0.0  ;;  %v2559_v9 = vmax.f32 %v2551_v41, 0.0  ;;  %13799 = vmatpush3.bf16.msra.mxu1 %v18189_v59  ;;  %v2868_v53 = vadd.f32 %v17974_v24, %v2860_v10  ;;  %v153_v41 = vld [vmem:[#allocation2 + $0x18c] sm:$0x1]  ;;  %v18331_v44 = vld [vmem:[%s21053_s4 + $0x198] sm:$0xff]  }
 0x1da   :  { %v2934_v38 = vsel %vm16936_vm11, %v2926_v30, %v2933_v54  ;;  %v2995_v11 = vsel %vm16491_vm2, %v2935_v7, %v2994_v60  ;;  %v2913_v35 = vrot.slane %v2911_v62, 7  ;;  %v2636_v52 = vshrl.u32 %v12281_v49, 16  ;;  %13800 = vmatprep.subr.bf16.mxu1 %v18203_v16  ;;  %v2686_v7 = vld [vmem:[#allocation2 + $0x168] sm:$0xf]  ;;  %v350_v10 = vld [vmem:[#allocation2 + $0x1a0] sm:$0x1] }
 0x1db   :  { %2993 = vst [vmem:[#allocation2 + $0x184] sm:$0xf] %v2934_v38  ;;  %2996 = vst [vmem:[#allocation2 + $0x188] sm:$0x1] %v2995_v11  ;;  %v2639_v57 = vshll.u32 %v12281_v49, 16  ;;  %v12279_v2 = vpack.c.bf16 %v2556_v31, %v2556_v31  ;;  %v12282_v1 = vpack.c.bf16 %v2559_v9, %v2559_v9  ;;  %v336_v60 = vsel %vm16693_vm4, 0, %v335_v61  ;;  %13599 = vmatpush3.bf16.msra.mxu0 %v18294_v25 }
 0x1dc   :  { %v2916_v8 = vor.u32 %v2914_v46, %v2913_v35  ;;  %v2918_v30 = vrot.slane %v2913_v35, 4  ;;  %v2638_v13 = vrot.slane %v2636_v52, 7  ;;  %337 = vst [vmem:[#allocation2 + $0x164] sm:$0x1] %v336_v60  ;;  %13600 = vmatprep.subr.bf16.mxu0 %v18313_v42  ;;  %v2876_v46 = vmax.f32 %v2868_v53, 0.0 }
 0x1dd   :  { %v2619_v59 = vshrl.u32 %v12279_v2, 16  ;;  %v2622_v40 = vshll.u32 %v12279_v2, 16  ;;  %v2644_v20 = vshrl.u32 %v12282_v1, 16  ;;  %v2647_v62 = vshll.u32 %v12282_v1, 16  ;;  %13801 = vmatpush3.bf16.msra.mxu1 %v18203_v16  ;;  %v2690_v2 = vld [vmem:[#allocation2 + $0x170] sm:$0x1] }
 0x1de   :  { %v2917_v23 = vsel %vm16936_vm11, %v2909_v5, %v2916_v8  ;;  %v2988_v54 = vsel %vm16491_vm2, %v2918_v30, %v2987_v39  ;;  %v2641_v49 = vor.u32 %v2639_v57, %v2638_v13  ;;  %v2642_v31 = vrot.slane %v2638_v13, 4  ;;  %13802 = vmatprep.subr.bf16.mxu1 %v18228_v14  ;;  %13593 = vmatmul.mubr.bf16.gmra.mrb[36].mxu0 %v18257_v43  ;;  %v2679_v5 = vld [vmem:[#allocation2 + $0x15c] sm:$0xf]  ;;  %v347_v53 = vld [vmem:[#allocation2 + $0x194] sm:$0x1] }
 0x1df   :  { %2986 = vst [vmem:[#allocation2 + $0x178] sm:$0xf] %v2917_v23  ;;  %2989 = vst [vmem:[#allocation2 + $0x17c] sm:$0x1] %v2988_v54  ;;  %v18338_v9 = vrot.slane %v2619_v59, 7  ;;  %v2646_v61 = vrot.slane %v2644_v20, 7  ;;  %v12289_v38 = vpack.c.bf16 %v2876_v46, %v2876_v46  ;;  %v2541_v11 = vmul.f32 %v17953_v63, %v17766_v47  ;;  %13601 = vmatpush3.bf16.msra.mxu0 %v18313_v42 }
 0x1e0   :  { %v154_v35 = vsel %vm16491_vm2, 0, %v153_v41  ;;  %v2858_v16 = vmul.f32 %v17953_v63, %v17779_v55  ;;  %13612 = vmatprep.mubr.bf16.mxu0 %v17242_v3  ;;  %v5201_v39 = vrot.slane %v5199_v15, 4  ;;  %v2687_v52 = vsel %vm16922_vm10, %v2641_v49, %v2686_v7  ;;  %13602 = vmatprep.subr.bf16.mxu0 %v18331_v44  ;;  %v18359_v55 = vld [vmem:[%s21053_s4 + $0x1a0] sm:$0xff]   ;;  %v3004_v7 = vld [vmem:[#allocation2 + $0x198] sm:$0xf]  ;;  %v21186_v49 = vld [vmem:[#allocation15_spill] sm:$0xff] }
 0x1e1   :  { %v2624_v57 = vor.u32 %v2622_v40, %v18338_v9  ;;  %v2649_v47 = vor.u32 %v2647_v62, %v2646_v61  ;;  %155 = vst [vmem:[#allocation2 + $0x18c] sm:$0x1] %v154_v35  ;;  %2688 = vst [vmem:[#allocation2 + $0x168] sm:$0xf] %v2687_v52  ;;  %v2651_v3 = vrot.slane %v2646_v61, 4  ;;  %v2954_v1 = vshrl.u32 %v12289_v38, 16  ;;  %13803 = vmatpush3.bf16.msra.mxu1 %v18228_v14 }
 0x1e2   :  { %v2957_v8 = vshll.u32 %v12289_v38, 16  ;;  %v2549_v30 = vadd.f32 %v17974_v24, %v2541_v11  ;;  %v2866_v59 = vadd.f32 %v17974_v24, %v2858_v16  ;;  %v351_v40 = vsel %vm16693_vm4, 0, %v350_v10  ;;  %13812 = vmatprep.subr.bf16.mxu1 %v18269_v37  ;;  %v21187_v61 = vld [vmem:[#allocation26_spill] sm:$0xff] }
 0x1e3   :  { %v2680_v60 = vsel %vm16922_vm10, %v2624_v57, %v2679_v5  ;;  %v2650_v13 = vsel %vm16936_vm11, %v2642_v31, %v2649_v47  ;;  %v2691_v20 = vsel %vm16491_vm2, %v2651_v3, %v2690_v2  ;;  %v18373_v41 = vrot.slane %v2954_v1, 7  ;;  %352 = vst [vmem:[#allocation2 + $0x1a0] sm:$0x1] %v351_v40  ;;  %13603 = vmatpush3.bf16.msra.mxu0 %v18331_v44  ;;  %v2683_v47 = vld [vmem:[#allocation2 + $0x164] sm:$0x1] }
 0x1e4   :  { %2681 = vst [vmem:[#allocation2 + $0x15c] sm:$0xf] %v2680_v60  ;;  %2689 = vst [vmem:[#allocation2 + $0x16c] sm:$0xf] %v2650_v13  ;;  %v2557_v14 = vmax.f32 %v2549_v30, 0.0  ;;  %v2861_v23 = vmul.f32 %v17953_v63, %v17787_v27  ;;  %v5200_v54 = vsel %vm17178_vm14, %v12068_v36, %v5199_v15  ;;  %v2874_v62 = vmax.f32 %v2866_v59, 0.0  ;;  %13805 = vmatmul.mubr.bf16.vlgmr.msra.gmra.mrb[32].mxu1 %v21187_v61 }
 0x1e5   :  { %2692 = vst [vmem:[#allocation2 + $0x170] sm:$0x1] %v2691_v20  ;;  %v348_v46 = vsel %vm16693_vm4, 0, %v347_v53  ;;  %v2859_v31 = vmul.f32 %v17953_v63, %v21186_v49  ;;  %13604 = vmatprep.subr.bf16.mxu0 %v18359_v55  ;;  %v18393_v27 = vld [vmem:[%s21053_s4 + $0x1a8] sm:$0xff]   ;;  %v2959_v51 = vor.u32 %v2957_v8, %v18373_v41  ;;  %13808 = vmatprep.mubr.bf16.mxu1 %v21188_v33  ;;  %v2960_v40 = vrot.slane %v18373_v41, 4 }
 0x1e6   :  { %v12280_v36 = vpack.c.bf16 %v2557_v14, %v2557_v14  ;;  %v2869_v28 = vadd.f32 %v17974_v24, %v2861_v23  ;;  %349 = vst [vmem:[#allocation2 + $0x194] sm:$0x1] %v348_v46  ;;  %13813 = vmatpush3.bf16.msra.mxu1 %v18269_v37  ;;  %v5203_v63 = vsel %vm17178_vm14, %v5201_v39, %v5202_v17  ;;  %v2625_v17 = vrot.slane %v18338_v9, 4 }
 0x1e7   :  { %v12287_v15 = vpack.c.bf16 %v2874_v62, %v2874_v62  ;;  %v2867_v5 = vadd.f32 %v17974_v24, %v2859_v31  ;;  %13814 = vmatprep.subr.bf16.mxu1 %v18294_v25  ;;  %v3005_v38 = vsel %vm16922_vm10, %v2959_v51, %v3004_v7  ;;  %13605 = vmatpush3.bf16.msra.mxu0 %v18359_v55  ;;  %v18412_v24 = vld [vmem:[%s21053_s4 + $0x1b0] sm:$0xff]  }
 0x1e8   :  { %v2627_v11 = vshrl.u32 %v12280_v36, 16  ;;  %v2630_v35 = vshll.u32 %v12280_v36, 16  ;;  %v2877_v16 = vmax.f32 %v2869_v28, 0.0  ;;  %3006 = vst [vmem:[#allocation2 + $0x198] sm:$0xf] %v3005_v38  ;;  %13606 = vmatprep.subr.bf16.mxu0 %v18393_v27  ;;  %v18416_v57 = vcombine.low %v5200_v54, %v5203_v63 }
 0x1e9   :  { %v2937_v37 = vshrl.u32 %v12287_v15, 16  ;;  %v2940_v10 = vshll.u32 %v12287_v15, 16  ;;  %v2875_v34 = vmax.f32 %v2867_v5, 0.0  ;;  %v2997_v30 = vld [vmem:[#allocation2 + $0x18c] sm:$0xf] }
 0x1ea   :  { %v2629_v39 = vrot.slane %v2627_v11, 7  ;;  %v12290_v52 = vpack.c.bf16 %v2877_v16, %v2877_v16  ;;  %13815 = vmatpush3.bf16.msra.mxu1 %v18294_v25  ;;  %v15877_v25 = vld [vmem:[%s21053_s4 + $0x1b8] sm:$0xff]   ;;  %v3008_v62 = vld [vmem:[#allocation2 + $0x1a0] sm:$0x1]  ;;  %v15879_v15 = vld [vmem:[%s21053_s4 + $0x1c8] sm:$0xff]  }
 0x1eb   :  { %v2939_v2 = vrot.slane %v2937_v37, 7  ;;  %v12288_v3 = vpack.c.bf16 %v2875_v34, %v2875_v34  ;;  %13816 = vmatprep.subr.bf16.mxu1 %v18313_v42  ;;  %13607 = vmatpush3.bf16.msra.mxu0 %v18393_v27  ;;  %v3023_v5 = vld [vmem:[#allocation2 + $0x3c] sm:$0xf]  ;;  %v18461_v38 = vld [vmem:[#allocation2 + $0x40] sm:$0xf]  ;;  %v18480_v16 = vld [vmem:[%s21053_s4 + $0x1f0] sm:$0xff]  }
 0x1ec   :  { %v2632_v1 = vor.u32 %v2630_v35, %v2629_v39  ;;  %v2634_v8 = vrot.slane %v2629_v39, 4  ;;  %v2962_v53 = vshrl.u32 %v12290_v52, 16  ;;  %v2965_v60 = vshll.u32 %v12290_v52, 16  ;;  %13809 = vmatmul.mubr.bf16.gmra.mrb[36].mxu1 %v18416_v57  ;;  %13608 = vmatprep.subr.bf16.mxu0 %v18412_v24  ;;  %v15882_v11 = vld [vmem:[%s21053_s4 + $0x1d8] sm:$0xff]   ;;  %v15885_v35 = vld [vmem:[%s21053_s4 + $0x1e8] sm:$0xff]  }
 0x1ed   :  { %v2942_v13 = vor.u32 %v2940_v10, %v2939_v2  ;;  %v2945_v9 = vshrl.u32 %v12288_v3, 16  ;;  %v2948_v59 = vshll.u32 %v12288_v3, 16  ;;  %13828 = vmatprep.mubr.bf16.mxu1 %v21165_v26  ;;  %v2943_v54 = vrot.slane %v2939_v2, 4  ;;  %v3001_v31 = vld [vmem:[#allocation2 + $0x194] sm:$0x1]  ;;  %v15878_v26 = vld [vmem:[%s21053_s4 + $0x1c0] sm:$0xff]  }
 0x1ee   :  { %v2633_v20 = vsel %vm16936_vm11, %v2625_v17, %v2632_v1  ;;  %v2684_v14 = vsel %vm16491_vm2, %v2634_v8, %v2683_v47  ;;  %v2964_v23 = vrot.slane %v2962_v53, 7  ;;  %13817 = vmatpush3.bf16.msra.mxu1 %v18313_v42  ;;  %v4234_v37 = vshrl.u32 %v3023_v5, 16  ;;  %v18483_v34 = vld [vmem:[#allocation2 + $0x70] sm:$0xf]  ;;  %v18491_v17 = vld [vmem:[%s21053_s4 + $0x1f8] sm:$0xff]  }
 0x1ef   :  { %2682 = vst [vmem:[#allocation2 + $0x160] sm:$0xf] %v2633_v20  ;;  %2685 = vst [vmem:[#allocation2 + $0x164] sm:$0x1] %v2684_v14  ;;  %v2998_v7 = vsel %vm16922_vm10, %v2942_v13, %v2997_v30  ;;  %v2947_v46 = vrot.slane %v2945_v9, 7  ;;  %13818 = vmatprep.subr.bf16.mxu1 %v18331_v44  ;;  %13609 = vmatpush3.bf16.msra.mxu0 %v18412_v24  ;;  %v4237_v10 = vshll.u32 %v3023_v5, 16 }
 0x1f0   :  { %2999 = vst [vmem:[#allocation2 + $0x18c] sm:$0xf] %v2998_v7  ;;  %v2967_v41 = vor.u32 %v2965_v60, %v2964_v23  ;;  %v2969_v49 = vrot.slane %v2964_v23, 4  ;;  %13610 = vmatprep.subr.bf16.mxu0 %v15877_v25  ;;  %v4236_v39 = vrot.slane %v4234_v37, 4  ;;  %v18494_v3 = vld [vmem:[#allocation2 + $0x44] sm:$0x1] }
 0x1f1   :  { %v2950_v51 = vor.u32 %v2948_v59, %v2947_v46  ;;  %v2952_v42 = vrot.slane %v2947_v46, 4  ;;  %v4239_v52 = vrot.slane %v4237_v10, 5  ;;  %v18501_v30 = vld [vmem:[%s21053_s4 + $0x200] sm:$0xff]   ;;  %v5374_v13 = vshrl.u32 %v18483_v34, 16  ;;  %v5606_v37 = vld [vmem:[#allocation2 + $0x78] sm:$0xe] }
 0x1f2   :  { %v2968_v48 = vsel %vm16936_vm11, %v2960_v40, %v2967_v41  ;;  %v3009_v36 = vsel %vm16491_vm2, %v2969_v49, %v3008_v62  ;;  %13819 = vmatpush3.bf16.msra.mxu1 %v18331_v44  ;;  %v21189_v44 = vld [vmem:[#allocation14_spill] sm:$0xff]  ;;  %v5370_v9 = vshll.u32 %v18483_v34, 16  ;;  %v18524_v41 = vld [vmem:[%s21053_s4 + $0x210] sm:$0xff]   ;;  %v18558_v10 = vld [vmem:[#allocation2 + $0x80] sm:$0x1] }
 0x1f3   :  { %3007 = vst [vmem:[#allocation2 + $0x19c] sm:$0xf] %v2968_v48  ;;  %3010 = vst [vmem:[#allocation2 + $0x1a0] sm:$0x1] %v3009_v36  ;;  %v2951_v28 = vsel %vm16936_vm11, %v2943_v54, %v2950_v51  ;;  %v3002_v63 = vsel %vm16491_vm2, %v2952_v42, %v3001_v31  ;;  %13820 = vmatprep.subr.bf16.mxu1 %v18359_v55  ;;  %13611 = vmatpush3.bf16.msra.mxu0 %v15877_v25  ;;  %v18511_v40 = vld [vmem:[%s21053_s4 + $0x208] sm:$0xff]   ;;  %v5376_v62 = vrot.slane %v5374_v13, 4 }
 0x1f4   :  { %3000 = vst [vmem:[#allocation2 + $0x190] sm:$0xf] %v2951_v28  ;;  %3003 = vst [vmem:[#allocation2 + $0x194] sm:$0x1] %v3002_v63  ;;  %13620 = vmatprep.subr.bf16.mxu0 %v15878_v26  ;;  %v4240_v53 = vor.u32 %v4239_v52, %v4236_v39  ;;  %v18516_v54 = vld [vmem:[#allocation2 + $0x74] sm:$0x1] }
 0x1f5   :  { %v18518_v7 = vrot.slane %v5370_v9, 5  ;;  %v5604_v46 = vld [vmem:[#allocation2 + $0x60] sm:$0xe]  ;;  %v18526_v31 = vld [vmem:[#allocation2 + $0x68] sm:$0x1]  ;;  %v5380_v48 = vshll.u32 %v18516_v54, 16 }
 0x1f6   :  { %13821 = vmatpush3.bf16.msra.mxu1 %v18359_v55  ;;  %13613 = vmatmul.mubr.bf16.vlgmr.msra.gmra.mrb[32].mxu0 %v21189_v44  ;;  %v11988_v55 = vcombine.low %v3023_v5, %v18461_v38  ;;  %v4241_v20 = vrot.slane %v4240_v53, 4  ;;  %v18532_v51 = vld [vmem:[#allocation2 + $0x64] sm:$0xf]  ;;  %v18534_v42 = vld [vmem:[#allocation2 + $0x94] sm:$0xf]  ;;  %v12082_v28 = vrot.slane %v5604_v46, 9 }
 0x1f7   :  { %13822 = vmatprep.subr.bf16.mxu1 %v18393_v27  ;;  %13616 = vmatprep.mubr.bf16.mxu0 %v21190_v6  ;;  %v18538_v36 = vld [vmem:[#allocation2 + $0x98] sm:$0x1]  ;;  %v5605_v63 = vld [vmem:[#allocation2 + $0x6c] sm:$0xe]  ;;  %v18542_v44 = vld [vmem:[#allocation2 + $0x70] sm:$0xf] }
 0x1f8   :  { %13621 = vmatpush3.bf16.msra.mxu0 %v15878_v26  ;;  %v18544_v6 = vld [vmem:[#allocation2 + $0x74] sm:$0x1]  ;;  %v5889_v5 = vrot.slane %v18526_v31, 5  ;;  %v12083_v39 = vrot.slane %v5605_v63, 9  ;;  %v18566_v52 = vrot.slane %v5380_v48, 5  ;;  %v5893_v53 = vrot.slane %v18542_v44, 5 }
 0x1f9   :  { %13622 = vmatprep.subr.bf16.mxu0 %v15879_v15  ;;  %v5896_v13 = vrot.slane %v18544_v6, 5  ;;  %v12084_v9 = vrot.slane %v5606_v37, 9  ;;  %v6592_v46 = vld [vmem:[#allocation2 + $0xa8] sm:$0xe] }
 0x1fa   :  { %13823 = vmatpush3.bf16.msra.mxu1 %v18393_v27  ;;  %v15883_v27 = vld [vmem:[%s21053_s4 + $0x1e0] sm:$0xff]  }
 0x1fb   :  { %13824 = vmatprep.subr.bf16.mxu1 %v18412_v24 }
 0x1fc   :  { %13623 = vmatpush3.bf16.msra.mxu0 %v15879_v15 }
 0x1fd   :  { %13624 = vmatprep.subr.bf16.mxu0 %v15881_v21 }
 0x1fe   :  { %13825 = vmatpush3.bf16.msra.mxu1 %v18412_v24  ;;  %13617 = vmatmul.mubr.bf16.gmra.mrb[36].mxu0 %v11988_v55  ;;  %v4243_v24 = vshll.u32 %v18461_v38, 16 }
 0x1ff   :  { %13826 = vmatprep.subr.bf16.mxu1 %v15877_v25  ;;  %13636 = vmatprep.mubr.bf16.mxu0 %v21173_v0  ;;  %v4610_v0 = vld [vmem:[#allocation2 + $0x6c] sm:$0xf] }
 0x200   :  { %13625 = vmatpush3.bf16.msra.mxu0 %v15881_v21  ;;  %v4245_v47 = vrot.slane %v4243_v24, 5  ;;  %v5361_v1 = vshrl.u32 %v4610_v0, 16  ;;  %v5364_v8 = vshll.u32 %v4610_v0, 16 }
 0x201   :  { %13626 = vmatprep.subr.bf16.mxu0 %v15882_v11 }
 0x202   :  { %13827 = vmatpush3.bf16.msra.mxu1 %v15877_v25  ;;  %v5363_v59 = vrot.slane %v5361_v1, 4  ;;  %v5366_v25 = vrot.slane %v5364_v8, 5 }
 0x203   :  { %13836 = vmatprep.subr.bf16.mxu1 %v15878_v26 }
 0x204   :  { %13627 = vmatpush3.bf16.msra.mxu0 %v15882_v11  ;;  %v5367_v49 = vor.u32 %v5366_v25, %v5363_v59  ;;  %v6591_v59 = vld [vmem:[#allocation2 + $0x9c] sm:$0xe]  ;;  %v18592_v25 = vld [vmem:[%s21053_s4 + $0x220] sm:$0xff]  }
 0x205   :  { %13829 = vmatmul.mubr.bf16.vlgmr.msra.gmra.mrb[32].mxu1 %v17354_v32  ;;  %13628 = vmatprep.subr.bf16.mxu0 %v15883_v27  ;;  %v4247_v32 = vshrl.u32 %v18461_v38, 16 }
 0x206   :  { %13832 = vmatprep.mubr.bf16.mxu1 %v21167_v12  ;;  %13837 = vmatpush3.bf16.msra.mxu1 %v15878_v26  ;;  %v12070_v12 = vcombine.low %v4610_v0, %v18483_v34  ;;  %v6590_v26 = vld [vmem:[#allocation2 + $0x90] sm:$0xe]  ;;  %v6872_v0 = vrot.slane %v18534_v42, 5 }
 0x207   :  { %13838 = vmatprep.subr.bf16.mxu1 %v15879_v15  ;;  %v4249_v2 = vrot.slane %v4247_v32, 4 }
 0x208   :  { %13629 = vmatpush3.bf16.msra.mxu0 %v15883_v27  ;;  %v6874_v8 = vrot.slane %v6872_v0, 4 }
 0x209   :  { %13630 = vmatprep.subr.bf16.mxu0 %v15885_v35  ;;  %v4250_v60 = vor.u32 %v4249_v2, %v4245_v47  ;;  %v18570_v2 = vld [vmem:[#allocation2 + $0x88] sm:$0xf] }
 0x20a   :  { %13839 = vmatpush3.bf16.msra.mxu1 %v15879_v15  ;;  %v5377_v15 = vor.u32 %v5376_v62, %v18518_v7  ;;  %v5895_v62 = vrot.slane %v5893_v53, 4  ;;  %v5907_v48 = vrot.slane %v18570_v2, 5 }
 0x20b   :  { %13840 = vmatprep.subr.bf16.mxu1 %v15881_v21  ;;  %v4251_v14 = vrot.slane %v4250_v60, 4 }
 0x20c   :  { %13631 = vmatpush3.bf16.msra.mxu0 %v15885_v35  ;;  %v18581_v60 = vrot.slane %v5377_v15, 4  ;;  %v5897_v63 = vsel %vm17178_vm14, %v5895_v62, %v5896_v13  ;;  %v5909_v37 = vrot.slane %v5907_v48, 4  ;;  %v12108_v13 = vrot.slane %v6592_v46, 9 }
 0x20d   :  { %13833 = vmatmul.mubr.bf16.gmra.mrb[36].mxu1 %v12070_v12  ;;  %13632 = vmatprep.subr.bf16.mxu0 %v18480_v16  ;;  %v6875_v12 = vrot.slane %v18538_v36, 5 }
 0x20e   :  { %13841 = vmatpush3.bf16.msra.mxu1 %v15881_v21  ;;  %13852 = vmatprep.mubr.bf16.mxu1 %v21180_v50  ;;  %v4253_v50 = vshll.u32 %v18494_v3, 16  ;;  %v5886_v21 = vrot.slane %v18532_v51, 5 }
 0x20f   :  { %13842 = vmatprep.subr.bf16.mxu1 %v15882_v11 }
 0x210   :  { %13633 = vmatpush3.bf16.msra.mxu0 %v18480_v16  ;;  %v4255_v23 = vrot.slane %v4253_v50, 5  ;;  %v18562_v32 = vsel %vm17178_vm14, %v12082_v28, %v5886_v21  ;;  %v5888_v24 = vrot.slane %v5886_v21, 4  ;;  %v18611_v28 = vld [vmem:[#allocation2 + $0xb0] sm:$0x1]  ;;  %v12107_v21 = vrot.slane %v6591_v59, 9 }
 0x211   :  { %13634 = vmatprep.subr.bf16.mxu0 %v18491_v17  ;;  %v6889_v62 = vrot.slane %v18611_v28, 5 }
 0x212   :  { %13843 = vmatpush3.bf16.msra.mxu1 %v15882_v11  ;;  %v18552_v11 = vld [vmem:[%s21053_s4 + $0x218] sm:$0xff]   ;;  %v18585_v50 = vsel %vm17178_vm14, %v5888_v24, %v5889_v5  ;;  %v18617_v5 = vld [vmem:[#allocation2 + $0xa0] sm:$0xf]  ;;  %v18628_v24 = vld [vmem:[%s21053_s4 + $0x228] sm:$0xff]  }
 0x213   :  { %13844 = vmatprep.subr.bf16.mxu1 %v15883_v27 }
 0x214   :  { %13635 = vmatpush3.bf16.msra.mxu0 %v18491_v17 }
 0x215   :  { %13644 = vmatprep.subr.bf16.mxu0 %v18501_v30 }
 0x216   :  { %13845 = vmatpush3.bf16.msra.mxu1 %v15883_v27  ;;  %v18554_v27 = vrot.slane %v5367_v49, 4 }
 0x217   :  { %13846 = vmatprep.subr.bf16.mxu1 %v15885_v35  ;;  %13637 = vmatmul.mubr.bf16.vlgmr.msra.gmra.mrb[32].mxu0 %v21174_v45  ;;  %v4256_v45 = vsel %vm16855_vm7, %v4251_v14, %v4255_v23  ;;  %v18600_v14 = vsel %vm17178_vm14, %v6874_v8, %v6875_v12  ;;  %v5894_v23 = vsel %vm17178_vm14, %v12083_v39, %v5893_v53  ;;  %v18630_v12 = vld [vmem:[#allocation2 + $0xac] sm:$0xf]  ;;  %v6879_v8 = vrot.slane %v18617_v5, 5 }
 0x218   :  { %13640 = vmatprep.mubr.bf16.mxu0 %v18084_v58  ;;  %13645 = vmatpush3.bf16.msra.mxu0 %v18501_v30  ;;  %v4246_v58 = vsel %vm16855_vm7, %v4241_v20, %v4245_v47  ;;  %v18568_v47 = vld [vmem:[#allocation2 + $0x7c] sm:$0xf]  ;;  %v18594_v20 = vld [vmem:[#allocation2 + $0xa4] sm:$0x1] }
 0x219   :  { %13646 = vmatprep.subr.bf16.mxu0 %v18511_v40  ;;  %v12013_v55 = vcombine.low %v4246_v58, %v4256_v45  ;;  %v5900_v58 = vrot.slane %v18568_v47, 5  ;;  %v5903_v45 = vrot.slane %v18558_v10, 5  ;;  %v6882_v53 = vrot.slane %v18594_v20, 5 }
 0x21a   :  { %13847 = vmatpush3.bf16.msra.mxu1 %v15885_v35  ;;  %v12106_v35 = vrot.slane %v6590_v26, 9  ;;  %v5607_v26 = vld [vmem:[#allocation2 + $0x84] sm:$0xe] }
 0x21b   :  { %13848 = vmatprep.subr.bf16.mxu1 %v18480_v16  ;;  %v12085_v15 = vrot.slane %v5607_v26, 9  ;;  %v6881_v26 = vrot.slane %v6879_v8, 4 }
 0x21c   :  { %13647 = vmatpush3.bf16.msra.mxu0 %v18511_v40  ;;  %v18576_v1 = vsel %vm17178_vm14, %v12106_v35, %v6872_v0  ;;  %v5901_v35 = vsel %vm17178_vm14, %v12084_v9, %v5900_v58  ;;  %v5902_v0 = vrot.slane %v5900_v58, 4  ;;  %v18647_v58 = vld [vmem:[#allocation2 + $0xbc] sm:$0x1] }
 0x21d   :  { %13648 = vmatprep.subr.bf16.mxu0 %v18524_v41  ;;  %v5908_v39 = vsel %vm17178_vm14, %v12085_v15, %v5907_v48  ;;  %v5383_v48 = vsel %vm16855_vm7, %v18581_v60, %v18566_v52  ;;  %v18675_v52 = vld [vmem:[#allocation2 + $0xb8] sm:$0xf]  ;;  %v6883_v60 = vsel %vm17178_vm14, %v6881_v26, %v6882_v53 }
 0x21e   :  { %13849 = vmatpush3.bf16.msra.mxu1 %v18480_v16  ;;  %v18572_v16 = vld [vmem:[#allocation2 + $0x8c] sm:$0x1]  ;;  %v5904_v9 = vsel %vm17178_vm14, %v5902_v0, %v5903_v45  ;;  %v5373_v45 = vsel %vm16855_vm7, %v18554_v27, %v18518_v7 }
 0x21f   :  { %13850 = vmatprep.subr.bf16.mxu1 %v18491_v17  ;;  %13641 = vmatmul.mubr.bf16.gmra.mrb[36].mxu0 %v12013_v55  ;;  %v18619_v55 = vcombine.low %v5894_v23, %v5897_v63  ;;  %v6886_v23 = vrot.slane %v18630_v12, 5  ;;  %v18649_v46 = vcombine.low %v5901_v35, %v5904_v9  ;;  %v5624_v9 = vshrl.u32 %v18532_v51, 16 }
 0x220   :  { %13649 = vmatpush3.bf16.msra.mxu0 %v18524_v41  ;;  %13660 = vmatprep.mubr.bf16.mxu0 %v17295_v18  ;;  %v5702_v18 = vshll.u32 %v18572_v16, 16 }
 0x221   :  { %13650 = vmatprep.subr.bf16.mxu0 %v18552_v11  ;;  %v6887_v63 = vsel %vm17178_vm14, %v12108_v13, %v6886_v23  ;;  %v6888_v15 = vrot.slane %v6886_v23, 4  ;;  %v12071_v13 = vcombine.low %v5373_v45, %v5383_v48  ;;  %v18695_v23 = vld [vmem:[%s21053_s4 + $0x238] sm:$0xff]  }
 0x222   :  { %13851 = vmatpush3.bf16.msra.mxu1 %v18491_v17  ;;  %v5910_v17 = vrot.slane %v18572_v16, 5 }
 0x223   :  { %13860 = vmatprep.subr.bf16.mxu1 %v18501_v30  ;;  %v6890_v0 = vsel %vm17178_vm14, %v6888_v15, %v6889_v62 }
 0x224   :  { %13651 = vmatpush3.bf16.msra.mxu0 %v18552_v11  ;;  %v5911_v59 = vsel %vm17178_vm14, %v5909_v37, %v5910_v17  ;;  %v18670_v17 = vld [vmem:[%s21053_s4 + $0x230] sm:$0xff]  }
 0x225   :  { %13853 = vmatmul.mubr.bf16.vlgmr.msra.gmra.mrb[32].mxu1 %v21181_v19  ;;  %13652 = vmatprep.subr.bf16.mxu0 %v18592_v25  ;;  %v18638_v19 = vld [vmem:[#allocation2 + $0x60] sm:$0xf]  ;;  %v6593_v37 = vld [vmem:[#allocation2 + $0xb4] sm:$0xe] }
 0x226   :  { %13856 = vmatprep.mubr.bf16.mxu1 %v18091_v56  ;;  %13861 = vmatpush3.bf16.msra.mxu1 %v18501_v30  ;;  %v18651_v56 = vcombine.low %v5908_v39, %v5911_v59  ;;  %v6880_v30 = vsel %vm17178_vm14, %v12107_v21, %v6879_v8  ;;  %v5611_v7 = vshrl.u32 %v18638_v19, 16  ;;  %v5614_v27 = vshll.u32 %v18638_v19, 16 }
 0x227   :  { %13862 = vmatprep.subr.bf16.mxu1 %v18511_v40  ;;  %v5620_v21 = vshll.u32 %v18532_v51, 16  ;;  %v18680_v35 = vcombine.low %v6880_v30, %v6883_v60  ;;  %v6893_v39 = vrot.slane %v18675_v52, 5  ;;  %v6896_v8 = vrot.slane %v18647_v58, 5  ;;  %v18708_v60 = vld [vmem:[#allocation2 + $0x90] sm:$0xf] }
 0x228   :  { %13653 = vmatpush3.bf16.msra.mxu0 %v18592_v25  ;;  %v18688_v59 = vcombine.low %v6887_v63, %v6890_v0  ;;  %v12109_v53 = vrot.slane %v6593_v37, 9  ;;  %v5613_v30 = vrot.slane %v5611_v7, 4  ;;  %v5616_v45 = vrot.slane %v5614_v27, 5 }
 0x229   :  { %13654 = vmatprep.subr.bf16.mxu0 %v18628_v24  ;;  %v5622_v48 = vrot.slane %v5620_v21, 5  ;;  %v5626_v63 = vrot.slane %v5624_v9, 4  ;;  %v5630_v27 = vshll.u32 %v18526_v31, 16  ;;  %v6597_v21 = vshrl.u32 %v18708_v60, 16 }
 0x22a   :  { %13863 = vmatpush3.bf16.msra.mxu1 %v18511_v40  ;;  %21191 = vst [vmem:[#allocation18_spill] sm:$0xff] %v18688_v59  ;;  %v6895_v40 = vrot.slane %v6893_v39, 4  ;;  %v6894_v62 = vsel %vm17178_vm14, %v12109_v53, %v6893_v39  ;;  %v5617_v7 = vor.u32 %v5616_v45, %v5613_v30  ;;  %v6600_v37 = vshll.u32 %v18708_v60, 16  ;;  %v18720_v39 = vld [vmem:[%s21053_s4 + $0x40] sm:$0xff]   ;;  %v18855_v59 = vld [vmem:[#allocation2 + $0xb4] sm:$0xf] }
 0x22b   :  { %13864 = vmatprep.subr.bf16.mxu1 %v18524_v41  ;;  %v5627_v0 = vor.u32 %v5626_v63, %v5622_v48 }
 0x22c   :  { %13655 = vmatpush3.bf16.msra.mxu0 %v18628_v24  ;;  %v6897_v26 = vsel %vm17178_vm14, %v6895_v40, %v6896_v8  ;;  %v5618_v9 = vrot.slane %v5617_v7, 4  ;;  %v5632_v40 = vrot.slane %v5630_v27, 5  ;;  %v6602_v30 = vrot.slane %v6600_v37, 5  ;;  %v4623_v7 = vld [vmem:[#allocation2 + $0x6c] sm:$0xe]  ;;  %v18758_v37 = vld [vmem:[%s21053_s4 + $0x50] sm:$0xff]  }
 0x22d   :  { %13857 = vmatmul.mubr.bf16.gmra.mrb[36].mxu1 %v12071_v13  ;;  %13656 = vmatprep.subr.bf16.mxu0 %v18670_v17  ;;  %v18704_v15 = vcombine.low %v6894_v62, %v6897_v26  ;;  %v4406_v13 = vrot.slane %v18494_v3, 5  ;;  %v5628_v53 = vrot.slane %v5627_v0, 4  ;;  %v6599_v62 = vrot.slane %v6597_v21, 4 }
 0x22e   :  { %13865 = vmatpush3.bf16.msra.mxu1 %v18524_v41  ;;  %13876 = vmatprep.mubr.bf16.mxu1 %v21187_v61  ;;  %v4403_v61 = vrot.slane %v18461_v38, 5  ;;  %v3036_v41 = vld [vmem:[#allocation2 + $0x3c] sm:$0xe]  ;;  %v6606_v38 = vshll.u32 %v18534_v42, 16  ;;  %v5623_v63 = vsel %vm16855_vm7, %v5618_v9, %v5622_v48  ;;  %v5465_v0 = vrot.slane %v18483_v34, 5 }
 0x22f   :  { %13866 = vmatprep.subr.bf16.mxu1 %v18552_v11  ;;  %21192 = vst [vmem:[#allocation17_spill] sm:$0xff] %v18704_v15  ;;  %v12022_v31 = vrot.slane %v3036_v41, 9  ;;  %v5633_v41 = vsel %vm16855_vm7, %v5628_v53, %v5632_v40  ;;  %v6616_v27 = vshll.u32 %v18538_v36, 16  ;;  %v5648_v36 = vshrl.u32 %v18542_v44, 16 }
 0x230   :  { %13657 = vmatpush3.bf16.msra.mxu0 %v18670_v17  ;;  %v4405_v8 = vrot.slane %v4403_v61, 4  ;;  %v18737_v3 = vrot.slane %v6606_v38, 5  ;;  %v12074_v34 = vcombine.low %v5623_v63, %v5633_v41  ;;  %v5467_v9 = vrot.slane %v5465_v0, 4 }
 0x231   :  { %13658 = vmatprep.subr.bf16.mxu0 %v18695_v23  ;;  %v6618_v40 = vrot.slane %v6616_v27, 5  ;;  %v5668_v41 = vshll.u32 %v18568_v47, 16 }
 0x232   :  { %13867 = vmatpush3.bf16.msra.mxu1 %v18552_v11  ;;  %v6610_v11 = vshrl.u32 %v18534_v42, 16  ;;  %v4407_v45 = vsel %vm17178_vm14, %v4405_v8, %v4406_v13  ;;  %v12072_v8 = vrot.slane %v4623_v7, 9  ;;  %v5468_v13 = vrot.slane %v18516_v54, 5 }
 0x233   :  { %13868 = vmatprep.subr.bf16.mxu1 %v18592_v25  ;;  %v5672_v7 = vshrl.u32 %v18568_v47, 16 }
 0x234   :  { %13659 = vmatpush3.bf16.msra.mxu0 %v18695_v23  ;;  %v6612_v26 = vrot.slane %v6610_v11, 4  ;;  %v5644_v11 = vshll.u32 %v18542_v44, 16  ;;  %v5469_v27 = vsel %vm17178_vm14, %v5467_v9, %v5468_v13  ;;  %v5692_v13 = vshll.u32 %v18570_v2, 16  ;;  %v18816_v9 = vld [vmem:[#allocation2 + $0x9c] sm:$0xf] }
 0x235   :  { %13884 = vmatprep.subr.bf16.mxu0 %v18720_v39 }
 0x236   :  { %13869 = vmatpush3.bf16.msra.mxu1 %v18592_v25  ;;  %v18734_v25 = vld [vmem:[%s21053_s4 + $0x48] sm:$0xff]   ;;  %v6613_v48 = vor.u32 %v6612_v26, %v18737_v3 }
 0x237   :  { %13870 = vmatprep.subr.bf16.mxu1 %v18628_v24  ;;  %13661 = vmatmul.mubr.bf16.vlgmr.msra.gmra.mrb[32].mxu0 %v17364_v29  ;;  %v18739_v29 = vld [vmem:[#allocation2 + $0x6c] sm:$0xf] }
 0x238   :  { %13664 = vmatprep.mubr.bf16.mxu0 %v18257_v43  ;;  %13885 = vmatpush3.bf16.msra.mxu0 %v18720_v39  ;;  %v4404_v43 = vsel %vm17178_vm14, %v12022_v31, %v4403_v61  ;;  %v5635_v61 = vshrl.u32 %v18739_v29, 16  ;;  %v5638_v38 = vshll.u32 %v18739_v29, 16  ;;  %v18766_v31 = vld [vmem:[#allocation2 + $0x78] sm:$0xf] }
 0x239   :  { %13886 = vmatprep.subr.bf16.mxu0 %v18734_v25  ;;  %v12039_v21 = vcombine.low %v4404_v43, %v4407_v45  ;;  %v18777_v43 = vrot.slane %v5644_v11, 5  ;;  %v5659_v54 = vshrl.u32 %v18766_v31, 16  ;;  %v5650_v45 = vrot.slane %v5648_v36, 4 }
 0x23a   :  { %13871 = vmatpush3.bf16.msra.mxu1 %v18628_v24  ;;  %v6603_v24 = vor.u32 %v6602_v30, %v6599_v62  ;;  %v5637_v62 = vrot.slane %v5635_v61, 4  ;;  %v6614_v30 = vrot.slane %v6613_v48, 4  ;;  %v5640_v26 = vrot.slane %v5638_v38, 5 }
 0x23b   :  { %13872 = vmatprep.subr.bf16.mxu1 %v18670_v17  ;;  %v5662_v63 = vshll.u32 %v18766_v31, 16  ;;  %v5654_v61 = vshll.u32 %v18544_v6, 16  ;;  %v5661_v6 = vrot.slane %v5659_v54, 4  ;;  %v5674_v36 = vrot.slane %v5672_v7, 4 }
 0x23c   :  { %13887 = vmatpush3.bf16.msra.mxu0 %v18734_v25  ;;  %v6604_v53 = vrot.slane %v6603_v24, 4  ;;  %v5466_v24 = vsel %vm17178_vm14, %v12072_v8, %v5465_v0  ;;  %v6619_v48 = vsel %vm16855_vm7, %v6614_v30, %v6618_v40  ;;  %v5641_v38 = vor.u32 %v5640_v26, %v5637_v62  ;;  %v18821_v40 = vld [vmem:[%s21053_s4 + $0x68] sm:$0xff]  }
 0x23d   :  { %13888 = vmatprep.subr.bf16.mxu0 %v18758_v37  ;;  %v5664_v11 = vrot.slane %v5662_v63, 5  ;;  %v5656_v30 = vrot.slane %v5654_v61, 5  ;;  %v5678_v63 = vshll.u32 %v18558_v10, 16  ;;  %v18840_v10 = vld [vmem:[%s21053_s4 + $0x70] sm:$0xff]  }
 0x23e   :  { %13873 = vmatpush3.bf16.msra.mxu1 %v18670_v17  ;;  %v18774_v17 = vld [vmem:[%s21053_s4 + $0x58] sm:$0xff]   ;;  %v6609_v0 = vsel %vm16855_vm7, %v6604_v53, %v18737_v3  ;;  %v5642_v62 = vrot.slane %v5641_v38, 4  ;;  %v6634_v38 = vshrl.u32 %v18617_v5, 16 }
 0x23f   :  { %13874 = vmatprep.subr.bf16.mxu1 %v18695_v23  ;;  %13665 = vmatmul.mubr.bf16.gmra.mrb[36].mxu0 %v12039_v21  ;;  %v18797_v21 = vld [vmem:[%s21053_s4 + $0x60] sm:$0xff]   ;;  %v12098_v53 = vcombine.low %v6609_v0, %v6619_v48  ;;  %v5665_v54 = vor.u32 %v5664_v11, %v5661_v6  ;;  %v6621_v0 = vshrl.u32 %v18816_v9, 16  ;;  %v6630_v48 = vshll.u32 %v18617_v5, 16 }
 0x240   :  { %13889 = vmatpush3.bf16.msra.mxu0 %v18758_v37  ;;  %13900 = vmatprep.mubr.bf16.mxu0 %v12074_v34  ;;  %v18808_v34 = vrot.slane %v5668_v41, 5  ;;  %v18827_v41 = vld [vmem:[#allocation2 + $0xa8] sm:$0xf]  ;;  %v6654_v11 = vshll.u32 %v18630_v12, 16 }
 0x241   :  { %13890 = vmatprep.subr.bf16.mxu0 %v18774_v17  ;;  %v6645_v6 = vshrl.u32 %v18827_v41, 16  ;;  %v6623_v15 = vrot.slane %v6621_v0, 4  ;;  %v6672_v0 = vshll.u32 %v18855_v59, 16 }
 0x242   :  { %13875 = vmatpush3.bf16.msra.mxu1 %v18695_v23  ;;  %v18791_v23 = vld [vmem:[#allocation2 + $0x84] sm:$0xf] }
 0x243   :  { %14100 = vmatprep.subr.bf16.mxu1 %v18720_v39  ;;  %v5683_v8 = vshrl.u32 %v18791_v23, 16  ;;  %v5686_v3 = vshll.u32 %v18791_v23, 16 }
 0x244   :  { %13891 = vmatpush3.bf16.msra.mxu0 %v18774_v17 }
 0x245   :  { %13877 = vmatmul.mubr.bf16.vlgmr.msra.gmra.mrb[32].mxu1 %v21188_v33  ;;  %13892 = vmatprep.subr.bf16.mxu0 %v18797_v21  ;;  %v5651_v33 = vor.u32 %v5650_v45, %v18777_v43  ;;  %v5675_v45 = vor.u32 %v5674_v36, %v18808_v34  ;;  %v5685_v7 = vrot.slane %v5683_v8, 4  ;;  %v6658_v36 = vshrl.u32 %v18630_v12, 16 }
 0x246   :  { %13880 = vmatprep.mubr.bf16.mxu1 %v18416_v57  ;;  %14101 = vmatpush3.bf16.msra.mxu1 %v18720_v39  ;;  %v5696_v57 = vshrl.u32 %v18570_v2, 16  ;;  %v12073_v39 = vcombine.low %v5466_v24, %v5469_v27  ;;  %v5688_v24 = vrot.slane %v5686_v3, 5  ;;  %v18830_v27 = vrot.slane %v5692_v13, 5 }
 0x247   :  { %14102 = vmatprep.subr.bf16.mxu1 %v18734_v25  ;;  %v5652_v26 = vrot.slane %v5651_v33, 4  ;;  %v6648_v33 = vshll.u32 %v18827_v41, 16  ;;  %v5647_v8 = vsel %vm16855_vm7, %v5642_v62, %v18777_v43  ;;  %v5666_v13 = vrot.slane %v5665_v54, 4 }
 0x248   :  { %13893 = vmatpush3.bf16.msra.mxu0 %v18797_v21  ;;  %v5698_v61 = vrot.slane %v5696_v57, 4  ;;  %v5680_v57 = vrot.slane %v5678_v63, 5  ;;  %v5689_v49 = vor.u32 %v5688_v24, %v5685_v7  ;;  %v18859_v43 = vrot.slane %v6630_v48, 5 }
 0x249   :  { %13894 = vmatprep.subr.bf16.mxu0 %v18821_v40  ;;  %v5657_v3 = vsel %vm16855_vm7, %v5652_v26, %v5656_v30  ;;  %v6636_v62 = vrot.slane %v6634_v38, 4  ;;  %v18864_v30 = vld [vmem:[%s21053_s4 + $0x78] sm:$0xff]   ;;  %v6647_v26 = vrot.slane %v6645_v6, 4  ;;  %v6650_v16 = vrot.slane %v6648_v33, 5 }
 0x24a   :  { %14103 = vmatpush3.bf16.msra.mxu1 %v18734_v25  ;;  %v6624_v25 = vshll.u32 %v18816_v9, 16  ;;  %v18867_v54 = vrot.slane %v6654_v11, 5  ;;  %v18870_v63 = vcombine.low %v5647_v8, %v5657_v3  ;;  %v5671_v7 = vsel %vm16855_vm7, %v5666_v13, %v18808_v34  ;;  %v18887_v11 = vld [vmem:[%s21053_s4] sm:$0xff]  }
 0x24b   :  { %14104 = vmatprep.subr.bf16.mxu1 %v18758_v37  ;;  %v6669_v24 = vshrl.u32 %v18855_v59, 16  ;;  %v6678_v48 = vshll.u32 %v18675_v52, 16  ;;  %v5690_v38 = vrot.slane %v5689_v49, 4  ;;  %v6640_v34 = vshll.u32 %v18594_v20, 16 }
 0x24c   :  { %13895 = vmatpush3.bf16.msra.mxu0 %v18821_v40  ;;  %v6664_v3 = vshll.u32 %v18611_v28, 16  ;;  %v6674_v20 = vrot.slane %v6672_v0, 5  ;;  %v7561_v0 = vld [vmem:[#allocation2 + $0xe8] sm:$0xf] }
 0x24d   :  { %13881 = vmatmul.mubr.bf16.gmra.mrb[36].mxu1 %v12073_v39  ;;  %13896 = vmatprep.subr.bf16.mxu0 %v18840_v10  ;;  %v5676_v39 = vrot.slane %v5675_v45, 4  ;;  %v6660_v45 = vrot.slane %v6658_v36, 4  ;;  %v6651_v36 = vor.u32 %v6650_v16, %v6647_v26  ;;  %v18898_v13 = vrot.slane %v6678_v48, 5 }
 0x24e   :  { %14105 = vmatpush3.bf16.msra.mxu1 %v18758_v37  ;;  %14116 = vmatprep.mubr.bf16.mxu1 %v12098_v53  ;;  %v5699_v37 = vor.u32 %v5698_v61, %v18830_v27  ;;  %v6626_v53 = vrot.slane %v6624_v25, 5  ;;  %v5704_v25 = vrot.slane %v5702_v18, 5  ;;  %v6637_v18 = vor.u32 %v6636_v62, %v18859_v43  ;;  %v18910_v62 = vld [vmem:[%s21053_s4 + $0x8] sm:$0xff]  }
 0x24f   :  { %14106 = vmatprep.subr.bf16.mxu1 %v18774_v17  ;;  %v5681_v61 = vsel %vm16855_vm7, %v5676_v39, %v5680_v57  ;;  %v6661_v8 = vor.u32 %v6660_v45, %v18867_v54  ;;  %v5695_v28 = vsel %vm16855_vm7, %v5690_v38, %v18830_v27  ;;  %v6652_v16 = vrot.slane %v6651_v36, 4  ;;  %v7571_v36 = vld [vmem:[#allocation2 + $0xec] sm:$0x1] }
 0x250   :  { %13897 = vmatpush3.bf16.msra.mxu0 %v18840_v10  ;;  %v5700_v6 = vrot.slane %v5699_v37, 4  ;;  %v6627_v33 = vor.u32 %v6626_v53, %v6623_v15  ;;  %v18894_v49 = vcombine.low %v5671_v7, %v5681_v61  ;;  %v6671_v15 = vrot.slane %v6669_v24, 4  ;;  %v7577_v53 = vld [vmem:[#allocation2 + $0xe4] sm:$0xe] }
 0x251   :  { %13898 = vmatprep.subr.bf16.mxu0 %v18864_v30  ;;  %v6642_v37 = vrot.slane %v6640_v34, 5  ;;  %v6638_v26 = vrot.slane %v6637_v18, 4  ;;  %v6662_v45 = vrot.slane %v6661_v8, 4  ;;  %v6666_v7 = vrot.slane %v6664_v3, 5  ;;  %v7578_v8 = vld [vmem:[#allocation2 + $0xf0] sm:$0xe] }
 0x252   :  { %14107 = vmatpush3.bf16.msra.mxu1 %v18774_v17  ;;  %v6682_v17 = vshrl.u32 %v18675_v52, 16  ;;  %v6628_v39 = vrot.slane %v6627_v33, 4  ;;  %v6675_v27 = vor.u32 %v6674_v20, %v6671_v15  ;;  %v6688_v24 = vshll.u32 %v18647_v58, 16  ;;  %v8555_v33 = vld [vmem:[#allocation2 + $0x110] sm:$0x1] }
 0x253   :  { %14108 = vmatprep.subr.bf16.mxu1 %v18797_v21  ;;  %v12131_v48 = vrot.slane %v7577_v53, 9  ;;  %v18925_v58 = vld [vmem:[%s21053_s4 + $0x10] sm:$0xff]   ;;  %v6643_v34 = vsel %vm16855_vm7, %v6638_v26, %v6642_v37  ;;  %v6657_v18 = vsel %vm16855_vm7, %v6652_v16, %v18867_v54  ;;  %v7579_v37 = vld [vmem:[#allocation2 + $0xfc] sm:$0xe]  ;;  %v7868_v16 = vrot.slane %v7571_v36, 5 }
 0x254   :  { %13899 = vmatpush3.bf16.msra.mxu0 %v18864_v30  ;;  %v6684_v57 = vrot.slane %v6682_v17, 4  ;;  %v7865_v17 = vrot.slane %v7561_v0, 5  ;;  %v18939_v3 = vrot.slane %v6675_v27, 4  ;;  %v18941_v15 = vrot.slane %v6688_v24, 5  ;;  %v18959_v27 = vld [vmem:[%s21053_s4 + $0x18] sm:$0xff]  }
 0x255   :  { %13908 = vmatprep.subr.bf16.mxu0 %v18887_v11  ;;  %v7565_v24 = vld [vmem:[#allocation2 + $0x100] sm:$0xf]  ;;  %v8556_v36 = vld [vmem:[#allocation2 + $0x11c] sm:$0x1] }
 0x256   :  { %14109 = vmatpush3.bf16.msra.mxu1 %v18797_v21  ;;  %v5705_v21 = vsel %vm16855_vm7, %v5700_v6, %v5704_v25  ;;  %v6685_v61 = vor.u32 %v6684_v57, %v18898_v13  ;;  %v8561_v25 = vld [vmem:[#allocation2 + $0x108] sm:$0xe]  ;;  %v12078_v6 = vcombine.low %v18638_v19, %v18532_v51  ;;  %v6667_v51 = vsel %vm16855_vm7, %v6662_v45, %v6666_v7  ;;  %v8544_v19 = vld [vmem:[#allocation2 + $0x10c] sm:$0xf] }
 0x257   :  { %14110 = vmatprep.subr.bf16.mxu1 %v18821_v40  ;;  %13901 = vmatmul.mubr.bf16.vlgmr.msra.gmra.mrb[40].mxu0 %v18870_v63  ;;  %v18918_v38 = vcombine.low %v5695_v28, %v5705_v21  ;;  %v12154_v20 = vrot.slane %v8561_v25, 9  ;;  %v8843_v57 = vrot.slane %v8544_v19, 5  ;;  %v8846_v28 = vrot.slane %v8555_v33, 5  ;;  %v7573_v25 = vld [vmem:[#allocation2 + $0x104] sm:$0x1] }
 0x258   :  { %13904 = vmatprep.mubr.bf16.mxu0 %v18894_v49  ;;  %13909 = vmatpush3.bf16.msra.mxu0 %v18887_v11  ;;  %v18945_v54 = vrot.slane %v6685_v61, 4  ;;  %v7866_v21 = vsel %vm17178_vm14, %v12131_v48, %v7865_v17  ;;  %v12132_v45 = vrot.slane %v7578_v8, 9  ;;  %v7879_v33 = vrot.slane %v7565_v24, 5  ;;  %v8546_v19 = vld [vmem:[#allocation2 + $0x118] sm:$0xf] }
 0x259   :  { %13910 = vmatprep.subr.bf16.mxu0 %v18910_v62  ;;  %v18952_v53 = vsel %vm17178_vm14, %v12154_v20, %v8843_v57  ;;  %v8845_v26 = vrot.slane %v8843_v57, 4  ;;  %v8563_v20 = vld [vmem:[#allocation2 + $0x120] sm:$0xe]  ;;  %v8557_v57 = vld [vmem:[#allocation2 + $0x128] sm:$0x1] }
 0x25a   :  { %14111 = vmatpush3.bf16.msra.mxu1 %v18821_v40  ;;  %v6633_v40 = vsel %vm16855_vm7, %v6628_v39, %v18859_v43  ;;  %v7572_v43 = vld [vmem:[#allocation2 + $0xf8] sm:$0x1]  ;;  %v7867_v39 = vrot.slane %v7865_v17, 4 }
 0x25b   :  { %14112 = vmatprep.subr.bf16.mxu1 %v18840_v10  ;;  %v18954_v7 = vcombine.low %v6633_v40, %v6643_v34  ;;  %v7875_v61 = vrot.slane %v7572_v43, 5  ;;  %v18965_v48 = vsel %vm17178_vm14, %v8845_v26, %v8846_v28  ;;  %v8562_v40 = vld [vmem:[#allocation2 + $0x114] sm:$0xe]  ;;  %v18970_v34 = vcombine.low %v6657_v18, %v6667_v51  ;;  %v8548_v51 = vld [vmem:[#allocation2 + $0x124] sm:$0xf] }
 0x25c   :  { %13911 = vmatpush3.bf16.msra.mxu0 %v18910_v62  ;;  %v7869_v17 = vsel %vm17178_vm14, %v7867_v39, %v7868_v16  ;;  %v6691_v18 = vsel %vm16855_vm7, %v18945_v54, %v18941_v15  ;;  %v8558_v39 = vld [vmem:[#allocation2 + $0x134] sm:$0x1]  ;;  %v12155_v15 = vrot.slane %v8562_v40, 9  ;;  %v8850_v54 = vrot.slane %v8546_v19, 5 }
 0x25d   :  { %13912 = vmatprep.subr.bf16.mxu0 %v18925_v58  ;;  %v18978_v43 = vcombine.low %v7866_v21, %v7869_v17  ;;  %v15958_v21 = vld [vmem:[%s21053_s4 + $0x20] sm:$0xff]   ;;  %v8853_v16 = vrot.slane %v8556_v36, 5  ;;  %v8857_v24 = vrot.slane %v8548_v51, 5  ;;  %v8860_v36 = vrot.slane %v8557_v57, 5 }
 0x25e   :  { %14113 = vmatpush3.bf16.msra.mxu1 %v18840_v10  ;;  %v7563_v10 = vld [vmem:[#allocation2 + $0xf4] sm:$0xf] }
 0x25f   :  { %14114 = vmatprep.subr.bf16.mxu1 %v18864_v30  ;;  %13905 = vmatmul.mubr.bf16.gmra.mrb[44].mxu0 %v18918_v38  ;;  %v7872_v0 = vrot.slane %v7563_v10, 5  ;;  %v7882_v10 = vrot.slane %v7573_v25, 5  ;;  %v8859_v19 = vrot.slane %v8857_v24, 4 }
 0x260   :  { %13913 = vmatpush3.bf16.msra.mxu0 %v18925_v58  ;;  %13924 = vmatprep.mubr.bf16.mxu0 %v12078_v6  ;;  %v12133_v6 = vrot.slane %v7579_v37, 9  ;;  %v7881_v37 = vrot.slane %v7879_v33, 4 }
 0x261   :  { %13914 = vmatprep.subr.bf16.mxu0 %v18959_v27 }
 0x262   :  { %14115 = vmatpush3.bf16.msra.mxu1 %v18864_v30  ;;  %v6681_v30 = vsel %vm16855_vm7, %v18939_v3, %v18898_v13  ;;  %v7873_v13 = vsel %vm17178_vm14, %v12132_v45, %v7872_v0  ;;  %v7874_v3 = vrot.slane %v7872_v0, 4  ;;  %v7880_v28 = vsel %vm17178_vm14, %v12133_v6, %v7879_v33  ;;  %v8564_v0 = vld [vmem:[#allocation2 + $0x12c] sm:$0xe] }
 0x263   :  { %14124 = vmatprep.subr.bf16.mxu1 %v18887_v11  ;;  %v12156_v45 = vrot.slane %v8563_v20, 9  ;;  %v7883_v25 = vsel %vm17178_vm14, %v7881_v37, %v7882_v10  ;;  %v8851_v6 = vsel %vm17178_vm14, %v12155_v15, %v8850_v54  ;;  %v8852_v33 = vrot.slane %v8850_v54, 4  ;;  %v15959_v20 = vld [vmem:[%s21053_s4 + $0x28] sm:$0xff]  }
 0x264   :  { %13915 = vmatpush3.bf16.msra.mxu0 %v18959_v27  ;;  %v7876_v26 = vsel %vm17178_vm14, %v7874_v3, %v7875_v61  ;;  %v19004_v40 = vcombine.low %v7880_v28, %v7883_v25  ;;  %v8867_v37 = vrot.slane %v8558_v39, 5  ;;  %v8861_v10 = vsel %vm17178_vm14, %v8859_v19, %v8860_v36  ;;  %v21195_v25 = vld [vmem:[#allocation18_spill] sm:$0xff] }
 0x265   :  { %14117 = vmatmul.mubr.bf16.vlgmr.msra.gmra.mrb[40].mxu1 %v18954_v7  ;;  %13916 = vmatprep.subr.bf16.mxu0 %v15958_v21  ;;  %v18998_v17 = vcombine.low %v7873_v13, %v7876_v26  ;;  %v8858_v61 = vsel %vm17178_vm14, %v12156_v45, %v8857_v24  ;;  %v8854_v51 = vsel %vm17178_vm14, %v8852_v33, %v8853_v16  ;;  %v12157_v13 = vrot.slane %v8564_v0, 9  ;;  %v9547_v45 = vld [vmem:[#allocation2 + $0x138] sm:$0xe]  ;;  %v19129_v24 = vld [vmem:[%s21053_s4 + $0xe0] sm:$0xff]   ;;  %v10533_v0 = vld [vmem:[#allocation2 + $0x168] sm:$0xe] }
 0x266   :  { %14120 = vmatprep.mubr.bf16.mxu1 %v18970_v34  ;;  %14125 = vmatpush3.bf16.msra.mxu1 %v18887_v11  ;;  %v8550_v11 = vld [vmem:[#allocation2 + $0x130] sm:$0xf]  ;;  %v19014_v28 = vcombine.low %v8851_v6, %v8854_v51  ;;  %v19018_v15 = vcombine.low %v6681_v30, %v6691_v18  ;;  %v19021_v57 = vcombine.low %v8858_v61, %v8861_v10  ;;  %v9530_v6 = vld [vmem:[#allocation2 + $0x13c] sm:$0xf]  ;;  %v9532_v61 = vld [vmem:[#allocation2 + $0x148] sm:$0xf] }
 0x267   :  { %14126 = vmatprep.subr.bf16.mxu1 %v18910_v62  ;;  %v8864_v3 = vrot.slane %v8550_v11, 5  ;;  %v12102_v39 = vcombine.low %v18708_v60, %v18534_v42  ;;  %v15961_v42 = vld [vmem:[%s21053_s4 + $0x38] sm:$0xff]   ;;  %v19043_v60 = vcombine.low %v18739_v29, %v18542_v44  ;;  %v19050_v16 = vcombine.low %v18766_v31, %v18568_v47  ;;  %v15963_v44 = vld [vmem:[%s21053_s4 + $0x88] sm:$0xff]   ;;  %v15964_v47 = vld [vmem:[%s21053_s4 + $0x90] sm:$0xff]  }
 0x268   :  { %13917 = vmatpush3.bf16.msra.mxu0 %v15958_v21  ;;  %v19059_v29 = vcombine.low %v18791_v23, %v18570_v2  ;;  %v21193_v31 = vcombine.low %v18562_v32, %v18585_v50  ;;  %v19073_v2 = vcombine.low %v18816_v9, %v18617_v5  ;;  %v19077_v23 = vcombine.low %v18827_v41, %v18630_v12  ;;  %v15966_v32 = vld [vmem:[%s21053_s4 + $0xa0] sm:$0xff]   ;;  %v15967_v50 = vld [vmem:[%s21053_s4 + $0xa8] sm:$0xff]   ;;  %v15968_v12 = vld [vmem:[%s21053_s4 + $0xb0] sm:$0xff]  }
 0x269   :  { %13918 = vmatprep.subr.bf16.mxu0 %v15959_v20  ;;  %v8865_v54 = vsel %vm17178_vm14, %v12157_v13, %v8864_v3  ;;  %v8866_v26 = vrot.slane %v8864_v3, 4  ;;  %v19089_v5 = vcombine.low %v18855_v59, %v18675_v52  ;;  %v21194_v9 = vcombine.low %v18576_v1, %v18600_v14  ;;  %v15969_v52 = vld [vmem:[%s21053_s4 + $0xb8] sm:$0xff]   ;;  %v15970_v59 = vld [vmem:[%s21053_s4 + $0xc0] sm:$0xff]   ;;  %v15971_v1 = vld [vmem:[%s21053_s4 + $0xc8] sm:$0xff]  }
 0x26a   :  { %14127 = vmatpush3.bf16.msra.mxu1 %v18910_v62  ;;  %v15960_v62 = vld [vmem:[%s21053_s4 + $0x30] sm:$0xff]   ;;  %v19121_v41 = vld [vmem:[%s21053_s4 + $0xd8] sm:$0xff]   ;;  %v9542_v11 = vld [vmem:[#allocation2 + $0x14c] sm:$0x1]  ;;  %v12178_v19 = vrot.slane %v9547_v45, 9  ;;  %v9829_v36 = vrot.slane %v9530_v6, 5 }
 0x26b   :  { %14128 = vmatprep.subr.bf16.mxu1 %v18925_v58  ;;  %v8868_v30 = vsel %vm17178_vm14, %v8866_v26, %v8867_v37  ;;  %v19112_v14 = vld [vmem:[%s21053_s4 + $0xd0] sm:$0xff]   ;;  %v9548_v51 = vld [vmem:[#allocation2 + $0x144] sm:$0xe]  ;;  %v10516_v13 = vld [vmem:[#allocation2 + $0x16c] sm:$0xf]  ;;  %v12202_v37 = vrot.slane %v10533_v0, 9 }
 0x26c   :  { %13919 = vmatpush3.bf16.msra.mxu0 %v15959_v20  ;;  %v19034_v18 = vcombine.low %v8865_v54, %v8868_v30  ;;  %v10527_v33 = vld [vmem:[#allocation2 + $0x170] sm:$0x1]  ;;  %v9543_v3 = vld [vmem:[#allocation2 + $0x158] sm:$0x1]  ;;  %v19137_v10 = vld [vmem:[%s21053_s4 + $0xe8] sm:$0xff]   ;;  %v19142_v54 = vsel %vm17178_vm14, %v12178_v19, %v9829_v36  ;;  %v9831_v26 = vrot.slane %v9829_v36, 4 }
 0x26d   :  { %14121 = vmatmul.mubr.bf16.gmra.mrb[44].mxu1 %v19018_v15  ;;  %13920 = vmatprep.subr.bf16.mxu0 %v15960_v62  ;;  %v9549_v30 = vld [vmem:[#allocation2 + $0x150] sm:$0xe]  ;;  %v21197_v45 = vld [vmem:[#allocation17_spill] sm:$0xff]  ;;  %v10529_v36 = vld [vmem:[#allocation2 + $0x188] sm:$0x1] }
 0x26e   :  { %14129 = vmatpush3.bf16.msra.mxu1 %v18925_v58  ;;  %14140 = vmatprep.mubr.bf16.mxu1 %v12102_v39  ;;  %v15962_v58 = vld [vmem:[%s21053_s4 + $0x80] sm:$0xff]   ;;  %v10815_v39 = vrot.slane %v10516_v13, 5  ;;  %v19162_v0 = vld [vmem:[%s21053_s4 + $0xf0] sm:$0xff]  }
 0x26f   :  { %14130 = vmatprep.subr.bf16.mxu1 %v18959_v27  ;;  %v9536_v6 = vld [vmem:[#allocation2 + $0x160] sm:$0xf] }
 0x270   :  { %13921 = vmatpush3.bf16.msra.mxu0 %v15960_v62  ;;  %v9850_v13 = vrot.slane %v9536_v6, 5 }
 0x271   :  { %13922 = vmatprep.subr.bf16.mxu0 %v15961_v42 }
 0x272   :  { %14131 = vmatpush3.bf16.msra.mxu1 %v18959_v27  ;;  %v15965_v27 = vld [vmem:[%s21053_s4 + $0x98] sm:$0xff]  }
 0x273   :  { %14132 = vmatprep.subr.bf16.mxu1 %v15958_v21 }
 0x274   :  { %13923 = vmatpush3.bf16.msra.mxu0 %v15961_v42 }
 0x275   :  { %13932 = vmatprep.subr.bf16.mxu0 %v15962_v58 }
 0x276   :  { %14133 = vmatpush3.bf16.msra.mxu1 %v15958_v21  ;;  %v9541_v21 = vld [vmem:[#allocation2 + $0x140] sm:$0x1] }
 0x277   :  { %14134 = vmatprep.subr.bf16.mxu1 %v15959_v20  ;;  %13925 = vmatmul.mubr.bf16.vlgmr.msra.gmra.mrb[40].mxu0 %v19043_v60 }
 0x278   :  { %13928 = vmatprep.mubr.bf16.mxu0 %v19050_v16  ;;  %13933 = vmatpush3.bf16.msra.mxu0 %v15962_v58 }
 0x279   :  { %13934 = vmatprep.subr.bf16.mxu0 %v15963_v44 }
 0x27a   :  { %14135 = vmatpush3.bf16.msra.mxu1 %v15959_v20  ;;  %v9832_v20 = vrot.slane %v9541_v21, 5  ;;  %v10534_v21 = vld [vmem:[#allocation2 + $0x174] sm:$0xe] }
 0x27b   :  { %14136 = vmatprep.subr.bf16.mxu1 %v15960_v62 }
 0x27c   :  { %13935 = vmatpush3.bf16.msra.mxu0 %v15963_v44 }
 0x27d   :  { %13936 = vmatprep.subr.bf16.mxu0 %v15964_v47 }
 0x27e   :  { %14137 = vmatpush3.bf16.msra.mxu1 %v15960_v62  ;;  %v10818_v62 = vrot.slane %v10527_v33, 5 }
 0x27f   :  { %14138 = vmatprep.subr.bf16.mxu1 %v15961_v42  ;;  %13929 = vmatmul.mubr.bf16.gmra.mrb[44].mxu0 %v19059_v29 }
 0x280   :  { %13937 = vmatpush3.bf16.msra.mxu0 %v15964_v47  ;;  %13948 = vmatprep.mubr.bf16.mxu0 %v21193_v31  ;;  %v9544_v31 = vld [vmem:[#allocation2 + $0x164] sm:$0x1] }
 0x281   :  { %13938 = vmatprep.subr.bf16.mxu0 %v15965_v27 }
 0x282   :  { %14139 = vmatpush3.bf16.msra.mxu1 %v15961_v42  ;;  %v12179_v42 = vrot.slane %v9548_v51, 9 }
 0x283   :  { %14148 = vmatprep.subr.bf16.mxu1 %v15962_v58 }
 0x284   :  { %13939 = vmatpush3.bf16.msra.mxu0 %v15965_v27 }
 0x285   :  { %14141 = vmatmul.mubr.bf16.vlgmr.msra.gmra.mrb[40].mxu1 %v19073_v2  ;;  %13940 = vmatprep.subr.bf16.mxu0 %v15966_v32 }
 0x286   :  { %14144 = vmatprep.mubr.bf16.mxu1 %v19077_v23  ;;  %14149 = vmatpush3.bf16.msra.mxu1 %v15962_v58  ;;  %v9839_v58 = vrot.slane %v9542_v11, 5 }
 0x287   :  { %14150 = vmatprep.subr.bf16.mxu1 %v15963_v44 }
 0x288   :  { %13941 = vmatpush3.bf16.msra.mxu0 %v15966_v32 }
 0x289   :  { %13942 = vmatprep.subr.bf16.mxu0 %v15967_v50 }
 0x28a   :  { %14151 = vmatpush3.bf16.msra.mxu1 %v15963_v44  ;;  %v9550_v44 = vld [vmem:[#allocation2 + $0x15c] sm:$0xe] }
 0x28b   :  { %14152 = vmatprep.subr.bf16.mxu1 %v15964_v47  ;;  %v12181_v19 = vrot.slane %v9550_v44, 9 }
 0x28c   :  { %13943 = vmatpush3.bf16.msra.mxu0 %v15967_v50 }
 0x28d   :  { %14145 = vmatmul.mubr.bf16.gmra.mrb[44].mxu1 %v19089_v5  ;;  %13944 = vmatprep.subr.bf16.mxu0 %v15968_v12 }
 0x28e   :  { %14153 = vmatpush3.bf16.msra.mxu1 %v15964_v47  ;;  %14164 = vmatprep.mubr.bf16.mxu1 %v21194_v9  ;;  %v9534_v47 = vld [vmem:[#allocation2 + $0x154] sm:$0xf] }
 0x28f   :  { %14154 = vmatprep.subr.bf16.mxu1 %v15965_v27  ;;  %v9843_v11 = vrot.slane %v9534_v47, 5  ;;  %v10536_v47 = vld [vmem:[#allocation2 + $0x18c] sm:$0xe] }
 0x290   :  { %13945 = vmatpush3.bf16.msra.mxu0 %v15968_v12 }
 0x291   :  { %13946 = vmatprep.subr.bf16.mxu0 %v15969_v52 }
 0x292   :  { %14155 = vmatpush3.bf16.msra.mxu1 %v15965_v27  ;;  %v19147_v27 = vsel %vm17178_vm14, %v9831_v26, %v9832_v20  ;;  %v10535_v26 = vld [vmem:[#allocation2 + $0x180] sm:$0xe] }
 0x293   :  { %14156 = vmatprep.subr.bf16.mxu1 %v15966_v32 }
 0x294   :  { %13947 = vmatpush3.bf16.msra.mxu0 %v15969_v52 }
 0x295   :  { %13956 = vmatprep.subr.bf16.mxu0 %v15970_v59 }
 0x296   :  { %14157 = vmatpush3.bf16.msra.mxu1 %v15966_v32  ;;  %v19151_v32 = vsel %vm17178_vm14, %v12202_v37, %v10815_v39  ;;  %v9853_v37 = vrot.slane %v9544_v31, 5  ;;  %v15977_v31 = vld [vmem:[%s21053_s4 + $0xf8] sm:$0xff]  }
 0x297   :  { %14158 = vmatprep.subr.bf16.mxu1 %v15967_v50  ;;  %13949 = vmatmul.mubr.bf16.vlgmr.msra.gmra.mrb[40].mxu0 %v18619_v55  ;;  %21196 = vst [vmem:[#allocation19_spill] sm:$0xff] %v19151_v32 }
 0x298   :  { %13952 = vmatprep.mubr.bf16.mxu0 %v18649_v46  ;;  %13957 = vmatpush3.bf16.msra.mxu0 %v15970_v59 }
 0x299   :  { %13958 = vmatprep.subr.bf16.mxu0 %v15971_v1 }
 0x29a   :  { %14159 = vmatpush3.bf16.msra.mxu1 %v15967_v50  ;;  %v10817_v50 = vrot.slane %v10815_v39, 4  ;;  %v10518_v39 = vld [vmem:[#allocation2 + $0x178] sm:$0xf] }
 0x29b   :  { %14160 = vmatprep.subr.bf16.mxu1 %v15968_v12 }
 0x29c   :  { %13959 = vmatpush3.bf16.msra.mxu0 %v15971_v1  ;;  %v19167_v33 = vsel %vm17178_vm14, %v10817_v50, %v10818_v62  ;;  %v10520_v62 = vld [vmem:[#allocation2 + $0x184] sm:$0xf]  ;;  %v10530_v50 = vld [vmem:[#allocation2 + $0x194] sm:$0x1] }
 0x29d   :  { %13960 = vmatprep.subr.bf16.mxu0 %v19112_v14  ;;  %21198 = vst [vmem:[#allocation20_spill] sm:$0xff] %v19167_v33 }
 0x29e   :  { %14161 = vmatpush3.bf16.msra.mxu1 %v15968_v12  ;;  %v10528_v12 = vld [vmem:[#allocation2 + $0x17c] sm:$0x1] }
 0x29f   :  { %14162 = vmatprep.subr.bf16.mxu1 %v15969_v52  ;;  %13953 = vmatmul.mubr.bf16.gmra.mrb[44].mxu0 %v18651_v56  ;;  %v10825_v44 = vrot.slane %v10528_v12, 5 }
 0x2a0   :  { %13961 = vmatpush3.bf16.msra.mxu0 %v19112_v14  ;;  %13972 = vmatprep.mubr.bf16.mxu0 %v19043_v60  ;;  %v9836_v60 = vrot.slane %v9532_v61, 5  ;;  %v9846_v61 = vrot.slane %v9543_v3, 5 }
 0x2a1   :  { %13962 = vmatprep.subr.bf16.mxu0 %v19121_v41 }
 0x2a2   :  { %14163 = vmatpush3.bf16.msra.mxu1 %v15969_v52  ;;  %v9837_v52 = vsel %vm17178_vm14, %v12179_v42, %v9836_v60  ;;  %v9851_v42 = vsel %vm17178_vm14, %v12181_v19, %v9850_v13 }
 0x2a3   :  { %14172 = vmatprep.subr.bf16.mxu1 %v15970_v59 }
 0x2a4   :  { %13963 = vmatpush3.bf16.msra.mxu0 %v19121_v41 }
 0x2a5   :  { %14165 = vmatmul.mubr.bf16.vlgmr.msra.gmra.mrb[40].mxu1 %v18680_v35  ;;  %13964 = vmatprep.subr.bf16.mxu0 %v19129_v24 }
 0x2a6   :  { %14168 = vmatprep.mubr.bf16.mxu1 %v21195_v25  ;;  %14173 = vmatpush3.bf16.msra.mxu1 %v15970_v59  ;;  %v9838_v59 = vrot.slane %v9836_v60, 4  ;;  %v9852_v60 = vrot.slane %v9850_v13, 4 }
 0x2a7   :  { %14174 = vmatprep.subr.bf16.mxu1 %v15971_v1 }
 0x2a8   :  { %13965 = vmatpush3.bf16.msra.mxu0 %v19129_v24  ;;  %v9840_v51 = vsel %vm17178_vm14, %v9838_v59, %v9839_v58  ;;  %v10822_v58 = vrot.slane %v10518_v39, 5  ;;  %v12204_v59 = vrot.slane %v10535_v26, 9  ;;  %v9854_v12 = vsel %vm17178_vm14, %v9852_v60, %v9853_v37 }
 0x2a9   :  { %13966 = vmatprep.subr.bf16.mxu0 %v19137_v10  ;;  %v19176_v3 = vcombine.low %v9837_v52, %v9840_v51  ;;  %v10522_v51 = vld [vmem:[#allocation2 + $0x190] sm:$0xf]  ;;  %v19196_v13 = vcombine.low %v9851_v42, %v9854_v12  ;;  %v12205_v26 = vrot.slane %v10536_v47, 9  ;;  %v10839_v37 = vrot.slane %v10530_v50, 5  ;;  %v19226_v50 = vld [vmem:[#allocation2 + $0x94] sm:$0xf] }
 0x2aa   :  { %14175 = vmatpush3.bf16.msra.mxu1 %v15971_v1  ;;  %v12180_v1 = vrot.slane %v9549_v30, 9  ;;  %v12203_v30 = vrot.slane %v10534_v21, 9  ;;  %v10832_v21 = vrot.slane %v10529_v36, 5  ;;  %v10824_v19 = vrot.slane %v10822_v58, 4  ;;  %v5594_v47 = vld [vmem:[#allocation2 + $0x90] sm:$0xf] }
 0x2ab   :  { %14176 = vmatprep.subr.bf16.mxu1 %v19112_v14  ;;  %21199 = vst [vmem:[#allocation21_spill] sm:$0xff] %v19176_v3  ;;  %21201 = vst [vmem:[#allocation7_spill] sm:$0xff] %v19196_v13  ;;  %v10836_v39 = vrot.slane %v10522_v51, 5  ;;  %v6580_v12 = vld [vmem:[#allocation2 + $0xc0] sm:$0xf] }
 0x2ac   :  { %13967 = vmatpush3.bf16.msra.mxu0 %v19137_v10 }
 0x2ad   :  { %14169 = vmatmul.mubr.bf16.gmra.mrb[44].mxu1 %v21197_v45  ;;  %13968 = vmatprep.subr.bf16.mxu0 %v19162_v0  ;;  %v10837_v42 = vsel %vm17178_vm14, %v12205_v26, %v10836_v39  ;;  %v10838_v60 = vrot.slane %v10836_v39, 4 }
 0x2ae   :  { %14177 = vmatpush3.bf16.msra.mxu1 %v19112_v14  ;;  %14188 = vmatprep.mubr.bf16.mxu1 %v19073_v2  ;;  %v9844_v14 = vsel %vm17178_vm14, %v12180_v1, %v9843_v11  ;;  %v9845_v2 = vrot.slane %v9843_v11, 4  ;;  %v10829_v1 = vrot.slane %v10520_v62, 5  ;;  %v10823_v11 = vsel %vm17178_vm14, %v12203_v30, %v10822_v58  ;;  %v15978_v62 = vld [vmem:[%s21053_s4 + $0x100] sm:$0xff]  }
 0x2af   :  { %14178 = vmatprep.subr.bf16.mxu1 %v19121_v41  ;;  %v10840_v58 = vsel %vm17178_vm14, %v10838_v60, %v10839_v37  ;;  %v19260_v37 = vld [vmem:[#allocation2 + $0x98] sm:$0x1] }
 0x2b0   :  { %13969 = vmatpush3.bf16.msra.mxu0 %v19162_v0  ;;  %v9847_v52 = vsel %vm17178_vm14, %v9845_v2, %v9846_v61  ;;  %v10830_v61 = vsel %vm17178_vm14, %v12204_v59, %v10829_v1  ;;  %v10831_v36 = vrot.slane %v10829_v1, 4  ;;  %v15980_v59 = vld [vmem:[%s21053_s4 + $0x110] sm:$0xff]   ;;  %v6084_v1 = vshll.u32 %v5594_v47, 16 }
 0x2b1   :  { %13970 = vmatprep.subr.bf16.mxu0 %v15977_v31  ;;  %v19189_v6 = vcombine.low %v9844_v14, %v9847_v52  ;;  %v19229_v52 = vcombine.low %v5594_v47, %v19226_v50  ;;  %v6100_v60 = vshll.u32 %v19260_v37, 16 }
 0x2b2   :  { %14179 = vmatpush3.bf16.msra.mxu1 %v19121_v41  ;;  %v10826_v41 = vsel %vm17178_vm14, %v10824_v19, %v10825_v44  ;;  %v10833_v2 = vsel %vm17178_vm14, %v10831_v36, %v10832_v21  ;;  %v19222_v44 = vcombine.low %v10837_v42, %v10840_v58  ;;  %v6094_v21 = vshrl.u32 %v19226_v50, 16 }
 0x2b3   :  { %21200 = vst [vmem:[#allocation6_spill] sm:$0xff] %v19189_v6  ;;  %14180 = vmatprep.subr.bf16.mxu1 %v19129_v24  ;;  %v19205_v14 = vcombine.low %v10823_v11, %v10826_v41  ;;  %v19210_v30 = vcombine.low %v10830_v61, %v10833_v2  ;;  %v19249_v11 = vld [vmem:[#allocation2 + $0xc4] sm:$0xf]  ;;  %v6090_v19 = vshll.u32 %v19226_v50, 16  ;;  %v15984_v61 = vld [vmem:[%s21053_s4 + $0x130] sm:$0xff]   ;;  %v6086_v26 = vrot.slane %v6084_v1, 5 }
 0x2b4   :  { %13971 = vmatpush3.bf16.msra.mxu0 %v15977_v31  ;;  %21204 = vst [vmem:[#allocation9_spill] sm:$0xff] %v19222_v44  ;;  %v19253_v51 = vcombine.low %v6580_v12, %v19249_v11  ;;  %v6096_v39 = vrot.slane %v6094_v21, 4  ;;  %v7076_v1 = vshll.u32 %v19249_v11, 16  ;;  %v15987_v21 = vld [vmem:[%s21053_s4 + $0x148] sm:$0xff]  }
 0x2b5   :  { %13980 = vmatprep.subr.bf16.mxu0 %v15978_v62  ;;  %21202 = vst [vmem:[#allocation24_spill] sm:$0xff] %v19205_v14  ;;  %21203 = vst [vmem:[#allocation22_spill] sm:$0xff] %v19210_v30  ;;  %v6092_v41 = vrot.slane %v6090_v19, 5 }
 0x2b6   :  { %14181 = vmatpush3.bf16.msra.mxu1 %v19129_v24  ;;  %v15979_v24 = vld [vmem:[%s21053_s4 + $0x108] sm:$0xff]  }
 0x2b7   :  { %14182 = vmatprep.subr.bf16.mxu1 %v19137_v10  ;;  %13973 = vmatmul.mubr.bf16.vlgmr.msra.gmra.mrb[40].mxu0 %v19050_v16  ;;  %v6097_v42 = vor.u32 %v6096_v39, %v6092_v41 }
 0x2b8   :  { %13976 = vmatprep.mubr.bf16.mxu0 %v19059_v29  ;;  %13981 = vmatpush3.bf16.msra.mxu0 %v15978_v62 }
 0x2b9   :  { %13982 = vmatprep.subr.bf16.mxu0 %v15979_v24 }
 0x2ba   :  { %14183 = vmatpush3.bf16.msra.mxu1 %v19137_v10  ;;  %v15981_v10 = vld [vmem:[%s21053_s4 + $0x118] sm:$0xff]  }
 0x2bb   :  { %14184 = vmatprep.subr.bf16.mxu1 %v19162_v0 }
 0x2bc   :  { %13983 = vmatpush3.bf16.msra.mxu0 %v15979_v24 }
 0x2bd   :  { %13984 = vmatprep.subr.bf16.mxu0 %v15980_v59 }
 0x2be   :  { %14185 = vmatpush3.bf16.msra.mxu1 %v19162_v0  ;;  %v15982_v0 = vld [vmem:[%s21053_s4 + $0x120] sm:$0xff]  }
 0x2bf   :  { %14186 = vmatprep.subr.bf16.mxu1 %v15977_v31  ;;  %13977 = vmatmul.mubr.bf16.gmra.mrb[44].mxu0 %v19229_v52 }
 0x2c0   :  { %13985 = vmatpush3.bf16.msra.mxu0 %v15980_v59  ;;  %13996 = vmatprep.mubr.bf16.mxu0 %v18870_v63  ;;  %v6081_v63 = vshrl.u32 %v5594_v47, 16  ;;  %v6102_v47 = vrot.slane %v6100_v60, 5 }
 0x2c1   :  { %13986 = vmatprep.subr.bf16.mxu0 %v15981_v10 }
 0x2c2   :  { %14187 = vmatpush3.bf16.msra.mxu1 %v15977_v31  ;;  %v15983_v31 = vld [vmem:[%s21053_s4 + $0x128] sm:$0xff]   ;;  %v6083_v36 = vrot.slane %v6081_v63, 4  ;;  %v7080_v63 = vshrl.u32 %v19249_v11, 16 }
 0x2c3   :  { %14196 = vmatprep.subr.bf16.mxu1 %v15978_v62 }
 0x2c4   :  { %13987 = vmatpush3.bf16.msra.mxu0 %v15981_v10  ;;  %v6087_v2 = vor.u32 %v6086_v26, %v6083_v36  ;;  %v7078_v26 = vrot.slane %v7076_v1, 5  ;;  %v7082_v39 = vrot.slane %v7080_v63, 4  ;;  %v15991_v63 = vld [vmem:[%s21053_s4 + $0x168] sm:$0xff]  }
 0x2c5   :  { %14189 = vmatmul.mubr.bf16.vlgmr.msra.gmra.mrb[40].mxu1 %v19077_v23  ;;  %13988 = vmatprep.subr.bf16.mxu0 %v15982_v0 }
 0x2c6   :  { %14192 = vmatprep.mubr.bf16.mxu1 %v19089_v5  ;;  %14197 = vmatpush3.bf16.msra.mxu1 %v15978_v62  ;;  %v15985_v62 = vld [vmem:[%s21053_s4 + $0x138] sm:$0xff]   ;;  %v6088_v58 = vrot.slane %v6087_v2, 4  ;;  %v7083_v60 = vor.u32 %v7082_v39, %v7078_v26 }
 0x2c7   :  { %14198 = vmatprep.subr.bf16.mxu1 %v15979_v24 }
 0x2c8   :  { %13989 = vmatpush3.bf16.msra.mxu0 %v15982_v0 }
 0x2c9   :  { %13990 = vmatprep.subr.bf16.mxu0 %v15983_v31 }
 0x2ca   :  { %14199 = vmatpush3.bf16.msra.mxu1 %v15979_v24  ;;  %v6098_v24 = vrot.slane %v6097_v42, 4  ;;  %v15988_v42 = vld [vmem:[%s21053_s4 + $0x150] sm:$0xff]  }
 0x2cb   :  { %14200 = vmatprep.subr.bf16.mxu1 %v15980_v59 }
 0x2cc   :  { %13991 = vmatpush3.bf16.msra.mxu0 %v15983_v31  ;;  %v6103_v19 = vsel %vm16855_vm7, %v6098_v24, %v6102_v47  ;;  %v15989_v24 = vld [vmem:[%s21053_s4 + $0x158] sm:$0xff]  }
 0x2cd   :  { %14193 = vmatmul.mubr.bf16.gmra.mrb[44].mxu1 %v19253_v51  ;;  %13992 = vmatprep.subr.bf16.mxu0 %v15984_v61 }
 0x2ce   :  { %14201 = vmatpush3.bf16.msra.mxu1 %v15980_v59  ;;  %14212 = vmatprep.mubr.bf16.mxu1 %v18954_v7  ;;  %v15986_v7 = vld [vmem:[%s21053_s4 + $0x140] sm:$0xff]   ;;  %v7067_v59 = vshrl.u32 %v6580_v12, 16 }
 0x2cf   :  { %14202 = vmatprep.subr.bf16.mxu1 %v15981_v10 }
 0x2d0   :  { %13993 = vmatpush3.bf16.msra.mxu0 %v15984_v61 }
 0x2d1   :  { %13994 = vmatprep.subr.bf16.mxu0 %v15985_v62 }
 0x2d2   :  { %14203 = vmatpush3.bf16.msra.mxu1 %v15981_v10  ;;  %v7070_v10 = vshll.u32 %v6580_v12, 16  ;;  %v7069_v12 = vrot.slane %v7067_v59, 4 }
 0x2d3   :  { %14204 = vmatprep.subr.bf16.mxu1 %v15982_v0 }
 0x2d4   :  { %13995 = vmatpush3.bf16.msra.mxu0 %v15985_v62  ;;  %v7072_v36 = vrot.slane %v7070_v10, 5 }
 0x2d5   :  { %14004 = vmatprep.subr.bf16.mxu0 %v15986_v7 }
 0x2d6   :  { %14205 = vmatpush3.bf16.msra.mxu1 %v15982_v0  ;;  %v6093_v0 = vsel %vm16855_vm7, %v6088_v58, %v6092_v41  ;;  %v7073_v41 = vor.u32 %v7072_v36, %v7069_v12  ;;  %v15994_v12 = vld [vmem:[%s21053_s4 + $0x180] sm:$0xff]  }
 0x2d7   :  { %14206 = vmatprep.subr.bf16.mxu1 %v15983_v31  ;;  %13997 = vmatmul.mubr.bf16.vlgmr.msra.gmra.mrb[40].mxu0 %v18894_v49  ;;  %v19280_v2 = vcombine.low %v6093_v0, %v6103_v19  ;;  %v6185_v0 = vrot.slane %v19226_v50, 5  ;;  %v5608_v19 = vld [vmem:[#allocation2 + $0x90] sm:$0xe]  ;;  %v15995_v50 = vld [vmem:[%s21053_s4 + $0x188] sm:$0xff]  }
 0x2d8   :  { %14000 = vmatprep.mubr.bf16.mxu0 %v18918_v38  ;;  %14005 = vmatpush3.bf16.msra.mxu0 %v15986_v7  ;;  %v7074_v47 = vrot.slane %v7073_v41, 4  ;;  %v15996_v41 = vld [vmem:[%s21053_s4 + $0x190] sm:$0xff]  }
 0x2d9   :  { %14006 = vmatprep.subr.bf16.mxu0 %v15987_v21  ;;  %v6187_v36 = vrot.slane %v6185_v0, 4 }
 0x2da   :  { %14207 = vmatpush3.bf16.msra.mxu1 %v15983_v31  ;;  %v19285_v31 = vld [vmem:[#allocation2 + $0xc8] sm:$0x1]  ;;  %v7079_v10 = vsel %vm16855_vm7, %v7074_v47, %v7078_v26  ;;  %v6188_v26 = vrot.slane %v19260_v37, 5 }
 0x2db   :  { %14208 = vmatprep.subr.bf16.mxu1 %v15984_v61  ;;  %v7086_v58 = vshll.u32 %v19285_v31, 16 }
 0x2dc   :  { %14007 = vmatpush3.bf16.msra.mxu0 %v15987_v21 }
 0x2dd   :  { %14008 = vmatprep.subr.bf16.mxu0 %v15988_v42  ;;  %v7088_v59 = vrot.slane %v7086_v58, 5  ;;  %v15997_v58 = vld [vmem:[%s21053_s4 + $0x198] sm:$0xff]  }
 0x2de   :  { %14209 = vmatpush3.bf16.msra.mxu1 %v15984_v61  ;;  %v7084_v61 = vrot.slane %v7083_v60, 4  ;;  %v7171_v60 = vrot.slane %v19249_v11, 5 }
 0x2df   :  { %14210 = vmatprep.subr.bf16.mxu1 %v15985_v62  ;;  %14001 = vmatmul.mubr.bf16.gmra.mrb[44].mxu0 %v19280_v2 }
 0x2e0   :  { %14009 = vmatpush3.bf16.msra.mxu0 %v15988_v42  ;;  %14020 = vmatprep.mubr.bf16.mxu0 %v18619_v55  ;;  %v15990_v55 = vld [vmem:[%s21053_s4 + $0x160] sm:$0xff]  }
 0x2e1   :  { %14010 = vmatprep.subr.bf16.mxu0 %v15989_v24 }
 0x2e2   :  { %14211 = vmatpush3.bf16.msra.mxu1 %v15985_v62  ;;  %v7089_v62 = vsel %vm16855_vm7, %v7084_v61, %v7088_v59  ;;  %v7173_v61 = vrot.slane %v7171_v60, 4  ;;  %v7174_v59 = vrot.slane %v19285_v31, 5  ;;  %v19353_v31 = vld [vmem:[%s21054_s5] ss:$0 sm:$0xff] }
 0x2e3   :  { %14220 = vmatprep.subr.bf16.mxu1 %v15986_v7  ;;  %v19305_v1 = vcombine.low %v7079_v10, %v7089_v62  ;;  %v19358_v10 = vld [vmem:[%s21053_s4 + $0x1a8] sm:$0xff]  }
 0x2e4   :  { %14011 = vmatpush3.bf16.msra.mxu0 %v15989_v24 }
 0x2e5   :  { %14213 = vmatmul.mubr.bf16.vlgmr.msra.gmra.mrb[40].mxu1 %v18970_v34  ;;  %14012 = vmatprep.subr.bf16.mxu0 %v15990_v55 }
 0x2e6   :  { %14216 = vmatprep.mubr.bf16.mxu1 %v19018_v15  ;;  %14221 = vmatpush3.bf16.msra.mxu1 %v15986_v7  ;;  %v15992_v7 = vld [vmem:[%s21053_s4 + $0x170] sm:$0xff]  }
 0x2e7   :  { %14222 = vmatprep.subr.bf16.mxu1 %v15987_v21 }
 0x2e8   :  { %14013 = vmatpush3.bf16.msra.mxu0 %v15990_v55 }
 0x2e9   :  { %14014 = vmatprep.subr.bf16.mxu0 %v15991_v63 }
 0x2ea   :  { %14223 = vmatpush3.bf16.msra.mxu1 %v15987_v21  ;;  %v15993_v21 = vld [vmem:[%s21053_s4 + $0x178] sm:$0xff]  }
 0x2eb   :  { %14224 = vmatprep.subr.bf16.mxu1 %v15988_v42 }
 0x2ec   :  { %14015 = vmatpush3.bf16.msra.mxu0 %v15991_v63 }
 0x2ed   :  { %14217 = vmatmul.mubr.bf16.gmra.mrb[44].mxu1 %v19305_v1  ;;  %14016 = vmatprep.subr.bf16.mxu0 %v15992_v7 }
 0x2ee   :  { %14225 = vmatpush3.bf16.msra.mxu1 %v15988_v42  ;;  %14236 = vmatprep.mubr.bf16.mxu1 %v18680_v35  ;;  %v12092_v35 = vrot.slane %v5608_v19, 9  ;;  %v6189_v42 = vsel %vm17178_vm14, %v6187_v36, %v6188_v26  ;;  %v19375_v36 = vld [vmem:[%s21053_s4 + $0x1b0] sm:$0xff]  }
 0x2ef   :  { %14226 = vmatprep.subr.bf16.mxu1 %v15989_v24 }
 0x2f0   :  { %14017 = vmatpush3.bf16.msra.mxu0 %v15992_v7  ;;  %v6186_v39 = vsel %vm17178_vm14, %v12092_v35, %v6185_v0 }
 0x2f1   :  { %14018 = vmatprep.subr.bf16.mxu0 %v15993_v21  ;;  %v19329_v37 = vcombine.low %v6186_v39, %v6189_v42 }
 0x2f2   :  { %14227 = vmatpush3.bf16.msra.mxu1 %v15989_v24  ;;  %v6594_v24 = vld [vmem:[#allocation2 + $0xc0] sm:$0xe] }
 0x2f3   :  { %14228 = vmatprep.subr.bf16.mxu1 %v15990_v55  ;;  %v12116_v47 = vrot.slane %v6594_v24, 9  ;;  %v19388_v24 = vld [vmem:[%s21053_s4 + $0x1b8] sm:$0xff]  }
 0x2f4   :  { %14019 = vmatpush3.bf16.msra.mxu0 %v15993_v21 }
 0x2f5   :  { %14028 = vmatprep.subr.bf16.mxu0 %v15994_v12  ;;  %v7172_v11 = vsel %vm17178_vm14, %v12116_v47, %v7171_v60 }
 0x2f6   :  { %14229 = vmatpush3.bf16.msra.mxu1 %v15990_v55  ;;  %v7175_v55 = vsel %vm17178_vm14, %v7173_v61, %v7174_v59 }
 0x2f7   :  { %14230 = vmatprep.subr.bf16.mxu1 %v15991_v63  ;;  %14021 = vmatmul.mubr.bf16.vlgmr.msra.gmra.mrb[40].mxu0 %v18649_v46 }
 0x2f8   :  { %14024 = vmatprep.mubr.bf16.mxu0 %v18651_v56  ;;  %14029 = vmatpush3.bf16.msra.mxu0 %v15994_v12 }
 0x2f9   :  { %14030 = vmatprep.subr.bf16.mxu0 %v15995_v50 }
 0x2fa   :  { %14231 = vmatpush3.bf16.msra.mxu1 %v15991_v63  ;;  %v19361_v63 = vcombine.low %v7172_v11, %v7175_v55 }
 0x2fb   :  { %14232 = vmatprep.subr.bf16.mxu1 %v15992_v7 }
 0x2fc   :  { %14031 = vmatpush3.bf16.msra.mxu0 %v15995_v50 }
 0x2fd   :  { %14032 = vmatprep.subr.bf16.mxu0 %v15996_v41 }
 0x2fe   :  { %14233 = vmatpush3.bf16.msra.mxu1 %v15992_v7  ;;  %v19366_v7 = vld [vmem:[%s21055_s6] ss:$0 sm:$0xff] }
 0x2ff   :  { %14234 = vmatprep.subr.bf16.mxu1 %v15993_v21  ;;  %14025 = vmatmul.mubr.bf16.gmra.mrb[44].mxu0 %v19329_v37 }
 0x300   :  { %14033 = vmatpush3.bf16.msra.mxu0 %v15996_v41  ;;  %14044 = vmatprep.mubr.bf16.mxu0 %v19050_v16  ;;  %v15998_v16 = vld [vmem:[%s21053_s4 + $0x1a0] sm:$0xff]  }
 0x301   :  { %14034 = vmatprep.subr.bf16.mxu0 %v15997_v58 }
 0x302   :  { %14235 = vmatpush3.bf16.msra.mxu1 %v15993_v21 }
 0x303   :  { %14244 = vmatprep.subr.bf16.mxu1 %v15994_v12 }
 0x304   :  { %14035 = vmatpush3.bf16.msra.mxu0 %v15997_v58 }
 0x305   :  { %14237 = vmatmul.mubr.bf16.vlgmr.msra.gmra.mrb[40].mxu1 %v21195_v25  ;;  %14036 = vmatprep.subr.bf16.mxu0 %v15998_v16 }
 0x306   :  { %14240 = vmatprep.mubr.bf16.mxu1 %v21197_v45  ;;  %14245 = vmatpush3.bf16.msra.mxu1 %v15994_v12 }
 0x307   :  { %14246 = vmatprep.subr.bf16.mxu1 %v15995_v50 }
 0x308   :  { %14037 = vmatpush3.bf16.msra.mxu0 %v15998_v16 }
 0x309   :  { %14038 = vmatprep.subr.bf16.mxu0 %v19358_v10 }
 0x30a   :  { %14247 = vmatpush3.bf16.msra.mxu1 %v15995_v50  ;;  %v13662_v62 = vpop.f32.mrb[32].mxu0 }
 0x30b   :  { %14248 = vmatprep.subr.bf16.mxu1 %v15996_v41  ;;  %v4511_v21 = vpop.f32.mrb[33].mxu0  ;;  %v4558_v0 = vmul.f32 %v13662_v62, %v19353_v31 }
 0x30c   :  { %v4556_v19 = vmul.f32 %v19353_v31, %v4511_v21  ;;  %v13663_v12 = vpop.f32.mrb[34].mxu0  ;;  %14039 = vmatpush3.bf16.msra.mxu0 %v19358_v10 }
 0x30d   :  { %14241 = vmatmul.mubr.bf16.gmra.mrb[44].mxu1 %v19361_v63  ;;  %v4514_v35 = vpop.f32.mrb[35].mxu0  ;;  %14040 = vmatprep.subr.bf16.mxu0 %v19375_v36  ;;  %v4559_v50 = vmul.f32 %v13663_v12, %v19353_v31  ;;  %v4572_v42 = vadd.f32 %v19366_v7, %v4558_v0 }
 0x30e   :  { %14249 = vmatpush3.bf16.msra.mxu1 %v15996_v41  ;;  %14260 = vmatprep.mubr.bf16.mxu1 %v19077_v23  ;;  %v4570_v26 = vadd.f32 %v19366_v7, %v4556_v19  ;;  %v4557_v39 = vmul.f32 %v19353_v31, %v4514_v35 }
 0x30f   :  { %14250 = vmatprep.subr.bf16.mxu1 %v15997_v58  ;;  %v4573_v41 = vadd.f32 %v19366_v7, %v4559_v50  ;;  %v4580_v11 = vmax.f32 %v4572_v42, 0.0 }
 0x310   :  { %v4571_v60 = vadd.f32 %v19366_v7, %v4557_v39  ;;  %14041 = vmatpush3.bf16.msra.mxu0 %v19375_v36  ;;  %v4578_v23 = vmax.f32 %v4570_v26, 0.0 }
 0x311   :  { %14042 = vmatprep.subr.bf16.mxu0 %v19388_v24  ;;  %v4581_v35 = vmax.f32 %v4573_v41, 0.0 }
 0x312   :  { %14251 = vmatpush3.bf16.msra.mxu1 %v15997_v58  ;;  %v4579_v47 = vmax.f32 %v4571_v60, 0.0  ;;  %v13666_v61 = vpop.f32.mrb[36].mxu0  ;;  %v19399_v58 = vld [vmem:[%s21053_s4 + $0x1c0] sm:$0xff]  }
 0x313   :  { %14252 = vmatprep.subr.bf16.mxu1 %v15998_v16  ;;  %v4527_v59 = vpop.f32.mrb[37].mxu0  ;;  %v4562_v62 = vmul.f32 %v13666_v61, %v19353_v31 }
 0x314   :  { %v4586_v55 = vadd.f32 %v4579_v47, %v4578_v23  ;;  %v4560_v21 = vmul.f32 %v19353_v31, %v4527_v59  ;;  %v13667_v0 = vpop.f32.mrb[38].mxu0  ;;  %14043 = vmatpush3.bf16.msra.mxu0 %v19388_v24  ;;  %v19414_v59 = vld [vmem:[%s21053_s4 + $0x1c8] sm:$0xff]  }
 0x315   :  { %v4563_v19 = vmul.f32 %v13667_v0, %v19353_v31  ;;  %v4530_v12 = vpop.f32.mrb[39].mxu0  ;;  %14052 = vmatprep.subr.bf16.mxu0 %v19399_v58  ;;  %v4576_v42 = vadd.f32 %v19366_v7, %v4562_v62 }
 0x316   :  { %v4587_v26 = vadd.f32 %v4586_v55, %v4580_v11  ;;  %14253 = vmatpush3.bf16.msra.mxu1 %v15998_v16  ;;  %v4574_v50 = vadd.f32 %v19366_v7, %v4560_v21  ;;  %v4561_v39 = vmul.f32 %v19353_v31, %v4530_v12 }
 0x317   :  { %14254 = vmatprep.subr.bf16.mxu1 %v19358_v10  ;;  %14045 = vmatmul.mubr.bf16.vlgmr.msra.gmra.mrb[40].mxu0 %v19059_v29  ;;  %v4577_v41 = vadd.f32 %v19366_v7, %v4563_v19  ;;  %v4584_v19 = vmax.f32 %v4576_v42, 0.0 }
 0x318   :  { %v13878_v60 = vpop.f32.mrb[32].mxu1  ;;  %v4582_v23 = vmax.f32 %v4574_v50, 0.0  ;;  %v4588_v47 = vadd.f32 %v4587_v26, %v4581_v35  ;;  %v4575_v61 = vadd.f32 %v19366_v7, %v4561_v39  ;;  %14048 = vmatprep.mubr.bf16.mxu0 %v19229_v52  ;;  %14053 = vmatpush3.bf16.msra.mxu0 %v19399_v58  ;;  %v19425_v50 = vld [vmem:[#allocation2 + $0x9c] sm:$0xf]  ;;  %v19427_v39 = vld [vmem:[#allocation2 + $0xa0] sm:$0xf] }
 0x319   :  { %v5508_v16 = vpop.f32.mrb[33].mxu1  ;;  %14054 = vmatprep.subr.bf16.mxu0 %v19414_v59  ;;  %v5549_v29 = vmul.f32 %v13878_v60, %v19353_v31  ;;  %v19434_v60 = vld [vmem:[%s21053_s4 + $0x1d0] sm:$0xff]  }
 0x31a   :  { %v4589_v11 = vadd.f32 %v4588_v47, %v4582_v23  ;;  %v5547_v55 = vmul.f32 %v19353_v31, %v5508_v16  ;;  %v13879_v62 = vpop.f32.mrb[34].mxu1  ;;  %14255 = vmatpush3.bf16.msra.mxu1 %v19358_v10  ;;  %v4583_v52 = vmax.f32 %v4575_v61, 0.0  ;;  %v12094_v10 = vcombine.low %v19425_v50, %v19427_v39 }
 0x31b   :  { %v5550_v21 = vmul.f32 %v13879_v62, %v19353_v31  ;;  %v5511_v0 = vpop.f32.mrb[35].mxu1  ;;  %14256 = vmatprep.subr.bf16.mxu1 %v19375_v36  ;;  %v5557_v42 = vadd.f32 %v19366_v7, %v5549_v29  ;;  %v4585_v23 = vmax.f32 %v4577_v41, 0.0  ;;  %v19447_v41 = vld [vmem:[%s21053_s4 + $0x1d8] sm:$0xff]  }
 0x31c   :  { %v5555_v12 = vadd.f32 %v19366_v7, %v5547_v55  ;;  %v4590_v35 = vadd.f32 %v4589_v11, %v4583_v52  ;;  %v5548_v26 = vmul.f32 %v19353_v31, %v5511_v0  ;;  %14055 = vmatpush3.bf16.msra.mxu0 %v19414_v59 }
 0x31d   :  { %14056 = vmatprep.subr.bf16.mxu0 %v19434_v60  ;;  %v5558_v16 = vadd.f32 %v19366_v7, %v5550_v21 }
 0x31e   :  { %v4591_v47 = vadd.f32 %v4590_v35, %v4584_v19  ;;  %v5556_v61 = vadd.f32 %v19366_v7, %v5548_v26  ;;  %14257 = vmatpush3.bf16.msra.mxu1 %v19375_v36  ;;  %v5563_v11 = vmax.f32 %v5555_v12, 0.0  ;;  %v5565_v36 = vmax.f32 %v5557_v42, 0.0 }
 0x31f   :  { %14258 = vmatprep.subr.bf16.mxu1 %v19388_v24  ;;  %14049 = vmatmul.mubr.bf16.gmra.mrb[44].mxu0 %v12094_v10  ;;  %v5566_v35 = vmax.f32 %v5558_v16, 0.0 }
 0x320   :  { %v4592_v55 = vadd.f32 %v4591_v47, %v4585_v23  ;;  %v5564_v62 = vmax.f32 %v5556_v61, 0.0  ;;  %v13882_v52 = vpop.f32.mrb[36].mxu1  ;;  %14057 = vmatpush3.bf16.msra.mxu0 %v19434_v60  ;;  %14068 = vmatprep.mubr.bf16.mxu0 %v18894_v49 }
 0x321   :  { %v5524_v29 = vpop.f32.mrb[37].mxu1  ;;  %14058 = vmatprep.subr.bf16.mxu0 %v19447_v41  ;;  %v5553_v0 = vmul.f32 %v13882_v52, %v19353_v31 }
 0x322   :  { %v5571_v21 = vadd.f32 %v5564_v62, %v5563_v11  ;;  %v5551_v19 = vmul.f32 %v19353_v31, %v5524_v29  ;;  %v13883_v12 = vpop.f32.mrb[38].mxu1  ;;  %14259 = vmatpush3.bf16.msra.mxu1 %v19388_v24  ;;  %v4593_v42 = vrot.slane %v4592_v55, 4  ;;  %v19462_v24 = vld [vmem:[%s21053_s4 + $0x1e0] sm:$0xff]  }
 0x323   :  { %v5527_v26 = vpop.f32.mrb[39].mxu1  ;;  %14268 = vmatprep.subr.bf16.mxu1 %v19399_v58  ;;  %v5554_v23 = vmul.f32 %v13883_v12, %v19353_v31  ;;  %v5561_v61 = vadd.f32 %v19366_v7, %v5553_v0  ;;  %v6350_v0 = vshll.u32 %v19425_v50, 16 }
 0x324   :  { %v5572_v49 = vadd.f32 %v5571_v21, %v5565_v36  ;;  %v5559_v10 = vadd.f32 %v19366_v7, %v5551_v19  ;;  %v5552_v47 = vmul.f32 %v19353_v31, %v5527_v26  ;;  %14059 = vmatpush3.bf16.msra.mxu0 %v19447_v41  ;;  %v19469_v31 = vld [vmem:[#allocation2 + $0xcc] sm:$0xf]  ;;  %v6347_v21 = vshrl.u32 %v19425_v50, 16 }
 0x325   :  { %14261 = vmatmul.mubr.bf16.vlgmr.msra.gmra.mrb[40].mxu1 %v19089_v5  ;;  %14060 = vmatprep.subr.bf16.mxu0 %v19462_v24  ;;  %v19471_v5 = vld [vmem:[#allocation2 + $0xd0] sm:$0xf]  ;;  %v5562_v29 = vadd.f32 %v19366_v7, %v5554_v23  ;;  %v19484_v19 = vld [vmem:[%s21053_s4 + $0x1e8] sm:$0xff]   ;;  %v4594_v12 = vadd.f32 %v4593_v42, %v4592_v55  ;;  %v6352_v23 = vrot.slane %v6350_v0, 5  ;;  %v19497_v55 = vld [vmem:[#allocation2 + $0xa4] sm:$0x1] }
 0x326   :  { %v5567_v16 = vmax.f32 %v5559_v10, 0.0  ;;  %v5573_v11 = vadd.f32 %v5572_v49, %v5566_v35  ;;  %v5560_v62 = vadd.f32 %v19366_v7, %v5552_v47  ;;  %14264 = vmatprep.mubr.bf16.mxu1 %v19253_v51  ;;  %14269 = vmatpush3.bf16.msra.mxu1 %v19399_v58  ;;  %v6360_v51 = vshrl.u32 %v19427_v39, 16  ;;  %v19494_v47 = vld [vmem:[%s21053_s4 + $0x1f0] sm:$0xff]  }
 0x327   :  { %14270 = vmatprep.subr.bf16.mxu1 %v19414_v59  ;;  %v12118_v58 = vcombine.low %v19469_v31, %v19471_v5  ;;  %v6356_v7 = vshll.u32 %v19427_v39, 16  ;;  %v5569_v35 = vmax.f32 %v5561_v61, 0.0  ;;  %v5570_v50 = vmax.f32 %v5562_v29, 0.0 }
 0x328   :  { %v5574_v52 = vadd.f32 %v5573_v11, %v5567_v16  ;;  %v5568_v36 = vmax.f32 %v5560_v62, 0.0  ;;  %14061 = vmatpush3.bf16.msra.mxu0 %v19462_v24  ;;  %v6349_v10 = vrot.slane %v6347_v21, 4  ;;  %v4595_v61 = vrot.slane %v4594_v12, 2 }
 0x329   :  { %14062 = vmatprep.subr.bf16.mxu0 %v19484_v19  ;;  %v6358_v42 = vrot.slane %v6356_v7, 5  ;;  %v6366_v62 = vshll.u32 %v19497_v55, 16  ;;  %v7333_v0 = vshrl.u32 %v19469_v31, 16  ;;  %v7346_v7 = vshrl.u32 %v19471_v5, 16 }
 0x32a   :  { %v5575_v26 = vadd.f32 %v5574_v52, %v5568_v36  ;;  %14271 = vmatpush3.bf16.msra.mxu1 %v19414_v59  ;;  %v6362_v59 = vrot.slane %v6360_v51, 4  ;;  %v19507_v52 = vld [vmem:[%s21053_s4 + $0x1f8] sm:$0xff]   ;;  %v6353_v29 = vor.u32 %v6352_v23, %v6349_v10  ;;  %v4596_v21 = vadd.f32 %v4595_v61, %v4594_v12 }
 0x32b   :  { %14272 = vmatprep.subr.bf16.mxu1 %v19434_v60  ;;  %v7336_v51 = vshll.u32 %v19469_v31, 16  ;;  %v7335_v10 = vrot.slane %v7333_v0, 4 }
 0x32c   :  { %v5576_v49 = vadd.f32 %v5575_v26, %v5569_v35  ;;  %14063 = vmatpush3.bf16.msra.mxu0 %v19484_v19  ;;  %v6363_v36 = vor.u32 %v6362_v59, %v6358_v42  ;;  %v19519_v35 = vld [vmem:[%s21053_s4 + $0x200] sm:$0xff]   ;;  %v7342_v26 = vshll.u32 %v19471_v5, 16  ;;  %v16011_v59 = vld [vmem:[%s21053_s4 + $0x208] sm:$0xff]  }
 0x32d   :  { %14265 = vmatmul.mubr.bf16.gmra.mrb[44].mxu1 %v12118_v58  ;;  %14064 = vmatprep.subr.bf16.mxu0 %v19494_v47  ;;  %v6368_v58 = vrot.slane %v6366_v62, 5  ;;  %v7338_v23 = vrot.slane %v7336_v51, 5  ;;  %v19537_v62 = vld [vmem:[#allocation2 + $0xe0] sm:$0x1] }
 0x32e   :  { %v5577_v16 = vadd.f32 %v5576_v49, %v5570_v50  ;;  %14273 = vmatpush3.bf16.msra.mxu1 %v19434_v60  ;;  %14284 = vmatprep.mubr.bf16.mxu1 %v18970_v34  ;;  %v6364_v12 = vrot.slane %v6363_v36, 4  ;;  %v4597_v50 = vrot.slane %v4596_v21, 1  ;;  %v19540_v36 = vld [vmem:[#allocation2 + $0xd4] sm:$0x1] }
 0x32f   :  { %14274 = vmatprep.subr.bf16.mxu1 %v19447_v41 }
 0x330   :  { %v5578_v11 = vrot.slane %v5577_v16, 4  ;;  %14065 = vmatpush3.bf16.msra.mxu0 %v19494_v47 }
 0x331   :  { %14066 = vmatprep.subr.bf16.mxu0 %v19507_v52 }
 0x332   :  { %v5579_v60 = vadd.f32 %v5578_v11, %v5577_v16  ;;  %14275 = vmatpush3.bf16.msra.mxu1 %v19447_v41  ;;  %v6354_v41 = vrot.slane %v6353_v29, 4  ;;  %v7344_v16 = vrot.slane %v7342_v26, 5  ;;  %v19535_v11 = vld [vmem:[#allocation2 + $0xdc] sm:$0xf] }
 0x333   :  { %14276 = vmatprep.subr.bf16.mxu1 %v19462_v24 }
 0x334   :  { %v5580_v34 = vrot.slane %v5579_v60, 2  ;;  %14067 = vmatpush3.bf16.msra.mxu0 %v19507_v52  ;;  %v6359_v61 = vsel %vm16855_vm7, %v6354_v41, %v6358_v42  ;;  %v7861_v42 = vrot.slane %v19537_v62, 5 }
 0x335   :  { %14076 = vmatprep.subr.bf16.mxu0 %v19519_v35 }
 0x336   :  { %v5581_v49 = vadd.f32 %v5580_v34, %v5579_v60  ;;  %14277 = vmatpush3.bf16.msra.mxu1 %v19462_v24  ;;  %v6369_v24 = vsel %vm16855_vm7, %v6364_v12, %v6368_v58  ;;  %v7576_v60 = vld [vmem:[#allocation2 + $0xd8] sm:$0xe]  ;;  %v7858_v34 = vrot.slane %v19535_v11, 5  ;;  %v7352_v12 = vshll.u32 %v19540_v36, 16 }
 0x337   :  { %14278 = vmatprep.subr.bf16.mxu1 %v19484_v19  ;;  %14069 = vmatmul.mubr.bf16.vlgmr.msra.gmra.mrb[40].mxu0 %v18918_v38  ;;  %v7348_v38 = vrot.slane %v7346_v7, 4  ;;  %v12130_v0 = vrot.slane %v7576_v60, 9  ;;  %v12095_v58 = vcombine.low %v6359_v61, %v6369_v24  ;;  %v16014_v61 = vld [vmem:[%s21053_s4 + $0x220] sm:$0xff]  }
 0x338   :  { %v5582_v31 = vrot.slane %v5581_v49, 1  ;;  %14072 = vmatprep.mubr.bf16.mxu0 %v19280_v2  ;;  %14077 = vmatpush3.bf16.msra.mxu0 %v19519_v35  ;;  %v4598_v2 = vadd.f32 %v4597_v50, %v4596_v21  ;;  %v7860_v7 = vrot.slane %v7858_v34, 4  ;;  %v16012_v21 = vld [vmem:[%s21053_s4 + $0x210] sm:$0xff]  }
 0x339   :  { %14078 = vmatprep.subr.bf16.mxu0 %v16011_v59  ;;  %v7349_v41 = vor.u32 %v7348_v38, %v7344_v16  ;;  %v19553_v26 = vsel %vm17178_vm14, %v12130_v0, %v7858_v34 }
 0x33a   :  { %v5583_v29 = vadd.f32 %v5582_v31, %v5581_v49  ;;  %14279 = vmatpush3.bf16.msra.mxu1 %v19484_v19  ;;  %v7339_v19 = vor.u32 %v7338_v23, %v7335_v10  ;;  %v19558_v50 = vsel %vm17178_vm14, %v7860_v7, %v7861_v42  ;;  %v16013_v31 = vld [vmem:[%s21053_s4 + $0x218] sm:$0xff]   ;;  %v7354_v23 = vrot.slane %v7352_v12, 5 }
 0x33b   :  { %14280 = vmatprep.subr.bf16.mxu1 %v19494_v47  ;;  %v5609_v7 = vld [vmem:[#allocation2 + $0x9c] sm:$0xe]  ;;  %v7602_v12 = vshll.u32 %v19537_v62, 16 }
 0x33c   :  { %v19545_v51 = vadd.f32 %v5583_v29, %v4598_v2  ;;  %14079 = vmatpush3.bf16.msra.mxu0 %v16011_v59  ;;  %v7340_v10 = vrot.slane %v7339_v19, 4  ;;  %v7592_v29 = vshll.u32 %v19535_v11, 16 }
 0x33d   :  { %14080 = vmatprep.subr.bf16.mxu0 %v16012_v21  ;;  %v7604_v62 = vrot.slane %v7602_v12, 5 }
 0x33e   :  { %14281 = vmatpush3.bf16.msra.mxu1 %v19494_v47  ;;  %v7350_v47 = vrot.slane %v7349_v41, 4  ;;  %v7594_v42 = vrot.slane %v7592_v29, 5 }
 0x33f   :  { %14282 = vmatprep.subr.bf16.mxu1 %v19507_v52  ;;  %14073 = vmatmul.mubr.bf16.gmra.mrb[44].mxu0 %v12095_v58  ;;  %v6451_v58 = vrot.slane %v19427_v39, 5  ;;  %v6454_v39 = vrot.slane %v19497_v55, 5 }
 0x340   :  { %14081 = vmatpush3.bf16.msra.mxu0 %v16012_v21  ;;  %14092 = vmatprep.mubr.bf16.mxu0 %v18649_v46  ;;  %v7345_v46 = vsel %vm16855_vm7, %v7340_v10, %v7344_v16  ;;  %v7355_v24 = vsel %vm16855_vm7, %v7350_v47, %v7354_v23  ;;  %v19605_v10 = vld [vmem:[%s21053_s4 + $0x40] sm:$0xff]   ;;  %v19608_v47 = vld [vmem:[#allocation2 + $0x108] sm:$0xf] }
 0x341   :  { %14082 = vmatprep.subr.bf16.mxu0 %v16013_v31  ;;  %v12119_v38 = vcombine.low %v7345_v46, %v7355_v24  ;;  %v8568_v24 = vshrl.u32 %v19608_v47, 16 }
 0x342   :  { %14283 = vmatpush3.bf16.msra.mxu1 %v19507_v52  ;;  %v19579_v52 = vld [vmem:[#allocation2 + $0xd8] sm:$0xf] }
 0x343   :  { %14292 = vmatprep.subr.bf16.mxu1 %v19519_v35  ;;  %v7583_v2 = vshrl.u32 %v19579_v52, 16  ;;  %v7586_v16 = vshll.u32 %v19579_v52, 16 }
 0x344   :  { %14083 = vmatpush3.bf16.msra.mxu0 %v16013_v31 }
 0x345   :  { %14285 = vmatmul.mubr.bf16.vlgmr.msra.gmra.mrb[40].mxu1 %v19018_v15  ;;  %14084 = vmatprep.subr.bf16.mxu0 %v16014_v61  ;;  %v16015_v15 = vld [vmem:[%s21053_s4 + $0x228] sm:$0xff]   ;;  %v7585_v60 = vrot.slane %v7583_v2, 4  ;;  %v7588_v34 = vrot.slane %v7586_v16, 5 }
 0x346   :  { %14288 = vmatprep.mubr.bf16.mxu1 %v19305_v1  ;;  %14293 = vmatpush3.bf16.msra.mxu1 %v19519_v35  ;;  %v7596_v1 = vshrl.u32 %v19535_v11, 16  ;;  %v16016_v35 = vld [vmem:[%s21053_s4 + $0x230] sm:$0xff]  }
 0x347   :  { %14294 = vmatprep.subr.bf16.mxu1 %v16011_v59  ;;  %v7589_v19 = vor.u32 %v7588_v34, %v7585_v60  ;;  %v19637_v34 = vld [vmem:[%s21053_s4 + $0x50] sm:$0xff]  }
 0x348   :  { %14085 = vmatpush3.bf16.msra.mxu0 %v16014_v61  ;;  %v7598_v0 = vrot.slane %v7596_v1, 4 }
 0x349   :  { %14086 = vmatprep.subr.bf16.mxu0 %v16015_v15  ;;  %v7590_v23 = vrot.slane %v7589_v19, 4  ;;  %v19642_v19 = vld [vmem:[#allocation2 + $0xe4] sm:$0xf] }
 0x34a   :  { %14295 = vmatpush3.bf16.msra.mxu1 %v16011_v59  ;;  %v19596_v59 = vld [vmem:[%s21053_s4 + $0x238] sm:$0xff]   ;;  %v7599_v41 = vor.u32 %v7598_v0, %v7594_v42  ;;  %v8570_v0 = vrot.slane %v8568_v24, 4  ;;  %v7607_v12 = vshrl.u32 %v19642_v19, 16 }
 0x34b   :  { %14296 = vmatprep.subr.bf16.mxu1 %v16012_v21  ;;  %v7595_v16 = vsel %vm16855_vm7, %v7590_v23, %v7594_v42 }
 0x34c   :  { %14087 = vmatpush3.bf16.msra.mxu0 %v16015_v15  ;;  %v7600_v46 = vrot.slane %v7599_v41, 4  ;;  %v6595_v41 = vld [vmem:[#allocation2 + $0xcc] sm:$0xe] }
 0x34d   :  { %14289 = vmatmul.mubr.bf16.gmra.mrb[44].mxu1 %v12119_v38  ;;  %14088 = vmatprep.subr.bf16.mxu0 %v16016_v35  ;;  %v8571_v38 = vshll.u32 %v19608_v47, 16  ;;  %v12120_v24 = vrot.slane %v6595_v41, 9 }
 0x34e   :  { %14297 = vmatpush3.bf16.msra.mxu1 %v16012_v21  ;;  %14308 = vmatprep.mubr.bf16.mxu1 %v21195_v25  ;;  %v12096_v25 = vrot.slane %v5609_v7, 9  ;;  %v6453_v21 = vrot.slane %v6451_v58, 4  ;;  %v7605_v29 = vsel %vm16855_vm7, %v7600_v46, %v7604_v62 }
 0x34f   :  { %14298 = vmatprep.subr.bf16.mxu1 %v16013_v31  ;;  %v12122_v60 = vcombine.low %v7595_v16, %v7605_v29  ;;  %v19667_v29 = vld [vmem:[#allocation2 + $0xf4] sm:$0xf] }
 0x350   :  { %14089 = vmatpush3.bf16.msra.mxu0 %v16016_v35  ;;  %v6452_v55 = vsel %vm17178_vm14, %v12096_v25, %v6451_v58  ;;  %v8573_v58 = vrot.slane %v8571_v38, 5  ;;  %v7610_v25 = vshll.u32 %v19642_v19, 16 }
 0x351   :  { %14090 = vmatprep.subr.bf16.mxu0 %v19596_v59 }
 0x352   :  { %14299 = vmatpush3.bf16.msra.mxu1 %v16013_v31  ;;  %v6455_v31 = vsel %vm17178_vm14, %v6453_v21, %v6454_v39  ;;  %v19649_v21 = vld [vmem:[#allocation2 + $0xe8] sm:$0xf]  ;;  %v8574_v46 = vor.u32 %v8573_v58, %v8570_v0  ;;  %v7609_v0 = vrot.slane %v7607_v12, 4 }
 0x353   :  { %14300 = vmatprep.subr.bf16.mxu1 %v16014_v61  ;;  %v12097_v1 = vcombine.low %v6452_v55, %v6455_v31  ;;  %v7616_v39 = vshll.u32 %v19649_v21, 16  ;;  %v7620_v23 = vshrl.u32 %v19649_v21, 16  ;;  %v16024_v55 = vld [vmem:[#allocation2 + $0x110] sm:$0x1] }
 0x354   :  { %14091 = vmatpush3.bf16.msra.mxu0 %v19596_v59  ;;  %v8587_v31 = vshll.u32 %v16024_v55, 16  ;;  %v8575_v41 = vrot.slane %v8574_v46, 4 }
 0x355   :  { %14316 = vmatprep.subr.bf16.mxu0 %v19605_v10  ;;  %v19672_v58 = vrot.slane %v7616_v39, 5 }
 0x356   :  { %14301 = vmatpush3.bf16.msra.mxu1 %v16014_v61  ;;  %v19622_v61 = vld [vmem:[%s21053_s4 + $0x48] sm:$0xff]   ;;  %v8589_v20 = vrot.slane %v8587_v31, 5 }
 0x357   :  { %14302 = vmatprep.subr.bf16.mxu1 %v16015_v15  ;;  %14093 = vmatmul.mubr.bf16.vlgmr.msra.gmra.mrb[40].mxu0 %v18651_v56  ;;  %v19625_v56 = vld [vmem:[#allocation2 + $0x10c] sm:$0xf] }
 0x358   :  { %14096 = vmatprep.mubr.bf16.mxu0 %v19329_v37  ;;  %14317 = vmatpush3.bf16.msra.mxu0 %v19605_v10  ;;  %v8577_v37 = vshll.u32 %v19625_v56, 16  ;;  %v8581_v2 = vshrl.u32 %v19625_v56, 16 }
 0x359   :  { %14318 = vmatprep.subr.bf16.mxu0 %v19622_v61 }
 0x35a   :  { %14303 = vmatpush3.bf16.msra.mxu1 %v16015_v15  ;;  %v19640_v7 = vrot.slane %v8577_v37, 5  ;;  %v8583_v42 = vrot.slane %v8581_v2, 4  ;;  %v7437_v15 = vrot.slane %v19471_v5, 5  ;;  %v19658_v5 = vld [vmem:[%s21053_s4 + $0x58] sm:$0xff]   ;;  %v7440_v37 = vrot.slane %v19540_v36, 5  ;;  %v19678_v36 = vld [vmem:[%s21053_s4 + $0x60] sm:$0xff]  }
 0x35b   :  { %14304 = vmatprep.subr.bf16.mxu1 %v16016_v35 }
 0x35c   :  { %14319 = vmatpush3.bf16.msra.mxu0 %v19622_v61  ;;  %v8584_v62 = vor.u32 %v8583_v42, %v19640_v7  ;;  %v7439_v38 = vrot.slane %v7437_v15, 4  ;;  %v7622_v42 = vrot.slane %v7620_v23, 4  ;;  %v7438_v12 = vsel %vm17178_vm14, %v12120_v24, %v7437_v15 }
 0x35d   :  { %14320 = vmatprep.subr.bf16.mxu0 %v19637_v34  ;;  %v8580_v31 = vsel %vm16855_vm7, %v8575_v41, %v19640_v7 }
 0x35e   :  { %14305 = vmatpush3.bf16.msra.mxu1 %v16016_v35  ;;  %v19653_v35 = vld [vmem:[#allocation2 + $0xf0] sm:$0xf]  ;;  %v8585_v55 = vrot.slane %v8584_v62, 4  ;;  %v19690_v62 = vld [vmem:[#allocation2 + $0xfc] sm:$0xf] }
 0x35f   :  { %14306 = vmatprep.subr.bf16.mxu1 %v19596_v59  ;;  %14097 = vmatmul.mubr.bf16.gmra.mrb[44].mxu0 %v12097_v1  ;;  %v7631_v2 = vshrl.u32 %v19653_v35, 16  ;;  %v7634_v16 = vshll.u32 %v19653_v35, 16  ;;  %v7640_v1 = vshll.u32 %v19667_v29, 16  ;;  %v7658_v7 = vshll.u32 %v19690_v62, 16 }
 0x360   :  { %14321 = vmatpush3.bf16.msra.mxu0 %v19637_v34  ;;  %14332 = vmatprep.mubr.bf16.mxu0 %v12122_v60  ;;  %v7644_v60 = vshrl.u32 %v19667_v29, 16  ;;  %v8590_v24 = vsel %vm16855_vm7, %v8585_v55, %v8589_v20 }
 0x361   :  { %14322 = vmatprep.subr.bf16.mxu0 %v19658_v5  ;;  %v7633_v23 = vrot.slane %v7631_v2, 4  ;;  %v7636_v9 = vrot.slane %v7634_v16, 5  ;;  %v19688_v8 = vrot.slane %v7640_v1, 5  ;;  %v19705_v16 = vld [vmem:[#allocation2 + $0x114] sm:$0xf]  ;;  %v7655_v1 = vshrl.u32 %v19690_v62, 16 }
 0x362   :  { %14307 = vmatpush3.bf16.msra.mxu1 %v19596_v59  ;;  %v7612_v59 = vrot.slane %v7610_v25, 5  ;;  %v16027_v25 = vld [vmem:[#allocation2 + $0xec] sm:$0x1]  ;;  %v7646_v46 = vrot.slane %v7644_v60, 4  ;;  %v19710_v60 = vld [vmem:[#allocation2 + $0x100] sm:$0xf]  ;;  %v12146_v55 = vcombine.low %v8580_v31, %v8590_v24 }
 0x363   :  { %14532 = vmatprep.subr.bf16.mxu1 %v19605_v10  ;;  %v7626_v39 = vshll.u32 %v16027_v25, 16  ;;  %v7664_v20 = vshll.u32 %v19710_v60, 16  ;;  %v19721_v25 = vld [vmem:[%s21053_s4 + $0x70] sm:$0xff]   ;;  %v19731_v24 = vld [vmem:[#allocation2 + $0x118] sm:$0xf] }
 0x364   :  { %14323 = vmatpush3.bf16.msra.mxu0 %v19658_v5  ;;  %v7647_v41 = vor.u32 %v7646_v46, %v19688_v8  ;;  %v8605_v49 = vshrl.u32 %v19731_v24, 16 }
 0x365   :  { %14309 = vmatmul.mubr.bf16.vlgmr.msra.gmra.mrb[40].mxu1 %v21197_v45  ;;  %14324 = vmatprep.subr.bf16.mxu0 %v19678_v36  ;;  %v7441_v45 = vsel %vm17178_vm14, %v7439_v38, %v7440_v37  ;;  %v19702_v38 = vld [vmem:[%s21053_s4 + $0x68] sm:$0xff]   ;;  %v16029_v37 = vld [vmem:[#allocation2 + $0xf8] sm:$0x1]  ;;  %v19726_v46 = vrot.slane %v7664_v20, 5 }
 0x366   :  { %14312 = vmatprep.mubr.bf16.mxu1 %v19361_v63  ;;  %14533 = vmatpush3.bf16.msra.mxu1 %v19605_v10  ;;  %v7613_v63 = vor.u32 %v7612_v59, %v7609_v0  ;;  %v7623_v10 = vor.u32 %v7622_v42, %v19672_v58  ;;  %v12121_v15 = vcombine.low %v7438_v12, %v7441_v45  ;;  %v7650_v2 = vshll.u32 %v16029_v37, 16  ;;  %v19744_v20 = vld [vmem:[%s21053_s4 + $0x78] sm:$0xff]  }
 0x367   :  { %14534 = vmatprep.subr.bf16.mxu1 %v19622_v61  ;;  %v7668_v0 = vshrl.u32 %v19710_v60, 16  ;;  %v7628_v59 = vrot.slane %v7626_v39, 5  ;;  %v7637_v42 = vor.u32 %v7636_v9, %v7633_v23  ;;  %v8592_v45 = vshrl.u32 %v19705_v16, 16 }
 0x368   :  { %14325 = vmatpush3.bf16.msra.mxu0 %v19678_v36  ;;  %v7624_v12 = vrot.slane %v7623_v10, 4  ;;  %v7652_v37 = vrot.slane %v7650_v2, 5  ;;  %v8595_v9 = vshll.u32 %v19705_v16, 16  ;;  %v7657_v39 = vrot.slane %v7655_v1, 4  ;;  %v19728_v10 = vld [vmem:[#allocation2 + $0x120] sm:$0xf] }
 0x369   :  { %14326 = vmatprep.subr.bf16.mxu0 %v19702_v38  ;;  %v7660_v23 = vrot.slane %v7658_v7, 5  ;;  %v7648_v31 = vrot.slane %v7647_v41, 4  ;;  %v8601_v2 = vshll.u32 %v19731_v24, 16  ;;  %v8594_v7 = vrot.slane %v8592_v45, 4  ;;  %v19749_v41 = vld [vmem:[#allocation2 + $0x124] sm:$0xf] }
 0x36a   :  { %14535 = vmatpush3.bf16.msra.mxu1 %v19622_v61  ;;  %v7614_v61 = vrot.slane %v7613_v63, 4  ;;  %v7670_v63 = vrot.slane %v7668_v0, 4  ;;  %v7629_v1 = vsel %vm16855_vm7, %v7624_v12, %v7628_v59  ;;  %v8616_v0 = vshrl.u32 %v19728_v10, 16  ;;  %v16035_v12 = vld [vmem:[#allocation2 + $0x104] sm:$0x1] }
 0x36b   :  { %14536 = vmatprep.subr.bf16.mxu1 %v19637_v34  ;;  %v7661_v59 = vor.u32 %v7660_v23, %v7657_v39  ;;  %v7674_v45 = vshll.u32 %v16035_v12, 16  ;;  %v8597_v44 = vrot.slane %v8595_v9, 5  ;;  %v7653_v14 = vsel %vm16855_vm7, %v7648_v31, %v7652_v37  ;;  %v19766_v39 = vld [vmem:[#allocation2 + $0x12c] sm:$0xf]  ;;  %v19771_v9 = vld [vmem:[%s21053_s4] sm:$0xff]  }
 0x36c   :  { %14327 = vmatpush3.bf16.msra.mxu0 %v19702_v38  ;;  %v19761_v13 = vrot.slane %v8601_v2, 5  ;;  %v8607_v6 = vrot.slane %v8605_v49, 4  ;;  %v16037_v12 = vld [vmem:[#allocation2 + $0x11c] sm:$0x1] }
 0x36d   :  { %14313 = vmatmul.mubr.bf16.gmra.mrb[44].mxu1 %v12121_v15  ;;  %14328 = vmatprep.subr.bf16.mxu0 %v19721_v25  ;;  %v7638_v15 = vrot.slane %v7637_v42, 4  ;;  %v8619_v42 = vshll.u32 %v19728_v10, 16  ;;  %v7676_v2 = vrot.slane %v7674_v45, 5 }
 0x36e   :  { %14537 = vmatpush3.bf16.msra.mxu1 %v19637_v34  ;;  %14548 = vmatprep.mubr.bf16.mxu1 %v12146_v55  ;;  %v7619_v34 = vsel %vm16855_vm7, %v7614_v61, %v19672_v58  ;;  %v8625_v55 = vshll.u32 %v19749_v41, 16  ;;  %v8629_v58 = vshrl.u32 %v19749_v41, 16  ;;  %v7671_v61 = vor.u32 %v7670_v63, %v19726_v46 }
 0x36f   :  { %14538 = vmatprep.subr.bf16.mxu1 %v19658_v5  ;;  %v7643_v30 = vsel %vm16855_vm7, %v7638_v15, %v19688_v8  ;;  %v8618_v8 = vrot.slane %v8616_v0, 4  ;;  %v8621_v23 = vrot.slane %v8619_v42, 5  ;;  %v7662_v15 = vrot.slane %v7661_v59, 4 }
 0x370   :  { %14329 = vmatpush3.bf16.msra.mxu0 %v19721_v25  ;;  %v19774_v63 = vrot.slane %v8625_v55, 5  ;;  %v8631_v37 = vrot.slane %v8629_v58, 4  ;;  %v19777_v49 = vcombine.low %v7643_v30, %v7653_v14  ;;  %v7672_v31 = vrot.slane %v7671_v61, 4  ;;  %v19786_v30 = vld [vmem:[#allocation2 + $0x130] sm:$0xf] }
 0x371   :  { %14330 = vmatprep.subr.bf16.mxu0 %v19744_v20  ;;  %v8611_v0 = vshll.u32 %v16037_v12, 16  ;;  %v8640_v42 = vshrl.u32 %v19766_v39, 16  ;;  %v8643_v14 = vshll.u32 %v19766_v39, 16  ;;  %v8653_v55 = vshrl.u32 %v19786_v30, 16  ;;  %v16040_v58 = vld [vmem:[#allocation2 + $0x128] sm:$0x1] }
 0x372   :  { %14539 = vmatpush3.bf16.msra.mxu1 %v19658_v5  ;;  %v19764_v5 = vcombine.low %v7619_v34, %v7629_v1  ;;  %v8598_v34 = vor.u32 %v8597_v44, %v8594_v7  ;;  %v8608_v1 = vor.u32 %v8607_v6, %v19761_v13  ;;  %v16039_v6 = vld [vmem:[%s21053_s4 + $0x8] sm:$0xff]   ;;  %v8622_v44 = vor.u32 %v8621_v23, %v8618_v8 }
 0x373   :  { %14540 = vmatprep.subr.bf16.mxu1 %v19678_v36  ;;  %v8632_v7 = vor.u32 %v8631_v37, %v19774_v63  ;;  %v8635_v59 = vshll.u32 %v16040_v58, 16  ;;  %v7667_v61 = vsel %vm16855_vm7, %v7662_v15, %v19726_v46  ;;  %v7677_v45 = vsel %vm16855_vm7, %v7672_v31, %v7676_v2  ;;  %v16041_v46 = vld [vmem:[%s21053_s4 + $0x10] sm:$0xff]  }
 0x374   :  { %14331 = vmatpush3.bf16.msra.mxu0 %v19744_v20  ;;  %v8599_v12 = vrot.slane %v8598_v34, 4  ;;  %v8609_v3 = vrot.slane %v8608_v1, 4  ;;  %v8613_v33 = vrot.slane %v8611_v0, 5  ;;  %v8642_v32 = vrot.slane %v8640_v42, 4  ;;  %v16042_v0 = vld [vmem:[#allocation2 + $0x134] sm:$0x1] }
 0x375   :  { %14340 = vmatprep.subr.bf16.mxu0 %v19771_v9  ;;  %v8645_v8 = vrot.slane %v8643_v14, 5  ;;  %v8655_v37 = vrot.slane %v8653_v55, 4  ;;  %v19803_v58 = vcombine.low %v7667_v61, %v7677_v45  ;;  %v8623_v15 = vrot.slane %v8622_v44, 4  ;;  %v16044_v55 = vld [vmem:[%s21053_s4 + $0x20] sm:$0xff]   ;;  %v16046_v61 = vld [vmem:[%s21053_s4 + $0x30] sm:$0xff]  }
 0x376   :  { %14541 = vmatpush3.bf16.msra.mxu1 %v19678_v36  ;;  %v8649_v36 = vshll.u32 %v19786_v30, 16  ;;  %v8633_v31 = vrot.slane %v8632_v7, 4  ;;  %v8637_v2 = vrot.slane %v8635_v59, 5  ;;  %v8659_v42 = vshll.u32 %v16042_v0, 16  ;;  %v16045_v7 = vld [vmem:[%s21053_s4 + $0x28] sm:$0xff]  }
 0x377   :  { %14542 = vmatprep.subr.bf16.mxu1 %v19702_v38  ;;  %14333 = vmatmul.mubr.bf16.vlgmr.msra.gmra.mrb[48].mxu0 %v19764_v5  ;;  %v8646_v34 = vor.u32 %v8645_v8, %v8642_v32  ;;  %v19863_v45 = vcombine.low %v19653_v35, %v19667_v29  ;;  %v16050_v35 = vld [vmem:[%s21053_s4 + $0x90] sm:$0xff]   ;;  %v21205_v29 = vcombine.low %v19553_v26, %v19558_v50  ;;  %v16052_v26 = vld [vmem:[%s21053_s4 + $0xa0] sm:$0xff]   ;;  %v16053_v50 = vld [vmem:[%s21053_s4 + $0xa8] sm:$0xff]  }
 0x378   :  { %14336 = vmatprep.mubr.bf16.mxu0 %v19777_v49  ;;  %14341 = vmatpush3.bf16.msra.mxu0 %v19771_v9  ;;  %v8651_v23 = vrot.slane %v8649_v36, 5  ;;  %v8638_v14 = vsel %vm16855_vm7, %v8633_v31, %v8637_v2  ;;  %v16060_v8 = vld [vmem:[%s21053_s4 + $0xe0] sm:$0xff]   ;;  %v7566_v31 = vld [vmem:[#allocation2 + $0x108] sm:$0xf]  ;;  %v19954_v2 = vld [vmem:[#allocation2 + $0x10c] sm:$0xf] }
 0x379   :  { %14342 = vmatprep.subr.bf16.mxu0 %v16039_v6  ;;  %v16069_v0 = vld [vmem:[%s21053_s4 + $0x128] sm:$0xff]  }
 0x37a   :  { %14543 = vmatpush3.bf16.msra.mxu1 %v19702_v38  ;;  %v12126_v38 = vcombine.low %v19579_v52, %v19535_v11  ;;  %v8604_v11 = vsel %vm16855_vm7, %v8599_v12, %v19761_v13  ;;  %v8614_v52 = vsel %vm16855_vm7, %v8609_v3, %v8613_v33  ;;  %v8656_v1 = vor.u32 %v8655_v37, %v8651_v23  ;;  %v16043_v13 = vld [vmem:[%s21053_s4 + $0x18] sm:$0xff]   ;;  %v16062_v37 = vld [vmem:[%s21053_s4 + $0xf0] sm:$0xff]  }
 0x37b   :  { %14544 = vmatprep.subr.bf16.mxu1 %v19721_v25  ;;  %v19825_v33 = vcombine.low %v8604_v11, %v8614_v52  ;;  %v8647_v3 = vrot.slane %v8646_v34, 4  ;;  %v16051_v12 = vld [vmem:[%s21053_s4 + $0x98] sm:$0xff]   ;;  %v19957_v11 = vcombine.low %v7566_v31, %v19954_v2  ;;  %v16066_v52 = vld [vmem:[%s21053_s4 + $0x110] sm:$0xff]  }
 0x37c   :  { %14343 = vmatpush3.bf16.msra.mxu0 %v16039_v6  ;;  %v8657_v36 = vrot.slane %v8656_v1, 4  ;;  %v16067_v34 = vld [vmem:[%s21053_s4 + $0x118] sm:$0xff]   ;;  %v16068_v1 = vld [vmem:[%s21053_s4 + $0x120] sm:$0xff]  }
 0x37d   :  { %14344 = vmatprep.subr.bf16.mxu0 %v16041_v46 }
 0x37e   :  { %14545 = vmatpush3.bf16.msra.mxu1 %v19721_v25  ;;  %v8628_v25 = vsel %vm16855_vm7, %v8623_v15, %v19774_v63  ;;  %v8661_v63 = vrot.slane %v8659_v42, 5  ;;  %v16065_v15 = vld [vmem:[%s21053_s4 + $0x108] sm:$0xff]   ;;  %v8053_v42 = vshrl.u32 %v7566_v31, 16 }
 0x37f   :  { %14546 = vmatprep.subr.bf16.mxu1 %v19744_v20  ;;  %14337 = vmatmul.mubr.bf16.gmra.mrb[52].mxu0 %v19803_v58  ;;  %v19828_v32 = vcombine.low %v8628_v25, %v8638_v14  ;;  %v8056_v25 = vshll.u32 %v7566_v31, 16  ;;  %v8066_v14 = vshrl.u32 %v19954_v2, 16  ;;  %v16075_v31 = vld [vmem:[%s21053_s4 + $0x158] sm:$0xff]  }
 0x380   :  { %14345 = vmatpush3.bf16.msra.mxu0 %v16041_v46  ;;  %14356 = vmatprep.mubr.bf16.mxu0 %v12126_v38  ;;  %v8662_v44 = vsel %vm16855_vm7, %v8657_v36, %v8661_v63  ;;  %v16063_v38 = vld [vmem:[%s21053_s4 + $0xf8] sm:$0xff]   ;;  %v16070_v63 = vld [vmem:[%s21053_s4 + $0x130] sm:$0xff]  }
 0x381   :  { %14346 = vmatprep.subr.bf16.mxu0 %v16043_v13 }
 0x382   :  { %14547 = vmatpush3.bf16.msra.mxu1 %v19744_v20  ;;  %v8652_v20 = vsel %vm16855_vm7, %v8647_v3, %v8651_v23  ;;  %v16061_v23 = vld [vmem:[%s21053_s4 + $0xe8] sm:$0xff]   ;;  %v8062_v3 = vshll.u32 %v19954_v2, 16 }
 0x383   :  { %14556 = vmatprep.subr.bf16.mxu1 %v19771_v9  ;;  %v19843_v59 = vcombine.low %v8652_v20, %v8662_v44  ;;  %v8058_v20 = vrot.slane %v8056_v25, 5 }
 0x384   :  { %14347 = vmatpush3.bf16.msra.mxu0 %v16043_v13  ;;  %v8064_v44 = vrot.slane %v8062_v3, 5  ;;  %v16079_v3 = vld [vmem:[%s21053_s4 + $0x178] sm:$0xff]  }
 0x385   :  { %14549 = vmatmul.mubr.bf16.vlgmr.msra.gmra.mrb[48].mxu1 %v19825_v33  ;;  %14348 = vmatprep.subr.bf16.mxu0 %v16044_v55 }
 0x386   :  { %14552 = vmatprep.mubr.bf16.mxu1 %v19828_v32  ;;  %14557 = vmatpush3.bf16.msra.mxu1 %v19771_v9  ;;  %v12150_v9 = vcombine.low %v19608_v47, %v19625_v56  ;;  %v19856_v47 = vcombine.low %v19642_v19, %v19649_v21  ;;  %v16048_v56 = vld [vmem:[%s21053_s4 + $0x80] sm:$0xff]   ;;  %v16049_v19 = vld [vmem:[%s21053_s4 + $0x88] sm:$0xff]   ;;  %v19872_v21 = vcombine.low %v19690_v62, %v19710_v60 }
 0x387   :  { %14558 = vmatprep.subr.bf16.mxu1 %v16039_v6  ;;  %v19886_v62 = vcombine.low %v19705_v16, %v19731_v24  ;;  %v19890_v60 = vcombine.low %v19728_v10, %v19749_v41  ;;  %v19902_v16 = vcombine.low %v19766_v39, %v19786_v30  ;;  %v16054_v10 = vld [vmem:[%s21053_s4 + $0xb0] sm:$0xff]   ;;  %v21206_v24 = vcombine.low %v18952_v53, %v18965_v48  ;;  %v16055_v41 = vld [vmem:[%s21053_s4 + $0xb8] sm:$0xff]   ;;  %v16056_v39 = vld [vmem:[%s21053_s4 + $0xc0] sm:$0xff]  }
 0x388   :  { %14349 = vmatpush3.bf16.msra.mxu0 %v16044_v55  ;;  %v16057_v53 = vld [vmem:[%s21053_s4 + $0xc8] sm:$0xff]   ;;  %v16058_v48 = vld [vmem:[%s21053_s4 + $0xd0] sm:$0xff]   ;;  %v16059_v30 = vld [vmem:[%s21053_s4 + $0xd8] sm:$0xff]  }
 0x389   :  { %14350 = vmatprep.subr.bf16.mxu0 %v16045_v7 }
 0x38a   :  { %14559 = vmatpush3.bf16.msra.mxu1 %v16039_v6  ;;  %v16047_v6 = vld [vmem:[%s21053_s4 + $0x38] sm:$0xff]  }
 0x38b   :  { %14560 = vmatprep.subr.bf16.mxu1 %v16041_v46 }
 0x38c   :  { %14351 = vmatpush3.bf16.msra.mxu0 %v16045_v7 }
 0x38d   :  { %14553 = vmatmul.mubr.bf16.gmra.mrb[52].mxu1 %v19843_v59  ;;  %14352 = vmatprep.subr.bf16.mxu0 %v16046_v61 }
 0x38e   :  { %14561 = vmatpush3.bf16.msra.mxu1 %v16041_v46  ;;  %14572 = vmatprep.mubr.bf16.mxu1 %v12150_v9  ;;  %v16064_v46 = vld [vmem:[%s21053_s4 + $0x100] sm:$0xff]   ;;  %v19987_v9 = vld [vmem:[#allocation2 + $0x110] sm:$0x1] }
 0x38f   :  { %14562 = vmatprep.subr.bf16.mxu1 %v16043_v13 }
 0x390   :  { %14353 = vmatpush3.bf16.msra.mxu0 %v16046_v61 }
 0x391   :  { %14354 = vmatprep.subr.bf16.mxu0 %v16047_v6 }
 0x392   :  { %14563 = vmatpush3.bf16.msra.mxu1 %v16043_v13  ;;  %v19976_v13 = vld [vmem:[#allocation2 + $0x13c] sm:$0xf] }
 0x393   :  { %14564 = vmatprep.subr.bf16.mxu1 %v16044_v55 }
 0x394   :  { %14355 = vmatpush3.bf16.msra.mxu0 %v16047_v6 }
 0x395   :  { %14364 = vmatprep.subr.bf16.mxu0 %v16048_v56 }
 0x396   :  { %14565 = vmatpush3.bf16.msra.mxu1 %v16044_v55  ;;  %v8055_v55 = vrot.slane %v8053_v42, 4  ;;  %v16077_v42 = vld [vmem:[%s21053_s4 + $0x168] sm:$0xff]  }
 0x397   :  { %14566 = vmatprep.subr.bf16.mxu1 %v16045_v7  ;;  %14357 = vmatmul.mubr.bf16.vlgmr.msra.gmra.mrb[48].mxu0 %v19856_v47 }
 0x398   :  { %14360 = vmatprep.mubr.bf16.mxu0 %v19863_v45  ;;  %14365 = vmatpush3.bf16.msra.mxu0 %v16048_v56 }
 0x399   :  { %14366 = vmatprep.subr.bf16.mxu0 %v16049_v19 }
 0x39a   :  { %14567 = vmatpush3.bf16.msra.mxu1 %v16045_v7  ;;  %v8068_v7 = vrot.slane %v8066_v14, 4  ;;  %v16078_v14 = vld [vmem:[%s21053_s4 + $0x170] sm:$0xff]  }
 0x39b   :  { %14568 = vmatprep.subr.bf16.mxu1 %v16046_v61 }
 0x39c   :  { %14367 = vmatpush3.bf16.msra.mxu0 %v16049_v19 }
 0x39d   :  { %14368 = vmatprep.subr.bf16.mxu0 %v16050_v35 }
 0x39e   :  { %14569 = vmatpush3.bf16.msra.mxu1 %v16046_v61  ;;  %v16071_v61 = vld [vmem:[%s21053_s4 + $0x138] sm:$0xff]  }
 0x39f   :  { %14570 = vmatprep.subr.bf16.mxu1 %v16047_v6  ;;  %14361 = vmatmul.mubr.bf16.gmra.mrb[52].mxu0 %v19872_v21 }
 0x3a0   :  { %14369 = vmatpush3.bf16.msra.mxu0 %v16050_v35  ;;  %14380 = vmatprep.mubr.bf16.mxu0 %v21205_v29 }
 0x3a1   :  { %14370 = vmatprep.subr.bf16.mxu0 %v16051_v12 }
 0x3a2   :  { %14571 = vmatpush3.bf16.msra.mxu1 %v16047_v6  ;;  %v8059_v6 = vor.u32 %v8058_v20, %v8055_v55  ;;  %v7580_v55 = vld [vmem:[#allocation2 + $0x108] sm:$0xe]  ;;  %v16080_v20 = vld [vmem:[%s21053_s4 + $0x180] sm:$0xff]  }
 0x3a3   :  { %14580 = vmatprep.subr.bf16.mxu1 %v16048_v56 }
 0x3a4   :  { %14371 = vmatpush3.bf16.msra.mxu0 %v16051_v12 }
 0x3a5   :  { %14573 = vmatmul.mubr.bf16.vlgmr.msra.gmra.mrb[48].mxu1 %v19886_v62  ;;  %14372 = vmatprep.subr.bf16.mxu0 %v16052_v26 }
 0x3a6   :  { %14576 = vmatprep.mubr.bf16.mxu1 %v19890_v60  ;;  %14581 = vmatpush3.bf16.msra.mxu1 %v16048_v56  ;;  %v8072_v56 = vshll.u32 %v19987_v9, 16 }
 0x3a7   :  { %14582 = vmatprep.subr.bf16.mxu1 %v16049_v19 }
 0x3a8   :  { %14373 = vmatpush3.bf16.msra.mxu0 %v16052_v26  ;;  %v8074_v29 = vrot.slane %v8072_v56, 5  ;;  %v9142_v56 = vrot.slane %v19976_v13, 5 }
 0x3a9   :  { %14374 = vmatprep.subr.bf16.mxu0 %v16053_v50 }
 0x3aa   :  { %14583 = vmatpush3.bf16.msra.mxu1 %v16049_v19  ;;  %v8060_v19 = vrot.slane %v8059_v6, 4 }
 0x3ab   :  { %14584 = vmatprep.subr.bf16.mxu1 %v16050_v35 }
 0x3ac   :  { %14375 = vmatpush3.bf16.msra.mxu0 %v16053_v50 }
 0x3ad   :  { %14577 = vmatmul.mubr.bf16.gmra.mrb[52].mxu1 %v19902_v16  ;;  %14376 = vmatprep.subr.bf16.mxu0 %v16054_v10 }
 0x3ae   :  { %14585 = vmatpush3.bf16.msra.mxu1 %v16050_v35  ;;  %14596 = vmatprep.mubr.bf16.mxu1 %v21206_v24  ;;  %v8065_v24 = vsel %vm16855_vm7, %v8060_v19, %v8064_v44  ;;  %v8565_v19 = vld [vmem:[#allocation2 + $0x138] sm:$0xe] }
 0x3af   :  { %14586 = vmatprep.subr.bf16.mxu1 %v16051_v12 }
 0x3b0   :  { %14377 = vmatpush3.bf16.msra.mxu0 %v16054_v10 }
 0x3b1   :  { %14378 = vmatprep.subr.bf16.mxu0 %v16055_v41 }
 0x3b2   :  { %14587 = vmatpush3.bf16.msra.mxu1 %v16051_v12 }
 0x3b3   :  { %14588 = vmatprep.subr.bf16.mxu1 %v16052_v26 }
 0x3b4   :  { %14379 = vmatpush3.bf16.msra.mxu0 %v16055_v41 }
 0x3b5   :  { %14388 = vmatprep.subr.bf16.mxu0 %v16056_v39 }
 0x3b6   :  { %14589 = vmatpush3.bf16.msra.mxu1 %v16052_v26  ;;  %v9051_v26 = vshrl.u32 %v19976_v13, 16 }
 0x3b7   :  { %14590 = vmatprep.subr.bf16.mxu1 %v16053_v50  ;;  %14381 = vmatmul.mubr.bf16.vlgmr.msra.gmra.mrb[48].mxu0 %v18978_v43 }
 0x3b8   :  { %14384 = vmatprep.mubr.bf16.mxu0 %v18998_v17  ;;  %14389 = vmatpush3.bf16.msra.mxu0 %v16056_v39 }
 0x3b9   :  { %14390 = vmatprep.subr.bf16.mxu0 %v16057_v53 }
 0x3ba   :  { %14591 = vmatpush3.bf16.msra.mxu1 %v16053_v50  ;;  %v9047_v50 = vshll.u32 %v19976_v13, 16 }
 0x3bb   :  { %14592 = vmatprep.subr.bf16.mxu1 %v16054_v10 }
 0x3bc   :  { %14391 = vmatpush3.bf16.msra.mxu0 %v16057_v53 }
 0x3bd   :  { %14392 = vmatprep.subr.bf16.mxu0 %v16058_v48 }
 0x3be   :  { %14593 = vmatpush3.bf16.msra.mxu1 %v16054_v10  ;;  %v16073_v10 = vld [vmem:[%s21053_s4 + $0x148] sm:$0xff]  }
 0x3bf   :  { %14594 = vmatprep.subr.bf16.mxu1 %v16055_v41  ;;  %14385 = vmatmul.mubr.bf16.gmra.mrb[52].mxu0 %v19004_v40 }
 0x3c0   :  { %14393 = vmatpush3.bf16.msra.mxu0 %v16058_v48  ;;  %14404 = vmatprep.mubr.bf16.mxu0 %v19856_v47  ;;  %v8069_v47 = vor.u32 %v8068_v7, %v8064_v44  ;;  %v8160_v7 = vrot.slane %v19987_v9, 5 }
 0x3c1   :  { %14394 = vmatprep.subr.bf16.mxu0 %v16059_v30 }
 0x3c2   :  { %14595 = vmatpush3.bf16.msra.mxu1 %v16055_v41  ;;  %v8070_v35 = vrot.slane %v8069_v47, 4  ;;  %v16082_v47 = vld [vmem:[%s21053_s4 + $0x190] sm:$0xff]  }
 0x3c3   :  { %14604 = vmatprep.subr.bf16.mxu1 %v16056_v39 }
 0x3c4   :  { %14395 = vmatpush3.bf16.msra.mxu0 %v16059_v30  ;;  %v8075_v41 = vsel %vm16855_vm7, %v8070_v35, %v8074_v29  ;;  %v12164_v35 = vrot.slane %v8565_v19, 9  ;;  %v9144_v29 = vrot.slane %v9142_v56, 4 }
 0x3c5   :  { %14597 = vmatmul.mubr.bf16.vlgmr.msra.gmra.mrb[48].mxu1 %v19014_v28  ;;  %14396 = vmatprep.subr.bf16.mxu0 %v16060_v8 }
 0x3c6   :  { %14600 = vmatprep.mubr.bf16.mxu1 %v19021_v57  ;;  %14605 = vmatpush3.bf16.msra.mxu1 %v16056_v39 }
 0x3c7   :  { %14606 = vmatprep.subr.bf16.mxu1 %v16057_v53 }
 0x3c8   :  { %14397 = vmatpush3.bf16.msra.mxu0 %v16060_v8 }
 0x3c9   :  { %14398 = vmatprep.subr.bf16.mxu0 %v16061_v23 }
 0x3ca   :  { %14607 = vmatpush3.bf16.msra.mxu1 %v16057_v53 }
 0x3cb   :  { %14608 = vmatprep.subr.bf16.mxu1 %v16058_v48 }
 0x3cc   :  { %14399 = vmatpush3.bf16.msra.mxu0 %v16061_v23 }
 0x3cd   :  { %14601 = vmatmul.mubr.bf16.gmra.mrb[52].mxu1 %v19034_v18  ;;  %14400 = vmatprep.subr.bf16.mxu0 %v16062_v37 }
 0x3ce   :  { %14609 = vmatpush3.bf16.msra.mxu1 %v16058_v48  ;;  %14620 = vmatprep.mubr.bf16.mxu1 %v19886_v62  ;;  %v9049_v48 = vrot.slane %v9047_v50, 5 }
 0x3cf   :  { %14610 = vmatprep.subr.bf16.mxu1 %v16059_v30 }
 0x3d0   :  { %14401 = vmatpush3.bf16.msra.mxu0 %v16062_v37 }
 0x3d1   :  { %14402 = vmatprep.subr.bf16.mxu0 %v16063_v38 }
 0x3d2   :  { %14611 = vmatpush3.bf16.msra.mxu1 %v16059_v30  ;;  %v9053_v30 = vrot.slane %v9051_v26, 4  ;;  %v20080_v26 = vld [vmem:[%s21053_s4 + $0x1a8] sm:$0xff]  }
 0x3d3   :  { %14612 = vmatprep.subr.bf16.mxu1 %v16060_v8 }
 0x3d4   :  { %14403 = vmatpush3.bf16.msra.mxu0 %v16063_v38 }
 0x3d5   :  { %14412 = vmatprep.subr.bf16.mxu0 %v16064_v46 }
 0x3d6   :  { %14613 = vmatpush3.bf16.msra.mxu1 %v16060_v8  ;;  %v20007_v8 = vcombine.low %v8065_v24, %v8075_v41  ;;  %v20088_v41 = vld [vmem:[%s21054_s5] ss:$0 sm:$0xff] }
 0x3d7   :  { %14614 = vmatprep.subr.bf16.mxu1 %v16061_v23  ;;  %14405 = vmatmul.mubr.bf16.vlgmr.msra.gmra.mrb[48].mxu0 %v19863_v45 }
 0x3d8   :  { %14408 = vmatprep.mubr.bf16.mxu0 %v19872_v21  ;;  %14413 = vmatpush3.bf16.msra.mxu0 %v16064_v46 }
 0x3d9   :  { %14414 = vmatprep.subr.bf16.mxu0 %v16065_v15 }
 0x3da   :  { %14615 = vmatpush3.bf16.msra.mxu1 %v16061_v23  ;;  %v16074_v23 = vld [vmem:[%s21053_s4 + $0x150] sm:$0xff]  }
 0x3db   :  { %14616 = vmatprep.subr.bf16.mxu1 %v16062_v37 }
 0x3dc   :  { %14415 = vmatpush3.bf16.msra.mxu0 %v16065_v15 }
 0x3dd   :  { %14416 = vmatprep.subr.bf16.mxu0 %v16066_v52 }
 0x3de   :  { %14617 = vmatpush3.bf16.msra.mxu1 %v16062_v37  ;;  %v20012_v37 = vld [vmem:[#allocation2 + $0x140] sm:$0x1] }
 0x3df   :  { %14618 = vmatprep.subr.bf16.mxu1 %v16063_v38  ;;  %14409 = vmatmul.mubr.bf16.gmra.mrb[52].mxu0 %v19957_v11 }
 0x3e0   :  { %14417 = vmatpush3.bf16.msra.mxu0 %v16066_v52  ;;  %14428 = vmatprep.mubr.bf16.mxu0 %v19764_v5  ;;  %v8551_v5 = vld [vmem:[#allocation2 + $0x138] sm:$0xf] }
 0x3e1   :  { %14418 = vmatprep.subr.bf16.mxu0 %v16067_v34  ;;  %v19980_v36 = vcombine.low %v8551_v5, %v19976_v13  ;;  %v9038_v12 = vshrl.u32 %v8551_v5, 16  ;;  %v9041_v62 = vshll.u32 %v8551_v5, 16  ;;  %v9143_v13 = vsel %vm17178_vm14, %v12164_v35, %v9142_v56 }
 0x3e2   :  { %14619 = vmatpush3.bf16.msra.mxu1 %v16063_v38 }
 0x3e3   :  { %14628 = vmatprep.subr.bf16.mxu1 %v16064_v46  ;;  %v9040_v39 = vrot.slane %v9038_v12, 4  ;;  %v9043_v53 = vrot.slane %v9041_v62, 5  ;;  %v9145_v12 = vrot.slane %v20012_v37, 5 }
 0x3e4   :  { %14419 = vmatpush3.bf16.msra.mxu0 %v16067_v34 }
 0x3e5   :  { %14621 = vmatmul.mubr.bf16.vlgmr.msra.gmra.mrb[48].mxu1 %v19890_v60  ;;  %14420 = vmatprep.subr.bf16.mxu0 %v16068_v1  ;;  %v9044_v38 = vor.u32 %v9043_v53, %v9040_v39  ;;  %v9146_v62 = vsel %vm17178_vm14, %v9144_v29, %v9145_v12 }
 0x3e6   :  { %14624 = vmatprep.mubr.bf16.mxu1 %v19902_v16  ;;  %14629 = vmatpush3.bf16.msra.mxu1 %v16064_v46  ;;  %v9054_v46 = vor.u32 %v9053_v30, %v9049_v48 }
 0x3e7   :  { %14630 = vmatprep.subr.bf16.mxu1 %v16065_v15 }
 0x3e8   :  { %14421 = vmatpush3.bf16.msra.mxu0 %v16068_v1 }
 0x3e9   :  { %14422 = vmatprep.subr.bf16.mxu0 %v16069_v0 }
 0x3ea   :  { %14631 = vmatpush3.bf16.msra.mxu1 %v16065_v15  ;;  %v9057_v15 = vshll.u32 %v20012_v37, 16  ;;  %v20104_v37 = vld [vmem:[%s21055_s6] ss:$0 sm:$0xff] }
 0x3eb   :  { %14632 = vmatprep.subr.bf16.mxu1 %v16066_v52 }
 0x3ec   :  { %14423 = vmatpush3.bf16.msra.mxu0 %v16069_v0 }
 0x3ed   :  { %14625 = vmatmul.mubr.bf16.gmra.mrb[52].mxu1 %v19980_v36  ;;  %14424 = vmatprep.subr.bf16.mxu0 %v16070_v63 }
 0x3ee   :  { %14633 = vmatpush3.bf16.msra.mxu1 %v16066_v52  ;;  %14644 = vmatprep.mubr.bf16.mxu1 %v19825_v33  ;;  %v16072_v33 = vld [vmem:[%s21053_s4 + $0x140] sm:$0xff]   ;;  %v9045_v52 = vrot.slane %v9044_v38, 4 }
 0x3ef   :  { %14634 = vmatprep.subr.bf16.mxu1 %v16067_v34 }
 0x3f0   :  { %14425 = vmatpush3.bf16.msra.mxu0 %v16070_v63  ;;  %v9050_v5 = vsel %vm16855_vm7, %v9045_v52, %v9049_v48 }
 0x3f1   :  { %14426 = vmatprep.subr.bf16.mxu0 %v16071_v61 }
 0x3f2   :  { %14635 = vmatpush3.bf16.msra.mxu1 %v16067_v34  ;;  %v9055_v34 = vrot.slane %v9054_v46, 4 }
 0x3f3   :  { %14636 = vmatprep.subr.bf16.mxu1 %v16068_v1 }
 0x3f4   :  { %14427 = vmatpush3.bf16.msra.mxu0 %v16071_v61 }
 0x3f5   :  { %14436 = vmatprep.subr.bf16.mxu0 %v16072_v33 }
 0x3f6   :  { %14637 = vmatpush3.bf16.msra.mxu1 %v16068_v1  ;;  %v9059_v1 = vrot.slane %v9057_v15, 5 }
 0x3f7   :  { %14638 = vmatprep.subr.bf16.mxu1 %v16069_v0  ;;  %14429 = vmatmul.mubr.bf16.vlgmr.msra.gmra.mrb[48].mxu0 %v19777_v49 }
 0x3f8   :  { %14432 = vmatprep.mubr.bf16.mxu0 %v19803_v58  ;;  %14437 = vmatpush3.bf16.msra.mxu0 %v16072_v33 }
 0x3f9   :  { %14438 = vmatprep.subr.bf16.mxu0 %v16073_v10 }
 0x3fa   :  { %14639 = vmatpush3.bf16.msra.mxu1 %v16069_v0  ;;  %v9060_v0 = vsel %vm16855_vm7, %v9055_v34, %v9059_v1 }
 0x3fb   :  { %14640 = vmatprep.subr.bf16.mxu1 %v16070_v63  ;;  %v20032_v25 = vcombine.low %v9050_v5, %v9060_v0 }
 0x3fc   :  { %14439 = vmatpush3.bf16.msra.mxu0 %v16073_v10 }
 0x3fd   :  { %14440 = vmatprep.subr.bf16.mxu0 %v16074_v23 }
 0x3fe   :  { %14641 = vmatpush3.bf16.msra.mxu1 %v16070_v63  ;;  %v8157_v63 = vrot.slane %v19954_v2, 5  ;;  %v16081_v2 = vld [vmem:[%s21053_s4 + $0x188] sm:$0xff]  }
 0x3ff   :  { %14642 = vmatprep.subr.bf16.mxu1 %v16071_v61  ;;  %14433 = vmatmul.mubr.bf16.gmra.mrb[52].mxu0 %v20007_v8 }
 0x400   :  { %14441 = vmatpush3.bf16.msra.mxu0 %v16074_v23  ;;  %14452 = vmatprep.mubr.bf16.mxu0 %v18978_v43  ;;  %v16076_v43 = vld [vmem:[%s21053_s4 + $0x160] sm:$0xff]   ;;  %v8159_v44 = vrot.slane %v8157_v63, 4 }
 0x401   :  { %14442 = vmatprep.subr.bf16.mxu0 %v16075_v31 }
 0x402   :  { %14643 = vmatpush3.bf16.msra.mxu1 %v16071_v61  ;;  %v8161_v6 = vsel %vm17178_vm14, %v8159_v44, %v8160_v7  ;;  %v20126_v44 = vld [vmem:[%s21053_s4 + $0x1c0] sm:$0xff]  }
 0x403   :  { %14652 = vmatprep.subr.bf16.mxu1 %v16072_v33 }
 0x404   :  { %14443 = vmatpush3.bf16.msra.mxu0 %v16075_v31 }
 0x405   :  { %14645 = vmatmul.mubr.bf16.vlgmr.msra.gmra.mrb[48].mxu1 %v19828_v32  ;;  %14444 = vmatprep.subr.bf16.mxu0 %v16076_v43 }
 0x406   :  { %14648 = vmatprep.mubr.bf16.mxu1 %v19843_v59  ;;  %14653 = vmatpush3.bf16.msra.mxu1 %v16072_v33  ;;  %v16083_v33 = vld [vmem:[%s21053_s4 + $0x198] sm:$0xff]  }
 0x407   :  { %14654 = vmatprep.subr.bf16.mxu1 %v16073_v10 }
 0x408   :  { %14445 = vmatpush3.bf16.msra.mxu0 %v16076_v43 }
 0x409   :  { %14446 = vmatprep.subr.bf16.mxu0 %v16077_v42 }
 0x40a   :  { %14655 = vmatpush3.bf16.msra.mxu1 %v16073_v10  ;;  %v20083_v10 = vcombine.low %v9143_v13, %v9146_v62 }
 0x40b   :  { %14656 = vmatprep.subr.bf16.mxu1 %v16074_v23 }
 0x40c   :  { %14447 = vmatpush3.bf16.msra.mxu0 %v16077_v42 }
 0x40d   :  { %14649 = vmatmul.mubr.bf16.gmra.mrb[52].mxu1 %v20032_v25  ;;  %14448 = vmatprep.subr.bf16.mxu0 %v16078_v14 }
 0x40e   :  { %14657 = vmatpush3.bf16.msra.mxu1 %v16074_v23  ;;  %14668 = vmatprep.mubr.bf16.mxu1 %v19014_v28  ;;  %v12140_v28 = vrot.slane %v7580_v55, 9  ;;  %v20097_v23 = vld [vmem:[%s21053_s4 + $0x1b0] sm:$0xff]  }
 0x40f   :  { %14658 = vmatprep.subr.bf16.mxu1 %v16075_v31 }
 0x410   :  { %14449 = vmatpush3.bf16.msra.mxu0 %v16078_v14  ;;  %v8158_v61 = vsel %vm17178_vm14, %v12140_v28, %v8157_v63 }
 0x411   :  { %14450 = vmatprep.subr.bf16.mxu0 %v16079_v3  ;;  %v20056_v9 = vcombine.low %v8158_v61, %v8161_v6 }
 0x412   :  { %14659 = vmatpush3.bf16.msra.mxu1 %v16075_v31 }
 0x413   :  { %14660 = vmatprep.subr.bf16.mxu1 %v16076_v43 }
 0x414   :  { %14451 = vmatpush3.bf16.msra.mxu0 %v16079_v3 }
 0x415   :  { %14460 = vmatprep.subr.bf16.mxu0 %v16080_v20 }
 0x416   :  { %14661 = vmatpush3.bf16.msra.mxu1 %v16076_v43 }
 0x417   :  { %14662 = vmatprep.subr.bf16.mxu1 %v16077_v42  ;;  %14453 = vmatmul.mubr.bf16.vlgmr.msra.gmra.mrb[48].mxu0 %v18998_v17 }
 0x418   :  { %14456 = vmatprep.mubr.bf16.mxu0 %v19004_v40  ;;  %14461 = vmatpush3.bf16.msra.mxu0 %v16080_v20 }
 0x419   :  { %14462 = vmatprep.subr.bf16.mxu0 %v16081_v2 }
 0x41a   :  { %14663 = vmatpush3.bf16.msra.mxu1 %v16077_v42 }
 0x41b   :  { %14664 = vmatprep.subr.bf16.mxu1 %v16078_v14 }
 0x41c   :  { %14463 = vmatpush3.bf16.msra.mxu0 %v16081_v2 }
 0x41d   :  { %14464 = vmatprep.subr.bf16.mxu0 %v16082_v47 }
 0x41e   :  { %14665 = vmatpush3.bf16.msra.mxu1 %v16078_v14 }
 0x41f   :  { %14666 = vmatprep.subr.bf16.mxu1 %v16079_v3  ;;  %14457 = vmatmul.mubr.bf16.gmra.mrb[52].mxu0 %v20056_v9 }
 0x420   :  { %14465 = vmatpush3.bf16.msra.mxu0 %v16082_v47  ;;  %14476 = vmatprep.mubr.bf16.mxu0 %v19863_v45  ;;  %v16084_v45 = vld [vmem:[%s21053_s4 + $0x1a0] sm:$0xff]  }
 0x421   :  { %14466 = vmatprep.subr.bf16.mxu0 %v16083_v33 }
 0x422   :  { %14667 = vmatpush3.bf16.msra.mxu1 %v16079_v3 }
 0x423   :  { %14676 = vmatprep.subr.bf16.mxu1 %v16080_v20 }
 0x424   :  { %14467 = vmatpush3.bf16.msra.mxu0 %v16083_v33 }
 0x425   :  { %14669 = vmatmul.mubr.bf16.vlgmr.msra.gmra.mrb[48].mxu1 %v19021_v57  ;;  %14468 = vmatprep.subr.bf16.mxu0 %v16084_v45 }
 0x426   :  { %14672 = vmatprep.mubr.bf16.mxu1 %v19034_v18  ;;  %14677 = vmatpush3.bf16.msra.mxu1 %v16080_v20 }
 0x427   :  { %14678 = vmatprep.subr.bf16.mxu1 %v16081_v2 }
 0x428   :  { %14469 = vmatpush3.bf16.msra.mxu0 %v16084_v45 }
 0x429   :  { %14470 = vmatprep.subr.bf16.mxu0 %v20080_v26 }
 0x42a   :  { %14679 = vmatpush3.bf16.msra.mxu1 %v16081_v2  ;;  %v14094_v50 = vpop.f32.mrb[40].mxu0 }
 0x42b   :  { %14680 = vmatprep.subr.bf16.mxu1 %v16082_v47  ;;  %v6494_v24 = vpop.f32.mrb[41].mxu0  ;;  %v6535_v39 = vmul.f32 %v20088_v41, %v14094_v50 }
 0x42c   :  { %v6533_v53 = vmul.f32 %v20088_v41, %v6494_v24  ;;  %v14095_v48 = vpop.f32.mrb[42].mxu0  ;;  %14471 = vmatpush3.bf16.msra.mxu0 %v20080_v26 }
 0x42d   :  { %14673 = vmatmul.mubr.bf16.gmra.mrb[52].mxu1 %v20083_v10  ;;  %v6497_v30 = vpop.f32.mrb[43].mxu0  ;;  %14472 = vmatprep.subr.bf16.mxu0 %v20097_v23  ;;  %v6536_v46 = vmul.f32 %v20088_v41, %v14095_v48  ;;  %v6543_v31 = vadd.f32 %v20104_v37, %v6535_v39 }
 0x42e   :  { %14681 = vmatpush3.bf16.msra.mxu1 %v16082_v47  ;;  %14692 = vmatprep.mubr.bf16.mxu1 %v19890_v60  ;;  %v6541_v38 = vadd.f32 %v20104_v37, %v6533_v53  ;;  %v6534_v15 = vmul.f32 %v20088_v41, %v6497_v30  ;;  %v20115_v60 = vld [vmem:[%s21053_s4 + $0x1b8] sm:$0xff]  }
 0x42f   :  { %14682 = vmatprep.subr.bf16.mxu1 %v16083_v33  ;;  %v6544_v1 = vadd.f32 %v20104_v37, %v6536_v46  ;;  %v6551_v42 = vmax.f32 %v6543_v31, 0.0  ;;  %v20152_v46 = vld [vmem:[#allocation2 + $0x114] sm:$0xf] }
 0x430   :  { %v6542_v52 = vadd.f32 %v20104_v37, %v6534_v15  ;;  %14473 = vmatpush3.bf16.msra.mxu0 %v20097_v23  ;;  %v6549_v34 = vmax.f32 %v6541_v38, 0.0  ;;  %v20154_v15 = vld [vmem:[#allocation2 + $0x118] sm:$0xf]  ;;  %v20161_v31 = vld [vmem:[%s21053_s4 + $0x1d0] sm:$0xff]  }
 0x431   :  { %14474 = vmatprep.subr.bf16.mxu0 %v20115_v60  ;;  %v6552_v7 = vmax.f32 %v6544_v1, 0.0 }
 0x432   :  { %14683 = vmatpush3.bf16.msra.mxu1 %v16083_v33  ;;  %v6550_v43 = vmax.f32 %v6542_v52, 0.0  ;;  %v14098_v5 = vpop.f32.mrb[44].mxu0 }
 0x433   :  { %14684 = vmatprep.subr.bf16.mxu1 %v16084_v45  ;;  %v6510_v0 = vpop.f32.mrb[45].mxu0  ;;  %v6539_v3 = vmul.f32 %v20088_v41, %v14098_v5 }
 0x434   :  { %v6557_v14 = vadd.f32 %v6550_v43, %v6549_v34  ;;  %v6537_v63 = vmul.f32 %v20088_v41, %v6510_v0  ;;  %v14099_v55 = vpop.f32.mrb[46].mxu0  ;;  %14475 = vmatpush3.bf16.msra.mxu0 %v20115_v60 }
 0x435   :  { %v6540_v20 = vmul.f32 %v20088_v41, %v14099_v55  ;;  %v6513_v28 = vpop.f32.mrb[47].mxu0  ;;  %14484 = vmatprep.subr.bf16.mxu0 %v20126_v44  ;;  %v6547_v47 = vadd.f32 %v20104_v37, %v6539_v3 }
 0x436   :  { %v6558_v2 = vadd.f32 %v6557_v14, %v6551_v42  ;;  %14685 = vmatpush3.bf16.msra.mxu1 %v16084_v45  ;;  %v6545_v61 = vadd.f32 %v20104_v37, %v6537_v63  ;;  %v6538_v6 = vmul.f32 %v20088_v41, %v6513_v28  ;;  %v20141_v45 = vld [vmem:[%s21053_s4 + $0x1c8] sm:$0xff]  }
 0x437   :  { %14686 = vmatprep.subr.bf16.mxu1 %v20080_v26  ;;  %14477 = vmatmul.mubr.bf16.vlgmr.msra.gmra.mrb[48].mxu0 %v19872_v21  ;;  %v6548_v12 = vadd.f32 %v20104_v37, %v6540_v20  ;;  %v6555_v53 = vmax.f32 %v6547_v47, 0.0 }
 0x438   :  { %v14310_v56 = vpop.f32.mrb[40].mxu1  ;;  %v6553_v33 = vmax.f32 %v6545_v61, 0.0  ;;  %v6559_v19 = vadd.f32 %v6558_v2, %v6552_v7  ;;  %v6546_v35 = vadd.f32 %v20104_v37, %v6538_v6  ;;  %14480 = vmatprep.mubr.bf16.mxu0 %v19957_v11  ;;  %14485 = vmatpush3.bf16.msra.mxu0 %v20126_v44 }
 0x439   :  { %v7480_v29 = vpop.f32.mrb[41].mxu1  ;;  %14486 = vmatprep.subr.bf16.mxu0 %v20141_v45  ;;  %v7521_v21 = vmul.f32 %v20088_v41, %v14310_v56  ;;  %v6556_v34 = vmax.f32 %v6548_v12, 0.0 }
 0x43a   :  { %v6560_v13 = vadd.f32 %v6559_v19, %v6553_v33  ;;  %v7519_v62 = vmul.f32 %v20088_v41, %v7480_v29  ;;  %v14311_v50 = vpop.f32.mrb[42].mxu1  ;;  %14687 = vmatpush3.bf16.msra.mxu1 %v20080_v26  ;;  %v6554_v11 = vmax.f32 %v6546_v35, 0.0  ;;  %v12142_v26 = vcombine.low %v20152_v46, %v20154_v15 }
 0x43b   :  { %v7522_v24 = vmul.f32 %v20088_v41, %v14311_v50  ;;  %v7483_v39 = vpop.f32.mrb[43].mxu1  ;;  %14688 = vmatprep.subr.bf16.mxu1 %v20097_v23  ;;  %v7529_v52 = vadd.f32 %v20104_v37, %v7521_v21 }
 0x43c   :  { %v7527_v48 = vadd.f32 %v20104_v37, %v7519_v62  ;;  %v6561_v30 = vadd.f32 %v6560_v13, %v6554_v11  ;;  %v7520_v38 = vmul.f32 %v20088_v41, %v7483_v39  ;;  %14487 = vmatpush3.bf16.msra.mxu0 %v20141_v45  ;;  %v8322_v39 = vshll.u32 %v20152_v46, 16 }
 0x43d   :  { %14488 = vmatprep.subr.bf16.mxu0 %v20161_v31  ;;  %v7530_v5 = vadd.f32 %v20104_v37, %v7522_v24  ;;  %v7537_v20 = vmax.f32 %v7529_v52, 0.0  ;;  %v8319_v24 = vshrl.u32 %v20152_v46, 16 }
 0x43e   :  { %v6562_v1 = vadd.f32 %v6561_v30, %v6555_v53  ;;  %v7528_v43 = vadd.f32 %v20104_v37, %v7520_v38  ;;  %14689 = vmatpush3.bf16.msra.mxu1 %v20097_v23  ;;  %v7535_v0 = vmax.f32 %v7527_v48, 0.0  ;;  %v20175_v23 = vld [vmem:[%s21053_s4 + $0x1d8] sm:$0xff]   ;;  %v8332_v53 = vshrl.u32 %v20154_v15, 16  ;;  %v20198_v48 = vld [vmem:[#allocation2 + $0x144] sm:$0xf] }
 0x43f   :  { %14690 = vmatprep.subr.bf16.mxu1 %v20115_v60  ;;  %14481 = vmatmul.mubr.bf16.gmra.mrb[52].mxu0 %v12142_v26  ;;  %v7538_v6 = vmax.f32 %v7530_v5, 0.0  ;;  %v8328_v26 = vshll.u32 %v20154_v15, 16  ;;  %v8324_v5 = vrot.slane %v8322_v39, 5 }
 0x440   :  { %v6563_v42 = vadd.f32 %v6562_v1, %v6556_v34  ;;  %v7536_v14 = vmax.f32 %v7528_v43, 0.0  ;;  %v14314_v3 = vpop.f32.mrb[44].mxu1  ;;  %14489 = vmatpush3.bf16.msra.mxu0 %v20161_v31  ;;  %14500 = vmatprep.mubr.bf16.mxu0 %v19777_v49  ;;  %v8321_v43 = vrot.slane %v8319_v24, 4 }
 0x441   :  { %v7525_v63 = vmul.f32 %v20088_v41, %v14314_v3  ;;  %v7496_v55 = vpop.f32.mrb[45].mxu1  ;;  %14490 = vmatprep.subr.bf16.mxu0 %v20175_v23  ;;  %v8334_v3 = vrot.slane %v8332_v53, 4 }
 0x442   :  { %v6564_v28 = vrot.slane %v6563_v42, 4  ;;  %v7543_v7 = vadd.f32 %v7536_v14, %v7535_v0  ;;  %v7523_v2 = vmul.f32 %v20088_v41, %v7496_v55  ;;  %v14315_v61 = vpop.f32.mrb[46].mxu1  ;;  %14691 = vmatpush3.bf16.msra.mxu1 %v20115_v60  ;;  %v16094_v60 = vld [vmem:[%s21053_s4 + $0x1e0] sm:$0xff]   ;;  %v8330_v14 = vrot.slane %v8328_v26, 5 }
 0x443   :  { %v7526_v49 = vmul.f32 %v20088_v41, %v14315_v61  ;;  %v7499_v47 = vpop.f32.mrb[47].mxu1  ;;  %14700 = vmatprep.subr.bf16.mxu1 %v20126_v44  ;;  %v7533_v29 = vadd.f32 %v20104_v37, %v7525_v63  ;;  %v20217_v63 = vld [vmem:[#allocation2 + $0x11c] sm:$0x1] }
 0x444   :  { %v6565_v56 = vadd.f32 %v6564_v28, %v6563_v42  ;;  %v7544_v33 = vadd.f32 %v7543_v7, %v7537_v20  ;;  %v7531_v19 = vadd.f32 %v20104_v37, %v7523_v2  ;;  %v7524_v35 = vmul.f32 %v20088_v41, %v7499_v47  ;;  %14491 = vmatpush3.bf16.msra.mxu0 %v20175_v23  ;;  %v16097_v20 = vld [vmem:[%s21053_s4 + $0x1f8] sm:$0xff]   ;;  %v16098_v2 = vld [vmem:[%s21053_s4 + $0x200] sm:$0xff]  }
 0x445   :  { %14693 = vmatmul.mubr.bf16.vlgmr.msra.gmra.mrb[48].mxu1 %v19902_v16  ;;  %14492 = vmatprep.subr.bf16.mxu0 %v16094_v60  ;;  %v7534_v16 = vadd.f32 %v20104_v37, %v7526_v49  ;;  %v7541_v30 = vmax.f32 %v7533_v29, 0.0  ;;  %v16099_v29 = vld [vmem:[%s21053_s4 + $0x208] sm:$0xff]  }
 0x446   :  { %v6566_v12 = vrot.slane %v6565_v56, 2  ;;  %v7539_v21 = vmax.f32 %v7531_v19, 0.0  ;;  %v7545_v13 = vadd.f32 %v7544_v33, %v7538_v6  ;;  %v7532_v62 = vadd.f32 %v20104_v37, %v7524_v35  ;;  %14696 = vmatprep.mubr.bf16.mxu1 %v19980_v36  ;;  %14701 = vmatpush3.bf16.msra.mxu1 %v20126_v44  ;;  %v16095_v36 = vld [vmem:[%s21053_s4 + $0x1e8] sm:$0xff]  }
 0x447   :  { %14702 = vmatprep.subr.bf16.mxu1 %v20141_v45  ;;  %v20204_v37 = vld [vmem:[#allocation2 + $0x148] sm:$0xf]  ;;  %v7542_v34 = vmax.f32 %v7534_v16, 0.0  ;;  %v9307_v33 = vshll.u32 %v20198_v48, 16  ;;  %v16100_v16 = vld [vmem:[%s21053_s4 + $0x210] sm:$0xff]  }
 0x448   :  { %v6567_v41 = vadd.f32 %v6566_v12, %v6565_v56  ;;  %v7546_v50 = vadd.f32 %v7545_v13, %v7539_v21  ;;  %v7540_v11 = vmax.f32 %v7532_v62, 0.0  ;;  %14493 = vmatpush3.bf16.msra.mxu0 %v16094_v60  ;;  %v12166_v46 = vcombine.low %v20198_v48, %v20204_v37 }
 0x449   :  { %14494 = vmatprep.subr.bf16.mxu0 %v16095_v36  ;;  %v9304_v56 = vshrl.u32 %v20198_v48, 16  ;;  %v9317_v19 = vshrl.u32 %v20204_v37, 16  ;;  %v9313_v35 = vshll.u32 %v20204_v37, 16  ;;  %v16101_v48 = vld [vmem:[%s21053_s4 + $0x218] sm:$0xff]  }
 0x44a   :  { %v6568_v44 = vrot.slane %v6567_v41, 1  ;;  %v7547_v38 = vadd.f32 %v7546_v50, %v7540_v11  ;;  %14703 = vmatpush3.bf16.msra.mxu1 %v20141_v45  ;;  %v16096_v45 = vld [vmem:[%s21053_s4 + $0x1f0] sm:$0xff]   ;;  %v20245_v11 = vld [vmem:[#allocation2 + $0x14c] sm:$0x1] }
 0x44b   :  { %14704 = vmatprep.subr.bf16.mxu1 %v20161_v31  ;;  %v9306_v21 = vrot.slane %v9304_v56, 4  ;;  %v9315_v62 = vrot.slane %v9313_v35, 5  ;;  %v9323_v53 = vshll.u32 %v20245_v11, 16 }
 0x44c   :  { %v6569_v52 = vadd.f32 %v6568_v44, %v6567_v41  ;;  %v7548_v1 = vadd.f32 %v7547_v38, %v7541_v30  ;;  %14495 = vmatpush3.bf16.msra.mxu0 %v16095_v36  ;;  %v9319_v41 = vrot.slane %v9317_v19, 4  ;;  %v20257_v38 = vld [vmem:[#allocation2 + $0x138] sm:$0xf]  ;;  %v20301_v19 = vld [vmem:[%s21053_s4 + $0x48] sm:$0xff]  }
 0x44d   :  { %14697 = vmatmul.mubr.bf16.gmra.mrb[52].mxu1 %v12166_v46  ;;  %14496 = vmatprep.subr.bf16.mxu0 %v16096_v45  ;;  %v9325_v30 = vrot.slane %v9323_v53, 5 }
 0x44e   :  { %v6570_v0 = vadd.f32 %v6569_v52, %v19545_v51  ;;  %v7549_v42 = vadd.f32 %v7548_v1, %v7542_v34  ;;  %14705 = vmatpush3.bf16.msra.mxu1 %v20161_v31  ;;  %14716 = vmatprep.mubr.bf16.mxu1 %v19828_v32  ;;  %v8325_v51 = vor.u32 %v8324_v5, %v8321_v43  ;;  %v8338_v32 = vshll.u32 %v20217_v63, 16  ;;  %v20268_v1 = vld [vmem:[#allocation2 + $0x13c] sm:$0xf] }
 0x44f   :  { %14706 = vmatprep.subr.bf16.mxu1 %v20175_v23  ;;  %v8335_v31 = vor.u32 %v8334_v3, %v8330_v14  ;;  %v9320_v39 = vor.u32 %v9319_v41, %v9315_v62  ;;  %v9554_v52 = vshrl.u32 %v20257_v38, 16  ;;  %v9557_v34 = vshll.u32 %v20257_v38, 16 }
 0x450   :  { %v7550_v55 = vrot.slane %v7549_v42, 4  ;;  %14497 = vmatpush3.bf16.msra.mxu0 %v16096_v45  ;;  %v8326_v6 = vrot.slane %v8325_v51, 4  ;;  %v8340_v47 = vrot.slane %v8338_v32, 5  ;;  %v9563_v43 = vshll.u32 %v20268_v1, 16 }
 0x451   :  { %14498 = vmatprep.subr.bf16.mxu0 %v16097_v20  ;;  %v8336_v49 = vrot.slane %v8335_v31, 4  ;;  %v9321_v44 = vrot.slane %v9320_v39, 4  ;;  %v9567_v5 = vshrl.u32 %v20268_v1, 16  ;;  %v9408_v39 = vrot.slane %v20204_v37, 5  ;;  %v20341_v37 = vld [vmem:[%s21053_s4 + $0x58] sm:$0xff]  }
 0x452   :  { %v7551_v28 = vadd.f32 %v7550_v55, %v7549_v42  ;;  %14707 = vmatpush3.bf16.msra.mxu1 %v20175_v23  ;;  %v9559_v42 = vrot.slane %v9557_v34, 5  ;;  %v20279_v55 = vld [vmem:[%s21053_s4 + $0x238] sm:$0xff]  }
 0x453   :  { %14708 = vmatprep.subr.bf16.mxu1 %v16094_v60  ;;  %v8341_v12 = vsel %vm16855_vm7, %v8336_v49, %v8340_v47  ;;  %v9326_v46 = vsel %vm16855_vm7, %v9321_v44, %v9325_v30  ;;  %v9569_v3 = vrot.slane %v9567_v5, 4  ;;  %v20348_v5 = vld [vmem:[#allocation2 + $0x154] sm:$0xf] }
 0x454   :  { %v7552_v7 = vrot.slane %v7551_v28, 2  ;;  %14499 = vmatpush3.bf16.msra.mxu0 %v16097_v20 }
 0x455   :  { %14508 = vmatprep.subr.bf16.mxu0 %v16098_v2 }
 0x456   :  { %v7553_v61 = vadd.f32 %v7552_v7, %v7551_v28  ;;  %14709 = vmatpush3.bf16.msra.mxu1 %v16094_v60  ;;  %v16107_v28 = vld [vmem:[#allocation2 + $0x140] sm:$0x1]  ;;  %v20284_v7 = vld [vmem:[#allocation2 + $0x168] sm:$0xf] }
 0x457   :  { %14710 = vmatprep.subr.bf16.mxu1 %v16095_v36  ;;  %14501 = vmatmul.mubr.bf16.vlgmr.msra.gmra.mrb[48].mxu0 %v19803_v58  ;;  %v8331_v58 = vsel %vm16855_vm7, %v8326_v6, %v8330_v14  ;;  %v9565_v14 = vrot.slane %v9563_v43, 5  ;;  %v9573_v51 = vshll.u32 %v16107_v28, 16  ;;  %v8426_v6 = vrot.slane %v20217_v63, 5  ;;  %v20304_v63 = vld [vmem:[#allocation2 + $0x16c] sm:$0xf] }
 0x458   :  { %v7554_v23 = vrot.slane %v7553_v61, 1  ;;  %14504 = vmatprep.mubr.bf16.mxu0 %v20007_v8  ;;  %14509 = vmatpush3.bf16.msra.mxu0 %v16098_v2  ;;  %v9309_v8 = vrot.slane %v9307_v33, 5  ;;  %v12143_v50 = vcombine.low %v8331_v58, %v8341_v12  ;;  %v10543_v33 = vshll.u32 %v20284_v7, 16 }
 0x459   :  { %14510 = vmatprep.subr.bf16.mxu0 %v16099_v29  ;;  %v9570_v32 = vor.u32 %v9569_v3, %v9565_v14  ;;  %v9575_v49 = vrot.slane %v9573_v51, 5  ;;  %v10553_v35 = vshrl.u32 %v20304_v63, 16  ;;  %v9411_v3 = vrot.slane %v20245_v11, 5 }
 0x45a   :  { %v7555_v60 = vadd.f32 %v7554_v23, %v7553_v61  ;;  %14711 = vmatpush3.bf16.msra.mxu1 %v16095_v36  ;;  %v9310_v24 = vor.u32 %v9309_v8, %v9306_v21  ;;  %v10540_v23 = vshrl.u32 %v20284_v7, 16  ;;  %v10545_v21 = vrot.slane %v10543_v33, 5  ;;  %v16117_v33 = vld [vmem:[#allocation2 + $0x14c] sm:$0x1] }
 0x45b   :  { %14712 = vmatprep.subr.bf16.mxu1 %v16096_v45  ;;  %v9571_v56 = vrot.slane %v9570_v32, 4 }
 0x45c   :  { %v20240_v13 = vadd.f32 %v7555_v60, %v6570_v0  ;;  %14511 = vmatpush3.bf16.msra.mxu0 %v16099_v29  ;;  %v9311_v36 = vrot.slane %v9310_v24, 4  ;;  %v9556_v0 = vrot.slane %v9554_v52, 4  ;;  %v10542_v12 = vrot.slane %v10540_v23, 4  ;;  %v16114_v52 = vld [vmem:[#allocation2 + $0x170] sm:$0x1] }
 0x45d   :  { %14512 = vmatprep.subr.bf16.mxu0 %v16100_v16  ;;  %v9576_v58 = vsel %vm16855_vm7, %v9571_v56, %v9575_v49 }
 0x45e   :  { %14713 = vmatpush3.bf16.msra.mxu1 %v16096_v45  ;;  %v9316_v26 = vsel %vm16855_vm7, %v9311_v36, %v9315_v62  ;;  %v16105_v45 = vld [vmem:[%s21053_s4 + $0x230] sm:$0xff]   ;;  %v9560_v31 = vor.u32 %v9559_v42, %v9556_v0  ;;  %v10546_v53 = vor.u32 %v10545_v21, %v10542_v12  ;;  %v8566_v36 = vld [vmem:[#allocation2 + $0x144] sm:$0xe]  ;;  %v9615_v0 = vshrl.u32 %v20348_v5, 16 }
 0x45f   :  { %14714 = vmatprep.subr.bf16.mxu1 %v16097_v20  ;;  %14505 = vmatmul.mubr.bf16.gmra.mrb[52].mxu0 %v12143_v50  ;;  %v20320_v62 = vld [vmem:[%s21053_s4 + $0x50] sm:$0xff]   ;;  %v10555_v50 = vrot.slane %v10553_v35, 4  ;;  %v12168_v42 = vrot.slane %v8566_v36, 9 }
 0x460   :  { %14513 = vmatpush3.bf16.msra.mxu0 %v16100_v16  ;;  %14524 = vmatprep.mubr.bf16.mxu0 %v18998_v17  ;;  %v16102_v17 = vld [vmem:[%s21053_s4 + $0x220] sm:$0xff]   ;;  %v9561_v47 = vrot.slane %v9560_v31, 4  ;;  %v9617_v49 = vrot.slane %v9615_v0, 4 }
 0x461   :  { %14514 = vmatprep.subr.bf16.mxu0 %v16101_v48  ;;  %v20361_v31 = vld [vmem:[%s21053_s4 + $0x60] sm:$0xff]  }
 0x462   :  { %14715 = vmatpush3.bf16.msra.mxu1 %v16097_v20  ;;  %v8423_v20 = vrot.slane %v20154_v15, 5  ;;  %v9566_v60 = vsel %vm16855_vm7, %v9561_v47, %v9565_v14  ;;  %v9410_v14 = vrot.slane %v9408_v39, 4  ;;  %v20368_v47 = vld [vmem:[#allocation2 + $0x15c] sm:$0xf]  ;;  %v20409_v0 = vld [vmem:[#allocation2 + $0x180] sm:$0xf] }
 0x463   :  { %14724 = vmatprep.subr.bf16.mxu1 %v16098_v2  ;;  %v12170_v24 = vcombine.low %v9566_v60, %v9576_v58  ;;  %v9626_v58 = vshrl.u32 %v20368_v47, 16  ;;  %v9629_v12 = vshll.u32 %v20368_v47, 16 }
 0x464   :  { %14515 = vmatpush3.bf16.msra.mxu0 %v16101_v48  ;;  %v8425_v15 = vrot.slane %v8423_v20, 4  ;;  %v9412_v56 = vsel %vm17178_vm14, %v9410_v14, %v9411_v3  ;;  %v20414_v3 = vld [vmem:[#allocation2 + $0x178] sm:$0xf] }
 0x465   :  { %14717 = vmatmul.mubr.bf16.vlgmr.msra.gmra.mrb[48].mxu1 %v19843_v59  ;;  %14516 = vmatprep.subr.bf16.mxu0 %v16102_v17  ;;  %v16103_v59 = vld [vmem:[%s21053_s4 + $0x228] sm:$0xff]  }
 0x466   :  { %14720 = vmatprep.mubr.bf16.mxu1 %v20032_v25  ;;  %14725 = vmatpush3.bf16.msra.mxu1 %v16098_v2  ;;  %v12167_v25 = vcombine.low %v9316_v26, %v9326_v46  ;;  %v20289_v2 = vld [vmem:[%s21053_s4 + $0x40] sm:$0xff]  }
 0x467   :  { %14726 = vmatprep.subr.bf16.mxu1 %v16099_v29 }
 0x468   :  { %14517 = vmatpush3.bf16.msra.mxu0 %v16102_v17 }
 0x469   :  { %14518 = vmatprep.subr.bf16.mxu0 %v16103_v59 }
 0x46a   :  { %14727 = vmatpush3.bf16.msra.mxu1 %v16099_v29 }
 0x46b   :  { %14728 = vmatprep.subr.bf16.mxu1 %v16100_v16 }
 0x46c   :  { %14519 = vmatpush3.bf16.msra.mxu0 %v16103_v59 }
 0x46d   :  { %14721 = vmatmul.mubr.bf16.gmra.mrb[52].mxu1 %v12167_v25  ;;  %14520 = vmatprep.subr.bf16.mxu0 %v16105_v45  ;;  %v10559_v25 = vshll.u32 %v16114_v52, 16  ;;  %v9631_v52 = vrot.slane %v9629_v12, 5 }
 0x46e   :  { %14729 = vmatpush3.bf16.msra.mxu1 %v16100_v16  ;;  %14740 = vmatprep.mubr.bf16.mxu1 %v19021_v57  ;;  %v7581_v57 = vld [vmem:[#allocation2 + $0x114] sm:$0xe]  ;;  %v20325_v16 = vld [vmem:[#allocation2 + $0x144] sm:$0xf] }
 0x46f   :  { %14730 = vmatprep.subr.bf16.mxu1 %v16101_v48  ;;  %v12144_v61 = vrot.slane %v7581_v57, 9  ;;  %v9578_v44 = vshrl.u32 %v20325_v16, 16  ;;  %v9581_v30 = vshll.u32 %v20325_v16, 16 }
 0x470   :  { %14521 = vmatpush3.bf16.msra.mxu0 %v16105_v45 }
 0x471   :  { %14522 = vmatprep.subr.bf16.mxu0 %v20279_v55  ;;  %v8424_v29 = vsel %vm17178_vm14, %v12144_v61, %v8423_v20  ;;  %v10547_v20 = vrot.slane %v10546_v53, 4  ;;  %v9583_v28 = vrot.slane %v9581_v30, 5  ;;  %v10561_v61 = vrot.slane %v10559_v25, 5 }
 0x472   :  { %14731 = vmatpush3.bf16.msra.mxu1 %v16101_v48  ;;  %v20329_v48 = vld [vmem:[#allocation2 + $0x150] sm:$0xf] }
 0x473   :  { %14732 = vmatprep.subr.bf16.mxu1 %v16102_v17  ;;  %v9602_v34 = vshrl.u32 %v20329_v48, 16  ;;  %v9605_v43 = vshll.u32 %v20329_v48, 16 }
 0x474   :  { %14523 = vmatpush3.bf16.msra.mxu0 %v20279_v55 }
 0x475   :  { %14748 = vmatprep.subr.bf16.mxu0 %v20289_v2  ;;  %v9604_v11 = vrot.slane %v9602_v34, 4 }
 0x476   :  { %14733 = vmatpush3.bf16.msra.mxu1 %v16102_v17  ;;  %v20334_v17 = vld [vmem:[#allocation2 + $0x148] sm:$0xf] }
 0x477   :  { %14734 = vmatprep.subr.bf16.mxu1 %v16103_v59  ;;  %14525 = vmatmul.mubr.bf16.vlgmr.msra.gmra.mrb[48].mxu0 %v19004_v40  ;;  %v10549_v40 = vshll.u32 %v20304_v63, 16  ;;  %v9587_v26 = vshll.u32 %v20334_v17, 16  ;;  %v9591_v46 = vshrl.u32 %v20334_v17, 16 }
 0x478   :  { %14528 = vmatprep.mubr.bf16.mxu0 %v20056_v9  ;;  %14749 = vmatpush3.bf16.msra.mxu0 %v20289_v2  ;;  %v8427_v9 = vsel %vm17178_vm14, %v8425_v15, %v8426_v6  ;;  %v9607_v15 = vrot.slane %v9605_v43, 5 }
 0x479   :  { %14750 = vmatprep.subr.bf16.mxu0 %v20301_v19  ;;  %v12145_v8 = vcombine.low %v8424_v29, %v8427_v9  ;;  %v20323_v41 = vrot.slane %v10549_v40, 5  ;;  %v20355_v51 = vrot.slane %v9587_v26, 5  ;;  %v9593_v57 = vrot.slane %v9591_v46, 4  ;;  %v20385_v29 = vld [vmem:[%s21053_s4 + $0x68] sm:$0xff]   ;;  %v16119_v9 = vld [vmem:[#allocation2 + $0x158] sm:$0x1] }
 0x47a   :  { %14735 = vmatpush3.bf16.msra.mxu1 %v16103_v59  ;;  %v9597_v40 = vshll.u32 %v16117_v33, 16  ;;  %v9621_v60 = vshll.u32 %v16119_v9, 16  ;;  %v9608_v21 = vor.u32 %v9607_v15, %v9604_v11  ;;  %v20398_v26 = vld [vmem:[#allocation2 + $0x174] sm:$0xf]  ;;  %v10588_v11 = vshrl.u32 %v20409_v0, 16 }
 0x47b   :  { %14736 = vmatprep.subr.bf16.mxu1 %v16105_v45  ;;  %v10556_v59 = vor.u32 %v10555_v50, %v20323_v41  ;;  %v9594_v23 = vor.u32 %v9593_v57, %v20355_v51  ;;  %v10567_v14 = vshll.u32 %v20398_v26, 16  ;;  %v16123_v57 = vld [vmem:[#allocation2 + $0x164] sm:$0x1]  ;;  %v10591_v15 = vshll.u32 %v20409_v0, 16 }
 0x47c   :  { %14751 = vmatpush3.bf16.msra.mxu0 %v20301_v19  ;;  %v9599_v30 = vrot.slane %v9597_v40, 5  ;;  %v9623_v46 = vrot.slane %v9621_v60, 5  ;;  %v9609_v25 = vrot.slane %v9608_v21, 4  ;;  %v10590_v60 = vrot.slane %v10588_v11, 4 }
 0x47d   :  { %14752 = vmatprep.subr.bf16.mxu0 %v20320_v62  ;;  %v10557_v32 = vrot.slane %v10556_v59, 4  ;;  %v9628_v59 = vrot.slane %v9626_v58, 4  ;;  %v10569_v40 = vrot.slane %v10567_v14, 5  ;;  %v10593_v58 = vrot.slane %v10591_v15, 5 }
 0x47e   :  { %14737 = vmatpush3.bf16.msra.mxu1 %v16105_v45  ;;  %v9611_v45 = vshll.u32 %v20348_v5, 16 }
 0x47f   :  { %14738 = vmatprep.subr.bf16.mxu1 %v20279_v55  ;;  %14529 = vmatmul.mubr.bf16.gmra.mrb[52].mxu0 %v12145_v8  ;;  %v10562_v35 = vsel %vm16855_vm7, %v10557_v32, %v10561_v61  ;;  %v9645_v32 = vshll.u32 %v16123_v57, 16  ;;  %v20427_v61 = vld [vmem:[%s21053_s4 + $0x78] sm:$0xff]  }
 0x480   :  { %14753 = vmatpush3.bf16.msra.mxu0 %v20320_v62  ;;  %14764 = vmatprep.mubr.bf16.mxu0 %v12170_v24  ;;  %v20366_v6 = vrot.slane %v9611_v45, 5 }
 0x481   :  { %14754 = vmatprep.subr.bf16.mxu0 %v20341_v37 }
 0x482   :  { %14739 = vmatpush3.bf16.msra.mxu1 %v20279_v55  ;;  %v9580_v55 = vrot.slane %v9578_v44, 4  ;;  %v9618_v8 = vor.u32 %v9617_v49, %v20366_v6  ;;  %v9595_v44 = vrot.slane %v9594_v23, 4  ;;  %v20432_v49 = vld [vmem:[#allocation2 + $0x184] sm:$0xf] }
 0x483   :  { %14964 = vmatprep.subr.bf16.mxu1 %v20289_v2 }
 0x484   :  { %14755 = vmatpush3.bf16.msra.mxu0 %v20341_v37  ;;  %v9619_v34 = vrot.slane %v9618_v8, 4  ;;  %v20457_v8 = vld [vmem:[#allocation2 + $0x18c] sm:$0xf] }
 0x485   :  { %14741 = vmatmul.mubr.bf16.vlgmr.msra.gmra.mrb[48].mxu1 %v19034_v18  ;;  %14756 = vmatprep.subr.bf16.mxu0 %v20361_v31  ;;  %v9409_v18 = vsel %vm17178_vm14, %v12168_v42, %v9408_v39  ;;  %v10564_v42 = vshrl.u32 %v20398_v26, 16 }
 0x486   :  { %14744 = vmatprep.mubr.bf16.mxu1 %v20083_v10  ;;  %14965 = vmatpush3.bf16.msra.mxu1 %v20289_v2  ;;  %v10552_v10 = vsel %vm16855_vm7, %v10547_v20, %v20323_v41  ;;  %v9584_v2 = vor.u32 %v9583_v28, %v9580_v55  ;;  %v20392_v41 = vld [vmem:[#allocation2 + $0x160] sm:$0xf]  ;;  %v12169_v39 = vcombine.low %v9409_v18, %v9412_v56  ;;  %v10573_v20 = vshll.u32 %v20414_v3, 16 }
 0x487   :  { %14966 = vmatprep.subr.bf16.mxu1 %v20301_v19  ;;  %v9635_v50 = vshll.u32 %v20392_v41, 16  ;;  %v9639_v24 = vshrl.u32 %v20392_v41, 16  ;;  %v12194_v53 = vcombine.low %v10552_v10, %v10562_v35  ;;  %v9600_v28 = vsel %vm16855_vm7, %v9595_v44, %v9599_v30  ;;  %v16127_v30 = vld [vmem:[#allocation2 + $0x17c] sm:$0x1] }
 0x488   :  { %14757 = vmatpush3.bf16.msra.mxu0 %v20361_v31  ;;  %v9585_v36 = vrot.slane %v9584_v2, 4  ;;  %v10601_v18 = vshrl.u32 %v20432_v49, 16  ;;  %v9614_v56 = vsel %vm16855_vm7, %v9609_v25, %v20366_v6  ;;  %v9624_v10 = vsel %vm16855_vm7, %v9619_v34, %v9623_v46  ;;  %v20452_v6 = vld [vmem:[%s21053_s4] sm:$0xff]  }
 0x489   :  { %14758 = vmatprep.subr.bf16.mxu0 %v20385_v29  ;;  %v20407_v43 = vrot.slane %v9635_v50, 5  ;;  %v9641_v45 = vrot.slane %v9639_v24, 4  ;;  %v9632_v2 = vor.u32 %v9631_v52, %v9628_v59  ;;  %v10566_v33 = vrot.slane %v10564_v42, 4  ;;  %v20469_v52 = vld [vmem:[#allocation2 + $0x190] sm:$0xf] }
 0x48a   :  { %14967 = vmatpush3.bf16.msra.mxu1 %v20301_v19  ;;  %v20403_v19 = vld [vmem:[%s21053_s4 + $0x70] sm:$0xff]   ;;  %v9590_v55 = vsel %vm16855_vm7, %v9585_v36, %v20355_v51  ;;  %v10597_v51 = vshll.u32 %v20432_v49, 16  ;;  %v20444_v35 = vrot.slane %v10573_v20, 5  ;;  %v10603_v21 = vrot.slane %v10601_v18, 4  ;;  %v16130_v20 = vld [vmem:[#allocation2 + $0x188] sm:$0x1] }
 0x48b   :  { %14968 = vmatprep.subr.bf16.mxu1 %v20320_v62  ;;  %v9642_v23 = vor.u32 %v9641_v45, %v20407_v43  ;;  %v20460_v50 = vcombine.low %v9614_v56, %v9624_v10  ;;  %v9633_v24 = vrot.slane %v9632_v2, 4  ;;  %v10570_v36 = vor.u32 %v10569_v40, %v10566_v33  ;;  %v16129_v45 = vld [vmem:[%s21053_s4 + $0x8] sm:$0xff]  }
 0x48c   :  { %14759 = vmatpush3.bf16.msra.mxu0 %v20385_v29  ;;  %v20455_v12 = vrot.slane %v10597_v51, 5  ;;  %v10583_v46 = vshll.u32 %v16127_v30, 16  ;;  %v10615_v59 = vshll.u32 %v20457_v8, 16  ;;  %v10621_v25 = vshll.u32 %v20469_v52, 16 }
 0x48d   :  { %14745 = vmatmul.mubr.bf16.gmra.mrb[52].mxu1 %v12169_v39  ;;  %14760 = vmatprep.subr.bf16.mxu0 %v20403_v19  ;;  %v9643_v39 = vrot.slane %v9642_v23, 4  ;;  %v10625_v34 = vshrl.u32 %v20469_v52, 16  ;;  %v10594_v42 = vor.u32 %v10593_v58, %v10590_v60  ;;  %v10571_v57 = vrot.slane %v10570_v36, 4 }
 0x48e   :  { %14969 = vmatpush3.bf16.msra.mxu1 %v20320_v62  ;;  %14980 = vmatprep.mubr.bf16.mxu1 %v12194_v53  ;;  %v10577_v62 = vshrl.u32 %v20414_v3, 16  ;;  %v9647_v53 = vrot.slane %v9645_v32, 5  ;;  %v10604_v14 = vor.u32 %v10603_v21, %v20455_v12  ;;  %v10585_v11 = vrot.slane %v10583_v46, 5  ;;  %v16132_v21 = vld [vmem:[#allocation2 + $0x194] sm:$0x1]  ;;  %v16135_v46 = vld [vmem:[%s21053_s4 + $0x28] sm:$0xff]  }
 0x48f   :  { %14970 = vmatprep.subr.bf16.mxu1 %v20341_v37  ;;  %v10617_v51 = vrot.slane %v10615_v59, 5  ;;  %v10623_v18 = vrot.slane %v10621_v25, 5  ;;  %v10627_v56 = vrot.slane %v10625_v34, 4  ;;  %v12174_v33 = vcombine.low %v20257_v38, %v20268_v1  ;;  %v16136_v59 = vld [vmem:[%s21053_s4 + $0x30] sm:$0xff]   ;;  %v16137_v25 = vld [vmem:[%s21053_s4 + $0x38] sm:$0xff]  }
 0x490   :  { %14761 = vmatpush3.bf16.msra.mxu0 %v20403_v19  ;;  %v10579_v9 = vrot.slane %v10577_v62, 4  ;;  %v10607_v62 = vshll.u32 %v16130_v20, 16  ;;  %v10605_v2 = vrot.slane %v10604_v14, 4  ;;  %v10576_v40 = vsel %vm16855_vm7, %v10571_v57, %v20444_v35  ;;  %v21211_v14 = vld [vmem:[#allocation21_spill] sm:$0xff]  ;;  %v21212_v20 = vld [vmem:[#allocation6_spill] sm:$0xff] }
 0x491   :  { %14762 = vmatprep.subr.bf16.mxu0 %v20427_v61  ;;  %v10628_v58 = vor.u32 %v10627_v56, %v10623_v18  ;;  %v20546_v34 = vcombine.low %v20329_v48, %v20348_v5  ;;  %v16140_v48 = vld [vmem:[%s21053_s4 + $0x90] sm:$0xff]   ;;  %v21207_v5 = vcombine.low %v19142_v54, %v19147_v27  ;;  %v16142_v54 = vld [vmem:[%s21053_s4 + $0xa0] sm:$0xff]   ;;  %v16143_v27 = vld [vmem:[%s21053_s4 + $0xa8] sm:$0xff]  }
 0x492   :  { %14971 = vmatpush3.bf16.msra.mxu1 %v20341_v37  ;;  %v20447_v37 = vcombine.low %v9590_v55, %v9600_v28  ;;  %v10580_v44 = vor.u32 %v10579_v9, %v20444_v35  ;;  %v9638_v55 = vsel %vm16855_vm7, %v9633_v24, %v20407_v43  ;;  %v9648_v28 = vsel %vm16855_vm7, %v9643_v39, %v9647_v53  ;;  %v16133_v35 = vld [vmem:[%s21053_s4 + $0x18] sm:$0xff]   ;;  %v16152_v56 = vld [vmem:[%s21053_s4 + $0xf0] sm:$0xff]  }
 0x493   :  { %14972 = vmatprep.subr.bf16.mxu1 %v20361_v31  ;;  %v20484_v10 = vcombine.low %v9638_v55, %v9648_v28  ;;  %v10595_v43 = vrot.slane %v10594_v42, 4  ;;  %v10609_v23 = vrot.slane %v10607_v62, 5  ;;  %v10629_v36 = vrot.slane %v10628_v58, 4  ;;  %v16147_v62 = vld [vmem:[%s21053_s4 + $0xc8] sm:$0xff]   ;;  %v16148_v55 = vld [vmem:[%s21053_s4 + $0xd0] sm:$0xff]   ;;  %v16149_v57 = vld [vmem:[%s21053_s4 + $0xd8] sm:$0xff]  }
 0x494   :  { %14763 = vmatpush3.bf16.msra.mxu0 %v20427_v61  ;;  %v10581_v32 = vrot.slane %v10580_v44, 4  ;;  %v16134_v44 = vld [vmem:[%s21053_s4 + $0x20] sm:$0xff]   ;;  %v21213_v28 = vld [vmem:[#allocation7_spill] sm:$0xff] }
 0x495   :  { %14772 = vmatprep.subr.bf16.mxu0 %v20452_v6  ;;  %v10600_v38 = vsel %vm16855_vm7, %v10595_v43, %v20455_v12  ;;  %v10610_v1 = vsel %vm16855_vm7, %v10605_v2, %v10609_v23  ;;  %v16154_v43 = vld [vmem:[%s21053_s4 + $0x100] sm:$0xff]   ;;  %v16155_v2 = vld [vmem:[%s21053_s4 + $0x108] sm:$0xff]  }
 0x496   :  { %14973 = vmatpush3.bf16.msra.mxu1 %v20361_v31  ;;  %v10612_v31 = vshrl.u32 %v20457_v8, 16  ;;  %v10586_v9 = vsel %vm16855_vm7, %v10581_v32, %v10585_v11  ;;  %v20511_v39 = vcombine.low %v10600_v38, %v10610_v1  ;;  %v21214_v32 = vld [vmem:[#allocation24_spill] sm:$0xff]  ;;  %v16150_v11 = vld [vmem:[%s21053_s4 + $0xe0] sm:$0xff]   ;;  %v9537_v23 = vld [vmem:[#allocation2 + $0x168] sm:$0xf] }
 0x497   :  { %14974 = vmatprep.subr.bf16.mxu1 %v20385_v29  ;;  %14765 = vmatmul.mubr.bf16.vlgmr.msra.gmra.mrb[56].mxu0 %v20447_v37  ;;  %v20508_v24 = vcombine.low %v10576_v40, %v10586_v9  ;;  %v16156_v9 = vld [vmem:[%s21053_s4 + $0x110] sm:$0xff]   ;;  %v16158_v58 = vld [vmem:[%s21053_s4 + $0x120] sm:$0xff]   ;;  %v10027_v38 = vshll.u32 %v9537_v23, 16 }
 0x498   :  { %14768 = vmatprep.mubr.bf16.mxu0 %v20460_v50  ;;  %14773 = vmatpush3.bf16.msra.mxu0 %v20452_v6  ;;  %v10614_v15 = vrot.slane %v10612_v31, 4 }
 0x499   :  { %14774 = vmatprep.subr.bf16.mxu0 %v16129_v45 }
 0x49a   :  { %14975 = vmatpush3.bf16.msra.mxu1 %v20385_v29  ;;  %v16131_v29 = vld [vmem:[%s21053_s4 + $0x10] sm:$0xff]   ;;  %v10618_v60 = vor.u32 %v10617_v51, %v10614_v15  ;;  %v21215_v15 = vld [vmem:[#allocation22_spill] sm:$0xff] }
 0x49b   :  { %14976 = vmatprep.subr.bf16.mxu1 %v20403_v19  ;;  %v16151_v51 = vld [vmem:[%s21053_s4 + $0xe8] sm:$0xff]  }
 0x49c   :  { %14775 = vmatpush3.bf16.msra.mxu0 %v16129_v45  ;;  %v10619_v53 = vrot.slane %v10618_v60, 4  ;;  %v16157_v60 = vld [vmem:[%s21053_s4 + $0x118] sm:$0xff]  }
 0x49d   :  { %14776 = vmatprep.subr.bf16.mxu0 %v16131_v29 }
 0x49e   :  { %14977 = vmatpush3.bf16.msra.mxu1 %v20403_v19  ;;  %v10631_v19 = vshll.u32 %v16132_v21, 16  ;;  %v16159_v21 = vld [vmem:[%s21053_s4 + $0x128] sm:$0xff]  }
 0x49f   :  { %14978 = vmatprep.subr.bf16.mxu1 %v20427_v61  ;;  %14769 = vmatmul.mubr.bf16.gmra.mrb[60].mxu0 %v20484_v10 }
 0x4a0   :  { %14777 = vmatpush3.bf16.msra.mxu0 %v16131_v29  ;;  %14788 = vmatprep.mubr.bf16.mxu0 %v12174_v33  ;;  %v10633_v12 = vrot.slane %v10631_v19, 5  ;;  %v20637_v33 = vld [vmem:[#allocation2 + $0x16c] sm:$0xf]  ;;  %v10024_v19 = vshrl.u32 %v9537_v23, 16 }
 0x4a1   :  { %14778 = vmatprep.subr.bf16.mxu0 %v16133_v35  ;;  %v20640_v40 = vcombine.low %v9537_v23, %v20637_v33  ;;  %v10037_v1 = vshrl.u32 %v20637_v33, 16 }
 0x4a2   :  { %14979 = vmatpush3.bf16.msra.mxu1 %v20427_v61  ;;  %v10624_v61 = vsel %vm16855_vm7, %v10619_v53, %v10623_v18  ;;  %v10634_v30 = vsel %vm16855_vm7, %v10629_v36, %v10633_v12  ;;  %v21216_v18 = vld [vmem:[#allocation9_spill] sm:$0xff]  ;;  %v10033_v53 = vshll.u32 %v20637_v33, 16  ;;  %v16160_v12 = vld [vmem:[%s21053_s4 + $0x130] sm:$0xff]  }
 0x4a3   :  { %14988 = vmatprep.subr.bf16.mxu1 %v20452_v6  ;;  %v20526_v31 = vcombine.low %v10624_v61, %v10634_v30  ;;  %v10029_v61 = vrot.slane %v10027_v38, 5  ;;  %v16169_v38 = vld [vmem:[%s21053_s4 + $0x178] sm:$0xff]  }
 0x4a4   :  { %14779 = vmatpush3.bf16.msra.mxu0 %v16133_v35  ;;  %v10035_v30 = vrot.slane %v10033_v53, 5  ;;  %v9551_v53 = vld [vmem:[#allocation2 + $0x168] sm:$0xe] }
 0x4a5   :  { %14981 = vmatmul.mubr.bf16.vlgmr.msra.gmra.mrb[56].mxu1 %v20508_v24  ;;  %14780 = vmatprep.subr.bf16.mxu0 %v16134_v44 }
 0x4a6   :  { %14984 = vmatprep.mubr.bf16.mxu1 %v20511_v39  ;;  %14989 = vmatpush3.bf16.msra.mxu1 %v20452_v6  ;;  %v12198_v6 = vcombine.low %v20284_v7, %v20304_v63  ;;  %v20539_v7 = vcombine.low %v20325_v16, %v20334_v17  ;;  %v16138_v63 = vld [vmem:[%s21053_s4 + $0x80] sm:$0xff]   ;;  %v16139_v16 = vld [vmem:[%s21053_s4 + $0x88] sm:$0xff]   ;;  %v20555_v17 = vcombine.low %v20368_v47, %v20392_v41 }
 0x4a7   :  { %14990 = vmatprep.subr.bf16.mxu1 %v16129_v45  ;;  %v20569_v47 = vcombine.low %v20398_v26, %v20414_v3  ;;  %v20573_v41 = vcombine.low %v20409_v0, %v20432_v49  ;;  %v20585_v26 = vcombine.low %v20457_v8, %v20469_v52  ;;  %v16144_v0 = vld [vmem:[%s21053_s4 + $0xb0] sm:$0xff]   ;;  %v16145_v8 = vld [vmem:[%s21053_s4 + $0xb8] sm:$0xff]   ;;  %v16146_v52 = vld [vmem:[%s21053_s4 + $0xc0] sm:$0xff]  }
 0x4a8   :  { %14781 = vmatpush3.bf16.msra.mxu0 %v16134_v44  ;;  %v21208_v3 = vld [vmem:[#allocation19_spill] sm:$0xff]  ;;  %v21209_v49 = vld [vmem:[#allocation20_spill] sm:$0xff] }
 0x4a9   :  { %14782 = vmatprep.subr.bf16.mxu0 %v16135_v46  ;;  %v21210_v42 = vcombine.low %v21208_v3, %v21209_v49 }
 0x4aa   :  { %14991 = vmatpush3.bf16.msra.mxu1 %v16129_v45  ;;  %v16141_v45 = vld [vmem:[%s21053_s4 + $0x98] sm:$0xff]  }
 0x4ab   :  { %14992 = vmatprep.subr.bf16.mxu1 %v16131_v29 }
 0x4ac   :  { %14783 = vmatpush3.bf16.msra.mxu0 %v16135_v46 }
 0x4ad   :  { %14985 = vmatmul.mubr.bf16.gmra.mrb[60].mxu1 %v20526_v31  ;;  %14784 = vmatprep.subr.bf16.mxu0 %v16136_v59 }
 0x4ae   :  { %14993 = vmatpush3.bf16.msra.mxu1 %v16131_v29  ;;  %15004 = vmatprep.mubr.bf16.mxu1 %v12198_v6  ;;  %v16153_v29 = vld [vmem:[%s21053_s4 + $0xf8] sm:$0xff]   ;;  %v20670_v6 = vld [vmem:[#allocation2 + $0x170] sm:$0x1] }
 0x4af   :  { %14994 = vmatprep.subr.bf16.mxu1 %v16133_v35 }
 0x4b0   :  { %14785 = vmatpush3.bf16.msra.mxu0 %v16136_v59 }
 0x4b1   :  { %14786 = vmatprep.subr.bf16.mxu0 %v16137_v25 }
 0x4b2   :  { %14995 = vmatpush3.bf16.msra.mxu1 %v16133_v35  ;;  %v20659_v35 = vld [vmem:[#allocation2 + $0x19c] sm:$0xf] }
 0x4b3   :  { %14996 = vmatprep.subr.bf16.mxu1 %v16134_v44 }
 0x4b4   :  { %14787 = vmatpush3.bf16.msra.mxu0 %v16137_v25 }
 0x4b5   :  { %14796 = vmatprep.subr.bf16.mxu0 %v16138_v63 }
 0x4b6   :  { %14997 = vmatpush3.bf16.msra.mxu1 %v16134_v44  ;;  %v10026_v44 = vrot.slane %v10024_v19, 4  ;;  %v16168_v19 = vld [vmem:[%s21053_s4 + $0x170] sm:$0xff]  }
 0x4b7   :  { %14998 = vmatprep.subr.bf16.mxu1 %v16135_v46  ;;  %14789 = vmatmul.mubr.bf16.vlgmr.msra.gmra.mrb[56].mxu0 %v20539_v7 }
 0x4b8   :  { %14792 = vmatprep.mubr.bf16.mxu0 %v20546_v34  ;;  %14797 = vmatpush3.bf16.msra.mxu0 %v16138_v63 }
 0x4b9   :  { %14798 = vmatprep.subr.bf16.mxu0 %v16139_v16 }
 0x4ba   :  { %14999 = vmatpush3.bf16.msra.mxu1 %v16135_v46  ;;  %v10039_v46 = vrot.slane %v10037_v1, 4  ;;  %v10128_v1 = vrot.slane %v20637_v33, 5  ;;  %v16171_v33 = vld [vmem:[%s21053_s4 + $0x188] sm:$0xff]  }
 0x4bb   :  { %15000 = vmatprep.subr.bf16.mxu1 %v16136_v59 }
 0x4bc   :  { %14799 = vmatpush3.bf16.msra.mxu0 %v16139_v16 }
 0x4bd   :  { %14800 = vmatprep.subr.bf16.mxu0 %v16140_v48 }
 0x4be   :  { %15001 = vmatpush3.bf16.msra.mxu1 %v16136_v59  ;;  %v16161_v59 = vld [vmem:[%s21053_s4 + $0x138] sm:$0xff]  }
 0x4bf   :  { %15002 = vmatprep.subr.bf16.mxu1 %v16137_v25  ;;  %14793 = vmatmul.mubr.bf16.gmra.mrb[60].mxu0 %v20555_v17 }
 0x4c0   :  { %14801 = vmatpush3.bf16.msra.mxu0 %v16140_v48  ;;  %14812 = vmatprep.mubr.bf16.mxu0 %v21207_v5 }
 0x4c1   :  { %14802 = vmatprep.subr.bf16.mxu0 %v16141_v45 }
 0x4c2   :  { %15003 = vmatpush3.bf16.msra.mxu1 %v16137_v25  ;;  %v10030_v25 = vor.u32 %v10029_v61, %v10026_v44  ;;  %v10130_v44 = vrot.slane %v10128_v1, 4  ;;  %v10131_v61 = vrot.slane %v20670_v6, 5 }
 0x4c3   :  { %15012 = vmatprep.subr.bf16.mxu1 %v16138_v63 }
 0x4c4   :  { %14803 = vmatpush3.bf16.msra.mxu0 %v16141_v45 }
 0x4c5   :  { %15005 = vmatmul.mubr.bf16.vlgmr.msra.gmra.mrb[56].mxu1 %v20569_v47  ;;  %14804 = vmatprep.subr.bf16.mxu0 %v16142_v54 }
 0x4c6   :  { %15008 = vmatprep.mubr.bf16.mxu1 %v20573_v41  ;;  %15013 = vmatpush3.bf16.msra.mxu1 %v16138_v63  ;;  %v10043_v63 = vshll.u32 %v20670_v6, 16 }
 0x4c7   :  { %15014 = vmatprep.subr.bf16.mxu1 %v16139_v16 }
 0x4c8   :  { %14805 = vmatpush3.bf16.msra.mxu0 %v16142_v54  ;;  %v10045_v5 = vrot.slane %v10043_v63, 5  ;;  %v10537_v63 = vld [vmem:[#allocation2 + $0x198] sm:$0xe] }
 0x4c9   :  { %14806 = vmatprep.subr.bf16.mxu0 %v16143_v27 }
 0x4ca   :  { %15015 = vmatpush3.bf16.msra.mxu1 %v16139_v16  ;;  %v10031_v16 = vrot.slane %v10030_v25, 4  ;;  %v11114_v25 = vrot.slane %v20659_v35, 5 }
 0x4cb   :  { %15016 = vmatprep.subr.bf16.mxu1 %v16140_v48 }
 0x4cc   :  { %14807 = vmatpush3.bf16.msra.mxu0 %v16143_v27  ;;  %v10036_v3 = vsel %vm16855_vm7, %v10031_v16, %v10035_v30  ;;  %v11116_v16 = vrot.slane %v11114_v25, 4 }
 0x4cd   :  { %15009 = vmatmul.mubr.bf16.gmra.mrb[60].mxu1 %v20585_v26  ;;  %14808 = vmatprep.subr.bf16.mxu0 %v16144_v0 }
 0x4ce   :  { %15017 = vmatpush3.bf16.msra.mxu1 %v16140_v48  ;;  %15028 = vmatprep.mubr.bf16.mxu1 %v21210_v42 }
 0x4cf   :  { %15018 = vmatprep.subr.bf16.mxu1 %v16141_v45 }
 0x4d0   :  { %14809 = vmatpush3.bf16.msra.mxu0 %v16144_v0 }
 0x4d1   :  { %14810 = vmatprep.subr.bf16.mxu0 %v16145_v8 }
 0x4d2   :  { %15019 = vmatpush3.bf16.msra.mxu1 %v16141_v45 }
 0x4d3   :  { %15020 = vmatprep.subr.bf16.mxu1 %v16142_v54 }
 0x4d4   :  { %14811 = vmatpush3.bf16.msra.mxu0 %v16145_v8 }
 0x4d5   :  { %14820 = vmatprep.subr.bf16.mxu0 %v16146_v52 }
 0x4d6   :  { %15021 = vmatpush3.bf16.msra.mxu1 %v16142_v54  ;;  %v11023_v54 = vshrl.u32 %v20659_v35, 16 }
 0x4d7   :  { %15022 = vmatprep.subr.bf16.mxu1 %v16143_v27  ;;  %14813 = vmatmul.mubr.bf16.vlgmr.msra.gmra.mrb[56].mxu0 %v21211_v14 }
 0x4d8   :  { %14816 = vmatprep.mubr.bf16.mxu0 %v21212_v20  ;;  %14821 = vmatpush3.bf16.msra.mxu0 %v16146_v52 }
 0x4d9   :  { %14822 = vmatprep.subr.bf16.mxu0 %v16147_v62 }
 0x4da   :  { %15023 = vmatpush3.bf16.msra.mxu1 %v16143_v27  ;;  %v11019_v27 = vshll.u32 %v20659_v35, 16 }
 0x4db   :  { %15024 = vmatprep.subr.bf16.mxu1 %v16144_v0 }
 0x4dc   :  { %14823 = vmatpush3.bf16.msra.mxu0 %v16147_v62 }
 0x4dd   :  { %14824 = vmatprep.subr.bf16.mxu0 %v16148_v55 }
 0x4de   :  { %15025 = vmatpush3.bf16.msra.mxu1 %v16144_v0  ;;  %v16163_v0 = vld [vmem:[%s21053_s4 + $0x148] sm:$0xff]  }
 0x4df   :  { %15026 = vmatprep.subr.bf16.mxu1 %v16145_v8  ;;  %14817 = vmatmul.mubr.bf16.gmra.mrb[60].mxu0 %v21213_v28 }
 0x4e0   :  { %14825 = vmatpush3.bf16.msra.mxu0 %v16148_v55  ;;  %14836 = vmatprep.mubr.bf16.mxu0 %v20539_v7  ;;  %v10040_v7 = vor.u32 %v10039_v46, %v10035_v30  ;;  %v10132_v46 = vsel %vm17178_vm14, %v10130_v44, %v10131_v61 }
 0x4e1   :  { %14826 = vmatprep.subr.bf16.mxu0 %v16149_v57 }
 0x4e2   :  { %15027 = vmatpush3.bf16.msra.mxu1 %v16145_v8  ;;  %v10041_v48 = vrot.slane %v10040_v7, 4  ;;  %v16173_v7 = vld [vmem:[%s21053_s4 + $0x198] sm:$0xff]  }
 0x4e3   :  { %15036 = vmatprep.subr.bf16.mxu1 %v16146_v52 }
 0x4e4   :  { %14827 = vmatpush3.bf16.msra.mxu0 %v16149_v57  ;;  %v10046_v49 = vsel %vm16855_vm7, %v10041_v48, %v10045_v5 }
 0x4e5   :  { %15029 = vmatmul.mubr.bf16.vlgmr.msra.gmra.mrb[56].mxu1 %v21214_v32  ;;  %14828 = vmatprep.subr.bf16.mxu0 %v16150_v11 }
 0x4e6   :  { %15032 = vmatprep.mubr.bf16.mxu1 %v21215_v15  ;;  %15037 = vmatpush3.bf16.msra.mxu1 %v16146_v52  ;;  %v11021_v52 = vrot.slane %v11019_v27, 5 }
 0x4e7   :  { %15038 = vmatprep.subr.bf16.mxu1 %v16147_v62 }
 0x4e8   :  { %14829 = vmatpush3.bf16.msra.mxu0 %v16150_v11 }
 0x4e9   :  { %14830 = vmatprep.subr.bf16.mxu0 %v16151_v51 }
 0x4ea   :  { %15039 = vmatpush3.bf16.msra.mxu1 %v16147_v62  ;;  %v11025_v62 = vrot.slane %v11023_v54, 4 }
 0x4eb   :  { %15040 = vmatprep.subr.bf16.mxu1 %v16148_v55 }
 0x4ec   :  { %14831 = vmatpush3.bf16.msra.mxu0 %v16151_v51 }
 0x4ed   :  { %15033 = vmatmul.mubr.bf16.gmra.mrb[60].mxu1 %v21216_v18  ;;  %14832 = vmatprep.subr.bf16.mxu0 %v16152_v56 }
 0x4ee   :  { %15041 = vmatpush3.bf16.msra.mxu1 %v16148_v55  ;;  %15052 = vmatprep.mubr.bf16.mxu1 %v20569_v47  ;;  %v20690_v55 = vcombine.low %v10036_v3, %v10046_v49 }
 0x4ef   :  { %15042 = vmatprep.subr.bf16.mxu1 %v16149_v57 }
 0x4f0   :  { %14833 = vmatpush3.bf16.msra.mxu0 %v16152_v56 }
 0x4f1   :  { %14834 = vmatprep.subr.bf16.mxu0 %v16153_v29 }
 0x4f2   :  { %15043 = vmatpush3.bf16.msra.mxu1 %v16149_v57  ;;  %v16164_v57 = vld [vmem:[%s21053_s4 + $0x150] sm:$0xff]  }
 0x4f3   :  { %15044 = vmatprep.subr.bf16.mxu1 %v16150_v11 }
 0x4f4   :  { %14835 = vmatpush3.bf16.msra.mxu0 %v16153_v29 }
 0x4f5   :  { %14844 = vmatprep.subr.bf16.mxu0 %v16154_v43 }
 0x4f6   :  { %15045 = vmatpush3.bf16.msra.mxu1 %v16150_v11  ;;  %v20695_v11 = vld [vmem:[#allocation2 + $0x1a0] sm:$0x1] }
 0x4f7   :  { %15046 = vmatprep.subr.bf16.mxu1 %v16151_v51  ;;  %14837 = vmatmul.mubr.bf16.vlgmr.msra.gmra.mrb[56].mxu0 %v20546_v34  ;;  %v11117_v48 = vrot.slane %v20695_v11, 5 }
 0x4f8   :  { %14840 = vmatprep.mubr.bf16.mxu0 %v20555_v17  ;;  %14845 = vmatpush3.bf16.msra.mxu0 %v16154_v43 }
 0x4f9   :  { %14846 = vmatprep.subr.bf16.mxu0 %v16155_v2  ;;  %v11118_v5 = vsel %vm17178_vm14, %v11116_v16, %v11117_v48  ;;  %v20824_v16 = vld [vmem:[%s21053_s4 + $0x1c8] sm:$0xff]  }
 0x4fa   :  { %15047 = vmatpush3.bf16.msra.mxu1 %v16151_v51 }
 0x4fb   :  { %15048 = vmatprep.subr.bf16.mxu1 %v16152_v56 }
 0x4fc   :  { %14847 = vmatpush3.bf16.msra.mxu0 %v16155_v2 }
 0x4fd   :  { %14848 = vmatprep.subr.bf16.mxu0 %v16156_v9 }
 0x4fe   :  { %15049 = vmatpush3.bf16.msra.mxu1 %v16152_v56  ;;  %v11026_v56 = vor.u32 %v11025_v62, %v11021_v52  ;;  %v20787_v62 = vld [vmem:[%s21055_s6] ss:$0 sm:$0xff] }
 0x4ff   :  { %15050 = vmatprep.subr.bf16.mxu1 %v16153_v29  ;;  %14841 = vmatmul.mubr.bf16.gmra.mrb[60].mxu0 %v20640_v40 }
 0x500   :  { %14849 = vmatpush3.bf16.msra.mxu0 %v16156_v9  ;;  %14860 = vmatprep.mubr.bf16.mxu0 %v20447_v37  ;;  %v10523_v37 = vld [vmem:[#allocation2 + $0x198] sm:$0xf]  ;;  %v11027_v23 = vrot.slane %v11026_v56, 4 }
 0x501   :  { %14850 = vmatprep.subr.bf16.mxu0 %v16157_v60  ;;  %v20663_v36 = vcombine.low %v10523_v37, %v20659_v35  ;;  %v11010_v45 = vshrl.u32 %v10523_v37, 16  ;;  %v11013_v47 = vshll.u32 %v10523_v37, 16  ;;  %v16167_v37 = vld [vmem:[%s21053_s4 + $0x168] sm:$0xff]  }
 0x502   :  { %15051 = vmatpush3.bf16.msra.mxu1 %v16153_v29  ;;  %v11029_v29 = vshll.u32 %v20695_v11, 16 }
 0x503   :  { %15060 = vmatprep.subr.bf16.mxu1 %v16154_v43  ;;  %v11012_v42 = vrot.slane %v11010_v45, 4  ;;  %v11015_v8 = vrot.slane %v11013_v47, 5  ;;  %v20763_v45 = vld [vmem:[%s21053_s4 + $0x1a8] sm:$0xff]  }
 0x504   :  { %14851 = vmatpush3.bf16.msra.mxu0 %v16157_v60 }
 0x505   :  { %15053 = vmatmul.mubr.bf16.vlgmr.msra.gmra.mrb[56].mxu1 %v20573_v41  ;;  %14852 = vmatprep.subr.bf16.mxu0 %v16158_v58  ;;  %v11016_v51 = vor.u32 %v11015_v8, %v11012_v42 }
 0x506   :  { %15056 = vmatprep.mubr.bf16.mxu1 %v20585_v26  ;;  %15061 = vmatpush3.bf16.msra.mxu1 %v16154_v43  ;;  %v16165_v43 = vld [vmem:[%s21053_s4 + $0x158] sm:$0xff]  }
 0x507   :  { %15062 = vmatprep.subr.bf16.mxu1 %v16155_v2 }
 0x508   :  { %14853 = vmatpush3.bf16.msra.mxu0 %v16158_v58 }
 0x509   :  { %14854 = vmatprep.subr.bf16.mxu0 %v16159_v21 }
 0x50a   :  { %15063 = vmatpush3.bf16.msra.mxu1 %v16155_v2  ;;  %v11017_v2 = vrot.slane %v11016_v51, 4 }
 0x50b   :  { %15064 = vmatprep.subr.bf16.mxu1 %v16156_v9 }
 0x50c   :  { %14855 = vmatpush3.bf16.msra.mxu0 %v16159_v21 }
 0x50d   :  { %15057 = vmatmul.mubr.bf16.gmra.mrb[60].mxu1 %v20663_v36  ;;  %14856 = vmatprep.subr.bf16.mxu0 %v16160_v12 }
 0x50e   :  { %15065 = vmatpush3.bf16.msra.mxu1 %v16156_v9  ;;  %15076 = vmatprep.mubr.bf16.mxu1 %v20508_v24  ;;  %v16162_v24 = vld [vmem:[%s21053_s4 + $0x140] sm:$0xff]   ;;  %v11031_v9 = vrot.slane %v11029_v29, 5 }
 0x50f   :  { %15066 = vmatprep.subr.bf16.mxu1 %v16157_v60 }
 0x510   :  { %14857 = vmatpush3.bf16.msra.mxu0 %v16160_v12 }
 0x511   :  { %14858 = vmatprep.subr.bf16.mxu0 %v16161_v59 }
 0x512   :  { %15067 = vmatpush3.bf16.msra.mxu1 %v16157_v60  ;;  %v11022_v60 = vsel %vm16855_vm7, %v11017_v2, %v11021_v52  ;;  %v20780_v52 = vld [vmem:[%s21053_s4 + $0x1b0] sm:$0xff]  }
 0x513   :  { %15068 = vmatprep.subr.bf16.mxu1 %v16158_v58 }
 0x514   :  { %14859 = vmatpush3.bf16.msra.mxu0 %v16161_v59 }
 0x515   :  { %14868 = vmatprep.subr.bf16.mxu0 %v16162_v24 }
 0x516   :  { %15069 = vmatpush3.bf16.msra.mxu1 %v16158_v58  ;;  %v11032_v58 = vsel %vm16855_vm7, %v11027_v23, %v11031_v9 }
 0x517   :  { %15070 = vmatprep.subr.bf16.mxu1 %v16159_v21  ;;  %14861 = vmatmul.mubr.bf16.vlgmr.msra.gmra.mrb[56].mxu0 %v20460_v50 }
 0x518   :  { %14864 = vmatprep.mubr.bf16.mxu0 %v20484_v10  ;;  %14869 = vmatpush3.bf16.msra.mxu0 %v16162_v24 }
 0x519   :  { %14870 = vmatprep.subr.bf16.mxu0 %v16163_v0 }
 0x51a   :  { %15071 = vmatpush3.bf16.msra.mxu1 %v16159_v21  ;;  %v20715_v21 = vcombine.low %v11022_v60, %v11032_v58 }
 0x51b   :  { %15072 = vmatprep.subr.bf16.mxu1 %v16160_v12 }
 0x51c   :  { %14871 = vmatpush3.bf16.msra.mxu0 %v16163_v0 }
 0x51d   :  { %14872 = vmatprep.subr.bf16.mxu0 %v16164_v57 }
 0x51e   :  { %15073 = vmatpush3.bf16.msra.mxu1 %v16160_v12  ;;  %v16170_v12 = vld [vmem:[%s21053_s4 + $0x180] sm:$0xff]  }
 0x51f   :  { %15074 = vmatprep.subr.bf16.mxu1 %v16161_v59  ;;  %14865 = vmatmul.mubr.bf16.gmra.mrb[60].mxu0 %v20690_v55 }
 0x520   :  { %14873 = vmatpush3.bf16.msra.mxu0 %v16164_v57  ;;  %14884 = vmatprep.mubr.bf16.mxu0 %v21211_v14  ;;  %v16166_v14 = vld [vmem:[%s21053_s4 + $0x160] sm:$0xff]  }
 0x521   :  { %14874 = vmatprep.subr.bf16.mxu0 %v16165_v43 }
 0x522   :  { %15075 = vmatpush3.bf16.msra.mxu1 %v16161_v59  ;;  %v16172_v59 = vld [vmem:[%s21053_s4 + $0x190] sm:$0xff]  }
 0x523   :  { %15084 = vmatprep.subr.bf16.mxu1 %v16162_v24 }
 0x524   :  { %14875 = vmatpush3.bf16.msra.mxu0 %v16165_v43 }
 0x525   :  { %15077 = vmatmul.mubr.bf16.vlgmr.msra.gmra.mrb[56].mxu1 %v20511_v39  ;;  %14876 = vmatprep.subr.bf16.mxu0 %v16166_v14 }
 0x526   :  { %15080 = vmatprep.mubr.bf16.mxu1 %v20526_v31  ;;  %15085 = vmatpush3.bf16.msra.mxu1 %v16162_v24  ;;  %v12212_v24 = vrot.slane %v10537_v63, 9 }
 0x527   :  { %15086 = vmatprep.subr.bf16.mxu1 %v16163_v0 }
 0x528   :  { %14877 = vmatpush3.bf16.msra.mxu0 %v16166_v14  ;;  %v11115_v35 = vsel %vm17178_vm14, %v12212_v24, %v11114_v25 }
 0x529   :  { %14878 = vmatprep.subr.bf16.mxu0 %v16167_v37  ;;  %v20766_v54 = vcombine.low %v11115_v35, %v11118_v5 }
 0x52a   :  { %15087 = vmatpush3.bf16.msra.mxu1 %v16163_v0  ;;  %v20771_v0 = vld [vmem:[%s21054_s5] ss:$0 sm:$0xff]  ;;  %s16196_s5 = scalar_lea.vmem %s11623_s3, 32 }
 0x52b   :  { %15088 = vmatprep.subr.bf16.mxu1 %v16164_v57  ;;  %p16197_p0 = scmp.ne.s32.totalorder %s11623_s3, %s16196_s5  ;;  %p16202_p2 = scmp.lt.s32.totalorder %s16196_s5, %s16196_s5 }
 0x52c   :  { %14879 = vmatpush3.bf16.msra.mxu0 %v16167_v37 }
 0x52d   :  { %15081 = vmatmul.mubr.bf16.gmra.mrb[60].mxu1 %v20715_v21  ;;  %14880 = vmatprep.subr.bf16.mxu0 %v16168_v19  ;;  %p16203_p3 = por %p16202_p2, %p16201_p1 }
 0x52e   :  { %15089 = vmatpush3.bf16.msra.mxu1 %v16164_v57  ;;  %15100 = vmatprep.mubr.bf16.mxu1 %v21214_v32  ;;  %v12188_v32 = vrot.slane %v9551_v53, 9 }
 0x52f   :  { %15090 = vmatprep.subr.bf16.mxu1 %v16165_v43  ;;  %p16204_p4 = pnand %p16203_p3, %p16197_p0 }
 0x530   :  { %14881 = vmatpush3.bf16.msra.mxu0 %v16168_v19  ;;  %v10129_v30 = vsel %vm17178_vm14, %v12188_v32, %v10128_v1 }
 0x531   :  { %14882 = vmatprep.subr.bf16.mxu0 %v16169_v38  ;;  %v20739_v6 = vcombine.low %v10129_v30, %v10132_v46 }
 0x532   :  { %15091 = vmatpush3.bf16.msra.mxu1 %v16165_v43 }
 0x533   :  { %15092 = vmatprep.subr.bf16.mxu1 %v16166_v14 }
 0x534   :  { %14883 = vmatpush3.bf16.msra.mxu0 %v16169_v38 }
 0x535   :  { %14892 = vmatprep.subr.bf16.mxu0 %v16170_v12 }
 0x536   :  { %15093 = vmatpush3.bf16.msra.mxu1 %v16166_v14 }
 0x537   :  { %15094 = vmatprep.subr.bf16.mxu1 %v16167_v37  ;;  %14885 = vmatmul.mubr.bf16.vlgmr.msra.gmra.mrb[56].mxu0 %v21212_v20 }
 0x538   :  { %14888 = vmatprep.mubr.bf16.mxu0 %v21213_v28  ;;  %14893 = vmatpush3.bf16.msra.mxu0 %v16170_v12 }
 0x539   :  { %14894 = vmatprep.subr.bf16.mxu0 %v16171_v33 }
 0x53a   :  { %15095 = vmatpush3.bf16.msra.mxu1 %v16167_v37 }
 0x53b   :  { %15096 = vmatprep.subr.bf16.mxu1 %v16168_v19 }
 0x53c   :  { %14895 = vmatpush3.bf16.msra.mxu0 %v16171_v33 }
 0x53d   :  { %14896 = vmatprep.subr.bf16.mxu0 %v16172_v59 }
 0x53e   :  { %15097 = vmatpush3.bf16.msra.mxu1 %v16168_v19 }
 0x53f   :  { %15098 = vmatprep.subr.bf16.mxu1 %v16169_v38  ;;  %14889 = vmatmul.mubr.bf16.gmra.mrb[60].mxu0 %v20739_v6 }
 0x540   :  { %14897 = vmatpush3.bf16.msra.mxu0 %v16172_v59  ;;  %14908 = vmatprep.mubr.bf16.mxu0 %v20546_v34  ;;  %v16174_v34 = vld [vmem:[%s21053_s4 + $0x1a0] sm:$0xff]  }
 0x541   :  { %14898 = vmatprep.subr.bf16.mxu0 %v16173_v7 }
 0x542   :  { %15099 = vmatpush3.bf16.msra.mxu1 %v16169_v38 }
 0x543   :  { %15108 = vmatprep.subr.bf16.mxu1 %v16170_v12 }
 0x544   :  { %14899 = vmatpush3.bf16.msra.mxu0 %v16173_v7 }
 0x545   :  { %15101 = vmatmul.mubr.bf16.vlgmr.msra.gmra.mrb[56].mxu1 %v21215_v15  ;;  %14900 = vmatprep.subr.bf16.mxu0 %v16174_v34 }
 0x546   :  { %15104 = vmatprep.mubr.bf16.mxu1 %v21216_v18  ;;  %15109 = vmatpush3.bf16.msra.mxu1 %v16170_v12  ;;  %v20809_v12 = vld [vmem:[%s21053_s4 + $0x1c0] sm:$0xff]  }
 0x547   :  { %15110 = vmatprep.subr.bf16.mxu1 %v16171_v33 }
 0x548   :  { %14901 = vmatpush3.bf16.msra.mxu0 %v16174_v34 }
 0x549   :  { %14902 = vmatprep.subr.bf16.mxu0 %v20763_v45 }
 0x54a   :  { %15111 = vmatpush3.bf16.msra.mxu1 %v16171_v33  ;;  %v14526_v47 = vpop.f32.mrb[48].mxu0 }
 0x54b   :  { %15112 = vmatprep.subr.bf16.mxu1 %v16172_v59  ;;  %v8466_v27 = vpop.f32.mrb[49].mxu0  ;;  %v8507_v3 = vmul.f32 %v20771_v0, %v14526_v47 }
 0x54c   :  { %v8505_v49 = vmul.f32 %v20771_v0, %v8466_v27  ;;  %v14527_v42 = vpop.f32.mrb[50].mxu0  ;;  %14903 = vmatpush3.bf16.msra.mxu0 %v20763_v45 }
 0x54d   :  { %15105 = vmatmul.mubr.bf16.gmra.mrb[60].mxu1 %v20766_v54  ;;  %v8469_v8 = vpop.f32.mrb[51].mxu0  ;;  %14904 = vmatprep.subr.bf16.mxu0 %v20780_v52  ;;  %v8508_v11 = vmul.f32 %v20771_v0, %v14527_v42  ;;  %v8515_v56 = vadd.f32 %v20787_v62, %v8507_v3 }
 0x54e   :  { %15113 = vmatpush3.bf16.msra.mxu1 %v16172_v59  ;;  %15124 = vmatprep.mubr.bf16.mxu1 %v20573_v41  ;;  %v8513_v57 = vadd.f32 %v20787_v62, %v8505_v49  ;;  %v8506_v51 = vmul.f32 %v20771_v0, %v8469_v8  ;;  %v20798_v41 = vld [vmem:[%s21053_s4 + $0x1b8] sm:$0xff]   ;;  %v20835_v8 = vld [vmem:[#allocation2 + $0x174] sm:$0xf] }
 0x54f   :  { %15114 = vmatprep.subr.bf16.mxu1 %v16173_v7  ;;  %v8516_v2 = vadd.f32 %v20787_v62, %v8508_v11  ;;  %v8523_v60 = vmax.f32 %v8515_v56, 0.0  ;;  %v20844_v11 = vld [vmem:[%s21053_s4 + $0x1d0] sm:$0xff]  }
 0x550   :  { %v8514_v29 = vadd.f32 %v20787_v62, %v8506_v51  ;;  %14905 = vmatpush3.bf16.msra.mxu0 %v20780_v52  ;;  %v8521_v43 = vmax.f32 %v8513_v57, 0.0  ;;  %v20837_v57 = vld [vmem:[#allocation2 + $0x178] sm:$0xf] }
 0x551   :  { %14906 = vmatprep.subr.bf16.mxu0 %v20798_v41  ;;  %v8524_v32 = vmax.f32 %v8516_v2, 0.0 }
 0x552   :  { %15115 = vmatpush3.bf16.msra.mxu1 %v16173_v7  ;;  %v8522_v23 = vmax.f32 %v8514_v29, 0.0  ;;  %v14530_v9 = vpop.f32.mrb[52].mxu0 }
 0x553   :  { %15116 = vmatprep.subr.bf16.mxu1 %v16174_v34  ;;  %v8482_v14 = vpop.f32.mrb[53].mxu0  ;;  %v8511_v37 = vmul.f32 %v20771_v0, %v14530_v9 }
 0x554   :  { %v8529_v58 = vadd.f32 %v8522_v23, %v8521_v43  ;;  %v8509_v19 = vmul.f32 %v20771_v0, %v8482_v14  ;;  %v14531_v38 = vpop.f32.mrb[54].mxu0  ;;  %14907 = vmatpush3.bf16.msra.mxu0 %v20798_v41 }
 0x555   :  { %v8512_v1 = vmul.f32 %v20771_v0, %v14531_v38  ;;  %v8485_v53 = vpop.f32.mrb[55].mxu0  ;;  %14916 = vmatprep.subr.bf16.mxu0 %v20809_v12  ;;  %v8519_v30 = vadd.f32 %v20787_v62, %v8511_v37  ;;  %v20857_v37 = vld [vmem:[%s21053_s4 + $0x1d8] sm:$0xff]  }
 0x556   :  { %v8530_v44 = vadd.f32 %v8529_v58, %v8523_v60  ;;  %15117 = vmatpush3.bf16.msra.mxu1 %v16174_v34  ;;  %v8517_v61 = vadd.f32 %v20787_v62, %v8509_v19  ;;  %v8510_v33 = vmul.f32 %v20771_v0, %v8485_v53 }
 0x557   :  { %15118 = vmatprep.subr.bf16.mxu1 %v20763_v45  ;;  %14909 = vmatmul.mubr.bf16.vlgmr.msra.gmra.mrb[56].mxu0 %v20555_v17  ;;  %v8520_v24 = vadd.f32 %v20787_v62, %v8512_v1  ;;  %v8527_v27 = vmax.f32 %v8519_v30, 0.0 }
 0x558   :  { %v14742_v46 = vpop.f32.mrb[48].mxu1  ;;  %v8525_v59 = vmax.f32 %v8517_v61, 0.0  ;;  %v8531_v25 = vadd.f32 %v8530_v44, %v8524_v32  ;;  %v8518_v7 = vadd.f32 %v20787_v62, %v8510_v33  ;;  %14912 = vmatprep.mubr.bf16.mxu0 %v20640_v40  ;;  %14917 = vmatpush3.bf16.msra.mxu0 %v20809_v12 }
 0x559   :  { %v9451_v63 = vpop.f32.mrb[49].mxu1  ;;  %14918 = vmatprep.subr.bf16.mxu0 %v20824_v16  ;;  %v9492_v17 = vmul.f32 %v20771_v0, %v14742_v46  ;;  %v8528_v56 = vmax.f32 %v8520_v24, 0.0  ;;  %v20879_v24 = vld [vmem:[#allocation2 + $0x1a4] sm:$0xf] }
 0x55a   :  { %v8532_v48 = vadd.f32 %v8531_v25, %v8525_v59  ;;  %v9490_v34 = vmul.f32 %v20771_v0, %v9451_v63  ;;  %v14743_v35 = vpop.f32.mrb[50].mxu1  ;;  %15119 = vmatpush3.bf16.msra.mxu1 %v20763_v45  ;;  %v8526_v40 = vmax.f32 %v8518_v7, 0.0  ;;  %v12190_v45 = vcombine.low %v20835_v8, %v20837_v57 }
 0x55b   :  { %v9493_v5 = vmul.f32 %v20771_v0, %v14743_v35  ;;  %v9454_v47 = vpop.f32.mrb[51].mxu1  ;;  %15120 = vmatprep.subr.bf16.mxu1 %v20780_v52  ;;  %v9500_v51 = vadd.f32 %v20787_v62, %v9492_v17  ;;  %v10290_v35 = vshrl.u32 %v20835_v8, 16 }
 0x55c   :  { %v9498_v3 = vadd.f32 %v20787_v62, %v9490_v34  ;;  %v8533_v49 = vadd.f32 %v8532_v48, %v8526_v40  ;;  %v9491_v42 = vmul.f32 %v20771_v0, %v9454_v47  ;;  %14919 = vmatpush3.bf16.msra.mxu0 %v20824_v16  ;;  %v10293_v40 = vshll.u32 %v20835_v8, 16 }
 0x55d   :  { %14920 = vmatprep.subr.bf16.mxu0 %v20844_v11  ;;  %v9501_v2 = vadd.f32 %v20787_v62, %v9493_v5  ;;  %v16185_v5 = vld [vmem:[%s21053_s4 + $0x1e8] sm:$0xff]   ;;  %v10299_v47 = vshll.u32 %v20837_v57, 16 }
 0x55e   :  { %v8534_v29 = vadd.f32 %v8533_v49, %v8527_v27  ;;  %v9499_v43 = vadd.f32 %v20787_v62, %v9491_v42  ;;  %15121 = vmatpush3.bf16.msra.mxu1 %v20780_v52  ;;  %v9506_v23 = vmax.f32 %v9498_v3, 0.0  ;;  %v9508_v52 = vmax.f32 %v9500_v51, 0.0 }
 0x55f   :  { %15122 = vmatprep.subr.bf16.mxu1 %v20798_v41  ;;  %14913 = vmatmul.mubr.bf16.gmra.mrb[60].mxu0 %v12190_v45  ;;  %v9509_v32 = vmax.f32 %v9501_v2, 0.0  ;;  %v10292_v45 = vrot.slane %v10290_v35, 4  ;;  %v10295_v51 = vrot.slane %v10293_v40, 5  ;;  %v16190_v40 = vld [vmem:[%s21053_s4 + $0x210] sm:$0xff]  }
 0x560   :  { %v8535_v9 = vadd.f32 %v8534_v29, %v8528_v56  ;;  %v9507_v14 = vmax.f32 %v9499_v43, 0.0  ;;  %v14746_v60 = vpop.f32.mrb[52].mxu1  ;;  %14921 = vmatpush3.bf16.msra.mxu0 %v20844_v11  ;;  %14932 = vmatprep.mubr.bf16.mxu0 %v20460_v50  ;;  %v16186_v56 = vld [vmem:[%s21053_s4 + $0x1f0] sm:$0xff]   ;;  %v20900_v29 = vld [vmem:[#allocation2 + $0x17c] sm:$0x1]  ;;  %v10301_v43 = vrot.slane %v10299_v47, 5 }
 0x561   :  { %v9467_v58 = vpop.f32.mrb[53].mxu1  ;;  %14922 = vmatprep.subr.bf16.mxu0 %v20857_v37  ;;  %v9496_v38 = vmul.f32 %v20771_v0, %v14746_v60  ;;  %v16187_v60 = vld [vmem:[%s21053_s4 + $0x1f8] sm:$0xff]  }
 0x562   :  { %v9514_v19 = vadd.f32 %v9507_v14, %v9506_v23  ;;  %v9494_v1 = vmul.f32 %v20771_v0, %v9467_v58  ;;  %v14747_v53 = vpop.f32.mrb[54].mxu1  ;;  %15123 = vmatpush3.bf16.msra.mxu1 %v20798_v41  ;;  %v8536_v46 = vrot.slane %v8535_v9, 4  ;;  %v20872_v41 = vld [vmem:[%s21053_s4 + $0x1e0] sm:$0xff]   ;;  %v10309_v14 = vshll.u32 %v20900_v29, 16 }
 0x563   :  { %v9470_v44 = vpop.f32.mrb[55].mxu1  ;;  %15132 = vmatprep.subr.bf16.mxu1 %v20809_v12  ;;  %v9497_v33 = vmul.f32 %v20771_v0, %v14747_v53  ;;  %v9504_v59 = vadd.f32 %v20787_v62, %v9496_v38  ;;  %v10296_v58 = vor.u32 %v10295_v51, %v10292_v45  ;;  %v11279_v53 = vshll.u32 %v20879_v24, 16 }
 0x564   :  { %v9515_v50 = vadd.f32 %v9514_v19, %v9508_v52  ;;  %v9502_v61 = vadd.f32 %v20787_v62, %v9494_v1  ;;  %v9495_v30 = vmul.f32 %v20771_v0, %v9470_v44  ;;  %14923 = vmatpush3.bf16.msra.mxu0 %v20857_v37  ;;  %v8537_v27 = vadd.f32 %v8536_v46, %v8535_v9 }
 0x565   :  { %15125 = vmatmul.mubr.bf16.vlgmr.msra.gmra.mrb[56].mxu1 %v20585_v26  ;;  %14924 = vmatprep.subr.bf16.mxu0 %v20872_v41  ;;  %v20881_v26 = vld [vmem:[#allocation2 + $0x1a8] sm:$0xf]  ;;  %v9505_v48 = vadd.f32 %v20787_v62, %v9497_v33  ;;  %v9512_v3 = vmax.f32 %v9504_v59, 0.0  ;;  %v11276_v1 = vshrl.u32 %v20879_v24, 16  ;;  %v10297_v44 = vrot.slane %v10296_v58, 4 }
 0x566   :  { %v9510_v25 = vmax.f32 %v9502_v61, 0.0  ;;  %v9516_v7 = vadd.f32 %v9515_v50, %v9509_v32  ;;  %v9503_v63 = vadd.f32 %v20787_v62, %v9495_v30  ;;  %15128 = vmatprep.mubr.bf16.mxu1 %v20663_v36  ;;  %15133 = vmatpush3.bf16.msra.mxu1 %v20809_v12  ;;  %v10303_v36 = vshrl.u32 %v20837_v57, 16  ;;  %v16188_v32 = vld [vmem:[%s21053_s4 + $0x200] sm:$0xff]  }
 0x567   :  { %15134 = vmatprep.subr.bf16.mxu1 %v20824_v16  ;;  %v12214_v12 = vcombine.low %v20879_v24, %v20881_v26  ;;  %v9513_v42 = vmax.f32 %v9505_v48, 0.0  ;;  %v8538_v23 = vrot.slane %v8537_v27, 2  ;;  %v11285_v30 = vshll.u32 %v20881_v26, 16 }
 0x568   :  { %v9517_v17 = vadd.f32 %v9516_v7, %v9510_v25  ;;  %v9511_v34 = vmax.f32 %v9503_v63, 0.0  ;;  %14925 = vmatpush3.bf16.msra.mxu0 %v20872_v41  ;;  %v10305_v2 = vrot.slane %v10303_v36, 4  ;;  %v11278_v59 = vrot.slane %v11276_v1, 4  ;;  %v16189_v7 = vld [vmem:[%s21053_s4 + $0x208] sm:$0xff]   ;;  %v15939_v1 = vld [vmem:[%s21056_s7 + $0x38] sm:$0xff]  }
 0x569   :  { %14926 = vmatprep.subr.bf16.mxu0 %v16185_v5  ;;  %v8539_v19 = vadd.f32 %v8538_v23, %v8537_v27  ;;  %v11281_v25 = vrot.slane %v11279_v53, 5  ;;  %v10302_v63 = vsel %vm16855_vm7, %v10297_v44, %v10301_v43  ;;  %v10394_v51 = vrot.slane %v20837_v57, 5 }
 0x56a   :  { %v9518_v49 = vadd.f32 %v9517_v17, %v9511_v34  ;;  %15135 = vmatpush3.bf16.msra.mxu1 %v20824_v16  ;;  %v10306_v52 = vor.u32 %v10305_v2, %v10301_v43  ;;  %v10397_v23 = vrot.slane %v20900_v29, 5  ;;  %v10538_v29 = vld [vmem:[#allocation2 + $0x1a4] sm:$0xe] }
 0x56b   :  { %15136 = vmatprep.subr.bf16.mxu1 %v20844_v11  ;;  %v8540_v61 = vrot.slane %v8539_v19, 1  ;;  %v11282_v36 = vor.u32 %v11281_v25, %v11278_v59  ;;  %v10396_v2 = vrot.slane %v10394_v51, 4 }
 0x56c   :  { %v9519_v8 = vadd.f32 %v9518_v49, %v9512_v3  ;;  %14927 = vmatpush3.bf16.msra.mxu0 %v16185_v5  ;;  %v10307_v50 = vrot.slane %v10306_v52, 4 }
 0x56d   :  { %15129 = vmatmul.mubr.bf16.gmra.mrb[60].mxu1 %v12214_v12  ;;  %14928 = vmatprep.subr.bf16.mxu0 %v16186_v56  ;;  %v8541_v24 = vadd.f32 %v8540_v61, %v8539_v19  ;;  %v11283_v27 = vrot.slane %v11282_v36, 4  ;;  %v10398_v57 = vsel %vm17178_vm14, %v10396_v2, %v10397_v23  ;;  %v16221_v19 = vmov 0.0  }
 0x56e   :  { %v9520_v9 = vadd.f32 %v9519_v8, %v9513_v42  ;;  %15137 = vmatpush3.bf16.msra.mxu1 %v20844_v11  ;;  %15148 = vmatprep.mubr.bf16.mxu1 %v20511_v39  ;;  %v10311_v11 = vrot.slane %v10309_v14, 5  ;;  %v16192_v42 = vld [vmem:[%s21053_s4 + $0x220] sm:$0xff]   ;;  %v12216_v14 = vrot.slane %v10538_v29, 9 }
 0x56f   :  { %15138 = vmatprep.subr.bf16.mxu1 %v20857_v37 }
 0x570   :  { %v9521_v16 = vrot.slane %v9520_v9, 4  ;;  %14929 = vmatpush3.bf16.msra.mxu0 %v16186_v56 }
 0x571   :  { %14930 = vmatprep.subr.bf16.mxu0 %v16187_v60 }
 0x572   :  { %v9522_v38 = vadd.f32 %v9521_v16, %v9520_v9  ;;  %15139 = vmatpush3.bf16.msra.mxu1 %v20857_v37  ;;  %v11289_v37 = vshrl.u32 %v20881_v26, 16  ;;  %v11380_v16 = vrot.slane %v20881_v26, 5  ;;  %v15932_v26 = vld [vmem:[%s21056_s7] sm:$0xff]  }
 0x573   :  { %15140 = vmatprep.subr.bf16.mxu1 %v20872_v41 }
 0x574   :  { %v9523_v39 = vrot.slane %v9522_v38, 2  ;;  %14931 = vmatpush3.bf16.msra.mxu0 %v16187_v60  ;;  %v11291_v48 = vrot.slane %v11289_v37, 4 }
 0x575   :  { %14940 = vmatprep.subr.bf16.mxu0 %v16188_v32 }
 0x576   :  { %v9524_v33 = vadd.f32 %v9523_v39, %v9522_v38  ;;  %15141 = vmatpush3.bf16.msra.mxu1 %v20872_v41  ;;  %v10312_v41 = vsel %vm16855_vm7, %v10307_v50, %v10311_v11  ;;  %v15936_v38 = vld [vmem:[%s21056_s7 + $0x20] sm:$0xff]   ;;  %v15937_v39 = vld [vmem:[%s21056_s7 + $0x28] sm:$0xff]   ;;  %v15938_v11 = vld [vmem:[%s21056_s7 + $0x30] sm:$0xff]  }
 0x577   :  { %15142 = vmatprep.subr.bf16.mxu1 %v16185_v5  ;;  %14933 = vmatmul.mubr.bf16.vlgmr.msra.gmra.mrb[56].mxu0 %v20484_v10  ;;  %v11287_v10 = vrot.slane %v11285_v30, 5  ;;  %v12191_v35 = vcombine.low %v10302_v63, %v10312_v41 }
 0x578   :  { %v9525_v46 = vrot.slane %v9524_v33, 1  ;;  %14936 = vmatprep.mubr.bf16.mxu0 %v20690_v55  ;;  %14941 = vmatpush3.bf16.msra.mxu0 %v16188_v32  ;;  %v20928_v55 = vld [vmem:[#allocation2 + $0x1ac] sm:$0x1] }
 0x579   :  { %14942 = vmatprep.subr.bf16.mxu0 %v16189_v7  ;;  %v11292_v12 = vor.u32 %v11291_v48, %v11287_v10  ;;  %v11295_v47 = vshll.u32 %v20928_v55, 16 }
 0x57a   :  { %v9526_v17 = vadd.f32 %v9525_v46, %v9524_v33  ;;  %15143 = vmatpush3.bf16.msra.mxu1 %v16185_v5  ;;  %v16191_v5 = vld [vmem:[%s21053_s4 + $0x218] sm:$0xff]  }
 0x57b   :  { %15144 = vmatprep.subr.bf16.mxu1 %v16186_v56  ;;  %v11293_v3 = vrot.slane %v11292_v12, 4  ;;  %v11297_v49 = vrot.slane %v11295_v47, 5 }
 0x57c   :  { %v20930_v34 = vadd.f32 %v9526_v17, %v8541_v24  ;;  %14943 = vmatpush3.bf16.msra.mxu0 %v16189_v7 }
 0x57d   :  { %14944 = vmatprep.subr.bf16.mxu0 %v16190_v40  ;;  %v11298_v8 = vsel %vm16855_vm7, %v11293_v3, %v11297_v49 }
 0x57e   :  { %15145 = vmatpush3.bf16.msra.mxu1 %v16186_v56  ;;  %v9552_v56 = vld [vmem:[#allocation2 + $0x174] sm:$0xe] }
 0x57f   :  { %15146 = vmatprep.subr.bf16.mxu1 %v16187_v60  ;;  %14937 = vmatmul.mubr.bf16.gmra.mrb[60].mxu0 %v12191_v35  ;;  %v12192_v43 = vrot.slane %v9552_v56, 9 }
 0x580   :  { %14945 = vmatpush3.bf16.msra.mxu0 %v16190_v40  ;;  %14956 = vmatprep.mubr.bf16.mxu0 %v21212_v20  ;;  %v11288_v20 = vsel %vm16855_vm7, %v11283_v27, %v11287_v10 }
 0x581   :  { %14946 = vmatprep.subr.bf16.mxu0 %v16191_v5  ;;  %v12215_v45 = vcombine.low %v11288_v20, %v11298_v8 }
 0x582   :  { %15147 = vmatpush3.bf16.msra.mxu1 %v16187_v60  ;;  %v11381_v60 = vsel %vm17178_vm14, %v12216_v14, %v11380_v16 }
 0x583   :  { %15156 = vmatprep.subr.bf16.mxu1 %v16188_v32 }
 0x584   :  { %14947 = vmatpush3.bf16.msra.mxu0 %v16191_v5 }
 0x585   :  { %15149 = vmatmul.mubr.bf16.vlgmr.msra.gmra.mrb[56].mxu1 %v20526_v31  ;;  %14948 = vmatprep.subr.bf16.mxu0 %v16192_v42  ;;  %v16193_v31 = vld [vmem:[%s21053_s4 + $0x228] sm:$0xff]  }
 0x586   :  { %15152 = vmatprep.mubr.bf16.mxu1 %v20715_v21  ;;  %15157 = vmatpush3.bf16.msra.mxu1 %v16188_v32  ;;  %v16194_v21 = vld [vmem:[%s21053_s4 + $0x230] sm:$0xff]  }
 0x587   :  { %15158 = vmatprep.subr.bf16.mxu1 %v16189_v7 }
 0x588   :  { %14949 = vmatpush3.bf16.msra.mxu0 %v16192_v42 }
 0x589   :  { %14950 = vmatprep.subr.bf16.mxu0 %v16193_v31 }
 0x58a   :  { %15159 = vmatpush3.bf16.msra.mxu1 %v16189_v7 }
 0x58b   :  { %15160 = vmatprep.subr.bf16.mxu1 %v16190_v40 }
 0x58c   :  { %14951 = vmatpush3.bf16.msra.mxu0 %v16193_v31 }
 0x58d   :  { %15153 = vmatmul.mubr.bf16.gmra.mrb[60].mxu1 %v12215_v45  ;;  %14952 = vmatprep.subr.bf16.mxu0 %v16194_v21 }
 0x58e   :  { %15161 = vmatpush3.bf16.msra.mxu1 %v16190_v40  ;;  %15172 = vmatprep.mubr.bf16.mxu1 %v21215_v15  ;;  %v10395_v15 = vsel %vm17178_vm14, %v12192_v43, %v10394_v51 }
 0x58f   :  { %15162 = vmatprep.subr.bf16.mxu1 %v16191_v5  ;;  %v12193_v9 = vcombine.low %v10395_v15, %v10398_v57 }
 0x590   :  { %14953 = vmatpush3.bf16.msra.mxu0 %v16194_v21 }
 0x591   :  { %14954 = vmatprep.subr.bf16.mxu0 %v16195_v4 }
 0x592   :  { %15163 = vmatpush3.bf16.msra.mxu1 %v16191_v5 }
 0x593   :  { %15164 = vmatprep.subr.bf16.mxu1 %v16192_v42 }
 0x594   :  { %14955 = vmatpush3.bf16.msra.mxu0 %v16195_v4 }
 0x595   :  { %15180 = vmatprep.subr.bf16.mxu0 %v16221_v19 }
 0x596   :  { %15165 = vmatpush3.bf16.msra.mxu1 %v16192_v42 }
 0x597   :  { %15166 = vmatprep.subr.bf16.mxu1 %v16193_v31  ;;  %14957 = vmatmul.mubr.bf16.vlgmr.msra.gmra.mrb[56].mxu0 %v21213_v28  ;;  %v11382_v28 = vrot.slane %v11380_v16, 4 }
 0x598   :  { %14960 = vmatprep.mubr.bf16.mxu0 %v20739_v6  ;;  %v11383_v6 = vrot.slane %v20928_v55, 5  ;;  %15181 = vmatpush3.bf16.msra.mxu0 %v15932_v26 }
 0x599   :  { %15182 = vmatprep.subr.bf16.mxu0 %v16221_v19 }
 0x59a   :  { %15167 = vmatpush3.bf16.msra.mxu1 %v16193_v31  ;;  %v11384_v58 = vsel %vm17178_vm14, %v11382_v28, %v11383_v6 }
 0x59b   :  { %15168 = vmatprep.subr.bf16.mxu1 %v16194_v21  ;;  %v12217_v52 = vcombine.low %v11381_v60, %v11384_v58 }
 0x59e   :  { %15169 = vmatpush3.bf16.msra.mxu1 %v16194_v21 }
 0x59f   :  { %15170 = vmatprep.subr.bf16.mxu1 %v16195_v4  ;;  %14961 = vmatmul.mubr.bf16.gmra.mrb[60].mxu0 %v12193_v9 }
 0x5a0   :  { %15196 = vmatprep.mubr.msk.bf16.mxu0 %vm16222_vm15, %v16221_v19 }
 0x5a2   :  { %15171 = vmatpush3.bf16.msra.mxu1 %v16195_v4 }
 0x5a5   :  { %15173 = vmatmul.mubr.bf16.vlgmr.msra.gmra.mrb[56].mxu1 %v21216_v18  ;;  %v15933_v18 = vld [vmem:[%s21056_s7 + $0x8] sm:$0xff]  }
 0x5a6   :  { %15176 = vmatprep.mubr.bf16.mxu1 %v20766_v54  ;;  %15183 = vmatpush3.bf16.msra.mxu0 %v15933_v18  ;;  %v15935_v54 = vld [vmem:[%s21056_s7 + $0x18] sm:$0xff]  }
 0x5a7   :  { %15184 = vmatprep.subr.bf16.mxu0 %v16221_v19 }
 0x5aa   :  { %15185 = vmatpush3.bf16.msra.mxu0 %v15934_v22 }
 0x5ab   :  { %15186 = vmatprep.subr.bf16.mxu0 %v16221_v19 }
 0x5ad   :  { %15177 = vmatmul.mubr.bf16.gmra.mrb[60].mxu1 %v12217_v52 }
 0x5ae   :  { %15187 = vmatpush3.bf16.msra.mxu0 %v15935_v54 }
 0x5af   :  { %15188 = vmatprep.subr.bf16.mxu0 %v16221_v19 }
 0x5b2   :  { %15189 = vmatpush3.bf16.msra.mxu0 %v15936_v38 }
 0x5b3   :  { %15190 = vmatprep.subr.bf16.mxu0 %v16221_v19 }
 0x5b6   :  { %15191 = vmatpush3.bf16.msra.mxu0 %v15937_v39 }
 0x5b7   :  { %15192 = vmatprep.subr.bf16.mxu0 %v16221_v19 }
 0x5ba   :  { %15193 = vmatpush3.bf16.msra.mxu0 %v15938_v11 }
 0x5bb   :  { %15194 = vmatprep.subr.bf16.mxu0 %v16221_v19 }
 0x5be   :  { %15195 = vmatpush3.bf16.msra.mxu0 %v15939_v1 }
 0x66a   :  { %v14958_v53 = vpop.f32.mrb[56].mxu0 }
 0x66b   :  { %v10437_v32 = vpop.f32.mrb[57].mxu0  ;;  %v10478_v44 = vmul.f32 %v20771_v0, %v14958_v53 }
 0x66c   :  { %v10476_v50 = vmul.f32 %v20771_v0, %v10437_v32  ;;  %v14959_v61 = vpop.f32.mrb[58].mxu0 }
 0x66d   :  { %v10440_v33 = vpop.f32.mrb[59].mxu0  ;;  %v10479_v30 = vmul.f32 %v20771_v0, %v14959_v61  ;;  %v10486_v59 = vadd.f32 %v20787_v62, %v10478_v44 }
 0x66e   :  { %v10484_v37 = vadd.f32 %v20787_v62, %v10476_v50  ;;  %v10477_v46 = vmul.f32 %v20771_v0, %v10440_v33 }
 0x66f   :  { %v10487_v63 = vadd.f32 %v20787_v62, %v10479_v30  ;;  %v10494_v10 = vmax.f32 %v10486_v59, 0.0 }
 0x670   :  { %v10485_v25 = vadd.f32 %v20787_v62, %v10477_v46  ;;  %v10492_v7 = vmax.f32 %v10484_v37, 0.0 }
 0x671   :  { %v10495_v47 = vmax.f32 %v10487_v63, 0.0 }
 0x672   :  { %v10493_v41 = vmax.f32 %v10485_v25, 0.0  ;;  %v14962_v24 = vpop.f32.mrb[60].mxu0 }
 0x673   :  { %v10453_v17 = vpop.f32.mrb[61].mxu0  ;;  %v10482_v55 = vmul.f32 %v20771_v0, %v14962_v24 }
 0x674   :  { %v10500_v48 = vadd.f32 %v10493_v41, %v10492_v7  ;;  %v10480_v35 = vmul.f32 %v20771_v0, %v10453_v17  ;;  %v14963_v40 = vpop.f32.mrb[62].mxu0 }
 0x675   :  { %v10483_v36 = vmul.f32 %v20771_v0, %v14963_v40  ;;  %v10456_v12 = vpop.f32.mrb[63].mxu0  ;;  %v10490_v49 = vadd.f32 %v20787_v62, %v10482_v55 }
 0x676   :  { %v10501_v5 = vadd.f32 %v10500_v48, %v10494_v10  ;;  %v10488_v27 = vadd.f32 %v20787_v62, %v10480_v35  ;;  %v10481_v3 = vmul.f32 %v20771_v0, %v10456_v12 }
 0x677   :  { %v10491_v21 = vadd.f32 %v20787_v62, %v10483_v36  ;;  %v10498_v57 = vmax.f32 %v10490_v49, 0.0 }
 0x678   :  { %v15174_v42 = vpop.f32.mrb[56].mxu1  ;;  %v10496_v20 = vmax.f32 %v10488_v27, 0.0  ;;  %v10502_v8 = vadd.f32 %v10501_v5, %v10495_v47  ;;  %v10489_v45 = vadd.f32 %v20787_v62, %v10481_v3 }
 0x679   :  { %v11423_v31 = vpop.f32.mrb[57].mxu1  ;;  %v11464_v4 = vmul.f32 %v20771_v0, %v15174_v42  ;;  %v10499_v28 = vmax.f32 %v10491_v21, 0.0  ;;  %v12218_v21 = vld [vmem:[%s21057_s8] ss:$0 sm:$0xff] }
 0x67a   :  { %v10503_v51 = vadd.f32 %v10502_v8, %v10496_v20  ;;  %v11462_v56 = vmul.f32 %v20771_v0, %v11423_v31  ;;  %v15175_v43 = vpop.f32.mrb[58].mxu1  ;;  %v10497_v2 = vmax.f32 %v10489_v45, 0.0 }
 0x67b   :  { %v11465_v23 = vmul.f32 %v20771_v0, %v15175_v43  ;;  %v11426_v15 = vpop.f32.mrb[59].mxu1  ;;  %v11472_v14 = vadd.f32 %v20787_v62, %v11464_v4 }
 0x67c   :  { %v11470_v9 = vadd.f32 %v20787_v62, %v11462_v56  ;;  %v10504_v16 = vadd.f32 %v10503_v51, %v10497_v2  ;;  %v11463_v29 = vmul.f32 %v20771_v0, %v11426_v15 }
 0x67d   :  { %v11473_v58 = vadd.f32 %v20787_v62, %v11465_v23  ;;  %v11480_v38 = vmax.f32 %v11472_v14, 0.0 }
 0x67e   :  { %v10505_v6 = vadd.f32 %v10504_v16, %v10498_v57  ;;  %v11471_v60 = vadd.f32 %v20787_v62, %v11463_v29  ;;  %v11478_v52 = vmax.f32 %v11470_v9, 0.0 }
 0x67f   :  { %v11481_v32 = vmax.f32 %v11473_v58, 0.0 }
 0x680   :  { %v10506_v26 = vadd.f32 %v10505_v6, %v10499_v28  ;;  %v11479_v19 = vmax.f32 %v11471_v60, 0.0  ;;  %v15178_v18 = vpop.f32.mrb[60].mxu1 }
 0x681   :  { %v11468_v22 = vmul.f32 %v20771_v0, %v15178_v18  ;;  %v11439_v54 = vpop.f32.mrb[61].mxu1 }
 0x682   :  { %v10507_v39 = vrot.slane %v10506_v26, 4  ;;  %v11486_v11 = vadd.f32 %v11479_v19, %v11478_v52  ;;  %v11466_v1 = vmul.f32 %v20771_v0, %v11439_v54  ;;  %v15179_v53 = vpop.f32.mrb[62].mxu1 }
 0x683   :  { %v11469_v44 = vmul.f32 %v20771_v0, %v15179_v53  ;;  %v11442_v50 = vpop.f32.mrb[63].mxu1  ;;  %v11476_v46 = vadd.f32 %v20787_v62, %v11468_v22 }
 0x684   :  { %v10508_v61 = vadd.f32 %v10507_v39, %v10506_v26  ;;  %v11487_v33 = vadd.f32 %v11486_v11, %v11480_v38  ;;  %v11474_v37 = vadd.f32 %v20787_v62, %v11466_v1  ;;  %v11467_v30 = vmul.f32 %v20771_v0, %v11442_v50 }
 0x685   :  { %v11477_v17 = vadd.f32 %v20787_v62, %v11469_v44  ;;  %v11484_v55 = vmax.f32 %v11476_v46, 0.0 }
 0x686   :  { %v10509_v59 = vrot.slane %v10508_v61, 2  ;;  %v11482_v25 = vmax.f32 %v11474_v37, 0.0  ;;  %v11488_v7 = vadd.f32 %v11487_v33, %v11481_v32  ;;  %v11475_v63 = vadd.f32 %v20787_v62, %v11467_v30 }
 0x687   :  { %v11485_v36 = vmax.f32 %v11477_v17, 0.0 }
 0x688   :  { %v10510_v41 = vadd.f32 %v10509_v59, %v10508_v61  ;;  %v11489_v24 = vadd.f32 %v11488_v7, %v11482_v25  ;;  %v11483_v10 = vmax.f32 %v11475_v63, 0.0 }
 0x68a   :  { %v10511_v48 = vrot.slane %v10510_v41, 1  ;;  %v11490_v35 = vadd.f32 %v11489_v24, %v11483_v10 }
 0x68c   :  { %v10512_v40 = vadd.f32 %v10511_v48, %v10510_v41  ;;  %v11491_v12 = vadd.f32 %v11490_v35, %v11484_v55 }
 0x68e   :  { %v10513_v0 = vadd.f32 %v10512_v40, %v20930_v34  ;;  %v11492_v47 = vadd.f32 %v11491_v12, %v11485_v36 }
 0x690   :  { %v11493_v5 = vrot.slane %v11492_v47, 4 }
 0x692   :  { %v11494_v27 = vadd.f32 %v11493_v5, %v11492_v47 }
 0x694   :  { %v11495_v3 = vrot.slane %v11494_v27, 2 }
 0x696   :  { %v11496_v49 = vadd.f32 %v11495_v3, %v11494_v27 }
 0x698   :  { %v11497_v42 = vrot.slane %v11496_v49, 1 }
 0x69a   :  { %v11498_v20 = vadd.f32 %v11497_v42, %v11496_v49 }
 0x69c   :  { %v11499_v8 = vadd.f32 %v11498_v20, %v10513_v0 }
 0x69e   :  { %v11501_v62 = vsel %vm60_vm0, %v20240_v13, %v11499_v8 }
 0x69f   :  { %v11502_v45 = vmul.f32 0.00390625, %v11501_v62 }
 0x6a1   :  { %v11503_v31 = vpack.c.bf16 %v11502_v45, %v11502_v45 }
 0x6a3   :  { %15197 = vmatmul.mubr.bf16.vlgmr.msra.gmra.mrb[64].mxu0 %v11503_v31 }
 0x776   :  { %v11609_v34 = vpop.f32.mrb[64].mxu0 }
 0x777   :  { %v11610_v4 = vadd.f32 %v12218_v21, %v11609_v34  ;;  %v15198_v51 = vpop.f32.mrb[65].mxu0 }
 0x778   :  { %v11612_v56 = vpop.f32.mrb[66].mxu0 }
 0x779   :  { %11615 = vst [vmem:[#allocation3] sm:$0x3] %v11610_v4  ;;  %v15199_v43 = vpop.f32.mrb[67].mxu0 }
 0x77a   :  { %16207 = shalt.err (!%p16204_p4)
}
 0x77b   :  { %s16208_s8 = scalar_lea.hbm %s21058_s9, 32 }
 0x77c   :  { %p16209_p5 = scmp.ne.s32.totalorder %s21058_s9, %s16208_s8  ;;  %p16212_p6 = scmp.lt.u32.totalorder %s16208_s8, %s21058_s9 }
 0x77e   :  { %p16214_p7 = pnand %p16212_p6, %p16209_p5 }
 0x780   :  { %16217 = shalt.err (!%p16214_p7)
}
 0x781   :  { %11625 = dma.vmem_to_hbm [thread:$0]  %s11623_s3, 32, %s21058_s9, [#allocation4]  }
 0x782   :  { %16218 = dma.done.wait [#allocation4], 32  }
 0x783   :  { %16219 = vsyncadd [#allocation4], 4294967264 }
 0x784   :  { %11629 = vsyncpa [#allocation4], 1 }

</bundles_post_ra>
